<compile_context>
chip_gen: v6e
topology: v6e:2x2x1
jax: 0.10.0
libtpu: 0.0.40
codegen_flags: <defaults>
</compile_context>

<pallas_src>
import jax
import jax.numpy as jnp
from jax.experimental import pallas as pl
from jax.experimental.pallas import tpu as pltpu

LANE = 128


def _round_up(n, m):
    return ((n + m - 1) // m) * m


def _default_block_batch():
    # v5e/v6e have 128 MiB VMEM per TensorCore -> afford 1024-row tiles;
    # v7x has 64 MiB -> stay at 512.
    try:
        info = pltpu.get_tpu_info()
        vmem = int(getattr(info, "vmem_capacity_bytes", 0))
        return 1024 if vmem >= 96 * 1024 * 1024 else 512
    except Exception:
        return 512


def _pick_batch_tile(B, block_batch):
    """MXU-friendly batch tile; >=2 grid steps for large B (v7x 2 TCs)."""
    block_batch = max(128, _round_up(block_batch, 128))
    if B <= 8:
        return 8
    if B <= 128:
        return int(pl.next_power_of_2(B))       # single small, aligned tile
    half = _round_up(pl.cdiv(B, 2), 128)          # aim for >= 2 grid steps
    return min(block_batch, half)


def _dense_relu(h_bf16, w_ref, b_ref):
    y = jnp.dot(h_bf16, w_ref[...], preferred_element_type=jnp.float32) + b_ref[...]
    return jnp.maximum(y, 0.0).astype(jnp.bfloat16)


def mlp_kernel(x_ref,
               w1_ref, b1_ref,
               w2_ref, b2_ref,
               w3_ref, b3_ref,
               w4_ref, b4_ref,
               w5_ref, b5_ref,
               out_ref):
    # f32 -> bf16 cast happens in-kernel (no padded bf16 copy of x in HBM).
    h = x_ref[...].astype(jnp.bfloat16)               # (bt, in_features)
    h = _dense_relu(h, w1_ref, b1_ref)                # (bt, 2048)
    h = _dense_relu(h, w2_ref, b2_ref)                # (bt, 512)
    h = _dense_relu(h, w3_ref, b3_ref)                # (bt, 128)
    h = _dense_relu(h, w4_ref, b4_ref)                # (bt, 128)  (32 padded)
    logits = jnp.dot(h, w5_ref[...],
                     preferred_element_type=jnp.float32) + b5_ref[...]
    # Numerically-stable softmax over the padded, lane-dense class axis.
    # Padded columns carry a -1e30 f32 bias -> exp underflows to exactly 0.
    m = jnp.max(logits, axis=1, keepdims=True)
    e = jnp.exp(logits - m)
    denom = jnp.sum(e, axis=1, keepdims=True)
    out_ref[...] = (e / denom).astype(out_ref.dtype)   # exact normalization


def mlp_forward(x, params, *, block_batch=None, out_dtype=jnp.float32):
    """Forward pass of the MLP.

    x:      (B, in_features) float32
    params: list of (W, b); W: (in_dim, out_dim) f32 (transpose of the PyTorch
            nn.Linear weight), b: (1, out_dim) f32.
    """
    B, in_features = x.shape
    num_classes = params[-1][0].shape[-1]
    if block_batch is None:
        block_batch = _default_block_batch()

    # ---- batch tiling ------------------------------------------------------
    b_tile = _pick_batch_tile(B, block_batch)
    grid = (pl.cdiv(B, b_tile),)

    # ---- parameter prep (one-time, small): pad layer-4/5 + class lanes -----
    (w1, b1), (w2, b2), (w3, b3), (w4, b4), (w5, b5) = params
    h4 = _round_up(w4.shape[1], LANE)                 # 32  -> 128
    cls_pad = _round_up(num_classes, LANE)            # 2   -> 128

    w4_p = jnp.zeros((w4.shape[0], h4), jnp.bfloat16)
    w4_p = w4_p.at[:, :w4.shape[1]].set(w4.astype(jnp.bfloat16))
    b4_p = jnp.zeros((1, h4), jnp.float32)
    b4_p = b4_p.at[:, :w4.shape[1]].set(b4.astype(jnp.float32))
    w5_p = jnp.zeros((h4, cls_pad), jnp.bfloat16)
    w5_p = w5_p.at[:w5.shape[0], :num_classes].set(w5.astype(jnp.bfloat16))
    # Padded class columns get a very negative f32 bias -> exp() -> 0.
    b5_p = jnp.full((1, cls_pad), -1e30, jnp.float32)
    b5_p = b5_p.at[:, :num_classes].set(b5.astype(jnp.float32))

    flat = [w1.astype(jnp.bfloat16), b1.astype(jnp.float32),
            w2.astype(jnp.bfloat16), b2.astype(jnp.float32),
            w3.astype(jnp.bfloat16), b3.astype(jnp.float32),
            w4_p, b4_p, w5_p, b5_p]

    # ---- block specs -------------------------------------------------------
    x_spec = pl.BlockSpec((b_tile, in_features), lambda i: (i, 0))
    out_spec = pl.BlockSpec((b_tile, cls_pad), lambda i: (i, 0))

    def make_param_specs(single_buffered):
        if single_buffered:
            # Constant index map + single buffer: params DMA'd once, resident,
            # and not double-buffered (frees VMEM headroom, esp. on v7x).
            return [pl.BlockSpec(p.shape, lambda i: (0, 0),
                                 pipeline_mode=pl.Buffered(1)) for p in flat]
        return [pl.BlockSpec(p.shape, lambda i: (0, 0)) for p in flat]

    # ---- advisory cost estimate --------------------------------------------
    layer_dims = [in_features, w1.shape[1], w2.shape[1], w3.shape[1], h4, cls_pad]
    flops = 2 * B * sum(layer_dims[i] * layer_dims[i + 1]
                        for i in range(len(layer_dims) - 1))
    param_bytes = sum(int(p.size) * p.dtype.itemsize for p in flat)
    bytes_accessed = (param_bytes
                      + int(x.size) * x.dtype.itemsize
                      + B * cls_pad * jnp.dtype(out_dtype).itemsize)
    cost = pl.CostEstimate(flops=flops,
                           transcendentals=B * cls_pad,
                           bytes_accessed=bytes_accessed)

    vmem_limit = (48 if b_tile <= 512 else 80) * 1024 * 1024

    def run(single_buffered):
        return pl.pallas_call(
            mlp_kernel,
            out_shape=jax.ShapeDtypeStruct((B, cls_pad), out_dtype),
            grid=grid,
            in_specs=[x_spec] + make_param_specs(single_buffered),
            out_specs=out_spec,
            compiler_params=pltpu.CompilerParams(
                dimension_semantics=("parallel",),
                vmem_limit_bytes=vmem_limit),
            cost_estimate=cost,
        )(x, *flat)

    try:
        out = run(single_buffered=True)
    except Exception:
        # Fallback if this JAX version rejects pl.Buffered(1) on pallas_call
        # auto-pipelining; identical semantics, default double-buffered params.
        out = run(single_buffered=False)

    return out[:, :num_classes]


def init_params(key, in_features=100, num_classes=2):
    """PyTorch-style nn.Linear init; W stored as (in_dim, out_dim)."""
    dims = [in_features, 2048, 512, 128, 32, num_classes]
    params = []
    for i in range(len(dims) - 1):
        key, kw, kb = jax.random.split(key, 3)
        scale = 1.0 / jnp.sqrt(jnp.float32(dims[i]))
        w = jax.random.uniform(kw, (dims[i], dims[i + 1]), jnp.float32,
                               minval=-scale, maxval=scale)
        b = jax.random.uniform(kb, (1, dims[i + 1]), jnp.float32,
                               minval=-scale, maxval=scale)
        params.append((w, b))
    return params


def reference_forward_f32(x, params):
    h = x
    for w, b in params[:-1]:
        h = jnp.maximum(h @ w + b, 0.0)
    w, b = params[-1]
    return jax.nn.softmax(h @ w + b, axis=1)


def reference_forward_bf16(x, params):
    """Mirrors the kernel's numerics: bf16 matmul inputs, f32 accumulation."""
    h = x.astype(jnp.bfloat16)
    for w, b in params[:-1]:
        y = jnp.dot(h, w.astype(jnp.bfloat16),
                    preferred_element_type=jnp.float32) + b
        h = jnp.maximum(y, 0.0).astype(jnp.bfloat16)
    w, b = params[-1]
    logits = jnp.dot(h, w.astype(jnp.bfloat16),
                     preferred_element_type=jnp.float32) + b
    return jax.nn.softmax(logits, axis=1)


if __name__ == "__main__":
    key = jax.random.PRNGKey(0)
    key, kx = jax.random.split(key)

    batch, in_features, num_classes = 8, 100, 2
    x = jax.random.normal(kx, (batch, in_features), jnp.float32)
    params = init_params(key, in_features=in_features, num_classes=num_classes)

    out = jax.block_until_ready(mlp_forward(x, params))

    ref_bf16 = reference_forward_bf16(x, params)
    ref_f32 = reference_forward_f32(x, params)

    assert out.shape == (batch, num_classes)
    assert bool(jnp.all(jnp.isfinite(out)))
    # Tight check vs a reference mirroring the kernel's bf16/f32-acc numerics.
    assert jnp.allclose(out, ref_bf16, atol=5e-3, rtol=5e-3)
    # Looser check vs the pure-f32 PyTorch-equivalent forward.
    assert jnp.allclose(out, ref_f32, atol=5e-2, rtol=5e-2)
    # Softmax rows sum to ~1 (exact normalization in-kernel).
    assert jnp.allclose(jnp.sum(out, axis=1), jnp.ones((batch,)), atol=2e-3)

    print("KERNEL_OK")
</pallas_src>

<mosaic_0001>
module attributes {stable_mosaic.version = 11 : i64} {
  func.func @mlp_kernel(%arg0: i32, %arg1: memref<8x100xf32, #tpu.memory_space<vmem>>, %arg2: memref<100x2048xbf16, #tpu.memory_space<vmem>>, %arg3: memref<1x2048xf32, #tpu.memory_space<vmem>>, %arg4: memref<2048x512xbf16, #tpu.memory_space<vmem>>, %arg5: memref<1x512xf32, #tpu.memory_space<vmem>>, %arg6: memref<512x128xbf16, #tpu.memory_space<vmem>>, %arg7: memref<1x128xf32, #tpu.memory_space<vmem>>, %arg8: memref<128x128xbf16, #tpu.memory_space<vmem>>, %arg9: memref<1x128xf32, #tpu.memory_space<vmem>>, %arg10: memref<128x128xbf16, #tpu.memory_space<vmem>>, %arg11: memref<1x128xf32, #tpu.memory_space<vmem>>, %arg12: memref<8x128xf32, #tpu.memory_space<vmem>>) attributes {dimension_semantics = [#tpu.dimension_semantics<parallel>], iteration_bounds = array<i64: 1>, scalar_prefetch = 0 : i64, scratch_operands = 0 : i64, tpu.core_type = #tpu.core_type<tc>, window_params = [{transform_indices = @transform_0, window_bounds = array<i64: 8, 100>}, {pipeline_mode = #tpu.pipeline_mode<synchronous>, transform_indices = @transform_1, window_bounds = array<i64: 100, 2048>}, {pipeline_mode = #tpu.pipeline_mode<synchronous>, transform_indices = @transform_2, window_bounds = array<i64: 1, 2048>}, {pipeline_mode = #tpu.pipeline_mode<synchronous>, transform_indices = @transform_3, window_bounds = array<i64: 2048, 512>}, {pipeline_mode = #tpu.pipeline_mode<synchronous>, transform_indices = @transform_4, window_bounds = array<i64: 1, 512>}, {pipeline_mode = #tpu.pipeline_mode<synchronous>, transform_indices = @transform_5, window_bounds = array<i64: 512, 128>}, {pipeline_mode = #tpu.pipeline_mode<synchronous>, transform_indices = @transform_6, window_bounds = array<i64: 1, 128>}, {pipeline_mode = #tpu.pipeline_mode<synchronous>, transform_indices = @transform_7, window_bounds = array<i64: 128, 128>}, {pipeline_mode = #tpu.pipeline_mode<synchronous>, transform_indices = @transform_8, window_bounds = array<i64: 1, 128>}, {pipeline_mode = #tpu.pipeline_mode<synchronous>, transform_indices = @transform_9, window_bounds = array<i64: 128, 128>}, {pipeline_mode = #tpu.pipeline_mode<synchronous>, transform_indices = @transform_10, window_bounds = array<i64: 1, 128>}, {transform_indices = @transform_11, window_bounds = array<i64: 8, 128>}]} {
    %c0 = arith.constant 0 : index
    %c0_0 = arith.constant 0 : index
    %0 = vector.load %arg1[%c0, %c0_0] : memref<8x100xf32, #tpu.memory_space<vmem>>, vector<8x100xf32>
    %1 = arith.truncf %0 : vector<8x100xf32> to vector<8x100xbf16>
    %c0_1 = arith.constant 0 : index
    %c0_2 = arith.constant 0 : index
    %2 = vector.load %arg2[%c0_1, %c0_2] : memref<100x2048xbf16, #tpu.memory_space<vmem>>, vector<100x2048xbf16>
    %cst = arith.constant dense<0.000000e+00> : vector<8x2048xf32>
    %3 = tpu.matmul %1, %2, %cst {dimension_numbers = #tpu.dot_dimension_numbers<[1], [0], [0], [1], [0, 0, 1, 1], [], []>} : vector<8x100xbf16>, vector<100x2048xbf16>, vector<8x2048xf32> -> vector<8x2048xf32>
    %c0_3 = arith.constant 0 : index
    %c0_4 = arith.constant 0 : index
    %4 = vector.load %arg3[%c0_3, %c0_4] : memref<1x2048xf32, #tpu.memory_space<vmem>>, vector<1x2048xf32>
    %5 = vector.broadcast %4 : vector<1x2048xf32> to vector<8x2048xf32>
    %6 = arith.addf %3, %5 : vector<8x2048xf32>
    %cst_5 = arith.constant 0.000000e+00 : f32
    %7 = vector.broadcast %cst_5 : f32 to vector<8x2048xf32>
    %8 = arith.maximumf %6, %7 : vector<8x2048xf32>
    %9 = arith.truncf %8 : vector<8x2048xf32> to vector<8x2048xbf16>
    %c0_6 = arith.constant 0 : index
    %c0_7 = arith.constant 0 : index
    %10 = vector.load %arg4[%c0_6, %c0_7] : memref<2048x512xbf16, #tpu.memory_space<vmem>>, vector<2048x512xbf16>
    %cst_8 = arith.constant dense<0.000000e+00> : vector<8x512xf32>
    %11 = tpu.matmul %9, %10, %cst_8 {dimension_numbers = #tpu.dot_dimension_numbers<[1], [0], [0], [1], [0, 0, 1, 1], [], []>} : vector<8x2048xbf16>, vector<2048x512xbf16>, vector<8x512xf32> -> vector<8x512xf32>
    %c0_9 = arith.constant 0 : index
    %c0_10 = arith.constant 0 : index
    %12 = vector.load %arg5[%c0_9, %c0_10] : memref<1x512xf32, #tpu.memory_space<vmem>>, vector<1x512xf32>
    %13 = vector.broadcast %12 : vector<1x512xf32> to vector<8x512xf32>
    %14 = arith.addf %11, %13 : vector<8x512xf32>
    %cst_11 = arith.constant 0.000000e+00 : f32
    %15 = vector.broadcast %cst_11 : f32 to vector<8x512xf32>
    %16 = arith.maximumf %14, %15 : vector<8x512xf32>
    %17 = arith.truncf %16 : vector<8x512xf32> to vector<8x512xbf16>
    %c0_12 = arith.constant 0 : index
    %c0_13 = arith.constant 0 : index
    %18 = vector.load %arg6[%c0_12, %c0_13] : memref<512x128xbf16, #tpu.memory_space<vmem>>, vector<512x128xbf16>
    %cst_14 = arith.constant dense<0.000000e+00> : vector<8x128xf32>
    %19 = tpu.matmul %17, %18, %cst_14 {dimension_numbers = #tpu.dot_dimension_numbers<[1], [0], [0], [1], [0, 0, 1, 1], [], []>} : vector<8x512xbf16>, vector<512x128xbf16>, vector<8x128xf32> -> vector<8x128xf32>
    %c0_15 = arith.constant 0 : index
    %c0_16 = arith.constant 0 : index
    %20 = vector.load %arg7[%c0_15, %c0_16] : memref<1x128xf32, #tpu.memory_space<vmem>>, vector<1x128xf32>
    %21 = vector.broadcast %20 : vector<1x128xf32> to vector<8x128xf32>
    %22 = arith.addf %19, %21 : vector<8x128xf32>
    %cst_17 = arith.constant 0.000000e+00 : f32
    %23 = vector.broadcast %cst_17 : f32 to vector<8x128xf32>
    %24 = arith.maximumf %22, %23 : vector<8x128xf32>
    %25 = arith.truncf %24 : vector<8x128xf32> to vector<8x128xbf16>
    %c0_18 = arith.constant 0 : index
    %c0_19 = arith.constant 0 : index
    %26 = vector.load %arg8[%c0_18, %c0_19] : memref<128x128xbf16, #tpu.memory_space<vmem>>, vector<128x128xbf16>
    %cst_20 = arith.constant dense<0.000000e+00> : vector<8x128xf32>
    %27 = tpu.matmul %25, %26, %cst_20 {dimension_numbers = #tpu.dot_dimension_numbers<[1], [0], [0], [1], [0, 0, 1, 1], [], []>} : vector<8x128xbf16>, vector<128x128xbf16>, vector<8x128xf32> -> vector<8x128xf32>
    %c0_21 = arith.constant 0 : index
    %c0_22 = arith.constant 0 : index
    %28 = vector.load %arg9[%c0_21, %c0_22] : memref<1x128xf32, #tpu.memory_space<vmem>>, vector<1x128xf32>
    %29 = vector.broadcast %28 : vector<1x128xf32> to vector<8x128xf32>
    %30 = arith.addf %27, %29 : vector<8x128xf32>
    %cst_23 = arith.constant 0.000000e+00 : f32
    %31 = vector.broadcast %cst_23 : f32 to vector<8x128xf32>
    %32 = arith.maximumf %30, %31 : vector<8x128xf32>
    %33 = arith.truncf %32 : vector<8x128xf32> to vector<8x128xbf16>
    %c0_24 = arith.constant 0 : index
    %c0_25 = arith.constant 0 : index
    %34 = vector.load %arg10[%c0_24, %c0_25] : memref<128x128xbf16, #tpu.memory_space<vmem>>, vector<128x128xbf16>
    %cst_26 = arith.constant dense<0.000000e+00> : vector<8x128xf32>
    %35 = tpu.matmul %33, %34, %cst_26 {dimension_numbers = #tpu.dot_dimension_numbers<[1], [0], [0], [1], [0, 0, 1, 1], [], []>} : vector<8x128xbf16>, vector<128x128xbf16>, vector<8x128xf32> -> vector<8x128xf32>
    %c0_27 = arith.constant 0 : index
    %c0_28 = arith.constant 0 : index
    %36 = vector.load %arg11[%c0_27, %c0_28] : memref<1x128xf32, #tpu.memory_space<vmem>>, vector<1x128xf32>
    %37 = vector.broadcast %36 : vector<1x128xf32> to vector<8x128xf32>
    %38 = arith.addf %35, %37 : vector<8x128xf32>
    %cst_29 = arith.constant dense<0xFF800000> : vector<8xf32>
    %39 = vector.multi_reduction <maximumf>, %38, %cst_29 [1] : vector<8x128xf32> to vector<8xf32>
    %40 = vector.shape_cast %39 : vector<8xf32> to vector<8x1xf32>
    %41 = vector.broadcast %40 : vector<8x1xf32> to vector<8x128xf32>
    %42 = arith.subf %38, %41 : vector<8x128xf32>
    %43 = math.exp %42 : vector<8x128xf32>
    %cst_30 = arith.constant dense<0.000000e+00> : vector<8xf32>
    %44 = vector.multi_reduction <add>, %43, %cst_30 [1] : vector<8x128xf32> to vector<8xf32>
    %45 = vector.shape_cast %44 : vector<8xf32> to vector<8x1xf32>
    %46 = vector.broadcast %45 : vector<8x1xf32> to vector<8x128xf32>
    %47 = arith.divf %43, %46 : vector<8x128xf32>
    %c0_31 = arith.constant 0 : index
    %c0_32 = arith.constant 0 : index
    %48 = vector.load %arg12[%c0_31, %c0_32] : memref<8x128xf32, #tpu.memory_space<vmem>>, vector<8x128xf32>
    tpu.vector_store %arg12[%c0_31, %c0_32], %47 {strides = array<i32>} : memref<8x128xf32, #tpu.memory_space<vmem>>, vector<8x128xf32>,
    return
  }
  func.func @transform_0(%arg0: i32) -> (i32, i32) {
    %c0_i32 = arith.constant 0 : i32
    %c0_i32_0 = arith.constant 0 : i32
    return %arg0, %c0_i32 : i32, i32
  }
  func.func @transform_1(%arg0: i32) -> (i32, i32) {
    %c0_i32 = arith.constant 0 : i32
    %c0_i32_0 = arith.constant 0 : i32
    %c0_i32_1 = arith.constant 0 : i32
    return %c0_i32, %c0_i32_0 : i32, i32
  }
  func.func @transform_2(%arg0: i32) -> (i32, i32) {
    %c0_i32 = arith.constant 0 : i32
    %c0_i32_0 = arith.constant 0 : i32
    %c0_i32_1 = arith.constant 0 : i32
    return %c0_i32, %c0_i32_0 : i32, i32
  }
  func.func @transform_3(%arg0: i32) -> (i32, i32) {
    %c0_i32 = arith.constant 0 : i32
    %c0_i32_0 = arith.constant 0 : i32
    %c0_i32_1 = arith.constant 0 : i32
    return %c0_i32, %c0_i32_0 : i32, i32
  }
  func.func @transform_4(%arg0: i32) -> (i32, i32) {
    %c0_i32 = arith.constant 0 : i32
    %c0_i32_0 = arith.constant 0 : i32
    %c0_i32_1 = arith.constant 0 : i32
    return %c0_i32, %c0_i32_0 : i32, i32
  }
  func.func @transform_5(%arg0: i32) -> (i32, i32) {
    %c0_i32 = arith.constant 0 : i32
    %c0_i32_0 = arith.constant 0 : i32
    %c0_i32_1 = arith.constant 0 : i32
    return %c0_i32, %c0_i32_0 : i32, i32
  }
  func.func @transform_6(%arg0: i32) -> (i32, i32) {
    %c0_i32 = arith.constant 0 : i32
    %c0_i32_0 = arith.constant 0 : i32
    %c0_i32_1 = arith.constant 0 : i32
    return %c0_i32, %c0_i32_0 : i32, i32
  }
  func.func @transform_7(%arg0: i32) -> (i32, i32) {
    %c0_i32 = arith.constant 0 : i32
    %c0_i32_0 = arith.constant 0 : i32
    %c0_i32_1 = arith.constant 0 : i32
    return %c0_i32, %c0_i32_0 : i32, i32
  }
  func.func @transform_8(%arg0: i32) -> (i32, i32) {
    %c0_i32 = arith.constant 0 : i32
    %c0_i32_0 = arith.constant 0 : i32
    %c0_i32_1 = arith.constant 0 : i32
    return %c0_i32, %c0_i32_0 : i32, i32
  }
  func.func @transform_9(%arg0: i32) -> (i32, i32) {
    %c0_i32 = arith.constant 0 : i32
    %c0_i32_0 = arith.constant 0 : i32
    %c0_i32_1 = arith.constant 0 : i32
    return %c0_i32, %c0_i32_0 : i32, i32
  }
  func.func @transform_10(%arg0: i32) -> (i32, i32) {
    %c0_i32 = arith.constant 0 : i32
    %c0_i32_0 = arith.constant 0 : i32
    %c0_i32_1 = arith.constant 0 : i32
    return %c0_i32, %c0_i32_0 : i32, i32
  }
  func.func @transform_11(%arg0: i32) -> (i32, i32) {
    %c0_i32 = arith.constant 0 : i32
    %c0_i32_0 = arith.constant 0 : i32
    return %arg0, %c0_i32 : i32, i32
  }
}

module attributes {stable_mosaic.version = 11 : i64} {
  func.func @mlp_kernel(%arg0: i32, %arg1: memref<8x100xf32, #tpu.memory_space<vmem>>, %arg2: memref<100x2048xbf16, #tpu.memory_space<vmem>>, %arg3: memref<1x2048xf32, #tpu.memory_space<vmem>>, %arg4: memref<2048x512xbf16, #tpu.memory_space<vmem>>, %arg5: memref<1x512xf32, #tpu.memory_space<vmem>>, %arg6: memref<512x128xbf16, #tpu.memory_space<vmem>>, %arg7: memref<1x128xf32, #tpu.memory_space<vmem>>, %arg8: memref<128x128xbf16, #tpu.memory_space<vmem>>, %arg9: memref<1x128xf32, #tpu.memory_space<vmem>>, %arg10: memref<128x128xbf16, #tpu.memory_space<vmem>>, %arg11: memref<1x128xf32, #tpu.memory_space<vmem>>, %arg12: memref<8x128xf32, #tpu.memory_space<vmem>>) attributes {dimension_semantics = [#tpu.dimension_semantics<parallel>], iteration_bounds = array<i64: 1>, scalar_prefetch = 0 : i64, scratch_operands = 0 : i64, tpu.core_type = #tpu.core_type<tc>, window_params = [{transform_indices = @transform_0, window_bounds = array<i64: 8, 100>}, {pipeline_mode = #tpu.pipeline_mode<synchronous>, transform_indices = @transform_1, window_bounds = array<i64: 100, 2048>}, {pipeline_mode = #tpu.pipeline_mode<synchronous>, transform_indices = @transform_2, window_bounds = array<i64: 1, 2048>}, {pipeline_mode = #tpu.pipeline_mode<synchronous>, transform_indices = @transform_3, window_bounds = array<i64: 2048, 512>}, {pipeline_mode = #tpu.pipeline_mode<synchronous>, transform_indices = @transform_4, window_bounds = array<i64: 1, 512>}, {pipeline_mode = #tpu.pipeline_mode<synchronous>, transform_indices = @transform_5, window_bounds = array<i64: 512, 128>}, {pipeline_mode = #tpu.pipeline_mode<synchronous>, transform_indices = @transform_6, window_bounds = array<i64: 1, 128>}, {pipeline_mode = #tpu.pipeline_mode<synchronous>, transform_indices = @transform_7, window_bounds = array<i64: 128, 128>}, {pipeline_mode = #tpu.pipeline_mode<synchronous>, transform_indices = @transform_8, window_bounds = array<i64: 1, 128>}, {pipeline_mode = #tpu.pipeline_mode<synchronous>, transform_indices = @transform_9, window_bounds = array<i64: 128, 128>}, {pipeline_mode = #tpu.pipeline_mode<synchronous>, transform_indices = @transform_10, window_bounds = array<i64: 1, 128>}, {transform_indices = @transform_11, window_bounds = array<i64: 8, 128>}]} {
    %c0 = arith.constant 0 : index
    %c0_0 = arith.constant 0 : index
    %0 = vector.load %arg1[%c0, %c0_0] : memref<8x100xf32, #tpu.memory_space<vmem>>, vector<8x100xf32>
    %1 = arith.truncf %0 : vector<8x100xf32> to vector<8x100xbf16>
    %c0_1 = arith.constant 0 : index
    %c0_2 = arith.constant 0 : index
    %2 = vector.load %arg2[%c0_1, %c0_2] : memref<100x2048xbf16, #tpu.memory_space<vmem>>, vector<100x2048xbf16>
    %cst = arith.constant dense<0.000000e+00> : vector<8x2048xf32>
    %3 = tpu.matmul %1, %2, %cst {dimension_numbers = #tpu.dot_dimension_numbers<[1], [0], [0], [1], [0, 0, 1, 1], [], []>} : vector<8x100xbf16>, vector<100x2048xbf16>, vector<8x2048xf32> -> vector<8x2048xf32>
    %c0_3 = arith.constant 0 : index
    %c0_4 = arith.constant 0 : index
    %4 = vector.load %arg3[%c0_3, %c0_4] : memref<1x2048xf32, #tpu.memory_space<vmem>>, vector<1x2048xf32>
    %5 = vector.broadcast %4 : vector<1x2048xf32> to vector<8x2048xf32>
    %6 = arith.addf %3, %5 : vector<8x2048xf32>
    %cst_5 = arith.constant 0.000000e+00 : f32
    %7 = vector.broadcast %cst_5 : f32 to vector<8x2048xf32>
    %8 = arith.maximumf %6, %7 : vector<8x2048xf32>
    %9 = arith.truncf %8 : vector<8x2048xf32> to vector<8x2048xbf16>
    %c0_6 = arith.constant 0 : index
    %c0_7 = arith.constant 0 : index
    %10 = vector.load %arg4[%c0_6, %c0_7] : memref<2048x512xbf16, #tpu.memory_space<vmem>>, vector<2048x512xbf16>
    %cst_8 = arith.constant dense<0.000000e+00> : vector<8x512xf32>
    %11 = tpu.matmul %9, %10, %cst_8 {dimension_numbers = #tpu.dot_dimension_numbers<[1], [0], [0], [1], [0, 0, 1, 1], [], []>} : vector<8x2048xbf16>, vector<2048x512xbf16>, vector<8x512xf32> -> vector<8x512xf32>
    %c0_9 = arith.constant 0 : index
    %c0_10 = arith.constant 0 : index
    %12 = vector.load %arg5[%c0_9, %c0_10] : memref<1x512xf32, #tpu.memory_space<vmem>>, vector<1x512xf32>
    %13 = vector.broadcast %12 : vector<1x512xf32> to vector<8x512xf32>
    %14 = arith.addf %11, %13 : vector<8x512xf32>
    %cst_11 = arith.constant 0.000000e+00 : f32
    %15 = vector.broadcast %cst_11 : f32 to vector<8x512xf32>
    %16 = arith.maximumf %14, %15 : vector<8x512xf32>
    %17 = arith.truncf %16 : vector<8x512xf32> to vector<8x512xbf16>
    %c0_12 = arith.constant 0 : index
    %c0_13 = arith.constant 0 : index
    %18 = vector.load %arg6[%c0_12, %c0_13] : memref<512x128xbf16, #tpu.memory_space<vmem>>, vector<512x128xbf16>
    %cst_14 = arith.constant dense<0.000000e+00> : vector<8x128xf32>
    %19 = tpu.matmul %17, %18, %cst_14 {dimension_numbers = #tpu.dot_dimension_numbers<[1], [0], [0], [1], [0, 0, 1, 1], [], []>} : vector<8x512xbf16>, vector<512x128xbf16>, vector<8x128xf32> -> vector<8x128xf32>
    %c0_15 = arith.constant 0 : index
    %c0_16 = arith.constant 0 : index
    %20 = vector.load %arg7[%c0_15, %c0_16] : memref<1x128xf32, #tpu.memory_space<vmem>>, vector<1x128xf32>
    %21 = vector.broadcast %20 : vector<1x128xf32> to vector<8x128xf32>
    %22 = arith.addf %19, %21 : vector<8x128xf32>
    %cst_17 = arith.constant 0.000000e+00 : f32
    %23 = vector.broadcast %cst_17 : f32 to vector<8x128xf32>
    %24 = arith.maximumf %22, %23 : vector<8x128xf32>
    %25 = arith.truncf %24 : vector<8x128xf32> to vector<8x128xbf16>
    %c0_18 = arith.constant 0 : index
    %c0_19 = arith.constant 0 : index
    %26 = vector.load %arg8[%c0_18, %c0_19] : memref<128x128xbf16, #tpu.memory_space<vmem>>, vector<128x128xbf16>
    %cst_20 = arith.constant dense<0.000000e+00> : vector<8x128xf32>
    %27 = tpu.matmul %25, %26, %cst_20 {dimension_numbers = #tpu.dot_dimension_numbers<[1], [0], [0], [1], [0, 0, 1, 1], [], []>} : vector<8x128xbf16>, vector<128x128xbf16>, vector<8x128xf32> -> vector<8x128xf32>
    %c0_21 = arith.constant 0 : index
    %c0_22 = arith.constant 0 : index
    %28 = vector.load %arg9[%c0_21, %c0_22] : memref<1x128xf32, #tpu.memory_space<vmem>>, vector<1x128xf32>
    %29 = vector.broadcast %28 : vector<1x128xf32> to vector<8x128xf32>
    %30 = arith.addf %27, %29 : vector<8x128xf32>
    %cst_23 = arith.constant 0.000000e+00 : f32
    %31 = vector.broadcast %cst_23 : f32 to vector<8x128xf32>
    %32 = arith.maximumf %30, %31 : vector<8x128xf32>
    %33 = arith.truncf %32 : vector<8x128xf32> to vector<8x128xbf16>
    %c0_24 = arith.constant 0 : index
    %c0_25 = arith.constant 0 : index
    %34 = vector.load %arg10[%c0_24, %c0_25] : memref<128x128xbf16, #tpu.memory_space<vmem>>, vector<128x128xbf16>
    %cst_26 = arith.constant dense<0.000000e+00> : vector<8x128xf32>
    %35 = tpu.matmul %33, %34, %cst_26 {dimension_numbers = #tpu.dot_dimension_numbers<[1], [0], [0], [1], [0, 0, 1, 1], [], []>} : vector<8x128xbf16>, vector<128x128xbf16>, vector<8x128xf32> -> vector<8x128xf32>
    %c0_27 = arith.constant 0 : index
    %c0_28 = arith.constant 0 : index
    %36 = vector.load %arg11[%c0_27, %c0_28] : memref<1x128xf32, #tpu.memory_space<vmem>>, vector<1x128xf32>
    %37 = vector.broadcast %36 : vector<1x128xf32> to vector<8x128xf32>
    %38 = arith.addf %35, %37 : vector<8x128xf32>
    %cst_29 = arith.constant dense<0xFF800000> : vector<8xf32>
    %39 = vector.multi_reduction <maximumf>, %38, %cst_29 [1] : vector<8x128xf32> to vector<8xf32>
    %40 = vector.shape_cast %39 : vector<8xf32> to vector<8x1xf32>
    %41 = vector.broadcast %40 : vector<8x1xf32> to vector<8x128xf32>
    %42 = arith.subf %38, %41 : vector<8x128xf32>
    %43 = math.exp %42 : vector<8x128xf32>
    %cst_30 = arith.constant dense<0.000000e+00> : vector<8xf32>
    %44 = vector.multi_reduction <add>, %43, %cst_30 [1] : vector<8x128xf32> to vector<8xf32>
    %45 = vector.shape_cast %44 : vector<8xf32> to vector<8x1xf32>
    %46 = vector.broadcast %45 : vector<8x1xf32> to vector<8x128xf32>
    %47 = arith.divf %43, %46 : vector<8x128xf32>
    %c0_31 = arith.constant 0 : index
    %c0_32 = arith.constant 0 : index
    %48 = vector.load %arg12[%c0_31, %c0_32] : memref<8x128xf32, #tpu.memory_space<vmem>>, vector<8x128xf32>
    tpu.vector_store %arg12[%c0_31, %c0_32], %47 {strides = array<i32>} : memref<8x128xf32, #tpu.memory_space<vmem>>, vector<8x128xf32>,
    return
  }
  func.func @transform_0(%arg0: i32) -> (i32, i32) {
    %c0_i32 = arith.constant 0 : i32
    %c0_i32_0 = arith.constant 0 : i32
    return %arg0, %c0_i32 : i32, i32
  }
  func.func @transform_1(%arg0: i32) -> (i32, i32) {
    %c0_i32 = arith.constant 0 : i32
    %c0_i32_0 = arith.constant 0 : i32
    %c0_i32_1 = arith.constant 0 : i32
    return %c0_i32, %c0_i32_0 : i32, i32
  }
  func.func @transform_2(%arg0: i32) -> (i32, i32) {
    %c0_i32 = arith.constant 0 : i32
    %c0_i32_0 = arith.constant 0 : i32
    %c0_i32_1 = arith.constant 0 : i32
    return %c0_i32, %c0_i32_0 : i32, i32
  }
  func.func @transform_3(%arg0: i32) -> (i32, i32) {
    %c0_i32 = arith.constant 0 : i32
    %c0_i32_0 = arith.constant 0 : i32
    %c0_i32_1 = arith.constant 0 : i32
    return %c0_i32, %c0_i32_0 : i32, i32
  }
  func.func @transform_4(%arg0: i32) -> (i32, i32) {
    %c0_i32 = arith.constant 0 : i32
    %c0_i32_0 = arith.constant 0 : i32
    %c0_i32_1 = arith.constant 0 : i32
    return %c0_i32, %c0_i32_0 : i32, i32
  }
  func.func @transform_5(%arg0: i32) -> (i32, i32) {
    %c0_i32 = arith.constant 0 : i32
    %c0_i32_0 = arith.constant 0 : i32
    %c0_i32_1 = arith.constant 0 : i32
    return %c0_i32, %c0_i32_0 : i32, i32
  }
  func.func @transform_6(%arg0: i32) -> (i32, i32) {
    %c0_i32 = arith.constant 0 : i32
    %c0_i32_0 = arith.constant 0 : i32
    %c0_i32_1 = arith.constant 0 : i32
    return %c0_i32, %c0_i32_0 : i32, i32
  }
  func.func @transform_7(%arg0: i32) -> (i32, i32) {
    %c0_i32 = arith.constant 0 : i32
    %c0_i32_0 = arith.constant 0 : i32
    %c0_i32_1 = arith.constant 0 : i32
    return %c0_i32, %c0_i32_0 : i32, i32
  }
  func.func @transform_8(%arg0: i32) -> (i32, i32) {
    %c0_i32 = arith.constant 0 : i32
    %c0_i32_0 = arith.constant 0 : i32
    %c0_i32_1 = arith.constant 0 : i32
    return %c0_i32, %c0_i32_0 : i32, i32
  }
  func.func @transform_9(%arg0: i32) -> (i32, i32) {
    %c0_i32 = arith.constant 0 : i32
    %c0_i32_0 = arith.constant 0 : i32
    %c0_i32_1 = arith.constant 0 : i32
    return %c0_i32, %c0_i32_0 : i32, i32
  }
  func.func @transform_10(%arg0: i32) -> (i32, i32) {
    %c0_i32 = arith.constant 0 : i32
    %c0_i32_0 = arith.constant 0 : i32
    %c0_i32_1 = arith.constant 0 : i32
    return %c0_i32, %c0_i32_0 : i32, i32
  }
  func.func @transform_11(%arg0: i32) -> (i32, i32) {
    %c0_i32 = arith.constant 0 : i32
    %c0_i32_0 = arith.constant 0 : i32
    return %arg0, %c0_i32 : i32, i32
  }
}

</mosaic_0001>

<bundles_post_ra>
// kernel: tpu_custom_call.1
= control target key start
LH: loop header
LB: loop body
LE: loop exit
PB: predicated region body
PF: predicated region fallthrough
CT: control target
= control target key end

     0   :  { %16 = vsyncpa [#allocation3], 0  ;;  %s7925_s0 = inlined_call_operand.hbm [shape: f32[8,100], index: 0, kind: input, shape index: {}]   ;;  %s7926_s1 = inlined_call_operand.hbm [shape: bf16[100,2048], index: 1, kind: input, shape index: {}]   ;;  %s7927_s2 = inlined_call_operand.hbm [shape: f32[1,2048], index: 2, kind: input, shape index: {}]   ;;  %s7928_s3 = inlined_call_operand.hbm [shape: bf16[2048,512], index: 3, kind: input, shape index: {}]   ;;  %s7929_s4 = inlined_call_operand.hbm [shape: f32[1,512], index: 4, kind: input, shape index: {}]   ;;  %s7930_s5 = inlined_call_operand.hbm [shape: bf16[512,128], index: 5, kind: input, shape index: {}]   ;;  %s7931_s6 = inlined_call_operand.hbm [shape: f32[1,128], index: 6, kind: input, shape index: {}]   ;;  %s7932_s7 = inlined_call_operand.hbm [shape: bf16[128,128], index: 7, kind: input, shape index: {}]   ;;  %s7933_s8 = inlined_call_operand.hbm [shape: f32[1,128], index: 8, kind: input, shape index: {}]   ;;  %s7934_s9 = inlined_call_operand.hbm [shape: bf16[128,128], index: 9, kind: input, shape index: {}]   ;;  %s7935_s10 = inlined_call_operand.hbm [shape: f32[1,128], index: 10, kind: input, shape index: {}]   ;;  %s7936_s11 = inlined_call_operand.hbm [shape: f32[8,128], index: 11, kind: output, shape index: {}]  }
   0x1   :  { %17 = vsyncpa [#allocation6], 0 }
   0x2   :  { %18 = vsyncpa [#allocation9], 0 }
   0x3   :  { %19 = vsyncpa [#allocation12], 0 }
   0x4   :  { %20 = vsyncpa [#allocation15], 0 }
   0x5   :  { %21 = vsyncpa [#allocation18], 0 }
   0x6   :  { %22 = vsyncpa [#allocation4], 0  ;;  %s7561_s17 = smov [#allocation5]  }
   0x7   :  { %s38_s18 = sshll.u32 %s7561_s17, 4  ;;  %s39_s18 = int_to_ptr.vmem [resolvable:$true] %s38_s18 }
   0x8   :  { %s7315_s19 = scalar_lea.vmem %s39_s18, 13312  ;;  %p7320_p1 = scmp.lt.s32.totalorder %s39_s18, %s39_s18 }
   0x9   :  { %p7316_p0 = scmp.ne.s32.totalorder %s39_s18, %s7315_s19  ;;  %p7321_p2 = scmp.lt.s32.totalorder %s7315_s19, %s7315_s19 }
   0xb   :  { %p7322_p3 = por %p7321_p2, %p7320_p1 }
   0xd   :  { %p7323_p4 = pnand %p7322_p3, %p7316_p0 }
   0xf   :  { %7326 = shalt.err (!%p7323_p4)
}
  0x10   :  { %s7562_s20 = smov 1024   ;;  %s7563_s21 = smov 64  }
  0x11   :  { %44 = dma.hbm_to_vmem [thread:$0]  %s7926_s1, 13312, %s39_s18, [#allocation6], %s7562_s20, %s7562_s20, %s7563_s21  }
  0x12   :  { %s7564_s24 = smov [#allocation8]  }
  0x13   :  { %s60_s25 = sshll.u32 %s7564_s24, 4  ;;  %s61_s25 = int_to_ptr.vmem [resolvable:$true] %s60_s25 }
  0x14   :  { %s7335_s26 = scalar_lea.vmem %s61_s25, 65536  ;;  %p7340_p6 = scmp.lt.s32.totalorder %s61_s25, %s61_s25 }
  0x15   :  { %p7336_p5 = scmp.ne.s32.totalorder %s61_s25, %s7335_s26  ;;  %p7341_p7 = scmp.lt.s32.totalorder %s7335_s26, %s7335_s26 }
  0x17   :  { %p7342_p8 = por %p7341_p7, %p7340_p6 }
  0x19   :  { %p7343_p9 = pnand %p7342_p8, %p7336_p5 }
  0x1b   :  { %7346 = shalt.err (!%p7343_p9)
}
  0x1c   :  { %s7565_s27 = smov 256   ;;  %s7566_s28 = smov 16  }
  0x1d   :  { %66 = dma.hbm_to_vmem [thread:$0]  %s7928_s3, 65536, %s61_s25, [#allocation9], %s7565_s27, %s7565_s27, %s7566_s28  }
  0x1e   :  { %s7567_s12 = smov [#allocation11]   ;;  %s7568_s1 = smov [#allocation14]  }
  0x1f   :  { %s82_s13 = sshll.u32 %s7567_s12, 4  ;;  %s104_s14 = sshll.u32 %s7568_s1, 4  ;;  %s83_s13 = int_to_ptr.vmem [resolvable:$true] %s82_s13  ;;  %s105_s14 = int_to_ptr.vmem [resolvable:$true] %s104_s14 }
  0x20   :  { %s7355_s15 = scalar_lea.vmem %s83_s13, 4096  ;;  %p7360_p11 = scmp.lt.s32.totalorder %s83_s13, %s83_s13 }
  0x21   :  { %p7356_p10 = scmp.ne.s32.totalorder %s83_s13, %s7355_s15  ;;  %p7361_p12 = scmp.lt.s32.totalorder %s7355_s15, %s7355_s15 }
  0x23   :  { %p7362_p13 = por %p7361_p12, %p7360_p11 }
  0x25   :  { %p7363_p0 = pnand %p7362_p13, %p7356_p10 }
  0x27   :  { %7366 = shalt.err (!%p7363_p0)
}
  0x28   :  { %s7569_s16 = smov 4   ;;  %s7375_s3 = scalar_lea.vmem %s105_s14, 1024 }
  0x29   :  { %88 = dma.hbm_to_vmem [thread:$0]  %s7930_s5, 4096, %s83_s13, [#allocation12], %s7563_s21, %s7563_s21, %s7569_s16  }
  0x2a   :  { %p7376_p1 = scmp.ne.s32.totalorder %s105_s14, %s7375_s3  ;;  %p7380_p2 = scmp.lt.s32.totalorder %s105_s14, %s105_s14 }
  0x2b   :  { %p7381_p3 = scmp.lt.s32.totalorder %s7375_s3, %s7375_s3 }
  0x2d   :  { %p7382_p4 = por %p7381_p3, %p7380_p2 }
  0x2f   :  { %p7383_p5 = pnand %p7382_p4, %p7376_p1 }
  0x31   :  { %7386 = shalt.err (!%p7383_p5)
}
  0x32   :  { %110 = dma.hbm_to_vmem [thread:$0]  %s7932_s7, 1024, %s105_s14, [#allocation15], %s7563_s21, %s7563_s21, %s7569_s16  }
  0x33   :  { %s7570_s22 = smov [#allocation17]   ;;  %s7571_s24 = smov [#allocation2]  }
  0x34   :  { %s126_s23 = sshll.u32 %s7570_s22, 4  ;;  %s29_s25 = sshll.u32 %s7571_s24, 4  ;;  %s127_s23 = int_to_ptr.vmem [resolvable:$true] %s126_s23  ;;  %s30_s25 = int_to_ptr.vmem [resolvable:$true] %s29_s25 }
  0x35   :  { %s7395_s5 = scalar_lea.vmem %s127_s23, 1024  ;;  %p7400_p7 = scmp.lt.s32.totalorder %s127_s23, %s127_s23 }
  0x36   :  { %p7396_p6 = scmp.ne.s32.totalorder %s127_s23, %s7395_s5  ;;  %p7401_p8 = scmp.lt.s32.totalorder %s7395_s5, %s7395_s5 }
  0x38   :  { %p7402_p9 = por %p7401_p8, %p7400_p7 }
  0x3a   :  { %p7403_p10 = pnand %p7402_p9, %p7396_p6 }
  0x3c   :  { %7406 = shalt.err (!%p7403_p10)
}
  0x3d   :  { %132 = dma.hbm_to_vmem [thread:$0]  %s7934_s9, 1024, %s127_s23, [#allocation18], %s7563_s21, %s7563_s21, %s7569_s16  }
  0x3e   :  { %s7415_s7 = scalar_lea.vmem %s30_s25, 128  ;;  %p7420_p12 = scmp.lt.s32.totalorder %s30_s25, %s30_s25 }
  0x3f   :  { %p7416_p11 = scmp.ne.s32.totalorder %s30_s25, %s7415_s7  ;;  %p7421_p13 = scmp.lt.s32.totalorder %s7415_s7, %s7415_s7 }
  0x41   :  { %p7422_p0 = por %p7421_p13, %p7420_p12 }
  0x43   :  { %p7423_p1 = pnand %p7422_p0, %p7416_p11 }
  0x45   :  { %7426 = shalt.err (!%p7423_p1)
}
  0x46   :  { %32 = dma.hbm_to_vmem [thread:$0]  %s7925_s0, 128, %s30_s25, [#allocation3]  }
  0x47   :  { %s7572_s30 = smov [#allocation7]   ;;  %s7573_s13 = smov [#allocation10]  }
  0x48   :  { %s51_s12 = sshll.u32 %s7572_s30, 4  ;;  %s73_s1 = sshll.u32 %s7573_s13, 4  ;;  %s52_s12 = int_to_ptr.vmem [resolvable:$true] %s51_s12  ;;  %s74_s1 = int_to_ptr.vmem [resolvable:$true] %s73_s1 }
  0x49   :  { %s7435_s14 = scalar_lea.vmem %s52_s12, 256  ;;  %p7440_p3 = scmp.lt.s32.totalorder %s52_s12, %s52_s12 }
  0x4a   :  { %p7436_p2 = scmp.ne.s32.totalorder %s52_s12, %s7435_s14  ;;  %p7441_p4 = scmp.lt.s32.totalorder %s7435_s14, %s7435_s14 }
  0x4c   :  { %p7442_p5 = por %p7441_p4, %p7440_p3 }
  0x4e   :  { %p7443_p6 = pnand %p7442_p5, %p7436_p2 }
  0x50   :  { %7446 = shalt.err (!%p7443_p6)
}
  0x51   :  { %54 = dma.hbm_to_vmem [thread:$0]  %s7927_s2, 256, %s52_s12, [#allocation6]  }
  0x52   :  { %s7455_s15 = scalar_lea.vmem %s74_s1, 64  ;;  %p7460_p8 = scmp.lt.s32.totalorder %s74_s1, %s74_s1 }
  0x53   :  { %p7456_p7 = scmp.ne.s32.totalorder %s74_s1, %s7455_s15  ;;  %p7461_p9 = scmp.lt.s32.totalorder %s7455_s15, %s7455_s15 }
  0x55   :  { %p7462_p10 = por %p7461_p9, %p7460_p8 }
  0x57   :  { %p7463_p11 = pnand %p7462_p10, %p7456_p7 }
  0x59   :  { %7466 = shalt.err (!%p7463_p11)
}
  0x5a   :  { %76 = dma.hbm_to_vmem [thread:$0]  %s7929_s4, 64, %s74_s1, [#allocation9]  }
  0x5b   :  { %s7574_s17 = smov [#allocation13]   ;;  %s7575_s3 = smov [#allocation16]  }
  0x5c   :  { %s95_s18 = sshll.u32 %s7574_s17, 4  ;;  %s117_s19 = sshll.u32 %s7575_s3, 4  ;;  %s96_s18 = int_to_ptr.vmem [resolvable:$true] %s95_s18  ;;  %s118_s19 = int_to_ptr.vmem [resolvable:$true] %s117_s19 }
  0x5d   :  { %s7475_s20 = scalar_lea.vmem %s96_s18, 16  ;;  %s7479_s2 = scalar_lea.vmem %s96_s18, 32 }
  0x5e   :  { %p7476_p12 = scmp.ne.s32.totalorder %s96_s18, %s7475_s20  ;;  %p7480_p13 = scmp.lt.s32.totalorder %s96_s18, %s96_s18 }
  0x5f   :  { %p7481_p0 = scmp.lt.s32.totalorder %s7479_s2, %s7475_s20 }
  0x61   :  { %p7482_p1 = por %p7481_p0, %p7480_p13 }
  0x63   :  { %p7483_p2 = pnand %p7482_p1, %p7476_p12 }
  0x65   :  { %7486 = shalt.err (!%p7483_p2)
}
  0x66   :  { %98 = dma.hbm_to_vmem [thread:$0]  %s7931_s6, 16, %s96_s18, [#allocation12]  }
  0x67   :  { %s7495_s24 = scalar_lea.vmem %s118_s19, 16  ;;  %s7499_s4 = scalar_lea.vmem %s118_s19, 32 }
  0x68   :  { %p7496_p3 = scmp.ne.s32.totalorder %s118_s19, %s7495_s24  ;;  %p7500_p4 = scmp.lt.s32.totalorder %s118_s19, %s118_s19 }
  0x69   :  { %p7501_p5 = scmp.lt.s32.totalorder %s7499_s4, %s7495_s24 }
  0x6b   :  { %p7502_p6 = por %p7501_p5, %p7500_p4 }
  0x6d   :  { %p7503_p7 = pnand %p7502_p6, %p7496_p3 }
  0x6f   :  { %7506 = shalt.err (!%p7503_p7)
}
  0x70   :  { %120 = dma.hbm_to_vmem [thread:$0]  %s7933_s8, 16, %s118_s19, [#allocation15]  }
  0x71   :  { %s7576_s26 = smov [#allocation19]  }
  0x72   :  { %s139_s27 = sshll.u32 %s7576_s26, 4  ;;  %s140_s27 = int_to_ptr.vmem [resolvable:$true] %s139_s27 }
  0x73   :  { %s7515_s7 = scalar_lea.vmem %s140_s27, 16  ;;  %s7519_s28 = scalar_lea.vmem %s140_s27, 32 }
  0x74   :  { %p7516_p8 = scmp.ne.s32.totalorder %s140_s27, %s7515_s7  ;;  %p7520_p9 = scmp.lt.s32.totalorder %s140_s27, %s140_s27 }
  0x75   :  { %p7521_p10 = scmp.lt.s32.totalorder %s7519_s28, %s7515_s7 }
  0x77   :  { %p7522_p11 = por %p7521_p10, %p7520_p9 }
  0x79   :  { %p7523_p12 = pnand %p7522_p11, %p7516_p8 }
  0x7b   :  { %7526 = shalt.err (!%p7523_p12)
}
  0x7c   :  { %142 = dma.hbm_to_vmem [thread:$0]  %s7935_s10, 16, %s140_s27, [#allocation18]  }
  0x7d   :  { %7547 = dma.done.wait [#allocation3], 128  }
  0x7e   :  { %7548 = vsyncadd [#allocation3], 4294967168 }
  0x7f   :  { %7549 = dma.done.wait [#allocation6], 13568  }
  0x80   :  { %7550 = vsyncadd [#allocation6], 4294953728 }
  0x81   :  { %7551 = dma.done.wait [#allocation9], 65600  }
  0x82   :  { %7552 = vsyncadd [#allocation9], 4294901696 }
  0x83   :  { %7553 = dma.done.wait [#allocation12], 4112  }
  0x84   :  { %7554 = vsyncadd [#allocation12], 4294963184 }
  0x85   :  { %7555 = dma.done.wait [#allocation15], 1040  }
  0x86   :  { %7556 = vsyncadd [#allocation15], 4294966256 }
  0x87   :  { %7557 = dma.done.wait [#allocation18], 1040  }
  0x88   :  { %7558 = vsyncadd [#allocation18], 4294966256  ;;  %v7577_v0 = vmov 0   ;;  %v275_v1 = vld [vmem:[#allocation5 + $0x300] sm:$0x33]  ;;  %vm891_vm0 = vcmask 1041408  }
  0x89   :  { %972 = vmatprep.mubr.bf16.mxu0 %v7577_v0  ;;  %1013 = vmatprep.mubr.bf16.mxu1 %v7577_v0  ;;  %v276_v2 = vld [vmem:[#allocation5 + $0x308] sm:$0x33]  ;;  %v259_v3 = vld [vmem:[#allocation5 + $0x280] sm:$0xff]  ;;  %v5754_v4 = vcombine.high %v275_v1, %v275_v1  ;;  %v5753_v6 = vcombine.low %v275_v1, %v275_v1  ;;  %v277_v55 = vld [vmem:[#allocation5 + $0x310] sm:$0x33]  ;;  %vm887_vm1 = vcmask 818176  }
  0x8a   :  { %v5756_v5 = vcombine.high %v276_v2, %v276_v2  ;;  %v5755_v7 = vcombine.low %v276_v2, %v276_v2  ;;  %v267_v8 = vld [vmem:[#allocation5 + $0x2c0] sm:$0xff]  ;;  %v260_v9 = vld [vmem:[#allocation5 + $0x288] sm:$0xff]  ;;  %v278_v56 = vld [vmem:[#allocation5 + $0x318] sm:$0x33]  ;;  %v5758_v60 = vcombine.high %v277_v55, %v277_v55  ;;  %v5757_v61 = vcombine.low %v277_v55, %v277_v55  ;;  %s7580_s8 = smov [#allocation20]  }
  0x8b   :  { %v268_v10 = vld [vmem:[#allocation5 + $0x2c8] sm:$0xff]  ;;  %v5738_v11 = vcombine.high %v259_v3, %v267_v8  ;;  %v243_v13 = vld [vmem:[#allocation5 + $0x200] sm:$0xff]  ;;  %5769 = vmatprep.subr.msk.bf16.mxu0 %vm891_vm0, %v5754_v4  ;;  %v893_v16 = vsel %vm891_vm0, %v5753_v6, 0  ;;  %v5737_v19 = vcombine.low %v259_v3, %v267_v8  ;;  %v177_v59 = vld [vmem:[#allocation2] sm:$0xff]  ;;  %v5760_v62 = vcombine.high %v278_v56, %v278_v56  ;;  %s5643_s10 = sshll.u32 %s7580_s8, 4  ;;  %s5644_s10 = int_to_ptr.vmem [resolvable:$true] %s5643_s10 }
  0x8c   :  { %v5740_v12 = vcombine.high %v260_v9, %v268_v10  ;;  %v251_v14 = vld [vmem:[#allocation5 + $0x240] sm:$0xff]  ;;  %v244_v15 = vld [vmem:[#allocation5 + $0x208] sm:$0xff]  ;;  %5771 = vmatprep.subr.msk.bf16.mxu1 %vm891_vm0, %v5756_v5  ;;  %v899_v17 = vsel %vm891_vm0, %v5755_v7, 0  ;;  %943 = vmatpush1.bf16.msra.mxu0 %v893_v16  ;;  %v5739_v20 = vcombine.low %v260_v9, %v268_v10  ;;  %v5759_v63 = vcombine.low %v278_v56, %v278_v56  ;;  %v261_v1 = vld [vmem:[#allocation5 + $0x290] sm:$0xff]  ;;  %s7527_s30 = scalar_lea.vmem %s5644_s10, 128  ;;  %p7532_p0 = scmp.lt.s32.totalorder %s5644_s10, %s5644_s10 }
  0x8d   :  { %v252_v18 = vld [vmem:[#allocation5 + $0x248] sm:$0xff]  ;;  %984 = vmatpush1.bf16.msra.mxu1 %v899_v17  ;;  %944 = vmatprep.subr.bf16.mxu0 %v5738_v11  ;;  %v5722_v21 = vcombine.high %v243_v13, %v251_v14  ;;  %v227_v23 = vld [vmem:[#allocation5 + $0x180] sm:$0xff]  ;;  %v5721_v27 = vcombine.low %v243_v13, %v251_v14  ;;  %v269_v2 = vld [vmem:[#allocation5 + $0x2d0] sm:$0xff]  ;;  %v7687_v5 = vpack.c.bf16 %v177_v59, %v177_v59  ;;  %v905_v6 = vsel %vm891_vm0, %v5757_v61, 0  ;;  %p7528_p13 = scmp.ne.s32.totalorder %s5644_s10, %s7527_s30  ;;  %p7533_p1 = scmp.lt.s32.totalorder %s7527_s30, %s7527_s30 }
  0x8e   :  { %985 = vmatprep.subr.bf16.mxu1 %v5740_v12  ;;  %v5724_v22 = vcombine.high %v244_v15, %v252_v18  ;;  %v235_v24 = vld [vmem:[#allocation5 + $0x1c0] sm:$0xff]  ;;  %v228_v25 = vld [vmem:[#allocation5 + $0x188] sm:$0xff]  ;;  %v5723_v28 = vcombine.low %v244_v15, %v252_v18  ;;  %v262_v3 = vld [vmem:[#allocation5 + $0x298] sm:$0xff]  ;;  %v911_v7 = vsel %vm891_vm0, %v5759_v63, 0  ;;  %v5742_v8 = vcombine.high %v261_v1, %v269_v2 }
  0x8f   :  { %v236_v26 = vld [vmem:[#allocation5 + $0x1c8] sm:$0xff]  ;;  %v5706_v29 = vcombine.high %v227_v23, %v235_v24  ;;  %v211_v31 = vld [vmem:[#allocation5 + $0x100] sm:$0xff]  ;;  %v5705_v35 = vcombine.low %v227_v23, %v235_v24  ;;  %v270_v4 = vld [vmem:[#allocation5 + $0x2d8] sm:$0xff]  ;;  %v5741_v14 = vcombine.low %v261_v1, %v269_v2  ;;  %vm7579_vm2 = vmmov 0   ;;  %p7534_p2 = por %p7533_p1, %p7532_p0 }
  0x90   :  { %945 = vmatpush1.bf16.msra.mxu0 %v5737_v19  ;;  %v5708_v30 = vcombine.high %v228_v25, %v236_v26  ;;  %v219_v32 = vld [vmem:[#allocation5 + $0x140] sm:$0xff]  ;;  %v212_v33 = vld [vmem:[#allocation5 + $0x108] sm:$0xff]  ;;  %v5707_v36 = vcombine.low %v228_v25, %v236_v26  ;;  %v5744_v9 = vcombine.high %v262_v3, %v270_v4  ;;  %v245_v10 = vld [vmem:[#allocation5 + $0x210] sm:$0xff]  ;;  %v5743_v15 = vcombine.low %v262_v3, %v270_v4 }
  0x91   :  { %986 = vmatpush1.bf16.msra.mxu1 %v5739_v20  ;;  %946 = vmatprep.subr.bf16.mxu0 %v5722_v21  ;;  %v220_v34 = vld [vmem:[#allocation5 + $0x148] sm:$0xff]  ;;  %v5690_v37 = vcombine.high %v211_v31, %v219_v32  ;;  %v195_v39 = vld [vmem:[#allocation5 + $0x80] sm:$0xff]  ;;  %v5689_v43 = vcombine.low %v211_v31, %v219_v32  ;;  %v253_v11 = vld [vmem:[#allocation5 + $0x250] sm:$0xff]  ;;  %p7535_p3 = pnand %p7534_p2, %p7528_p13 }
  0x92   :  { %987 = vmatprep.subr.bf16.mxu1 %v5724_v22  ;;  %v5692_v38 = vcombine.high %v212_v33, %v220_v34  ;;  %v203_v40 = vld [vmem:[#allocation5 + $0xc0] sm:$0xff]  ;;  %v196_v41 = vld [vmem:[#allocation5 + $0x88] sm:$0xff]  ;;  %v5691_v44 = vcombine.low %v212_v33, %v220_v34  ;;  %v246_v12 = vld [vmem:[#allocation5 + $0x218] sm:$0xff]  ;;  %v5726_v16 = vcombine.high %v245_v10, %v253_v11  ;;  %v5725_v22 = vcombine.low %v245_v10, %v253_v11 }
  0x93   :  { %v204_v42 = vld [vmem:[#allocation5 + $0xc8] sm:$0xff]  ;;  %v5674_v45 = vcombine.high %v195_v39, %v203_v40  ;;  %v179_v47 = vld [vmem:[#allocation5] sm:$0xff]  ;;  %v5673_v51 = vcombine.low %v195_v39, %v203_v40  ;;  %v254_v13 = vld [vmem:[#allocation5 + $0x258] sm:$0xff] }
  0x94   :  { %947 = vmatpush1.bf16.msra.mxu0 %v5721_v27  ;;  %v5676_v46 = vcombine.high %v196_v41, %v204_v42  ;;  %v187_v48 = vld [vmem:[#allocation5 + $0x40] sm:$0xff]  ;;  %v180_v49 = vld [vmem:[#allocation5 + $0x8] sm:$0xff]  ;;  %v5675_v52 = vcombine.low %v196_v41, %v204_v42  ;;  %v5728_v17 = vcombine.high %v246_v12, %v254_v13  ;;  %v229_v18 = vld [vmem:[#allocation5 + $0x190] sm:$0xff]  ;;  %v5727_v23 = vcombine.low %v246_v12, %v254_v13 }
  0x95   :  { %988 = vmatpush1.bf16.msra.mxu1 %v5723_v28  ;;  %948 = vmatprep.subr.bf16.mxu0 %v5706_v29  ;;  %v188_v50 = vld [vmem:[#allocation5 + $0x48] sm:$0xff]  ;;  %v5658_v53 = vcombine.high %v179_v47, %v187_v48  ;;  %v5657_v57 = vcombine.low %v179_v47, %v187_v48  ;;  %v237_v19 = vld [vmem:[#allocation5 + $0x1d0] sm:$0xff]  ;;  %v230_v20 = vld [vmem:[#allocation5 + $0x198] sm:$0xff] }
  0x96   :  { %989 = vmatprep.subr.bf16.mxu1 %v5708_v30  ;;  %v5660_v54 = vcombine.high %v180_v49, %v188_v50  ;;  %v5659_v58 = vcombine.low %v180_v49, %v188_v50  ;;  %v238_v21 = vld [vmem:[#allocation5 + $0x1d8] sm:$0xff]  ;;  %v5710_v24 = vcombine.high %v229_v18, %v237_v19  ;;  %v213_v26 = vld [vmem:[#allocation5 + $0x110] sm:$0xff]  ;;  %v5709_v30 = vcombine.low %v229_v18, %v237_v19  ;;  %v279_v50 = vld [vmem:[#allocation5 + $0x320] sm:$0x33] }
  0x97   :  { %v5712_v25 = vcombine.high %v230_v20, %v238_v21  ;;  %v221_v27 = vld [vmem:[#allocation5 + $0x150] sm:$0xff]  ;;  %v214_v28 = vld [vmem:[#allocation5 + $0x118] sm:$0xff]  ;;  %v5711_v31 = vcombine.low %v230_v20, %v238_v21  ;;  %v5761_v55 = vcombine.low %v279_v50, %v279_v50  ;;  %v271_v59 = vld [vmem:[#allocation5 + $0x2e0] sm:$0xff] }
  0x98   :  { %949 = vmatpush1.bf16.msra.mxu0 %v5705_v35  ;;  %v222_v29 = vld [vmem:[#allocation5 + $0x158] sm:$0xff]  ;;  %v5694_v32 = vcombine.high %v213_v26, %v221_v27  ;;  %v197_v34 = vld [vmem:[#allocation5 + $0x90] sm:$0xff]  ;;  %v272_v61 = vld [vmem:[#allocation5 + $0x2e8] sm:$0xff] }
  0x99   :  { %990 = vmatpush1.bf16.msra.mxu1 %v5707_v36  ;;  %950 = vmatprep.subr.bf16.mxu0 %v5690_v37  ;;  %v5696_v33 = vcombine.high %v214_v28, %v222_v29  ;;  %v205_v35 = vld [vmem:[#allocation5 + $0xd0] sm:$0xff]  ;;  %v198_v36 = vld [vmem:[#allocation5 + $0x98] sm:$0xff]  ;;  %v5695_v39 = vcombine.low %v214_v28, %v222_v29  ;;  %v247_v3 = vld [vmem:[#allocation5 + $0x220] sm:$0xff] }
  0x9a   :  { %991 = vmatprep.subr.bf16.mxu1 %v5692_v38  ;;  %v206_v37 = vld [vmem:[#allocation5 + $0xd8] sm:$0xff]  ;;  %v5693_v38 = vcombine.low %v213_v26, %v221_v27  ;;  %v5678_v40 = vcombine.high %v197_v34, %v205_v35  ;;  %v181_v42 = vld [vmem:[#allocation5 + $0x10] sm:$0xff]  ;;  %v255_v4 = vld [vmem:[#allocation5 + $0x260] sm:$0xff] }
  0x9b   :  { %v5680_v41 = vcombine.high %v198_v36, %v206_v37  ;;  %v5679_v47 = vcombine.low %v198_v36, %v206_v37  ;;  %v5730_v10 = vcombine.high %v247_v3, %v255_v4  ;;  %v231_v12 = vld [vmem:[#allocation5 + $0x1a0] sm:$0xff]  ;;  %v184_v36 = vld [vmem:[#allocation5 + $0x28] sm:$0xff] }
  0x9c   :  { %951 = vmatpush1.bf16.msra.mxu0 %v5689_v43  ;;  %v189_v43 = vld [vmem:[#allocation5 + $0x50] sm:$0xff]  ;;  %v239_v13 = vld [vmem:[#allocation5 + $0x1e0] sm:$0xff]  ;;  %v192_v37 = vld [vmem:[#allocation5 + $0x68] sm:$0xff] }
  0x9d   :  { %992 = vmatpush1.bf16.msra.mxu1 %v5691_v44  ;;  %952 = vmatprep.subr.bf16.mxu0 %v5674_v45  ;;  %v182_v44 = vld [vmem:[#allocation5 + $0x18] sm:$0xff]  ;;  %v5662_v48 = vcombine.high %v181_v42, %v189_v43  ;;  %v5714_v18 = vcombine.high %v231_v12, %v239_v13  ;;  %v215_v20 = vld [vmem:[#allocation5 + $0x120] sm:$0xff] }
  0x9e   :  { %993 = vmatprep.subr.bf16.mxu1 %v5676_v46  ;;  %v190_v45 = vld [vmem:[#allocation5 + $0x58] sm:$0xff]  ;;  %v5677_v46 = vcombine.low %v197_v34, %v205_v35  ;;  %v223_v21 = vld [vmem:[#allocation5 + $0x160] sm:$0xff] }
  0x9f   :  { %v5664_v49 = vcombine.high %v182_v44, %v190_v45  ;;  %v5698_v26 = vcombine.high %v215_v20, %v223_v21  ;;  %v199_v28 = vld [vmem:[#allocation5 + $0xa0] sm:$0xff] }
  0xa0   :  { %953 = vmatpush1.bf16.msra.mxu0 %v5673_v51  ;;  %v280_v51 = vld [vmem:[#allocation5 + $0x328] sm:$0x33]  ;;  %v207_v29 = vld [vmem:[#allocation5 + $0xe0] sm:$0xff] }
  0xa1   :  { %994 = vmatpush1.bf16.msra.mxu1 %v5675_v52  ;;  %954 = vmatprep.subr.bf16.mxu0 %v5658_v53  ;;  %v5661_v52 = vcombine.low %v181_v42, %v189_v43  ;;  %v5663_v53 = vcombine.low %v182_v44, %v190_v45  ;;  %v5764_v56 = vcombine.high %v280_v51, %v280_v51  ;;  %v183_v34 = vld [vmem:[#allocation5 + $0x20] sm:$0xff]  ;;  %v282_v43 = vld [vmem:[#allocation5 + $0x338] sm:$0x33] }
  0xa2   :  { %995 = vmatprep.subr.bf16.mxu1 %v5660_v54  ;;  %v5762_v54 = vcombine.high %v279_v50, %v279_v50  ;;  %v191_v35 = vld [vmem:[#allocation5 + $0x60] sm:$0xff]  ;;  %v5668_v45 = vcombine.high %v184_v36, %v192_v37  ;;  %v273_v50 = vld [vmem:[#allocation5 + $0x2f0] sm:$0xff] }
  0xa3   :  { %v5666_v44 = vcombine.high %v183_v34, %v191_v35 }
  0xa4   :  { %955 = vmatpush1.bf16.msra.mxu0 %v5657_v57  ;;  %v5763_v57 = vcombine.low %v280_v51, %v280_v51  ;;  %v266_v51 = vld [vmem:[#allocation5 + $0x2b8] sm:$0xff] }
  0xa5   :  { %996 = vmatpush1.bf16.msra.mxu1 %v5659_v58  ;;  %5773 = vmatprep.subr.msk.bf16.mxu0 %vm891_vm0, %v5758_v60  ;;  %v263_v58 = vld [vmem:[#allocation5 + $0x2a0] sm:$0xff]  ;;  %v264_v60 = vld [vmem:[#allocation5 + $0x2a8] sm:$0xff] }
  0xa6   :  { %5775 = vmatprep.subr.msk.bf16.mxu1 %vm891_vm0, %v5760_v62  ;;  %v917_v62 = vsel %vm891_vm0, %v5761_v55, 0  ;;  %v923_v63 = vsel %vm891_vm0, %v5763_v57, 0  ;;  %v5746_v1 = vcombine.high %v263_v58, %v271_v59  ;;  %v5748_v2 = vcombine.high %v264_v60, %v272_v61  ;;  %v257_v57 = vld [vmem:[#allocation5 + $0x270] sm:$0xff] }
  0xa7   :  { %5770 = vmatmul.mubr.msk.bf16.vlgmr.msra.gmra.mxu0 %vm887_vm1, %v7687_v5  ;;  %v5767_v55 = vcombine.low %v282_v43, %v282_v43 }
  0xa8   :  { %5772 = vmatmul.mubr.msk.bf16.vlgmr.msra.gmra.mxu1 %vm887_vm1, %v7687_v5  ;;  %1025 = vmatpush1.bf16.msra.mxu0 %v905_v6  ;;  %v248_v6 = vld [vmem:[#allocation5 + $0x228] sm:$0xff] }
  0xa9   :  { %1066 = vmatpush1.bf16.msra.mxu1 %v911_v7  ;;  %1026 = vmatprep.subr.bf16.mxu0 %v5742_v8  ;;  %v256_v7 = vld [vmem:[#allocation5 + $0x268] sm:$0xff]  ;;  %v5745_v8 = vcombine.low %v263_v58, %v271_v59  ;;  %v250_v58 = vld [vmem:[#allocation5 + $0x238] sm:$0xff] }
  0xaa   :  { %1067 = vmatprep.subr.bf16.mxu1 %v5744_v9  ;;  %1054 = vmatprep.mubr.bf16.mxu0 %v7577_v0  ;;  %v5747_v9 = vcombine.low %v264_v60, %v272_v61  ;;  %v5732_v11 = vcombine.high %v248_v6, %v256_v7  ;;  %v258_v59 = vld [vmem:[#allocation5 + $0x278] sm:$0xff]  ;;  %v935_v61 = vsel %vm891_vm0, %v5767_v55, 0  ;;  %v6512_v55 = vld [vmem:[#allocation8 + $0x64] ss:$16 sps:$4 sm:$0xff]  }
  0xab   :  { %1095 = vmatprep.mubr.bf16.mxu1 %v7577_v0 }
  0xac   :  { %1027 = vmatpush1.bf16.msra.mxu0 %v5741_v14  ;;  %v232_v14 = vld [vmem:[#allocation5 + $0x1a8] sm:$0xff] }
  0xad   :  { %1068 = vmatpush1.bf16.msra.mxu1 %v5743_v15  ;;  %1028 = vmatprep.subr.bf16.mxu0 %v5726_v16  ;;  %v240_v15 = vld [vmem:[#allocation5 + $0x1e8] sm:$0xff]  ;;  %v5729_v16 = vcombine.low %v247_v3, %v255_v4  ;;  %v233_v3 = vld [vmem:[#allocation5 + $0x1b0] sm:$0xff] }
  0xae   :  { %1069 = vmatprep.subr.bf16.mxu1 %v5728_v17  ;;  %v5731_v17 = vcombine.low %v248_v6, %v256_v7  ;;  %v5716_v19 = vcombine.high %v232_v14, %v240_v15  ;;  %v241_v4 = vld [vmem:[#allocation5 + $0x1f0] sm:$0xff]  ;;  %v234_v6 = vld [vmem:[#allocation5 + $0x1b8] sm:$0xff] }
  0xaf   :  { %v242_v7 = vld [vmem:[#allocation5 + $0x1f8] sm:$0xff] }
  0xb0   :  { %1029 = vmatpush1.bf16.msra.mxu0 %v5725_v22  ;;  %v216_v22 = vld [vmem:[#allocation5 + $0x128] sm:$0xff] }
  0xb1   :  { %1070 = vmatpush1.bf16.msra.mxu1 %v5727_v23  ;;  %1030 = vmatprep.subr.bf16.mxu0 %v5710_v24  ;;  %v224_v23 = vld [vmem:[#allocation5 + $0x168] sm:$0xff]  ;;  %v5713_v24 = vcombine.low %v231_v12, %v239_v13  ;;  %v217_v12 = vld [vmem:[#allocation5 + $0x130] sm:$0xff]  ;;  %v5718_v13 = vcombine.high %v233_v3, %v241_v4 }
  0xb2   :  { %1071 = vmatprep.subr.bf16.mxu1 %v5712_v25  ;;  %v5715_v25 = vcombine.low %v232_v14, %v240_v15  ;;  %v5700_v27 = vcombine.high %v216_v22, %v224_v23  ;;  %v5720_v14 = vcombine.high %v234_v6, %v242_v7  ;;  %v225_v15 = vld [vmem:[#allocation5 + $0x170] sm:$0xff] }
  0xb4   :  { %1031 = vmatpush1.bf16.msra.mxu0 %v5709_v30  ;;  %v200_v30 = vld [vmem:[#allocation5 + $0xa8] sm:$0xff] }
  0xb5   :  { %1072 = vmatpush1.bf16.msra.mxu1 %v5711_v31  ;;  %1032 = vmatprep.subr.bf16.mxu0 %v5694_v32  ;;  %v208_v31 = vld [vmem:[#allocation5 + $0xe8] sm:$0xff]  ;;  %v5697_v32 = vcombine.low %v215_v20, %v223_v21  ;;  %v201_v20 = vld [vmem:[#allocation5 + $0xb0] sm:$0xff] }
  0xb6   :  { %1073 = vmatprep.subr.bf16.mxu1 %v5696_v33  ;;  %v5699_v33 = vcombine.low %v216_v22, %v224_v23  ;;  %v5683_v42 = vcombine.low %v200_v30, %v208_v31  ;;  %v209_v21 = vld [vmem:[#allocation5 + $0xf0] sm:$0xff]  ;;  %v202_v23 = vld [vmem:[#allocation5 + $0xb8] sm:$0xff] }
  0xb8   :  { %1033 = vmatpush1.bf16.msra.mxu0 %v5693_v38  ;;  %v5682_v38 = vcombine.high %v199_v28, %v207_v29 }
  0xb9   :  { %1074 = vmatpush1.bf16.msra.mxu1 %v5695_v39  ;;  %1034 = vmatprep.subr.bf16.mxu0 %v5678_v40  ;;  %v5684_v39 = vcombine.high %v200_v30, %v208_v31  ;;  %v281_v40 = vld [vmem:[#allocation5 + $0x330] sm:$0x33]  ;;  %v186_v31 = vld [vmem:[#allocation5 + $0x38] sm:$0xff] }
  0xba   :  { %1075 = vmatprep.subr.bf16.mxu1 %v5680_v41  ;;  %v5681_v41 = vcombine.low %v199_v28, %v207_v29  ;;  %v193_v28 = vld [vmem:[#allocation5 + $0x70] sm:$0xff]  ;;  %v5686_v29 = vcombine.high %v201_v20, %v209_v21 }
  0xbc   :  { %1035 = vmatpush1.bf16.msra.mxu0 %v5677_v46  ;;  %v5665_v46 = vcombine.low %v183_v34, %v191_v35 }
  0xbd   :  { %1076 = vmatpush1.bf16.msra.mxu1 %v5679_v47  ;;  %1036 = vmatprep.subr.bf16.mxu0 %v5662_v48  ;;  %v5667_v47 = vcombine.low %v184_v36, %v192_v37  ;;  %v5766_v48 = vcombine.high %v281_v40, %v281_v40  ;;  %v6488_v37 = vld [vmem:[#allocation8 + $0xe4] ss:$16 sps:$4 sm:$0xff]  }
  0xbe   :  { %1077 = vmatprep.subr.bf16.mxu1 %v5664_v49  ;;  %v265_v49 = vld [vmem:[#allocation5 + $0x2b0] sm:$0xff] }
  0xc0   :  { %1037 = vmatpush1.bf16.msra.mxu0 %v5661_v52  ;;  %v274_v52 = vld [vmem:[#allocation5 + $0x2f8] sm:$0xff] }
  0xc1   :  { %1078 = vmatpush1.bf16.msra.mxu1 %v5663_v53  ;;  %5777 = vmatprep.subr.msk.bf16.mxu0 %vm891_vm0, %v5762_v54  ;;  %v5765_v53 = vcombine.low %v281_v40, %v281_v40  ;;  %v5768_v54 = vcombine.high %v282_v43, %v282_v43  ;;  %v6494_v43 = vld [vmem:[#allocation8 + $0xc4] ss:$16 sps:$4 sm:$0xff]  }
  0xc2   :  { %5779 = vmatprep.subr.msk.bf16.mxu1 %vm891_vm0, %v5764_v56  ;;  %v249_v56 = vld [vmem:[#allocation5 + $0x230] sm:$0xff] }
  0xc3   :  { %5774 = vmatmul.mubr.msk.bf16.vlgmr.msra.gmra.mxu0 %vm887_vm1, %v7687_v5  ;;  %v929_v60 = vsel %vm891_vm0, %v5765_v53, 0  ;;  %v6504_v53 = vld [vmem:[#allocation8 + $0x80] ss:$16 sps:$4 sm:$0xff]  }
  0xc4   :  { %5776 = vmatmul.mubr.msk.bf16.vlgmr.msra.gmra.mxu1 %vm887_vm1, %v7687_v5  ;;  %1107 = vmatpush1.bf16.msra.mxu0 %v917_v62  ;;  %v5750_v62 = vcombine.high %v265_v49, %v273_v50 }
  0xc5   :  { %1148 = vmatpush1.bf16.msra.mxu1 %v923_v63  ;;  %1108 = vmatprep.subr.bf16.mxu0 %v5746_v1  ;;  %v5752_v63 = vcombine.high %v266_v51, %v274_v52  ;;  %v5749_v1 = vcombine.low %v265_v49, %v273_v50  ;;  %v6498_v49 = vld [vmem:[#allocation8 + $0xa0] ss:$16 sps:$4 sm:$0xff]  }
  0xc6   :  { %1149 = vmatprep.subr.bf16.mxu1 %v5748_v2  ;;  %1136 = vmatprep.mubr.bf16.mxu0 %v7577_v0  ;;  %v5751_v2 = vcombine.low %v266_v51, %v274_v52  ;;  %v6501_v50 = vld [vmem:[#allocation8 + $0x2a0] ss:$16 sps:$4 sm:$0xff]   ;;  %v6506_v51 = vld [vmem:[#allocation8 + $0x84] ss:$16 sps:$4 sm:$0xff]  }
  0xc7   :  { %1177 = vmatprep.mubr.bf16.mxu1 %v7577_v0  ;;  %v6509_v52 = vld [vmem:[#allocation8 + $0x284] ss:$16 sps:$4 sm:$0xff]  }
  0xc8   :  { %1109 = vmatpush1.bf16.msra.mxu0 %v5745_v8  ;;  %v5734_v8 = vcombine.high %v249_v56, %v257_v57 }
  0xc9   :  { %1150 = vmatpush1.bf16.msra.mxu1 %v5747_v9  ;;  %1110 = vmatprep.subr.bf16.mxu0 %v5730_v10  ;;  %v5736_v9 = vcombine.high %v250_v58, %v258_v59  ;;  %v5733_v10 = vcombine.low %v249_v56, %v257_v57  ;;  %v6515_v56 = vld [vmem:[#allocation8 + $0x264] ss:$16 sps:$4 sm:$0xff]   ;;  %v6513_v57 = vld [vmem:[#allocation8 + $0x260] ss:$16 sps:$4 sm:$0xff]  }
  0xca   :  { %1151 = vmatprep.subr.bf16.mxu1 %v5732_v11  ;;  %v5735_v11 = vcombine.low %v250_v58, %v258_v59  ;;  %v6518_v58 = vld [vmem:[#allocation8 + $0x44] ss:$16 sps:$4 sm:$0xff]  }
  0xcb   :  { %v6521_v59 = vld [vmem:[#allocation8 + $0x244] ss:$16 sps:$4 sm:$0xff]  }
  0xcc   :  { %1111 = vmatpush1.bf16.msra.mxu0 %v5729_v16  ;;  %v218_v16 = vld [vmem:[#allocation5 + $0x138] sm:$0xff] }
  0xcd   :  { %1152 = vmatpush1.bf16.msra.mxu1 %v5731_v17  ;;  %1112 = vmatprep.subr.bf16.mxu0 %v5714_v18  ;;  %v226_v17 = vld [vmem:[#allocation5 + $0x178] sm:$0xff]  ;;  %v5717_v18 = vcombine.low %v233_v3, %v241_v4  ;;  %v6530_v3 = vld [vmem:[#allocation8 + $0x4] ss:$16 sps:$4 sm:$0xff]  }
  0xce   :  { %1153 = vmatprep.subr.bf16.mxu1 %v5716_v19  ;;  %v5719_v19 = vcombine.low %v234_v6, %v242_v7  ;;  %v5704_v22 = vcombine.high %v218_v16, %v226_v17  ;;  %v6533_v4 = vld [vmem:[#allocation8 + $0x204] ss:$16 sps:$4 sm:$0xff]   ;;  %v6528_v6 = vld [vmem:[#allocation8] ss:$16 sps:$4 sm:$0xff]  }
  0xcf   :  { %v6531_v7 = vld [vmem:[#allocation8 + $0x200] ss:$16 sps:$4 sm:$0xff]  }
  0xd0   :  { %1113 = vmatpush1.bf16.msra.mxu0 %v5713_v24  ;;  %v210_v24 = vld [vmem:[#allocation5 + $0xf8] sm:$0xff] }
  0xd1   :  { %1154 = vmatpush1.bf16.msra.mxu1 %v5715_v25  ;;  %1114 = vmatprep.subr.bf16.mxu0 %v5698_v26  ;;  %v5701_v25 = vcombine.low %v217_v12, %v225_v15  ;;  %v5703_v26 = vcombine.low %v218_v16, %v226_v17  ;;  %v5688_v30 = vcombine.high %v202_v23, %v210_v24  ;;  %v6548_v16 = vld [vmem:[#allocation8 + $0x1a4] ss:$16 sps:$4 sm:$0xff]  }
  0xd2   :  { %1155 = vmatprep.subr.bf16.mxu1 %v5700_v27  ;;  %v185_v27 = vld [vmem:[#allocation5 + $0x30] sm:$0xff]  ;;  %v5687_v34 = vcombine.low %v202_v23, %v210_v24 }
  0xd3   :  { %v5670_v35 = vcombine.high %v185_v27, %v193_v28  ;;  %v6551_v17 = vld [vmem:[#allocation8 + $0x3a4] ss:$16 sps:$4 sm:$0xff]  }
  0xd4   :  { %1115 = vmatpush1.bf16.msra.mxu0 %v5697_v32  ;;  %v194_v32 = vld [vmem:[#allocation5 + $0x78] sm:$0xff]  ;;  %v6560_v23 = vld [vmem:[#allocation8 + $0x164] ss:$16 sps:$4 sm:$0xff]  }
  0xd5   :  { %1156 = vmatpush1.bf16.msra.mxu1 %v5699_v33  ;;  %1116 = vmatprep.subr.bf16.mxu0 %v5682_v38  ;;  %v5685_v33 = vcombine.low %v201_v20, %v209_v21  ;;  %v5672_v36 = vcombine.high %v186_v31, %v194_v32  ;;  %v6491_v38 = vld [vmem:[#allocation8 + $0x2e4] ss:$16 sps:$4 sm:$0xff]   ;;  %v5671_v40 = vcombine.low %v186_v31, %v194_v32 }
  0xd6   :  { %1157 = vmatprep.subr.bf16.mxu1 %v5684_v39  ;;  %v5669_v39 = vcombine.low %v185_v27, %v193_v28  ;;  %v6554_v20 = vld [vmem:[#allocation8 + $0x184] ss:$16 sps:$4 sm:$0xff]  }
  0xd7   :  { %v6557_v21 = vld [vmem:[#allocation8 + $0x384] ss:$16 sps:$4 sm:$0xff]  }
  0xd8   :  { %1117 = vmatpush1.bf16.msra.mxu0 %v5681_v41  ;;  %v6486_v41 = vld [vmem:[#allocation8 + $0xe0] ss:$16 sps:$4 sm:$0xff]   ;;  %v6563_v24 = vld [vmem:[#allocation8 + $0x364] ss:$16 sps:$4 sm:$0xff]  }
  0xd9   :  { %1158 = vmatpush1.bf16.msra.mxu1 %v5683_v42  ;;  %1118 = vmatprep.subr.bf16.mxu0 %v5666_v44  ;;  %v6489_v42 = vld [vmem:[#allocation8 + $0x2e0] ss:$16 sps:$4 sm:$0xff]   ;;  %v6497_v44 = vld [vmem:[#allocation8 + $0x2c4] ss:$16 sps:$4 sm:$0xff]  }
  0xda   :  { %1159 = vmatprep.subr.bf16.mxu1 %v5668_v45  ;;  %v6492_v45 = vld [vmem:[#allocation8 + $0xc0] ss:$16 sps:$4 sm:$0xff]   ;;  %v6566_v27 = vld [vmem:[#allocation8 + $0x144] ss:$16 sps:$4 sm:$0xff]  }
  0xdb   :  { %v6569_v28 = vld [vmem:[#allocation8 + $0x344] ss:$16 sps:$4 sm:$0xff]  }
  0xdc   :  { %1119 = vmatpush1.bf16.msra.mxu0 %v5665_v46  ;;  %v6495_v46 = vld [vmem:[#allocation8 + $0x2c0] ss:$16 sps:$4 sm:$0xff]   ;;  %v6572_v31 = vld [vmem:[#allocation8 + $0x124] ss:$16 sps:$4 sm:$0xff]  }
  0xdd   :  { %1160 = vmatpush1.bf16.msra.mxu1 %v5667_v47  ;;  %5781 = vmatprep.subr.msk.bf16.mxu0 %vm891_vm0, %v5766_v48  ;;  %v6500_v47 = vld [vmem:[#allocation8 + $0xa4] ss:$16 sps:$4 sm:$0xff]  }
  0xde   :  { %5783 = vmatprep.subr.msk.bf16.mxu1 %vm891_vm0, %v5768_v54  ;;  %v6503_v48 = vld [vmem:[#allocation8 + $0x2a4] ss:$16 sps:$4 sm:$0xff]   ;;  %v6507_v54 = vld [vmem:[#allocation8 + $0x280] ss:$16 sps:$4 sm:$0xff]  }
  0xdf   :  { %5778 = vmatmul.mubr.msk.bf16.vlgmr.msra.gmra.mxu0 %vm887_vm1, %v7687_v5  ;;  %v6575_v32 = vld [vmem:[#allocation8 + $0x324] ss:$16 sps:$4 sm:$0xff]  }
  0xe0   :  { %5780 = vmatmul.mubr.msk.bf16.vlgmr.msra.gmra.mxu1 %vm887_vm1, %v7687_v5  ;;  %1189 = vmatpush1.bf16.msra.mxu0 %v929_v60  ;;  %v6516_v60 = vld [vmem:[#allocation8 + $0x40] ss:$16 sps:$4 sm:$0xff]  }
  0xe1   :  { %1230 = vmatpush1.bf16.msra.mxu1 %v935_v61  ;;  %1190 = vmatprep.subr.bf16.mxu0 %v5750_v62  ;;  %v6519_v61 = vld [vmem:[#allocation8 + $0x240] ss:$16 sps:$4 sm:$0xff]   ;;  %v6524_v62 = vld [vmem:[#allocation8 + $0x24] ss:$16 sps:$4 sm:$0xff]  }
  0xe2   :  { %1231 = vmatprep.subr.bf16.mxu1 %v5752_v63  ;;  %1218 = vmatprep.mubr.bf16.mxu0 %v7577_v0  ;;  %v6527_v63 = vld [vmem:[#allocation8 + $0x224] ss:$16 sps:$4 sm:$0xff]  }
  0xe3   :  { %1259 = vmatprep.mubr.bf16.mxu1 %v7577_v0  ;;  %v5702_v0 = vcombine.high %v217_v12, %v225_v15  ;;  %v6542_v12 = vld [vmem:[#allocation8 + $0x1c4] ss:$16 sps:$4 sm:$0xff]   ;;  %v6543_v15 = vld [vmem:[#allocation8 + $0x3c0] ss:$16 sps:$4 sm:$0xff]  }
  0xe4   :  { %1191 = vmatpush1.bf16.msra.mxu0 %v5749_v1  ;;  %v6522_v1 = vld [vmem:[#allocation8 + $0x20] ss:$16 sps:$4 sm:$0xff]  }
  0xe5   :  { %1232 = vmatpush1.bf16.msra.mxu1 %v5751_v2  ;;  %1192 = vmatprep.subr.bf16.mxu0 %v5734_v8  ;;  %v6525_v2 = vld [vmem:[#allocation8 + $0x220] ss:$16 sps:$4 sm:$0xff]   ;;  %v6536_v8 = vld [vmem:[#allocation8 + $0x1e4] ss:$16 sps:$4 sm:$0xff]  }
  0xe6   :  { %1233 = vmatprep.subr.bf16.mxu1 %v5736_v9  ;;  %v6539_v9 = vld [vmem:[#allocation8 + $0x3e4] ss:$16 sps:$4 sm:$0xff]  }
  0xe8   :  { %1193 = vmatpush1.bf16.msra.mxu0 %v5733_v10  ;;  %v6534_v10 = vld [vmem:[#allocation8 + $0x1e0] ss:$16 sps:$4 sm:$0xff]  }
  0xe9   :  { %1234 = vmatpush1.bf16.msra.mxu1 %v5735_v11  ;;  %1194 = vmatprep.subr.bf16.mxu0 %v5718_v13  ;;  %v6537_v11 = vld [vmem:[#allocation8 + $0x3e0] ss:$16 sps:$4 sm:$0xff]   ;;  %v6545_v13 = vld [vmem:[#allocation8 + $0x3c4] ss:$16 sps:$4 sm:$0xff]  }
  0xea   :  { %1235 = vmatprep.subr.bf16.mxu1 %v5720_v14  ;;  %v6540_v14 = vld [vmem:[#allocation8 + $0x1c0] ss:$16 sps:$4 sm:$0xff]  }
  0xec   :  { %1195 = vmatpush1.bf16.msra.mxu0 %v5717_v18  ;;  %v6546_v18 = vld [vmem:[#allocation8 + $0x1a0] ss:$16 sps:$4 sm:$0xff]  }
  0xed   :  { %1236 = vmatpush1.bf16.msra.mxu1 %v5719_v19  ;;  %1196 = vmatprep.subr.bf16.mxu0 %v5702_v0  ;;  %v6549_v19 = vld [vmem:[#allocation8 + $0x3a0] ss:$16 sps:$4 sm:$0xff]  }
  0xee   :  { %1237 = vmatprep.subr.bf16.mxu1 %v5704_v22  ;;  %v6552_v0 = vld [vmem:[#allocation8 + $0x180] ss:$16 sps:$4 sm:$0xff]  }
  0xef   :  { %v6555_v22 = vld [vmem:[#allocation8 + $0x380] ss:$16 sps:$4 sm:$0xff]  }
  0xf0   :  { %1197 = vmatpush1.bf16.msra.mxu0 %v5701_v25  ;;  %v6558_v25 = vld [vmem:[#allocation8 + $0x160] ss:$16 sps:$4 sm:$0xff]  }
  0xf1   :  { %1238 = vmatpush1.bf16.msra.mxu1 %v5703_v26  ;;  %1198 = vmatprep.subr.bf16.mxu0 %v5686_v29  ;;  %v6561_v26 = vld [vmem:[#allocation8 + $0x360] ss:$16 sps:$4 sm:$0xff]  }
  0xf2   :  { %1239 = vmatprep.subr.bf16.mxu1 %v5688_v30  ;;  %v6564_v29 = vld [vmem:[#allocation8 + $0x140] ss:$16 sps:$4 sm:$0xff]  }
  0xf3   :  { %v6567_v30 = vld [vmem:[#allocation8 + $0x340] ss:$16 sps:$4 sm:$0xff]  }
  0xf4   :  { %1199 = vmatpush1.bf16.msra.mxu0 %v5685_v33  ;;  %v6570_v33 = vld [vmem:[#allocation8 + $0x120] ss:$16 sps:$4 sm:$0xff]  }
  0xf5   :  { %1240 = vmatpush1.bf16.msra.mxu1 %v5687_v34  ;;  %1200 = vmatprep.subr.bf16.mxu0 %v5670_v35  ;;  %v6573_v34 = vld [vmem:[#allocation8 + $0x320] ss:$16 sps:$4 sm:$0xff]   ;;  %v6578_v35 = vld [vmem:[#allocation8 + $0x104] ss:$16 sps:$4 sm:$0xff]  }
  0xf6   :  { %1241 = vmatprep.subr.bf16.mxu1 %v5672_v36  ;;  %v6581_v36 = vld [vmem:[#allocation8 + $0x304] ss:$16 sps:$4 sm:$0xff]  }
  0xf8   :  { %1201 = vmatpush1.bf16.msra.mxu0 %v5669_v39  ;;  %v6584_v39 = vld [vmem:[#allocation8 + $0x4e4] ss:$16 sps:$4 sm:$0xff]  }
  0xf9   :  { %1242 = vmatpush1.bf16.msra.mxu1 %v5671_v40  ;;  %4394 = vmatprep.subr.bf16.mxu0 %v6488_v37  ;;  %v6576_v37 = vld [vmem:[#allocation8 + $0x100] ss:$16 sps:$4 sm:$0xff]   ;;  %v6587_v40 = vld [vmem:[#allocation8 + $0x6e4] ss:$16 sps:$4 sm:$0xff]  }
  0xfa   :  { %4435 = vmatprep.subr.bf16.mxu1 %v6491_v38  ;;  %v6579_v38 = vld [vmem:[#allocation8 + $0x300] ss:$16 sps:$4 sm:$0xff]  }
  0xfb   :  { %5782 = vmatmul.mubr.msk.bf16.vlgmr.msra.gmra.mxu0 %vm887_vm1, %v7687_v5 }
  0xfc   :  { %5784 = vmatmul.mubr.msk.bf16.vlgmr.msra.gmra.mxu1 %vm887_vm1, %v7687_v5  ;;  %4395 = vmatpush1.bf16.msra.mxu0 %v6486_v41  ;;  %v6510_v5 = vld [vmem:[#allocation8 + $0x60] ss:$16 sps:$4 sm:$0xff]   ;;  %v287_v41 = vlaneseq }
  0xfd   :  { %4436 = vmatpush1.bf16.msra.mxu1 %v6489_v42  ;;  %4396 = vmatprep.subr.bf16.mxu0 %v6494_v43  ;;  %v7725_v43 = vld [vmem:[#allocation7] sm:$0xff] }
  0xfe   :  { %4437 = vmatprep.subr.bf16.mxu1 %v6497_v44  ;;  %v7723_v42 = vshrl.u32 %v287_v41, 7  ;;  %v6621_v41 = vld [vmem:[#allocation8 + $0x620] ss:$16 sps:$4 sm:$0xff]  }
 0x100   :  { %4397 = vmatpush1.bf16.msra.mxu0 %v6492_v45  ;;  %v7728_v44 = vsub.s32 0, %v7723_v42  ;;  %v7731_v45 = vsub.s32 2, %v7723_v42 }
 0x101   :  { %4438 = vmatpush1.bf16.msra.mxu1 %v6495_v46  ;;  %4398 = vmatprep.subr.bf16.mxu0 %v6500_v47  ;;  %v7734_v46 = vsub.s32 1, %v7723_v42  ;;  %v7737_v47 = vsub.s32 3, %v7723_v42 }
 0x102   :  { %4439 = vmatprep.subr.bf16.mxu1 %v6503_v48  ;;  %v290_v48 = vrot.slane %v7725_v43, %v7728_v44 }
 0x104   :  { %4399 = vmatpush1.bf16.msra.mxu0 %v6498_v49  ;;  %v298_v49 = vrot.slane %v7725_v43, %v7731_v45 }
 0x105   :  { %4440 = vmatpush1.bf16.msra.mxu1 %v6501_v50  ;;  %4400 = vmatprep.subr.bf16.mxu0 %v6506_v51  ;;  %v294_v50 = vrot.slane %v7725_v43, %v7734_v46  ;;  %v302_v51 = vrot.slane %v7725_v43, %v7737_v47 }
 0x106   :  { %4441 = vmatprep.subr.bf16.mxu1 %v6509_v52 }
 0x108   :  { %4401 = vmatpush1.bf16.msra.mxu0 %v6504_v53 }
 0x109   :  { %4442 = vmatpush1.bf16.msra.mxu1 %v6507_v54  ;;  %4402 = vmatprep.subr.bf16.mxu0 %v6512_v55 }
 0x10a   :  { %4443 = vmatprep.subr.bf16.mxu1 %v6515_v56 }
 0x10c   :  { %4403 = vmatpush1.bf16.msra.mxu0 %v6510_v5 }
 0x10d   :  { %4444 = vmatpush1.bf16.msra.mxu1 %v6513_v57  ;;  %4404 = vmatprep.subr.bf16.mxu0 %v6518_v58 }
 0x10e   :  { %4445 = vmatprep.subr.bf16.mxu1 %v6521_v59 }
 0x110   :  { %4405 = vmatpush1.bf16.msra.mxu0 %v6516_v60 }
 0x111   :  { %4446 = vmatpush1.bf16.msra.mxu1 %v6519_v61  ;;  %4406 = vmatprep.subr.bf16.mxu0 %v6524_v62 }
 0x112   :  { %4447 = vmatprep.subr.bf16.mxu1 %v6527_v63 }
 0x114   :  { %4407 = vmatpush1.bf16.msra.mxu0 %v6522_v1 }
 0x115   :  { %4448 = vmatpush1.bf16.msra.mxu1 %v6525_v2  ;;  %4408 = vmatprep.subr.bf16.mxu0 %v6530_v3  ;;  %v6582_v2 = vld [vmem:[#allocation8 + $0x4e0] ss:$16 sps:$4 sm:$0xff]  }
 0x116   :  { %4449 = vmatprep.subr.bf16.mxu1 %v6533_v4  ;;  %v6585_v3 = vld [vmem:[#allocation8 + $0x6e0] ss:$16 sps:$4 sm:$0xff]  }
 0x118   :  { %4409 = vmatpush1.bf16.msra.mxu0 %v6528_v6 }
 0x119   :  { %4450 = vmatpush1.bf16.msra.mxu1 %v6531_v7  ;;  %4410 = vmatprep.subr.bf16.mxu0 %v6536_v8 }
 0x11a   :  { %4451 = vmatprep.subr.bf16.mxu1 %v6539_v9 }
 0x11c   :  { %4411 = vmatpush2.bf16.msra.mxu0 %v6534_v10 }
 0x11d   :  { %4452 = vmatpush2.bf16.msra.mxu1 %v6537_v11  ;;  %4412 = vmatprep.subr.bf16.mxu0 %v6542_v12  ;;  %v6590_v11 = vld [vmem:[#allocation8 + $0x4c4] ss:$16 sps:$4 sm:$0xff]  }
 0x11e   :  { %4453 = vmatprep.subr.bf16.mxu1 %v6545_v13  ;;  %v6593_v12 = vld [vmem:[#allocation8 + $0x6c4] ss:$16 sps:$4 sm:$0xff]   ;;  %v6588_v13 = vld [vmem:[#allocation8 + $0x4c0] ss:$16 sps:$4 sm:$0xff]  }
 0x120   :  { %4413 = vmatpush2.bf16.msra.mxu0 %v6540_v14  ;;  %v6591_v14 = vld [vmem:[#allocation8 + $0x6c0] ss:$16 sps:$4 sm:$0xff]  }
 0x121   :  { %4454 = vmatpush2.bf16.msra.mxu1 %v6543_v15  ;;  %4414 = vmatprep.subr.bf16.mxu0 %v6548_v16  ;;  %v6596_v15 = vld [vmem:[#allocation8 + $0x4a4] ss:$16 sps:$4 sm:$0xff]  }
 0x122   :  { %4455 = vmatprep.subr.bf16.mxu1 %v6551_v17  ;;  %v6599_v16 = vld [vmem:[#allocation8 + $0x6a4] ss:$16 sps:$4 sm:$0xff]   ;;  %v6594_v17 = vld [vmem:[#allocation8 + $0x4a0] ss:$16 sps:$4 sm:$0xff]  }
 0x124   :  { %4415 = vmatpush2.bf16.msra.mxu0 %v6546_v18  ;;  %v6597_v18 = vld [vmem:[#allocation8 + $0x6a0] ss:$16 sps:$4 sm:$0xff]  }
 0x125   :  { %4456 = vmatpush2.bf16.msra.mxu1 %v6549_v19  ;;  %4416 = vmatprep.subr.bf16.mxu0 %v6554_v20  ;;  %v6602_v19 = vld [vmem:[#allocation8 + $0x484] ss:$16 sps:$4 sm:$0xff]  }
 0x126   :  { %4457 = vmatprep.subr.bf16.mxu1 %v6557_v21  ;;  %v6605_v20 = vld [vmem:[#allocation8 + $0x684] ss:$16 sps:$4 sm:$0xff]   ;;  %v6600_v21 = vld [vmem:[#allocation8 + $0x480] ss:$16 sps:$4 sm:$0xff]  }
 0x128   :  { %4417 = vmatpush2.bf16.msra.mxu0 %v6552_v0  ;;  %v6603_v0 = vld [vmem:[#allocation8 + $0x680] ss:$16 sps:$4 sm:$0xff]  }
 0x129   :  { %4458 = vmatpush2.bf16.msra.mxu1 %v6555_v22  ;;  %4418 = vmatprep.subr.bf16.mxu0 %v6560_v23  ;;  %v6608_v22 = vld [vmem:[#allocation8 + $0x464] ss:$16 sps:$4 sm:$0xff]  }
 0x12a   :  { %4459 = vmatprep.subr.bf16.mxu1 %v6563_v24  ;;  %v6611_v23 = vld [vmem:[#allocation8 + $0x664] ss:$16 sps:$4 sm:$0xff]   ;;  %v6606_v24 = vld [vmem:[#allocation8 + $0x460] ss:$16 sps:$4 sm:$0xff]  }
 0x12c   :  { %4419 = vmatpush2.bf16.msra.mxu0 %v6558_v25  ;;  %v6609_v25 = vld [vmem:[#allocation8 + $0x660] ss:$16 sps:$4 sm:$0xff]  }
 0x12d   :  { %4460 = vmatpush2.bf16.msra.mxu1 %v6561_v26  ;;  %4420 = vmatprep.subr.bf16.mxu0 %v6566_v27  ;;  %v309_v26 = vsub.s32 5, %v7723_v42  ;;  %v317_v27 = vsub.s32 7, %v7723_v42 }
 0x12e   :  { %4461 = vmatprep.subr.bf16.mxu1 %v6569_v28  ;;  %v6614_v28 = vld [vmem:[#allocation8 + $0x444] ss:$16 sps:$4 sm:$0xff]  }
 0x130   :  { %4421 = vmatpush2.bf16.msra.mxu0 %v6564_v29  ;;  %v6617_v29 = vld [vmem:[#allocation8 + $0x644] ss:$16 sps:$4 sm:$0xff]  }
 0x131   :  { %4462 = vmatpush2.bf16.msra.mxu1 %v6567_v30  ;;  %4422 = vmatprep.subr.bf16.mxu0 %v6572_v31  ;;  %v6612_v30 = vld [vmem:[#allocation8 + $0x440] ss:$16 sps:$4 sm:$0xff]  }
 0x132   :  { %4463 = vmatprep.subr.bf16.mxu1 %v6575_v32  ;;  %v6615_v31 = vld [vmem:[#allocation8 + $0x640] ss:$16 sps:$4 sm:$0xff]   ;;  %v310_v32 = vrot.slane %v7725_v43, %v309_v26 }
 0x134   :  { %4423 = vmatpush2.bf16.msra.mxu0 %v6570_v33  ;;  %v318_v33 = vrot.slane %v7725_v43, %v317_v27 }
 0x135   :  { %4464 = vmatpush2.bf16.msra.mxu1 %v6573_v34  ;;  %4424 = vmatprep.subr.bf16.mxu0 %v6578_v35  ;;  %v6620_v34 = vld [vmem:[#allocation8 + $0x424] ss:$16 sps:$4 sm:$0xff]  }
 0x136   :  { %4465 = vmatprep.subr.bf16.mxu1 %v6581_v36  ;;  %v6623_v35 = vld [vmem:[#allocation8 + $0x624] ss:$16 sps:$4 sm:$0xff]  }
 0x138   :  { %4425 = vmatpush2.bf16.msra.mxu0 %v6576_v37 }
 0x139   :  { %4466 = vmatpush2.bf16.msra.mxu1 %v6579_v38  ;;  %4476 = vmatprep.subr.bf16.mxu0 %v6584_v39 }
 0x13a   :  { %4517 = vmatprep.subr.bf16.mxu1 %v6587_v40  ;;  %v6618_v40 = vld [vmem:[#allocation8 + $0x420] ss:$16 sps:$4 sm:$0xff]  }
 0x167   :  { %v974_v52 = vpop.f32.mrf.mxu0 }
 0x168   :  { %v1015_v53 = vpop.f32.mrf.mxu1  ;;  %v975_v54 = vadd.f32 %v974_v52, %v290_v48 }
 0x169   :  { %v1016_v55 = vadd.f32 %v1015_v53, %v298_v49  ;;  %v976_v56 = vpop.f32.mrf.mxu0 }
 0x16a   :  { %v1017_v5 = vpop.f32.mrf.mxu1  ;;  %v977_v58 = vadd.f32 %v976_v56, %v294_v50  ;;  %v1268_v60 = vmax.f32 %v975_v54, 0.0  ;;  %v6626_v50 = vld [vmem:[#allocation8 + $0x404] ss:$16 sps:$4 sm:$0xff]  }
 0x16b   :  { %v1270_v57 = vmax.f32 %v1016_v55, 0.0  ;;  %v1018_v59 = vadd.f32 %v1017_v5, %v302_v51  ;;  %v978_v61 = vpop.f32.mrf.mxu0  ;;  %v6629_v51 = vld [vmem:[#allocation8 + $0x604] ss:$16 sps:$4 sm:$0xff]  }
 0x16c   :  { %v1019_v62 = vpop.f32.mrf.mxu1  ;;  %v1269_v63 = vmax.f32 %v977_v58, 0.0  ;;  %v7753_v10 = vpack.c.bf16 %v1268_v60, %v1268_v60  ;;  %v6627_v58 = vld [vmem:[#allocation8 + $0x600] ss:$16 sps:$4 sm:$0xff]   ;;  %v6632_v61 = vld [vmem:[#allocation8 + $0x5e4] ss:$16 sps:$4 sm:$0xff]  }
 0x16d   :  { %v1271_v1 = vmax.f32 %v1018_v59, 0.0  ;;  %v7747_v4 = vpack.c.bf16 %v1270_v57, %v1270_v57  ;;  %v979_v6 = vpop.f32.mrf.mxu0  ;;  %v6624_v57 = vld [vmem:[#allocation8 + $0x400] ss:$16 sps:$4 sm:$0xff]   ;;  %v6635_v62 = vld [vmem:[#allocation8 + $0x7e4] ss:$16 sps:$4 sm:$0xff]  }
 0x16e   :  { %v1020_v7 = vpop.f32.mrf.mxu1  ;;  %v7749_v8 = vpack.c.bf16 %v1269_v63, %v1269_v63  ;;  %v6630_v63 = vld [vmem:[#allocation8 + $0x5e0] ss:$16 sps:$4 sm:$0xff]  }
 0x16f   :  { %v7751_v9 = vpack.c.bf16 %v1271_v1, %v1271_v1  ;;  %v6633_v1 = vld [vmem:[#allocation8 + $0x7e0] ss:$16 sps:$4 sm:$0xff]  }
 0x170   :  { %4426 = vmatprep.mubr.bf16.mxu0 %v7749_v8  ;;  %v6636_v6 = vld [vmem:[#allocation8 + $0x5c0] ss:$16 sps:$4 sm:$0xff]  }
 0x171   :  { %4467 = vmatprep.mubr.bf16.mxu1 %v7751_v9  ;;  %4427 = vmatmul.mubr.bf16.vlgmr.msra.gmra.mxu0 %v7753_v10  ;;  %v6639_v7 = vld [vmem:[#allocation8 + $0x7c0] ss:$16 sps:$4 sm:$0xff]  }
 0x172   :  { %4468 = vmatmul.mubr.bf16.vlgmr.msra.gmra.mxu1 %v7747_v4  ;;  %4477 = vmatpush1.bf16.msra.mxu0 %v6582_v2  ;;  %v6638_v2 = vld [vmem:[#allocation8 + $0x5c4] ss:$16 sps:$4 sm:$0xff]  }
 0x173   :  { %4518 = vmatpush1.bf16.msra.mxu1 %v6585_v3  ;;  %4478 = vmatprep.subr.bf16.mxu0 %v6590_v11  ;;  %v6641_v3 = vld [vmem:[#allocation8 + $0x7c4] ss:$16 sps:$4 sm:$0xff]  }
 0x174   :  { %4519 = vmatprep.subr.bf16.mxu1 %v6593_v12  ;;  %v6644_v11 = vld [vmem:[#allocation8 + $0x5a4] ss:$16 sps:$4 sm:$0xff]  }
 0x175   :  { %v6647_v12 = vld [vmem:[#allocation8 + $0x7a4] ss:$16 sps:$4 sm:$0xff]  }
 0x176   :  { %4479 = vmatpush1.bf16.msra.mxu0 %v6588_v13  ;;  %v6642_v13 = vld [vmem:[#allocation8 + $0x5a0] ss:$16 sps:$4 sm:$0xff]  }
 0x177   :  { %4520 = vmatpush1.bf16.msra.mxu1 %v6591_v14  ;;  %4480 = vmatprep.subr.bf16.mxu0 %v6596_v15  ;;  %v6645_v14 = vld [vmem:[#allocation8 + $0x7a0] ss:$16 sps:$4 sm:$0xff]   ;;  %v6650_v15 = vld [vmem:[#allocation8 + $0x584] ss:$16 sps:$4 sm:$0xff]  }
 0x178   :  { %4521 = vmatprep.subr.bf16.mxu1 %v6599_v16  ;;  %v6653_v16 = vld [vmem:[#allocation8 + $0x784] ss:$16 sps:$4 sm:$0xff]  }
 0x17a   :  { %4481 = vmatpush1.bf16.msra.mxu0 %v6594_v17  ;;  %v6648_v17 = vld [vmem:[#allocation8 + $0x580] ss:$16 sps:$4 sm:$0xff]  }
 0x17b   :  { %4522 = vmatpush1.bf16.msra.mxu1 %v6597_v18  ;;  %4482 = vmatprep.subr.bf16.mxu0 %v6602_v19  ;;  %v6651_v18 = vld [vmem:[#allocation8 + $0x780] ss:$16 sps:$4 sm:$0xff]   ;;  %v6656_v19 = vld [vmem:[#allocation8 + $0x564] ss:$16 sps:$4 sm:$0xff]  }
 0x17c   :  { %4523 = vmatprep.subr.bf16.mxu1 %v6605_v20  ;;  %v6659_v20 = vld [vmem:[#allocation8 + $0x764] ss:$16 sps:$4 sm:$0xff]  }
 0x17e   :  { %4483 = vmatpush1.bf16.msra.mxu0 %v6600_v21  ;;  %v6654_v21 = vld [vmem:[#allocation8 + $0x560] ss:$16 sps:$4 sm:$0xff]  }
 0x17f   :  { %4524 = vmatpush1.bf16.msra.mxu1 %v6603_v0  ;;  %4484 = vmatprep.subr.bf16.mxu0 %v6608_v22  ;;  %v313_v0 = vsub.s32 6, %v7723_v42  ;;  %v6657_v22 = vld [vmem:[#allocation8 + $0x760] ss:$16 sps:$4 sm:$0xff]  }
 0x180   :  { %4525 = vmatprep.subr.bf16.mxu1 %v6611_v23  ;;  %v6662_v23 = vld [vmem:[#allocation8 + $0x544] ss:$16 sps:$4 sm:$0xff]  }
 0x182   :  { %4485 = vmatpush1.bf16.msra.mxu0 %v6606_v24  ;;  %v305_v24 = vsub.s32 4, %v7723_v42  ;;  %v6768_v42 = vld [vmem:[#allocation8 + $0x900] ss:$16 sps:$4 sm:$0xff]  }
 0x183   :  { %4526 = vmatpush1.bf16.msra.mxu1 %v6609_v25  ;;  %4486 = vmatprep.subr.bf16.mxu0 %v6614_v28  ;;  %v7767_v36 = vpop.f32.mrf.mxu0  ;;  %v6665_v25 = vld [vmem:[#allocation8 + $0x744] ss:$16 sps:$4 sm:$0xff]   ;;  %v7779_v28 = vld [vmem:[#allocation7 + $0x8] sm:$0xff] }
 0x184   :  { %4527 = vmatprep.subr.bf16.mxu1 %v6617_v29  ;;  %v7769_v37 = vpop.f32.mrf.mxu1 }
 0x185   :  { %v1058_v38 = vpop.f32.mrf.mxu0 }
 0x186   :  { %v1099_v39 = vpop.f32.mrf.mxu1  ;;  %4487 = vmatpush1.bf16.msra.mxu0 %v6612_v30  ;;  %v1059_v48 = vadd.f32 %v1058_v38, %v310_v32  ;;  %v306_v38 = vrot.slane %v7725_v43, %v305_v24 }
 0x187   :  { %4528 = vmatpush1.bf16.msra.mxu1 %v6615_v31  ;;  %v1100_v49 = vadd.f32 %v1099_v39, %v318_v33  ;;  %4488 = vmatprep.subr.bf16.mxu0 %v6620_v34  ;;  %v1060_v52 = vpop.f32.mrf.mxu0  ;;  %v314_v31 = vrot.slane %v7725_v43, %v313_v0  ;;  %v6660_v34 = vld [vmem:[#allocation8 + $0x540] ss:$16 sps:$4 sm:$0xff]   ;;  %v6668_v39 = vld [vmem:[#allocation8 + $0x524] ss:$16 sps:$4 sm:$0xff]  }
 0x188   :  { %4529 = vmatprep.subr.bf16.mxu1 %v6623_v35  ;;  %v1101_v53 = vpop.f32.mrf.mxu1  ;;  %v1273_v54 = vmax.f32 %v1059_v48, 0.0  ;;  %v6663_v35 = vld [vmem:[#allocation8 + $0x740] ss:$16 sps:$4 sm:$0xff]  }
 0x189   :  { %v1275_v55 = vmax.f32 %v1100_v49, 0.0  ;;  %v1061_v56 = vpop.f32.mrf.mxu0  ;;  %v326_v49 = vrot.slane %v7779_v28, %v7734_v46  ;;  %v6669_v43 = vld [vmem:[#allocation8 + $0x720] ss:$16 sps:$4 sm:$0xff]  }
 0x18a   :  { %v1102_v5 = vpop.f32.mrf.mxu1  ;;  %4489 = vmatpush1.bf16.msra.mxu0 %v6618_v40  ;;  %v7771_v59 = vpack.c.bf16 %v1273_v54, %v1273_v54  ;;  %v6671_v40 = vld [vmem:[#allocation8 + $0x724] ss:$16 sps:$4 sm:$0xff]   ;;  %v6666_v54 = vld [vmem:[#allocation8 + $0x520] ss:$16 sps:$4 sm:$0xff]  }
 0x18b   :  { %4530 = vmatpush1.bf16.msra.mxu1 %v6621_v41  ;;  %v7773_v60 = vpack.c.bf16 %v1275_v55, %v1275_v55  ;;  %4490 = vmatprep.subr.bf16.mxu0 %v6626_v50  ;;  %v334_v50 = vrot.slane %v7779_v28, %v7737_v47  ;;  %v1057_v55 = vadd.f32 %v7767_v36, %v306_v38  ;;  %v6674_v56 = vld [vmem:[#allocation8 + $0x504] ss:$16 sps:$4 sm:$0xff]  }
 0x18c   :  { %4531 = vmatprep.subr.bf16.mxu1 %v6629_v51  ;;  %4508 = vmatprep.mubr.bf16.mxu0 %v7771_v59  ;;  %v1098_v51 = vadd.f32 %v7769_v37, %v314_v31  ;;  %v6677_v5 = vld [vmem:[#allocation8 + $0x704] ss:$16 sps:$4 sm:$0xff]   ;;  %v6696_v31 = vld [vmem:[#allocation8 + $0x880] ss:$16 sps:$4 sm:$0xff]  }
 0x18d   :  { %4549 = vmatprep.mubr.bf16.mxu1 %v7773_v60  ;;  %v1272_v37 = vmax.f32 %v1057_v55, 0.0  ;;  %v6707_v38 = vld [vmem:[#allocation8 + $0xa64] ss:$16 sps:$4 sm:$0xff]   ;;  %v6711_v55 = vld [vmem:[#allocation8 + $0xa40] ss:$16 sps:$4 sm:$0xff]  }
 0x18e   :  { %4491 = vmatpush1.bf16.msra.mxu0 %v6624_v57 }
 0x18f   :  { %4532 = vmatpush1.bf16.msra.mxu1 %v6627_v58  ;;  %4492 = vmatprep.subr.bf16.mxu0 %v6632_v61  ;;  %v1274_v61 = vmax.f32 %v1098_v51, 0.0  ;;  %v6710_v51 = vld [vmem:[#allocation8 + $0x844] ss:$16 sps:$4 sm:$0xff]  }
 0x190   :  { %4533 = vmatprep.subr.bf16.mxu1 %v6635_v62  ;;  %v6672_v62 = vld [vmem:[#allocation8 + $0x500] ss:$16 sps:$4 sm:$0xff]  }
 0x192   :  { %4493 = vmatpush2.bf16.msra.mxu0 %v6630_v63  ;;  %v6675_v63 = vld [vmem:[#allocation8 + $0x700] ss:$16 sps:$4 sm:$0xff]  }
 0x193   :  { %4534 = vmatpush2.bf16.msra.mxu1 %v6633_v1  ;;  %4494 = vmatprep.subr.bf16.mxu0 %v6638_v2  ;;  %v6680_v1 = vld [vmem:[#allocation8 + $0x8e4] ss:$16 sps:$4 sm:$0xff]  }
 0x194   :  { %4535 = vmatprep.subr.bf16.mxu1 %v6641_v3  ;;  %v6683_v2 = vld [vmem:[#allocation8 + $0xae4] ss:$16 sps:$4 sm:$0xff]   ;;  %v6678_v3 = vld [vmem:[#allocation8 + $0x8e0] ss:$16 sps:$4 sm:$0xff]  }
 0x196   :  { %4495 = vmatpush2.bf16.msra.mxu0 %v6636_v6  ;;  %v6681_v6 = vld [vmem:[#allocation8 + $0xae0] ss:$16 sps:$4 sm:$0xff]  }
 0x197   :  { %4536 = vmatpush2.bf16.msra.mxu1 %v6639_v7  ;;  %4496 = vmatprep.subr.bf16.mxu0 %v6644_v11  ;;  %v7797_v11 = vpack.c.bf16 %v1274_v61, %v1274_v61  ;;  %v6714_v61 = vld [vmem:[#allocation8 + $0x820] ss:$16 sps:$4 sm:$0xff]  }
 0x198   :  { %4537 = vmatprep.subr.bf16.mxu1 %v6647_v12  ;;  %v7799_v12 = vpack.c.bf16 %v1272_v37, %v1272_v37  ;;  %v6725_v37 = vld [vmem:[#allocation8 + $0xa04] ss:$16 sps:$4 sm:$0xff]  }
 0x19a   :  { %4497 = vmatpush2.bf16.msra.mxu0 %v6642_v13  ;;  %v6686_v13 = vld [vmem:[#allocation8 + $0x8c4] ss:$16 sps:$4 sm:$0xff]  }
 0x19b   :  { %4538 = vmatpush2.bf16.msra.mxu1 %v6645_v14  ;;  %4498 = vmatprep.subr.bf16.mxu0 %v6650_v15  ;;  %v6689_v14 = vld [vmem:[#allocation8 + $0xac4] ss:$16 sps:$4 sm:$0xff]   ;;  %v6684_v15 = vld [vmem:[#allocation8 + $0x8c0] ss:$16 sps:$4 sm:$0xff]  }
 0x19c   :  { %4539 = vmatprep.subr.bf16.mxu1 %v6653_v16  ;;  %v6687_v16 = vld [vmem:[#allocation8 + $0xac0] ss:$16 sps:$4 sm:$0xff]  }
 0x19e   :  { %4499 = vmatpush2.bf16.msra.mxu0 %v6648_v17 }
 0x19f   :  { %4540 = vmatpush2.bf16.msra.mxu1 %v6651_v18  ;;  %4500 = vmatprep.subr.bf16.mxu0 %v6656_v19  ;;  %v7781_v29 = vpop.f32.mrf.mxu0  ;;  %v6692_v19 = vld [vmem:[#allocation8 + $0x8a4] ss:$16 sps:$4 sm:$0xff]  }
 0x1a0   :  { %4541 = vmatprep.subr.bf16.mxu1 %v6659_v20  ;;  %v7783_v30 = vpop.f32.mrf.mxu1  ;;  %v6695_v20 = vld [vmem:[#allocation8 + $0xaa4] ss:$16 sps:$4 sm:$0xff]  }
 0x1a1   :  { %v1140_v32 = vpop.f32.mrf.mxu0 }
 0x1a2   :  { %v1181_v33 = vpop.f32.mrf.mxu1  ;;  %4501 = vmatpush2.bf16.msra.mxu0 %v6654_v21  ;;  %v1141_v57 = vadd.f32 %v1140_v32, %v326_v49  ;;  %v6690_v21 = vld [vmem:[#allocation8 + $0x8a0] ss:$16 sps:$4 sm:$0xff]  }
 0x1a3   :  { %4542 = vmatpush2.bf16.msra.mxu1 %v6657_v22  ;;  %4502 = vmatprep.subr.bf16.mxu0 %v6662_v23  ;;  %v1142_v41 = vpop.f32.mrf.mxu0  ;;  %v1182_v58 = vadd.f32 %v1181_v33, %v334_v50  ;;  %v6693_v22 = vld [vmem:[#allocation8 + $0xaa0] ss:$16 sps:$4 sm:$0xff]   ;;  %v6698_v23 = vld [vmem:[#allocation8 + $0x884] ss:$16 sps:$4 sm:$0xff]   ;;  %v338_v33 = vrot.slane %v7779_v28, %v305_v24 }
 0x1a4   :  { %4543 = vmatprep.subr.bf16.mxu1 %v6665_v25  ;;  %v1183_v48 = vpop.f32.mrf.mxu1  ;;  %v1277_v7 = vmax.f32 %v1141_v57, 0.0  ;;  %v6701_v25 = vld [vmem:[#allocation8 + $0xa84] ss:$16 sps:$4 sm:$0xff]   ;;  %v6699_v32 = vld [vmem:[#allocation8 + $0xa80] ss:$16 sps:$4 sm:$0xff]  }
 0x1a5   :  { %v1143_v52 = vpop.f32.mrf.mxu0  ;;  %v1279_v36 = vmax.f32 %v1182_v58, 0.0  ;;  %v6702_v41 = vld [vmem:[#allocation8 + $0x860] ss:$16 sps:$4 sm:$0xff]   ;;  %v6716_v57 = vld [vmem:[#allocation8 + $0x824] ss:$16 sps:$4 sm:$0xff]  }
 0x1a6   :  { %v1184_v53 = vpop.f32.mrf.mxu1  ;;  %4503 = vmatpush2.bf16.msra.mxu0 %v6660_v34  ;;  %v7801_v17 = vpack.c.bf16 %v1277_v7, %v1277_v7  ;;  %v346_v34 = vrot.slane %v7779_v28, %v313_v0  ;;  %v6705_v0 = vld [vmem:[#allocation8 + $0xa60] ss:$16 sps:$4 sm:$0xff]   ;;  %v6713_v52 = vld [vmem:[#allocation8 + $0xa44] ss:$16 sps:$4 sm:$0xff]  }
 0x1a7   :  { %4544 = vmatpush2.bf16.msra.mxu1 %v6663_v35  ;;  %4504 = vmatprep.subr.bf16.mxu0 %v6668_v39  ;;  %v7803_v18 = vpack.c.bf16 %v1279_v36, %v1279_v36  ;;  %v6704_v35 = vld [vmem:[#allocation8 + $0x864] ss:$16 sps:$4 sm:$0xff]   ;;  %v6726_v7 = vld [vmem:[#allocation8 + $0x9e0] ss:$16 sps:$4 sm:$0xff]  }
 0x1a8   :  { %4545 = vmatprep.subr.bf16.mxu1 %v6671_v40  ;;  %v6719_v58 = vld [vmem:[#allocation8 + $0xa24] ss:$16 sps:$4 sm:$0xff]   ;;  %v6729_v36 = vld [vmem:[#allocation8 + $0xbe0] ss:$16 sps:$4 sm:$0xff]  }
 0x1aa   :  { %4505 = vmatpush2.bf16.msra.mxu0 %v6666_v54 }
 0x1ab   :  { %4546 = vmatpush2.bf16.msra.mxu1 %v6669_v43  ;;  %4506 = vmatprep.subr.bf16.mxu0 %v6674_v56  ;;  %v6708_v43 = vld [vmem:[#allocation8 + $0x840] ss:$16 sps:$4 sm:$0xff]  }
 0x1ac   :  { %4547 = vmatprep.subr.bf16.mxu1 %v6677_v5 }
 0x1ae   :  { %4507 = vmatpush2.bf16.msra.mxu0 %v6672_v62  ;;  %v6717_v62 = vld [vmem:[#allocation8 + $0xa20] ss:$16 sps:$4 sm:$0xff]  }
 0x1af   :  { %4548 = vmatpush2.bf16.msra.mxu1 %v6675_v63  ;;  %4558 = vmatprep.subr.bf16.mxu0 %v6680_v1  ;;  %v6722_v63 = vld [vmem:[#allocation8 + $0x804] ss:$16 sps:$4 sm:$0xff]   ;;  %v6720_v1 = vld [vmem:[#allocation8 + $0x800] ss:$16 sps:$4 sm:$0xff]  }
 0x1b0   :  { %4599 = vmatprep.subr.bf16.mxu1 %v6683_v2  ;;  %v6723_v2 = vld [vmem:[#allocation8 + $0xa00] ss:$16 sps:$4 sm:$0xff]  }
 0x1b1   :  { %4509 = vmatmul.mubr.bf16.vlgmr.msra.gmra.mxu0 %v7799_v12 }
 0x1b2   :  { %4550 = vmatmul.mubr.bf16.vlgmr.msra.gmra.mxu1 %v7797_v11  ;;  %4559 = vmatpush1.bf16.msra.mxu0 %v6678_v3  ;;  %v6728_v3 = vld [vmem:[#allocation8 + $0x9e4] ss:$16 sps:$4 sm:$0xff]  }
 0x1b3   :  { %4600 = vmatpush1.bf16.msra.mxu1 %v6681_v6  ;;  %4560 = vmatprep.subr.bf16.mxu0 %v6686_v13  ;;  %v6731_v6 = vld [vmem:[#allocation8 + $0xbe4] ss:$16 sps:$4 sm:$0xff]  }
 0x1b4   :  { %4601 = vmatprep.subr.bf16.mxu1 %v6689_v14  ;;  %4590 = vmatprep.mubr.bf16.mxu0 %v7801_v17  ;;  %v6734_v13 = vld [vmem:[#allocation8 + $0x9c4] ss:$16 sps:$4 sm:$0xff]  }
 0x1b5   :  { %4631 = vmatprep.mubr.bf16.mxu1 %v7803_v18  ;;  %v6737_v14 = vld [vmem:[#allocation8 + $0xbc4] ss:$16 sps:$4 sm:$0xff]  }
 0x1b6   :  { %4561 = vmatpush1.bf16.msra.mxu0 %v6684_v15  ;;  %v6732_v15 = vld [vmem:[#allocation8 + $0x9c0] ss:$16 sps:$4 sm:$0xff]  }
 0x1b7   :  { %4602 = vmatpush1.bf16.msra.mxu1 %v6687_v16  ;;  %4562 = vmatprep.subr.bf16.mxu0 %v6692_v19  ;;  %v6735_v16 = vld [vmem:[#allocation8 + $0xbc0] ss:$16 sps:$4 sm:$0xff]   ;;  %v6740_v19 = vld [vmem:[#allocation8 + $0x9a4] ss:$16 sps:$4 sm:$0xff]  }
 0x1b8   :  { %4603 = vmatprep.subr.bf16.mxu1 %v6695_v20  ;;  %v6743_v20 = vld [vmem:[#allocation8 + $0xba4] ss:$16 sps:$4 sm:$0xff]  }
 0x1ba   :  { %4563 = vmatpush1.bf16.msra.mxu0 %v6690_v21  ;;  %v6738_v21 = vld [vmem:[#allocation8 + $0x9a0] ss:$16 sps:$4 sm:$0xff]  }
 0x1bb   :  { %4604 = vmatpush1.bf16.msra.mxu1 %v6693_v22  ;;  %4564 = vmatprep.subr.bf16.mxu0 %v6698_v23  ;;  %v1220_v39 = vpop.f32.mrf.mxu0  ;;  %v6741_v22 = vld [vmem:[#allocation8 + $0xba0] ss:$16 sps:$4 sm:$0xff]   ;;  %v6746_v23 = vld [vmem:[#allocation8 + $0x984] ss:$16 sps:$4 sm:$0xff]  }
 0x1bc   :  { %4605 = vmatprep.subr.bf16.mxu1 %v6701_v25  ;;  %v1261_v40 = vpop.f32.mrf.mxu1  ;;  %v7815_v48 = vadd.f32 %v1220_v39, %v338_v33  ;;  %v6749_v25 = vld [vmem:[#allocation8 + $0xb84] ss:$16 sps:$4 sm:$0xff]  }
 0x1bd   :  { %v7817_v49 = vadd.f32 %v1261_v40, %v346_v34  ;;  %v7819_v50 = vpop.f32.mrf.mxu0  ;;  %v6752_v33 = vld [vmem:[#allocation8 + $0x964] ss:$16 sps:$4 sm:$0xff]  }
 0x1be   :  { %v7821_v24 = vpop.f32.mrf.mxu1  ;;  %4565 = vmatpush1.bf16.msra.mxu0 %v6696_v31  ;;  %v6744_v31 = vld [vmem:[#allocation8 + $0x980] ss:$16 sps:$4 sm:$0xff]   ;;  %v6755_v34 = vld [vmem:[#allocation8 + $0xb64] ss:$16 sps:$4 sm:$0xff]  }
 0x1bf   :  { %4606 = vmatpush1.bf16.msra.mxu1 %v6699_v32  ;;  %4566 = vmatprep.subr.bf16.mxu0 %v6704_v35  ;;  %v1224_v53 = vpop.f32.mrf.mxu0  ;;  %v6747_v32 = vld [vmem:[#allocation8 + $0xb80] ss:$16 sps:$4 sm:$0xff]   ;;  %v6758_v39 = vld [vmem:[#allocation8 + $0x944] ss:$16 sps:$4 sm:$0xff]  }
 0x1c0   :  { %4607 = vmatprep.subr.bf16.mxu1 %v6707_v38  ;;  %v1265_v54 = vpop.f32.mrf.mxu1  ;;  %v6750_v35 = vld [vmem:[#allocation8 + $0x960] ss:$16 sps:$4 sm:$0xff]   ;;  %v6761_v40 = vld [vmem:[#allocation8 + $0xb44] ss:$16 sps:$4 sm:$0xff]  }
 0x1c1   :  { %v1225_v56 = vpop.f32.mrf.mxu0  ;;  %v6753_v38 = vld [vmem:[#allocation8 + $0xb60] ss:$16 sps:$4 sm:$0xff]   ;;  %v6764_v53 = vld [vmem:[#allocation8 + $0x924] ss:$16 sps:$4 sm:$0xff]  }
 0x1c2   :  { %v1266_v5 = vpop.f32.mrf.mxu1  ;;  %4567 = vmatpush1.bf16.msra.mxu0 %v6702_v41  ;;  %v6756_v41 = vld [vmem:[#allocation8 + $0x940] ss:$16 sps:$4 sm:$0xff]   ;;  %v6767_v54 = vld [vmem:[#allocation8 + $0xb24] ss:$16 sps:$4 sm:$0xff]  }
 0x1c3   :  { %4608 = vmatpush1.bf16.msra.mxu1 %v6705_v0  ;;  %4568 = vmatprep.subr.bf16.mxu0 %v6710_v51  ;;  %v6759_v0 = vld [vmem:[#allocation8 + $0xb40] ss:$16 sps:$4 sm:$0xff]   ;;  %v322_v51 = vrot.slane %v7779_v28, %v7728_v44 }
 0x1c4   :  { %4609 = vmatprep.subr.bf16.mxu1 %v6713_v52  ;;  %v330_v52 = vrot.slane %v7779_v28, %v7731_v45  ;;  %v6762_v56 = vld [vmem:[#allocation8 + $0x920] ss:$16 sps:$4 sm:$0xff]  }
 0x1c5   :  { %v6765_v5 = vld [vmem:[#allocation8 + $0xb20] ss:$16 sps:$4 sm:$0xff]  }
 0x1c6   :  { %4569 = vmatpush1.bf16.msra.mxu0 %v6708_v43  ;;  %v342_v43 = vrot.slane %v7779_v28, %v309_v26 }
 0x1c7   :  { %4610 = vmatpush1.bf16.msra.mxu1 %v6711_v55  ;;  %4570 = vmatprep.subr.bf16.mxu0 %v6716_v57  ;;  %v350_v55 = vrot.slane %v7779_v28, %v317_v27  ;;  %v1139_v57 = vadd.f32 %v7781_v29, %v322_v51  ;;  %v6771_v27 = vld [vmem:[#allocation8 + $0xb00] ss:$16 sps:$4 sm:$0xff]   ;;  %v6779_v29 = vld [vmem:[#allocation8 + $0xee4] ss:$16 sps:$4 sm:$0xff]  }
 0x1c8   :  { %4611 = vmatprep.subr.bf16.mxu1 %v6719_v58  ;;  %v1180_v58 = vadd.f32 %v7783_v30, %v330_v52  ;;  %v6812_v51 = vld [vmem:[#allocation8 + $0xc24] ss:$16 sps:$4 sm:$0xff]  }
 0x1c9   :  { %v1264_v26 = vadd.f32 %v7821_v24, %v350_v55  ;;  %v1276_v28 = vmax.f32 %v1139_v57, 0.0  ;;  %v6782_v24 = vld [vmem:[#allocation8 + $0xcc4] ss:$16 sps:$4 sm:$0xff]  }
 0x1ca   :  { %4571 = vmatpush1.bf16.msra.mxu0 %v6714_v61  ;;  %v6770_v61 = vld [vmem:[#allocation8 + $0x904] ss:$16 sps:$4 sm:$0xff]  }
 0x1cb   :  { %4612 = vmatpush1.bf16.msra.mxu1 %v6717_v62  ;;  %4572 = vmatprep.subr.bf16.mxu0 %v6722_v63  ;;  %v6773_v62 = vld [vmem:[#allocation8 + $0xb04] ss:$16 sps:$4 sm:$0xff]   ;;  %v1223_v63 = vadd.f32 %v7819_v50, %v342_v43  ;;  %v1283_v30 = vmax.f32 %v1264_v26, 0.0 }
 0x1cc   :  { %4613 = vmatprep.subr.bf16.mxu1 %v6725_v37  ;;  %v1278_v37 = vmax.f32 %v1180_v58, 0.0  ;;  %v6815_v52 = vld [vmem:[#allocation8 + $0xe24] ss:$16 sps:$4 sm:$0xff]  }
 0x1cd   :  { %v6818_v43 = vld [vmem:[#allocation8 + $0xc04] ss:$16 sps:$4 sm:$0xff]  }
 0x1ce   :  { %4573 = vmatpush1.bf16.msra.mxu0 %v6720_v1  ;;  %v6776_v1 = vld [vmem:[#allocation8 + $0xce4] ss:$16 sps:$4 sm:$0xff]   ;;  %v7839_v50 = vpack.c.bf16 %v1278_v37, %v1278_v37 }
 0x1cf   :  { %4614 = vmatpush1.bf16.msra.mxu1 %v6723_v2  ;;  %4574 = vmatprep.subr.bf16.mxu0 %v6728_v3  ;;  %v1281_v2 = vmax.f32 %v1223_v63, 0.0  ;;  %v6774_v3 = vld [vmem:[#allocation8 + $0xce0] ss:$16 sps:$4 sm:$0xff]   ;;  %v6821_v55 = vld [vmem:[#allocation8 + $0xe04] ss:$16 sps:$4 sm:$0xff]  }
 0x1d0   :  { %4615 = vmatprep.subr.bf16.mxu1 %v6731_v6  ;;  %v6777_v6 = vld [vmem:[#allocation8 + $0xee0] ss:$16 sps:$4 sm:$0xff]   ;;  %v6824_v57 = vld [vmem:[#allocation8 + $0xde4] ss:$16 sps:$4 sm:$0xff]  }
 0x1d1   :  { %v6827_v58 = vld [vmem:[#allocation8 + $0xfe4] ss:$16 sps:$4 sm:$0xff]  }
 0x1d2   :  { %4575 = vmatpush2.bf16.msra.mxu0 %v6726_v7  ;;  %v7837_v7 = vpack.c.bf16 %v1276_v28, %v1276_v28  ;;  %v6830_v63 = vld [vmem:[#allocation8 + $0xdc4] ss:$16 sps:$4 sm:$0xff]  }
 0x1d3   :  { %4616 = vmatpush2.bf16.msra.mxu1 %v6729_v36  ;;  %4576 = vmatprep.subr.bf16.mxu0 %v6734_v13  ;;  %v6785_v36 = vld [vmem:[#allocation8 + $0xec4] ss:$16 sps:$4 sm:$0xff]   ;;  %v7841_v13 = vpack.c.bf16 %v1281_v2, %v1281_v2 }
 0x1d4   :  { %4617 = vmatprep.subr.bf16.mxu1 %v6737_v14  ;;  %v7843_v14 = vpack.c.bf16 %v1283_v30, %v1283_v30  ;;  %v6833_v26 = vld [vmem:[#allocation8 + $0xfc4] ss:$16 sps:$4 sm:$0xff]  }
 0x1d5   :  { %v6836_v28 = vld [vmem:[#allocation8 + $0xda4] ss:$16 sps:$4 sm:$0xff]  }
 0x1d6   :  { %4577 = vmatpush2.bf16.msra.mxu0 %v6732_v15  ;;  %v6780_v15 = vld [vmem:[#allocation8 + $0xcc0] ss:$16 sps:$4 sm:$0xff]   ;;  %v6839_v37 = vld [vmem:[#allocation8 + $0xfa4] ss:$16 sps:$4 sm:$0xff]  }
 0x1d7   :  { %4618 = vmatpush2.bf16.msra.mxu1 %v6735_v16  ;;  %4578 = vmatprep.subr.bf16.mxu0 %v6740_v19  ;;  %v6783_v16 = vld [vmem:[#allocation8 + $0xec0] ss:$16 sps:$4 sm:$0xff]   ;;  %v6788_v19 = vld [vmem:[#allocation8 + $0xca4] ss:$16 sps:$4 sm:$0xff]  }
 0x1d8   :  { %4619 = vmatprep.subr.bf16.mxu1 %v6743_v20  ;;  %v6791_v20 = vld [vmem:[#allocation8 + $0xea4] ss:$16 sps:$4 sm:$0xff]  }
 0x1d9   :  { %v6842_v2 = vld [vmem:[#allocation8 + $0xd84] ss:$16 sps:$4 sm:$0xff]  }
 0x1da   :  { %4579 = vmatpush2.bf16.msra.mxu0 %v6738_v21  ;;  %v6786_v21 = vld [vmem:[#allocation8 + $0xca0] ss:$16 sps:$4 sm:$0xff]   ;;  %v6845_v30 = vld [vmem:[#allocation8 + $0xf84] ss:$16 sps:$4 sm:$0xff]  }
 0x1db   :  { %4620 = vmatpush2.bf16.msra.mxu1 %v6741_v22  ;;  %4580 = vmatprep.subr.bf16.mxu0 %v6746_v23  ;;  %v6789_v22 = vld [vmem:[#allocation8 + $0xea0] ss:$16 sps:$4 sm:$0xff]   ;;  %v6794_v23 = vld [vmem:[#allocation8 + $0xc84] ss:$16 sps:$4 sm:$0xff]  }
 0x1dc   :  { %4621 = vmatprep.subr.bf16.mxu1 %v6749_v25  ;;  %v6797_v25 = vld [vmem:[#allocation8 + $0xe84] ss:$16 sps:$4 sm:$0xff]  }
 0x1de   :  { %4581 = vmatpush2.bf16.msra.mxu0 %v6744_v31  ;;  %v6792_v31 = vld [vmem:[#allocation8 + $0xc80] ss:$16 sps:$4 sm:$0xff]  }
 0x1df   :  { %4622 = vmatpush2.bf16.msra.mxu1 %v6747_v32  ;;  %4582 = vmatprep.subr.bf16.mxu0 %v6752_v33  ;;  %v6795_v32 = vld [vmem:[#allocation8 + $0xe80] ss:$16 sps:$4 sm:$0xff]   ;;  %v6800_v33 = vld [vmem:[#allocation8 + $0xc64] ss:$16 sps:$4 sm:$0xff]  }
 0x1e0   :  { %4623 = vmatprep.subr.bf16.mxu1 %v6755_v34  ;;  %v6803_v34 = vld [vmem:[#allocation8 + $0xe64] ss:$16 sps:$4 sm:$0xff]  }
 0x1e2   :  { %4583 = vmatpush2.bf16.msra.mxu0 %v6750_v35  ;;  %v6798_v35 = vld [vmem:[#allocation8 + $0xc60] ss:$16 sps:$4 sm:$0xff]  }
 0x1e3   :  { %4624 = vmatpush2.bf16.msra.mxu1 %v6753_v38  ;;  %4584 = vmatprep.subr.bf16.mxu0 %v6758_v39  ;;  %v6801_v38 = vld [vmem:[#allocation8 + $0xe60] ss:$16 sps:$4 sm:$0xff]   ;;  %v6806_v39 = vld [vmem:[#allocation8 + $0xc44] ss:$16 sps:$4 sm:$0xff]  }
 0x1e4   :  { %4625 = vmatprep.subr.bf16.mxu1 %v6761_v40  ;;  %v6809_v40 = vld [vmem:[#allocation8 + $0xe44] ss:$16 sps:$4 sm:$0xff]  }
 0x1e6   :  { %4585 = vmatpush2.bf16.msra.mxu0 %v6756_v41  ;;  %v6804_v41 = vld [vmem:[#allocation8 + $0xc40] ss:$16 sps:$4 sm:$0xff]  }
 0x1e7   :  { %4626 = vmatpush2.bf16.msra.mxu1 %v6759_v0  ;;  %4586 = vmatprep.subr.bf16.mxu0 %v6764_v53  ;;  %v6807_v0 = vld [vmem:[#allocation8 + $0xe40] ss:$16 sps:$4 sm:$0xff]  }
 0x1e8   :  { %4627 = vmatprep.subr.bf16.mxu1 %v6767_v54  ;;  %v6810_v53 = vld [vmem:[#allocation8 + $0xc20] ss:$16 sps:$4 sm:$0xff]  }
 0x1e9   :  { %v6813_v54 = vld [vmem:[#allocation8 + $0xe20] ss:$16 sps:$4 sm:$0xff]  }
 0x1ea   :  { %4587 = vmatpush2.bf16.msra.mxu0 %v6762_v56  ;;  %v6816_v56 = vld [vmem:[#allocation8 + $0xc00] ss:$16 sps:$4 sm:$0xff]  }
 0x1eb   :  { %4628 = vmatpush2.bf16.msra.mxu1 %v6765_v5  ;;  %4588 = vmatprep.subr.bf16.mxu0 %v6770_v61  ;;  %v6819_v5 = vld [vmem:[#allocation8 + $0xe00] ss:$16 sps:$4 sm:$0xff]  }
 0x1ec   :  { %4629 = vmatprep.subr.bf16.mxu1 %v6773_v62  ;;  %v6822_v61 = vld [vmem:[#allocation8 + $0xde0] ss:$16 sps:$4 sm:$0xff]  }
 0x1ed   :  { %v6825_v62 = vld [vmem:[#allocation8 + $0xfe0] ss:$16 sps:$4 sm:$0xff]  }
 0x1ee   :  { %4589 = vmatpush2.bf16.msra.mxu0 %v6768_v42  ;;  %v6828_v42 = vld [vmem:[#allocation8 + $0xdc0] ss:$16 sps:$4 sm:$0xff]  }
 0x1ef   :  { %4630 = vmatpush2.bf16.msra.mxu1 %v6771_v27  ;;  %4640 = vmatprep.subr.bf16.mxu0 %v6776_v1  ;;  %v6831_v27 = vld [vmem:[#allocation8 + $0xfc0] ss:$16 sps:$4 sm:$0xff]  }
 0x1f0   :  { %4681 = vmatprep.subr.bf16.mxu1 %v6779_v29  ;;  %v6834_v1 = vld [vmem:[#allocation8 + $0xda0] ss:$16 sps:$4 sm:$0xff]  }
 0x1f1   :  { %4591 = vmatmul.mubr.bf16.vlgmr.msra.gmra.mxu0 %v7837_v7  ;;  %v6837_v29 = vld [vmem:[#allocation8 + $0xfa0] ss:$16 sps:$4 sm:$0xff]  }
 0x1f2   :  { %4632 = vmatmul.mubr.bf16.vlgmr.msra.gmra.mxu1 %v7839_v50  ;;  %4641 = vmatpush1.bf16.msra.mxu0 %v6774_v3  ;;  %v6840_v3 = vld [vmem:[#allocation8 + $0xd80] ss:$16 sps:$4 sm:$0xff]  }
 0x1f3   :  { %4682 = vmatpush1.bf16.msra.mxu1 %v6777_v6  ;;  %4642 = vmatprep.subr.bf16.mxu0 %v6782_v24  ;;  %v6843_v6 = vld [vmem:[#allocation8 + $0xf80] ss:$16 sps:$4 sm:$0xff]   ;;  %v6848_v24 = vld [vmem:[#allocation8 + $0xd64] ss:$16 sps:$4 sm:$0xff]  }
 0x1f4   :  { %4683 = vmatprep.subr.bf16.mxu1 %v6785_v36  ;;  %4672 = vmatprep.mubr.bf16.mxu0 %v7841_v13  ;;  %v6851_v36 = vld [vmem:[#allocation8 + $0xf64] ss:$16 sps:$4 sm:$0xff]  }
 0x1f5   :  { %4713 = vmatprep.mubr.bf16.mxu1 %v7843_v14 }
 0x1f6   :  { %4643 = vmatpush1.bf16.msra.mxu0 %v6780_v15  ;;  %v6846_v15 = vld [vmem:[#allocation8 + $0xd60] ss:$16 sps:$4 sm:$0xff]  }
 0x1f7   :  { %4684 = vmatpush1.bf16.msra.mxu1 %v6783_v16  ;;  %4644 = vmatprep.subr.bf16.mxu0 %v6788_v19  ;;  %v6849_v16 = vld [vmem:[#allocation8 + $0xf60] ss:$16 sps:$4 sm:$0xff]   ;;  %v6854_v19 = vld [vmem:[#allocation8 + $0xd44] ss:$16 sps:$4 sm:$0xff]  }
 0x1f8   :  { %4685 = vmatprep.subr.bf16.mxu1 %v6791_v20  ;;  %v6857_v20 = vld [vmem:[#allocation8 + $0xf44] ss:$16 sps:$4 sm:$0xff]  }
 0x1fa   :  { %4645 = vmatpush1.bf16.msra.mxu0 %v6786_v21  ;;  %v6852_v21 = vld [vmem:[#allocation8 + $0xd40] ss:$16 sps:$4 sm:$0xff]  }
 0x1fb   :  { %4686 = vmatpush1.bf16.msra.mxu1 %v6789_v22  ;;  %4646 = vmatprep.subr.bf16.mxu0 %v6794_v23  ;;  %v6855_v22 = vld [vmem:[#allocation8 + $0xf40] ss:$16 sps:$4 sm:$0xff]   ;;  %v6860_v23 = vld [vmem:[#allocation8 + $0xd24] ss:$16 sps:$4 sm:$0xff]  }
 0x1fc   :  { %4687 = vmatprep.subr.bf16.mxu1 %v6797_v25  ;;  %v6863_v25 = vld [vmem:[#allocation8 + $0xf24] ss:$16 sps:$4 sm:$0xff]  }
 0x1fe   :  { %4647 = vmatpush1.bf16.msra.mxu0 %v6792_v31  ;;  %v6858_v31 = vld [vmem:[#allocation8 + $0xd20] ss:$16 sps:$4 sm:$0xff]  }
 0x1ff   :  { %4688 = vmatpush1.bf16.msra.mxu1 %v6795_v32  ;;  %4648 = vmatprep.subr.bf16.mxu0 %v6800_v33  ;;  %v6861_v32 = vld [vmem:[#allocation8 + $0xf20] ss:$16 sps:$4 sm:$0xff]   ;;  %v6866_v33 = vld [vmem:[#allocation8 + $0xd04] ss:$16 sps:$4 sm:$0xff]  }
 0x200   :  { %4689 = vmatprep.subr.bf16.mxu1 %v6803_v34  ;;  %v6869_v34 = vld [vmem:[#allocation8 + $0xf04] ss:$16 sps:$4 sm:$0xff]  }
 0x202   :  { %4649 = vmatpush1.bf16.msra.mxu0 %v6798_v35  ;;  %v6864_v35 = vld [vmem:[#allocation8 + $0xd00] ss:$16 sps:$4 sm:$0xff]  }
 0x203   :  { %4690 = vmatpush1.bf16.msra.mxu1 %v6801_v38  ;;  %4650 = vmatprep.subr.bf16.mxu0 %v6806_v39  ;;  %v6867_v38 = vld [vmem:[#allocation8 + $0xf00] ss:$16 sps:$4 sm:$0xff]   ;;  %v6872_v39 = vld [vmem:[#allocation8 + $0xec] ss:$16 sps:$4 sm:$0xff]  }
 0x204   :  { %4691 = vmatprep.subr.bf16.mxu1 %v6809_v40  ;;  %v1280_v40 = vmax.f32 %v7815_v48, 0.0 }
 0x206   :  { %4651 = vmatpush1.bf16.msra.mxu0 %v6804_v41  ;;  %v1282_v41 = vmax.f32 %v7817_v49, 0.0  ;;  %v6881_v49 = vld [vmem:[#allocation8 + $0x2cc] ss:$16 sps:$4 sm:$0xff]  }
 0x207   :  { %4692 = vmatpush1.bf16.msra.mxu1 %v6807_v0  ;;  %4652 = vmatprep.subr.bf16.mxu0 %v6812_v51  ;;  %v6875_v0 = vld [vmem:[#allocation8 + $0x2ec] ss:$16 sps:$4 sm:$0xff]   ;;  %v1812_v51 = vld [vmem:[#allocation10] sm:$0xf] }
 0x208   :  { %4693 = vmatprep.subr.bf16.mxu1 %v6815_v52  ;;  %v6870_v52 = vld [vmem:[#allocation8 + $0xe8] ss:$16 sps:$4 sm:$0xff]   ;;  %v1821_v48 = vrot.slane %v1812_v51, %v7734_v46  ;;  %v6884_v46 = vld [vmem:[#allocation8 + $0xac] ss:$16 sps:$4 sm:$0xff]  }
 0x20a   :  { %4653 = vmatpush1.bf16.msra.mxu0 %v6810_v53  ;;  %v1817_v53 = vrot.slane %v1812_v51, %v7728_v44  ;;  %v6876_v44 = vld [vmem:[#allocation8 + $0xc8] ss:$16 sps:$4 sm:$0xff]  }
 0x20b   :  { %4694 = vmatpush1.bf16.msra.mxu1 %v6813_v54  ;;  %4654 = vmatprep.subr.bf16.mxu0 %v6818_v43  ;;  %v7852_v54 = vpack.c.bf16 %v1280_v40, %v1280_v40  ;;  %v7854_v43 = vpack.c.bf16 %v1282_v41, %v1282_v41  ;;  %v6920_v40 = vld [vmem:[#allocation8 + $0x1ec] ss:$16 sps:$4 sm:$0xff]   ;;  %v6921_v51 = vld [vmem:[#allocation8 + $0x3e8] ss:$16 sps:$4 sm:$0xff]  }
 0x20c   :  { %4695 = vmatprep.subr.bf16.mxu1 %v6821_v55  ;;  %v6873_v55 = vld [vmem:[#allocation8 + $0x2e8] ss:$16 sps:$4 sm:$0xff]   ;;  %v6923_v41 = vld [vmem:[#allocation8 + $0x3ec] ss:$16 sps:$4 sm:$0xff]  }
 0x20e   :  { %4655 = vmatpush1.bf16.msra.mxu0 %v6816_v56  ;;  %v6878_v56 = vld [vmem:[#allocation8 + $0xcc] ss:$16 sps:$4 sm:$0xff]  }
 0x20f   :  { %4696 = vmatpush1.bf16.msra.mxu1 %v6819_v5  ;;  %4656 = vmatprep.subr.bf16.mxu0 %v6824_v57 }
 0x210   :  { %4697 = vmatprep.subr.bf16.mxu1 %v6827_v58 }
 0x212   :  { %4657 = vmatpush2.bf16.msra.mxu0 %v6822_v61 }
 0x213   :  { %4698 = vmatpush2.bf16.msra.mxu1 %v6825_v62  ;;  %4658 = vmatprep.subr.bf16.mxu0 %v6830_v63  ;;  %v6879_v63 = vld [vmem:[#allocation8 + $0x2c8] ss:$16 sps:$4 sm:$0xff]  }
 0x214   :  { %4699 = vmatprep.subr.bf16.mxu1 %v6833_v26 }
 0x216   :  { %4659 = vmatpush2.bf16.msra.mxu0 %v6828_v42 }
 0x217   :  { %4700 = vmatpush2.bf16.msra.mxu1 %v6831_v27  ;;  %4660 = vmatprep.subr.bf16.mxu0 %v6836_v28  ;;  %v6887_v27 = vld [vmem:[#allocation8 + $0x2ac] ss:$16 sps:$4 sm:$0xff]  }
 0x218   :  { %4701 = vmatprep.subr.bf16.mxu1 %v6839_v37 }
 0x21a   :  { %4661 = vmatpush2.bf16.msra.mxu0 %v6834_v1 }
 0x21b   :  { %4702 = vmatpush2.bf16.msra.mxu1 %v6837_v29  ;;  %4662 = vmatprep.subr.bf16.mxu0 %v6842_v2 }
 0x21c   :  { %4703 = vmatprep.subr.bf16.mxu1 %v6845_v30  ;;  %v6890_v30 = vld [vmem:[#allocation8 + $0x8c] ss:$16 sps:$4 sm:$0xff]  }
 0x21e   :  { %4663 = vmatpush2.bf16.msra.mxu0 %v6840_v3  ;;  %v6893_v3 = vld [vmem:[#allocation8 + $0x28c] ss:$16 sps:$4 sm:$0xff]  }
 0x21f   :  { %4704 = vmatpush2.bf16.msra.mxu1 %v6843_v6  ;;  %4664 = vmatprep.subr.bf16.mxu0 %v6848_v24  ;;  %v6888_v6 = vld [vmem:[#allocation8 + $0x88] ss:$16 sps:$4 sm:$0xff]  }
 0x220   :  { %4705 = vmatprep.subr.bf16.mxu1 %v6851_v36  ;;  %v6891_v24 = vld [vmem:[#allocation8 + $0x288] ss:$16 sps:$4 sm:$0xff]   ;;  %v6896_v36 = vld [vmem:[#allocation8 + $0x6c] ss:$16 sps:$4 sm:$0xff]  }
 0x222   :  { %4665 = vmatpush2.bf16.msra.mxu0 %v6846_v15  ;;  %v6899_v15 = vld [vmem:[#allocation8 + $0x26c] ss:$16 sps:$4 sm:$0xff]  }
 0x223   :  { %4706 = vmatpush2.bf16.msra.mxu1 %v6849_v16  ;;  %4666 = vmatprep.subr.bf16.mxu0 %v6854_v19  ;;  %v6894_v16 = vld [vmem:[#allocation8 + $0x68] ss:$16 sps:$4 sm:$0xff]  }
 0x224   :  { %4707 = vmatprep.subr.bf16.mxu1 %v6857_v20  ;;  %v6897_v19 = vld [vmem:[#allocation8 + $0x268] ss:$16 sps:$4 sm:$0xff]   ;;  %v6902_v20 = vld [vmem:[#allocation8 + $0x4c] ss:$16 sps:$4 sm:$0xff]  }
 0x226   :  { %4667 = vmatpush2.bf16.msra.mxu0 %v6852_v21  ;;  %v6905_v21 = vld [vmem:[#allocation8 + $0x24c] ss:$16 sps:$4 sm:$0xff]  }
 0x227   :  { %4708 = vmatpush2.bf16.msra.mxu1 %v6855_v22  ;;  %4668 = vmatprep.subr.bf16.mxu0 %v6860_v23  ;;  %v6900_v22 = vld [vmem:[#allocation8 + $0x48] ss:$16 sps:$4 sm:$0xff]  }
 0x228   :  { %4709 = vmatprep.subr.bf16.mxu1 %v6863_v25  ;;  %v6903_v23 = vld [vmem:[#allocation8 + $0x248] ss:$16 sps:$4 sm:$0xff]   ;;  %v6908_v25 = vld [vmem:[#allocation8 + $0x2c] ss:$16 sps:$4 sm:$0xff]  }
 0x22a   :  { %4669 = vmatpush2.bf16.msra.mxu0 %v6858_v31  ;;  %v6911_v31 = vld [vmem:[#allocation8 + $0x22c] ss:$16 sps:$4 sm:$0xff]  }
 0x22b   :  { %4710 = vmatpush2.bf16.msra.mxu1 %v6861_v32  ;;  %4670 = vmatprep.subr.bf16.mxu0 %v6866_v33  ;;  %v6906_v32 = vld [vmem:[#allocation8 + $0x28] ss:$16 sps:$4 sm:$0xff]  }
 0x22c   :  { %4711 = vmatprep.subr.bf16.mxu1 %v6869_v34  ;;  %v6909_v33 = vld [vmem:[#allocation8 + $0x228] ss:$16 sps:$4 sm:$0xff]   ;;  %v6914_v34 = vld [vmem:[#allocation8 + $0xc] ss:$16 sps:$4 sm:$0xff]  }
 0x22e   :  { %4671 = vmatpush2.bf16.msra.mxu0 %v6864_v35  ;;  %v6917_v35 = vld [vmem:[#allocation8 + $0x20c] ss:$16 sps:$4 sm:$0xff]  }
 0x22f   :  { %4712 = vmatpush2.bf16.msra.mxu1 %v6867_v38  ;;  %4722 = vmatprep.subr.bf16.mxu0 %v6872_v39  ;;  %v6912_v38 = vld [vmem:[#allocation8 + $0x8] ss:$16 sps:$4 sm:$0xff]  }
 0x230   :  { %4763 = vmatprep.subr.bf16.mxu1 %v6875_v0  ;;  %v6915_v39 = vld [vmem:[#allocation8 + $0x208] ss:$16 sps:$4 sm:$0xff]  }
 0x231   :  { %4673 = vmatmul.mubr.bf16.vlgmr.msra.gmra.mxu0 %v7852_v54  ;;  %v4428_v5 = vpop.f32.mrf.mxu0  ;;  %v6918_v0 = vld [vmem:[#allocation8 + $0x1e8] ss:$16 sps:$4 sm:$0xff]  }
 0x232   :  { %4714 = vmatmul.mubr.bf16.vlgmr.msra.gmra.mxu1 %v7854_v43  ;;  %v4469_v57 = vpop.f32.mrf.mxu1  ;;  %v4429_v58 = vadd.f32 %v4428_v5, %v1817_v53  ;;  %4723 = vmatpush1.bf16.msra.mxu0 %v6870_v52  ;;  %v6926_v52 = vld [vmem:[#allocation8 + $0x1cc] ss:$16 sps:$4 sm:$0xff]   ;;  %v6930_v5 = vld [vmem:[#allocation8 + $0x1a8] ss:$16 sps:$4 sm:$0xff]  }
 0x233   :  { %4754 = vmatprep.mubr.bf16.mxu0 %v7749_v8  ;;  %4764 = vmatpush1.bf16.msra.mxu1 %v6873_v55  ;;  %v4430_v61 = vpop.f32.mrf.mxu0  ;;  %v6882_v8 = vld [vmem:[#allocation8 + $0xa8] ss:$16 sps:$4 sm:$0xff]   ;;  %v6929_v53 = vld [vmem:[#allocation8 + $0x3cc] ss:$16 sps:$4 sm:$0xff]  }
 0x234   :  { %4795 = vmatprep.mubr.bf16.mxu1 %v7751_v9  ;;  %v4471_v62 = vpop.f32.mrf.mxu1  ;;  %v7861_v26 = vadd.f32 %v4469_v57, %v4429_v58  ;;  %v4431_v42 = vadd.f32 %v4430_v61, %v1821_v48  ;;  %4724 = vmatprep.subr.bf16.mxu0 %v6878_v56  ;;  %v6885_v9 = vld [vmem:[#allocation8 + $0x2a8] ss:$16 sps:$4 sm:$0xff]   ;;  %v6932_v56 = vld [vmem:[#allocation8 + $0x1ac] ss:$16 sps:$4 sm:$0xff]  }
 0x235   :  { %4765 = vmatprep.subr.bf16.mxu1 %v6881_v49  ;;  %v4432_v28 = vpop.f32.mrf.mxu0  ;;  %v6924_v55 = vld [vmem:[#allocation8 + $0x1c8] ss:$16 sps:$4 sm:$0xff]   ;;  %v6935_v49 = vld [vmem:[#allocation8 + $0x3ac] ss:$16 sps:$4 sm:$0xff]  }
 0x236   :  { %v4473_v37 = vpop.f32.mrf.mxu1  ;;  %v7863_v1 = vadd.f32 %v4471_v62, %v4431_v42  ;;  %4725 = vmatpush1.bf16.msra.mxu0 %v6876_v44  ;;  %v6927_v48 = vld [vmem:[#allocation8 + $0x3c8] ss:$16 sps:$4 sm:$0xff]   ;;  %v6938_v58 = vld [vmem:[#allocation8 + $0x18c] ss:$16 sps:$4 sm:$0xff]  }
 0x237   :  { %4766 = vmatpush1.bf16.msra.mxu1 %v6879_v63  ;;  %v4433_v29 = vpop.f32.mrf.mxu0  ;;  %4726 = vmatprep.subr.bf16.mxu0 %v6884_v46  ;;  %v6933_v57 = vld [vmem:[#allocation8 + $0x3a8] ss:$16 sps:$4 sm:$0xff]   ;;  %v6941_v44 = vld [vmem:[#allocation8 + $0x38c] ss:$16 sps:$4 sm:$0xff]  }
 0x238   :  { %v4474_v2 = vpop.f32.mrf.mxu1  ;;  %4767 = vmatprep.subr.bf16.mxu1 %v6887_v27  ;;  %v6936_v61 = vld [vmem:[#allocation8 + $0x188] ss:$16 sps:$4 sm:$0xff]   ;;  %v6944_v63 = vld [vmem:[#allocation8 + $0x16c] ss:$16 sps:$4 sm:$0xff]  }
 0x239   :  { %v6939_v62 = vld [vmem:[#allocation8 + $0x388] ss:$16 sps:$4 sm:$0xff]   ;;  %v6947_v46 = vld [vmem:[#allocation8 + $0x36c] ss:$16 sps:$4 sm:$0xff]  }
 0x23a   :  { %4727 = vmatpush1.bf16.msra.mxu0 %v6882_v8  ;;  %v6942_v42 = vld [vmem:[#allocation8 + $0x168] ss:$16 sps:$4 sm:$0xff]   ;;  %v6950_v28 = vld [vmem:[#allocation8 + $0x14c] ss:$16 sps:$4 sm:$0xff]  }
 0x23b   :  { %4768 = vmatpush1.bf16.msra.mxu1 %v6885_v9  ;;  %4728 = vmatprep.subr.bf16.mxu0 %v6890_v30  ;;  %v6945_v27 = vld [vmem:[#allocation8 + $0x368] ss:$16 sps:$4 sm:$0xff]   ;;  %v6953_v37 = vld [vmem:[#allocation8 + $0x34c] ss:$16 sps:$4 sm:$0xff]  }
 0x23c   :  { %4769 = vmatprep.subr.bf16.mxu1 %v6893_v3  ;;  %v6948_v8 = vld [vmem:[#allocation8 + $0x148] ss:$16 sps:$4 sm:$0xff]   ;;  %v6956_v2 = vld [vmem:[#allocation8 + $0x12c] ss:$16 sps:$4 sm:$0xff]  }
 0x23d   :  { %v6951_v29 = vld [vmem:[#allocation8 + $0x348] ss:$16 sps:$4 sm:$0xff]   ;;  %v6959_v9 = vld [vmem:[#allocation8 + $0x32c] ss:$16 sps:$4 sm:$0xff]  }
 0x23e   :  { %4729 = vmatpush1.bf16.msra.mxu0 %v6888_v6  ;;  %v6954_v30 = vld [vmem:[#allocation8 + $0x128] ss:$16 sps:$4 sm:$0xff]   ;;  %v6962_v6 = vld [vmem:[#allocation8 + $0x10c] ss:$16 sps:$4 sm:$0xff]  }
 0x23f   :  { %4770 = vmatpush1.bf16.msra.mxu1 %v6891_v24  ;;  %4730 = vmatprep.subr.bf16.mxu0 %v6896_v36  ;;  %v6957_v3 = vld [vmem:[#allocation8 + $0x328] ss:$16 sps:$4 sm:$0xff]   ;;  %v6965_v24 = vld [vmem:[#allocation8 + $0x30c] ss:$16 sps:$4 sm:$0xff]  }
 0x240   :  { %4771 = vmatprep.subr.bf16.mxu1 %v6899_v15  ;;  %v6960_v36 = vld [vmem:[#allocation8 + $0x108] ss:$16 sps:$4 sm:$0xff]  }
 0x241   :  { %v6963_v15 = vld [vmem:[#allocation8 + $0x308] ss:$16 sps:$4 sm:$0xff]  }
 0x242   :  { %4731 = vmatpush1.bf16.msra.mxu0 %v6894_v16  ;;  %v6968_v16 = vld [vmem:[#allocation8 + $0x4ec] ss:$16 sps:$4 sm:$0xff]  }
 0x243   :  { %4772 = vmatpush1.bf16.msra.mxu1 %v6897_v19  ;;  %4732 = vmatprep.subr.bf16.mxu0 %v6902_v20  ;;  %v6971_v19 = vld [vmem:[#allocation8 + $0x6ec] ss:$16 sps:$4 sm:$0xff]   ;;  %v6966_v20 = vld [vmem:[#allocation8 + $0x4e8] ss:$16 sps:$4 sm:$0xff]  }
 0x244   :  { %4773 = vmatprep.subr.bf16.mxu1 %v6905_v21  ;;  %v6969_v21 = vld [vmem:[#allocation8 + $0x6e8] ss:$16 sps:$4 sm:$0xff]  }
 0x246   :  { %4733 = vmatpush1.bf16.msra.mxu0 %v6900_v22  ;;  %v6974_v22 = vld [vmem:[#allocation8 + $0x4cc] ss:$16 sps:$4 sm:$0xff]  }
 0x247   :  { %4774 = vmatpush1.bf16.msra.mxu1 %v6903_v23  ;;  %4734 = vmatprep.subr.bf16.mxu0 %v6908_v25 }
 0x248   :  { %4775 = vmatprep.subr.bf16.mxu1 %v6911_v31  ;;  %v6977_v31 = vld [vmem:[#allocation8 + $0x6cc] ss:$16 sps:$4 sm:$0xff]  }
 0x24a   :  { %4735 = vmatpush1.bf16.msra.mxu0 %v6906_v32 }
 0x24b   :  { %4776 = vmatpush1.bf16.msra.mxu1 %v6909_v33  ;;  %4736 = vmatprep.subr.bf16.mxu0 %v6914_v34  ;;  %v6972_v33 = vld [vmem:[#allocation8 + $0x4c8] ss:$16 sps:$4 sm:$0xff]  }
 0x24c   :  { %4777 = vmatprep.subr.bf16.mxu1 %v6917_v35 }
 0x24e   :  { %4737 = vmatpush1.bf16.msra.mxu0 %v6912_v38  ;;  %v6975_v38 = vld [vmem:[#allocation8 + $0x6c8] ss:$16 sps:$4 sm:$0xff]  }
 0x24f   :  { %4778 = vmatpush1.bf16.msra.mxu1 %v6915_v39  ;;  %4738 = vmatprep.subr.bf16.mxu0 %v6920_v40  ;;  %v6980_v39 = vld [vmem:[#allocation8 + $0x4ac] ss:$16 sps:$4 sm:$0xff]  }
 0x250   :  { %4779 = vmatprep.subr.bf16.mxu1 %v6923_v41  ;;  %v6983_v41 = vld [vmem:[#allocation8 + $0x6ac] ss:$16 sps:$4 sm:$0xff]  }
 0x252   :  { %4739 = vmatpush2.bf16.msra.mxu0 %v6918_v0 }
 0x253   :  { %4780 = vmatpush2.bf16.msra.mxu1 %v6921_v51  ;;  %4740 = vmatprep.subr.bf16.mxu0 %v6926_v52 }
 0x254   :  { %4781 = vmatprep.subr.bf16.mxu1 %v6929_v53  ;;  %v6981_v53 = vld [vmem:[#allocation8 + $0x6a8] ss:$16 sps:$4 sm:$0xff]  }
 0x256   :  { %4741 = vmatpush2.bf16.msra.mxu0 %v6924_v55  ;;  %v6986_v55 = vld [vmem:[#allocation8 + $0x48c] ss:$16 sps:$4 sm:$0xff]  }
 0x257   :  { %4782 = vmatpush2.bf16.msra.mxu1 %v6927_v48  ;;  %4742 = vmatprep.subr.bf16.mxu0 %v6932_v56  ;;  %v6989_v48 = vld [vmem:[#allocation8 + $0x68c] ss:$16 sps:$4 sm:$0xff]  }
 0x258   :  { %4783 = vmatprep.subr.bf16.mxu1 %v6935_v49  ;;  %v6992_v56 = vld [vmem:[#allocation8 + $0x46c] ss:$16 sps:$4 sm:$0xff]  }
 0x259   :  { %v6995_v49 = vld [vmem:[#allocation8 + $0x66c] ss:$16 sps:$4 sm:$0xff]  }
 0x25a   :  { %4743 = vmatpush2.bf16.msra.mxu0 %v6930_v5  ;;  %v6990_v5 = vld [vmem:[#allocation8 + $0x468] ss:$16 sps:$4 sm:$0xff]  }
 0x25b   :  { %4784 = vmatpush2.bf16.msra.mxu1 %v6933_v57  ;;  %4744 = vmatprep.subr.bf16.mxu0 %v6938_v58  ;;  %v6993_v57 = vld [vmem:[#allocation8 + $0x668] ss:$16 sps:$4 sm:$0xff]   ;;  %v6998_v58 = vld [vmem:[#allocation8 + $0x44c] ss:$16 sps:$4 sm:$0xff]  }
 0x25c   :  { %4785 = vmatprep.subr.bf16.mxu1 %v6941_v44  ;;  %v7001_v44 = vld [vmem:[#allocation8 + $0x64c] ss:$16 sps:$4 sm:$0xff]  }
 0x25e   :  { %4745 = vmatpush2.bf16.msra.mxu0 %v6936_v61  ;;  %v6996_v61 = vld [vmem:[#allocation8 + $0x448] ss:$16 sps:$4 sm:$0xff]  }
 0x25f   :  { %4786 = vmatpush2.bf16.msra.mxu1 %v6939_v62  ;;  %4746 = vmatprep.subr.bf16.mxu0 %v6944_v63  ;;  %v6999_v62 = vld [vmem:[#allocation8 + $0x648] ss:$16 sps:$4 sm:$0xff]   ;;  %v7004_v63 = vld [vmem:[#allocation8 + $0x42c] ss:$16 sps:$4 sm:$0xff]  }
 0x260   :  { %4787 = vmatprep.subr.bf16.mxu1 %v6947_v46  ;;  %v7007_v46 = vld [vmem:[#allocation8 + $0x62c] ss:$16 sps:$4 sm:$0xff]  }
 0x262   :  { %4747 = vmatpush2.bf16.msra.mxu0 %v6942_v42  ;;  %v7002_v42 = vld [vmem:[#allocation8 + $0x428] ss:$16 sps:$4 sm:$0xff]  }
 0x263   :  { %4788 = vmatpush2.bf16.msra.mxu1 %v6945_v27  ;;  %4748 = vmatprep.subr.bf16.mxu0 %v6950_v28  ;;  %v7005_v27 = vld [vmem:[#allocation8 + $0x628] ss:$16 sps:$4 sm:$0xff]   ;;  %v7010_v28 = vld [vmem:[#allocation8 + $0x40c] ss:$16 sps:$4 sm:$0xff]  }
 0x264   :  { %4789 = vmatprep.subr.bf16.mxu1 %v6953_v37  ;;  %v7013_v37 = vld [vmem:[#allocation8 + $0x60c] ss:$16 sps:$4 sm:$0xff]  }
 0x266   :  { %4749 = vmatpush2.bf16.msra.mxu0 %v6948_v8  ;;  %v7008_v8 = vld [vmem:[#allocation8 + $0x408] ss:$16 sps:$4 sm:$0xff]  }
 0x267   :  { %4790 = vmatpush2.bf16.msra.mxu1 %v6951_v29  ;;  %4750 = vmatprep.subr.bf16.mxu0 %v6956_v2  ;;  %v7011_v29 = vld [vmem:[#allocation8 + $0x608] ss:$16 sps:$4 sm:$0xff]   ;;  %v7016_v2 = vld [vmem:[#allocation8 + $0x5ec] ss:$16 sps:$4 sm:$0xff]  }
 0x268   :  { %4791 = vmatprep.subr.bf16.mxu1 %v6959_v9  ;;  %v7019_v9 = vld [vmem:[#allocation8 + $0x7ec] ss:$16 sps:$4 sm:$0xff]  }
 0x26a   :  { %4751 = vmatpush2.bf16.msra.mxu0 %v6954_v30  ;;  %v7014_v30 = vld [vmem:[#allocation8 + $0x5e8] ss:$16 sps:$4 sm:$0xff]  }
 0x26b   :  { %4792 = vmatpush2.bf16.msra.mxu1 %v6957_v3  ;;  %4752 = vmatprep.subr.bf16.mxu0 %v6962_v6  ;;  %v7017_v3 = vld [vmem:[#allocation8 + $0x7e8] ss:$16 sps:$4 sm:$0xff]   ;;  %v7022_v6 = vld [vmem:[#allocation8 + $0x5cc] ss:$16 sps:$4 sm:$0xff]  }
 0x26c   :  { %4793 = vmatprep.subr.bf16.mxu1 %v6965_v24  ;;  %v7025_v24 = vld [vmem:[#allocation8 + $0x7cc] ss:$16 sps:$4 sm:$0xff]  }
 0x26e   :  { %4753 = vmatpush2.bf16.msra.mxu0 %v6960_v36  ;;  %v7020_v36 = vld [vmem:[#allocation8 + $0x5c8] ss:$16 sps:$4 sm:$0xff]  }
 0x26f   :  { %4794 = vmatpush2.bf16.msra.mxu1 %v6963_v15  ;;  %4804 = vmatprep.subr.bf16.mxu0 %v6968_v16  ;;  %v7023_v15 = vld [vmem:[#allocation8 + $0x7c8] ss:$16 sps:$4 sm:$0xff]   ;;  %v7028_v16 = vld [vmem:[#allocation8 + $0x5ac] ss:$16 sps:$4 sm:$0xff]  }
 0x270   :  { %4845 = vmatprep.subr.bf16.mxu1 %v6971_v19  ;;  %v7031_v19 = vld [vmem:[#allocation8 + $0x7ac] ss:$16 sps:$4 sm:$0xff]  }
 0x271   :  { %v4510_v23 = vpop.f32.mrf.mxu0  ;;  %4755 = vmatmul.mubr.bf16.vlgmr.msra.gmra.mxu0 %v7753_v10 }
 0x272   :  { %v4551_v25 = vpop.f32.mrf.mxu1  ;;  %v4511_v32 = vadd.f32 %v4510_v23, %v7861_v26  ;;  %4796 = vmatmul.mubr.bf16.vlgmr.msra.gmra.mxu1 %v7747_v4  ;;  %4805 = vmatpush1.bf16.msra.mxu0 %v6966_v20  ;;  %v7026_v20 = vld [vmem:[#allocation8 + $0x5a8] ss:$16 sps:$4 sm:$0xff]   ;;  %v7037_v23 = vld [vmem:[#allocation8 + $0x78c] ss:$16 sps:$4 sm:$0xff]  }
 0x273   :  { %4836 = vmatprep.mubr.bf16.mxu0 %v7771_v59  ;;  %4846 = vmatpush1.bf16.msra.mxu1 %v6969_v21  ;;  %v4512_v34 = vpop.f32.mrf.mxu0  ;;  %v6978_v59 = vld [vmem:[#allocation8 + $0x4a8] ss:$16 sps:$4 sm:$0xff]  }
 0x274   :  { %v4553_v35 = vpop.f32.mrf.mxu1  ;;  %v7869_v40 = vadd.f32 %v4551_v25, %v4511_v32  ;;  %4877 = vmatprep.mubr.bf16.mxu1 %v7773_v60  ;;  %v4513_v10 = vadd.f32 %v4512_v34, %v7863_v1  ;;  %4806 = vmatprep.subr.bf16.mxu0 %v6974_v22  ;;  %v6984_v60 = vld [vmem:[#allocation8 + $0x488] ss:$16 sps:$4 sm:$0xff]   ;;  %v7034_v22 = vld [vmem:[#allocation8 + $0x58c] ss:$16 sps:$4 sm:$0xff]  }
 0x275   :  { %v4514_v26 = vpop.f32.mrf.mxu0  ;;  %4847 = vmatprep.subr.bf16.mxu1 %v6977_v31  ;;  %v6987_v1 = vld [vmem:[#allocation8 + $0x688] ss:$16 sps:$4 sm:$0xff]   ;;  %v7040_v32 = vld [vmem:[#allocation8 + $0x56c] ss:$16 sps:$4 sm:$0xff]  }
 0x276   :  { %v4555_v0 = vpop.f32.mrf.mxu1  ;;  %v7873_v4 = vadd.f32 %v4553_v35, %v4513_v10  ;;  %4807 = vmatpush1.bf16.msra.mxu0 %v6972_v33  ;;  %v7029_v21 = vld [vmem:[#allocation8 + $0x7a8] ss:$16 sps:$4 sm:$0xff]   ;;  %v7043_v33 = vld [vmem:[#allocation8 + $0x76c] ss:$16 sps:$4 sm:$0xff]  }
 0x277   :  { %4848 = vmatpush1.bf16.msra.mxu1 %v6975_v38  ;;  %v4515_v51 = vpop.f32.mrf.mxu0  ;;  %4808 = vmatprep.subr.bf16.mxu0 %v6980_v39  ;;  %v7032_v25 = vld [vmem:[#allocation8 + $0x588] ss:$16 sps:$4 sm:$0xff]   ;;  %v7046_v38 = vld [vmem:[#allocation8 + $0x54c] ss:$16 sps:$4 sm:$0xff]  }
 0x278   :  { %v4556_v52 = vpop.f32.mrf.mxu1  ;;  %4849 = vmatprep.subr.bf16.mxu1 %v6983_v41  ;;  %v7035_v31 = vld [vmem:[#allocation8 + $0x788] ss:$16 sps:$4 sm:$0xff]   ;;  %v7049_v39 = vld [vmem:[#allocation8 + $0x74c] ss:$16 sps:$4 sm:$0xff]  }
 0x279   :  { %v7038_v34 = vld [vmem:[#allocation8 + $0x568] ss:$16 sps:$4 sm:$0xff]   ;;  %v7052_v26 = vld [vmem:[#allocation8 + $0x52c] ss:$16 sps:$4 sm:$0xff]  }
 0x27a   :  { %4809 = vmatpush1.bf16.msra.mxu0 %v6978_v59  ;;  %v7041_v35 = vld [vmem:[#allocation8 + $0x768] ss:$16 sps:$4 sm:$0xff]   ;;  %v7055_v0 = vld [vmem:[#allocation8 + $0x72c] ss:$16 sps:$4 sm:$0xff]  }
 0x27b   :  { %4850 = vmatpush1.bf16.msra.mxu1 %v6981_v53  ;;  %4810 = vmatprep.subr.bf16.mxu0 %v6986_v55  ;;  %v7044_v10 = vld [vmem:[#allocation8 + $0x548] ss:$16 sps:$4 sm:$0xff]   ;;  %v7058_v52 = vld [vmem:[#allocation8 + $0x50c] ss:$16 sps:$4 sm:$0xff]  }
 0x27c   :  { %4851 = vmatprep.subr.bf16.mxu1 %v6989_v48  ;;  %v7047_v41 = vld [vmem:[#allocation8 + $0x748] ss:$16 sps:$4 sm:$0xff]   ;;  %v7061_v53 = vld [vmem:[#allocation8 + $0x70c] ss:$16 sps:$4 sm:$0xff]  }
 0x27d   :  { %v7050_v59 = vld [vmem:[#allocation8 + $0x528] ss:$16 sps:$4 sm:$0xff]  }
 0x27e   :  { %4811 = vmatpush1.bf16.msra.mxu0 %v6984_v60  ;;  %v7053_v51 = vld [vmem:[#allocation8 + $0x728] ss:$16 sps:$4 sm:$0xff]   ;;  %v7064_v60 = vld [vmem:[#allocation8 + $0x8ec] ss:$16 sps:$4 sm:$0xff]  }
 0x27f   :  { %4852 = vmatpush1.bf16.msra.mxu1 %v6987_v1  ;;  %4812 = vmatprep.subr.bf16.mxu0 %v6992_v56  ;;  %v7056_v55 = vld [vmem:[#allocation8 + $0x508] ss:$16 sps:$4 sm:$0xff]   ;;  %v7067_v1 = vld [vmem:[#allocation8 + $0xaec] ss:$16 sps:$4 sm:$0xff]  }
 0x280   :  { %4853 = vmatprep.subr.bf16.mxu1 %v6995_v49  ;;  %v7059_v48 = vld [vmem:[#allocation8 + $0x708] ss:$16 sps:$4 sm:$0xff]  }
 0x281   :  { %v7062_v56 = vld [vmem:[#allocation8 + $0x8e8] ss:$16 sps:$4 sm:$0xff]  }
 0x282   :  { %4813 = vmatpush1.bf16.msra.mxu0 %v6990_v5  ;;  %v7065_v49 = vld [vmem:[#allocation8 + $0xae8] ss:$16 sps:$4 sm:$0xff]   ;;  %v7070_v5 = vld [vmem:[#allocation8 + $0x8cc] ss:$16 sps:$4 sm:$0xff]  }
 0x283   :  { %4854 = vmatpush1.bf16.msra.mxu1 %v6993_v57  ;;  %4814 = vmatprep.subr.bf16.mxu0 %v6998_v58 }
 0x284   :  { %4855 = vmatprep.subr.bf16.mxu1 %v7001_v44  ;;  %v7073_v44 = vld [vmem:[#allocation8 + $0xacc] ss:$16 sps:$4 sm:$0xff]  }
 0x286   :  { %4815 = vmatpush1.bf16.msra.mxu0 %v6996_v61 }
 0x287   :  { %4856 = vmatpush1.bf16.msra.mxu1 %v6999_v62  ;;  %4816 = vmatprep.subr.bf16.mxu0 %v7004_v63  ;;  %v7068_v62 = vld [vmem:[#allocation8 + $0x8c8] ss:$16 sps:$4 sm:$0xff]  }
 0x288   :  { %4857 = vmatprep.subr.bf16.mxu1 %v7007_v46 }
 0x28a   :  { %4817 = vmatpush1.bf16.msra.mxu0 %v7002_v42  ;;  %v7071_v42 = vld [vmem:[#allocation8 + $0xac8] ss:$16 sps:$4 sm:$0xff]  }
 0x28b   :  { %4858 = vmatpush1.bf16.msra.mxu1 %v7005_v27  ;;  %4818 = vmatprep.subr.bf16.mxu0 %v7010_v28  ;;  %v7076_v27 = vld [vmem:[#allocation8 + $0x8ac] ss:$16 sps:$4 sm:$0xff]  }
 0x28c   :  { %4859 = vmatprep.subr.bf16.mxu1 %v7013_v37  ;;  %v7079_v37 = vld [vmem:[#allocation8 + $0xaac] ss:$16 sps:$4 sm:$0xff]  }
 0x28e   :  { %4819 = vmatpush1.bf16.msra.mxu0 %v7008_v8 }
 0x28f   :  { %4860 = vmatpush1.bf16.msra.mxu1 %v7011_v29  ;;  %4820 = vmatprep.subr.bf16.mxu0 %v7016_v2 }
 0x290   :  { %4861 = vmatprep.subr.bf16.mxu1 %v7019_v9  ;;  %v7077_v9 = vld [vmem:[#allocation8 + $0xaa8] ss:$16 sps:$4 sm:$0xff]  }
 0x292   :  { %4821 = vmatpush2.bf16.msra.mxu0 %v7014_v30  ;;  %v7082_v30 = vld [vmem:[#allocation8 + $0x88c] ss:$16 sps:$4 sm:$0xff]  }
 0x293   :  { %4862 = vmatpush2.bf16.msra.mxu1 %v7017_v3  ;;  %4822 = vmatprep.subr.bf16.mxu0 %v7022_v6  ;;  %v7085_v3 = vld [vmem:[#allocation8 + $0xa8c] ss:$16 sps:$4 sm:$0xff]  }
 0x294   :  { %4863 = vmatprep.subr.bf16.mxu1 %v7025_v24  ;;  %v7088_v6 = vld [vmem:[#allocation8 + $0x86c] ss:$16 sps:$4 sm:$0xff]  }
 0x295   :  { %v7091_v24 = vld [vmem:[#allocation8 + $0xa6c] ss:$16 sps:$4 sm:$0xff]  }
 0x296   :  { %4823 = vmatpush2.bf16.msra.mxu0 %v7020_v36  ;;  %v7086_v36 = vld [vmem:[#allocation8 + $0x868] ss:$16 sps:$4 sm:$0xff]  }
 0x297   :  { %4864 = vmatpush2.bf16.msra.mxu1 %v7023_v15  ;;  %4824 = vmatprep.subr.bf16.mxu0 %v7028_v16  ;;  %v7089_v15 = vld [vmem:[#allocation8 + $0xa68] ss:$16 sps:$4 sm:$0xff]   ;;  %v7094_v16 = vld [vmem:[#allocation8 + $0x84c] ss:$16 sps:$4 sm:$0xff]  }
 0x298   :  { %4865 = vmatprep.subr.bf16.mxu1 %v7031_v19  ;;  %v7097_v19 = vld [vmem:[#allocation8 + $0xa4c] ss:$16 sps:$4 sm:$0xff]  }
 0x29a   :  { %4825 = vmatpush2.bf16.msra.mxu0 %v7026_v20  ;;  %v7092_v20 = vld [vmem:[#allocation8 + $0x848] ss:$16 sps:$4 sm:$0xff]  }
 0x29b   :  { %4866 = vmatpush2.bf16.msra.mxu1 %v7029_v21  ;;  %4826 = vmatprep.subr.bf16.mxu0 %v7034_v22  ;;  %v7095_v21 = vld [vmem:[#allocation8 + $0xa48] ss:$16 sps:$4 sm:$0xff]   ;;  %v7100_v22 = vld [vmem:[#allocation8 + $0x82c] ss:$16 sps:$4 sm:$0xff]  }
 0x29c   :  { %4867 = vmatprep.subr.bf16.mxu1 %v7037_v23  ;;  %v7103_v23 = vld [vmem:[#allocation8 + $0xa2c] ss:$16 sps:$4 sm:$0xff]  }
 0x29e   :  { %4827 = vmatpush2.bf16.msra.mxu0 %v7032_v25  ;;  %v7098_v25 = vld [vmem:[#allocation8 + $0x828] ss:$16 sps:$4 sm:$0xff]  }
 0x29f   :  { %4868 = vmatpush2.bf16.msra.mxu1 %v7035_v31  ;;  %4828 = vmatprep.subr.bf16.mxu0 %v7040_v32  ;;  %v7101_v31 = vld [vmem:[#allocation8 + $0xa28] ss:$16 sps:$4 sm:$0xff]   ;;  %v7106_v32 = vld [vmem:[#allocation8 + $0x80c] ss:$16 sps:$4 sm:$0xff]  }
 0x2a0   :  { %4869 = vmatprep.subr.bf16.mxu1 %v7043_v33  ;;  %v7109_v33 = vld [vmem:[#allocation8 + $0xa0c] ss:$16 sps:$4 sm:$0xff]  }
 0x2a2   :  { %4829 = vmatpush2.bf16.msra.mxu0 %v7038_v34  ;;  %v7104_v34 = vld [vmem:[#allocation8 + $0x808] ss:$16 sps:$4 sm:$0xff]  }
 0x2a3   :  { %4870 = vmatpush2.bf16.msra.mxu1 %v7041_v35  ;;  %4830 = vmatprep.subr.bf16.mxu0 %v7046_v38  ;;  %v7107_v35 = vld [vmem:[#allocation8 + $0xa08] ss:$16 sps:$4 sm:$0xff]   ;;  %v7112_v38 = vld [vmem:[#allocation8 + $0x9ec] ss:$16 sps:$4 sm:$0xff]  }
 0x2a4   :  { %4871 = vmatprep.subr.bf16.mxu1 %v7049_v39  ;;  %v7115_v39 = vld [vmem:[#allocation8 + $0xbec] ss:$16 sps:$4 sm:$0xff]  }
 0x2a6   :  { %4831 = vmatpush2.bf16.msra.mxu0 %v7044_v10  ;;  %v7110_v10 = vld [vmem:[#allocation8 + $0x9e8] ss:$16 sps:$4 sm:$0xff]  }
 0x2a7   :  { %4872 = vmatpush2.bf16.msra.mxu1 %v7047_v41  ;;  %4832 = vmatprep.subr.bf16.mxu0 %v7052_v26  ;;  %v7113_v41 = vld [vmem:[#allocation8 + $0xbe8] ss:$16 sps:$4 sm:$0xff]   ;;  %v7118_v26 = vld [vmem:[#allocation8 + $0x9cc] ss:$16 sps:$4 sm:$0xff]  }
 0x2a8   :  { %4873 = vmatprep.subr.bf16.mxu1 %v7055_v0  ;;  %v7121_v0 = vld [vmem:[#allocation8 + $0xbcc] ss:$16 sps:$4 sm:$0xff]  }
 0x2aa   :  { %4833 = vmatpush2.bf16.msra.mxu0 %v7050_v59  ;;  %v7116_v59 = vld [vmem:[#allocation8 + $0x9c8] ss:$16 sps:$4 sm:$0xff]  }
 0x2ab   :  { %4874 = vmatpush2.bf16.msra.mxu1 %v7053_v51  ;;  %4834 = vmatprep.subr.bf16.mxu0 %v7058_v52  ;;  %v7119_v51 = vld [vmem:[#allocation8 + $0xbc8] ss:$16 sps:$4 sm:$0xff]   ;;  %v7124_v52 = vld [vmem:[#allocation8 + $0x9ac] ss:$16 sps:$4 sm:$0xff]  }
 0x2ac   :  { %4875 = vmatprep.subr.bf16.mxu1 %v7061_v53  ;;  %v7127_v53 = vld [vmem:[#allocation8 + $0xbac] ss:$16 sps:$4 sm:$0xff]  }
 0x2ae   :  { %4835 = vmatpush2.bf16.msra.mxu0 %v7056_v55  ;;  %v7122_v55 = vld [vmem:[#allocation8 + $0x9a8] ss:$16 sps:$4 sm:$0xff]  }
 0x2af   :  { %4876 = vmatpush2.bf16.msra.mxu1 %v7059_v48  ;;  %4886 = vmatprep.subr.bf16.mxu0 %v7064_v60  ;;  %v7125_v48 = vld [vmem:[#allocation8 + $0xba8] ss:$16 sps:$4 sm:$0xff]   ;;  %v7130_v60 = vld [vmem:[#allocation8 + $0x98c] ss:$16 sps:$4 sm:$0xff]  }
 0x2b0   :  { %4927 = vmatprep.subr.bf16.mxu1 %v7067_v1  ;;  %v7133_v1 = vld [vmem:[#allocation8 + $0xb8c] ss:$16 sps:$4 sm:$0xff]  }
 0x2b1   :  { %v4592_v57 = vpop.f32.mrf.mxu0  ;;  %4837 = vmatmul.mubr.bf16.vlgmr.msra.gmra.mxu0 %v7799_v12 }
 0x2b2   :  { %v4633_v58 = vpop.f32.mrf.mxu1  ;;  %v4593_v61 = vadd.f32 %v4592_v57, %v7869_v40  ;;  %4878 = vmatmul.mubr.bf16.vlgmr.msra.gmra.mxu1 %v7797_v11  ;;  %4887 = vmatpush1.bf16.msra.mxu0 %v7062_v56  ;;  %v7128_v56 = vld [vmem:[#allocation8 + $0x988] ss:$16 sps:$4 sm:$0xff]   ;;  %v7139_v57 = vld [vmem:[#allocation8 + $0xb6c] ss:$16 sps:$4 sm:$0xff]  }
 0x2b3   :  { %4918 = vmatprep.mubr.bf16.mxu0 %v7801_v17  ;;  %4928 = vmatpush1.bf16.msra.mxu1 %v7065_v49  ;;  %v4594_v63 = vpop.f32.mrf.mxu0  ;;  %v7074_v17 = vld [vmem:[#allocation8 + $0x8a8] ss:$16 sps:$4 sm:$0xff]  }
 0x2b4   :  { %v4635_v46 = vpop.f32.mrf.mxu1  ;;  %v7879_v28 = vadd.f32 %v4633_v58, %v4593_v61  ;;  %4959 = vmatprep.mubr.bf16.mxu1 %v7803_v18  ;;  %v4595_v12 = vadd.f32 %v4594_v63, %v7873_v4  ;;  %4888 = vmatprep.subr.bf16.mxu0 %v7070_v5  ;;  %v7080_v18 = vld [vmem:[#allocation8 + $0x888] ss:$16 sps:$4 sm:$0xff]   ;;  %v7136_v5 = vld [vmem:[#allocation8 + $0x96c] ss:$16 sps:$4 sm:$0xff]  }
 0x2b5   :  { %v4596_v40 = vpop.f32.mrf.mxu0  ;;  %4929 = vmatprep.subr.bf16.mxu1 %v7073_v44  ;;  %v7083_v4 = vld [vmem:[#allocation8 + $0xa88] ss:$16 sps:$4 sm:$0xff]   ;;  %v7142_v61 = vld [vmem:[#allocation8 + $0x94c] ss:$16 sps:$4 sm:$0xff]  }
 0x2b6   :  { %v4637_v8 = vpop.f32.mrf.mxu1  ;;  %v7883_v11 = vadd.f32 %v4635_v46, %v4595_v12  ;;  %4889 = vmatpush1.bf16.msra.mxu0 %v7068_v62  ;;  %v7131_v49 = vld [vmem:[#allocation8 + $0xb88] ss:$16 sps:$4 sm:$0xff]   ;;  %v7145_v62 = vld [vmem:[#allocation8 + $0xb4c] ss:$16 sps:$4 sm:$0xff]  }
 0x2b7   :  { %4930 = vmatpush1.bf16.msra.mxu1 %v7071_v42  ;;  %v4597_v29 = vpop.f32.mrf.mxu0  ;;  %4890 = vmatprep.subr.bf16.mxu0 %v7076_v27  ;;  %v7134_v58 = vld [vmem:[#allocation8 + $0x968] ss:$16 sps:$4 sm:$0xff]   ;;  %v7148_v42 = vld [vmem:[#allocation8 + $0x92c] ss:$16 sps:$4 sm:$0xff]  }
 0x2b8   :  { %v4638_v2 = vpop.f32.mrf.mxu1  ;;  %4931 = vmatprep.subr.bf16.mxu1 %v7079_v37  ;;  %v7137_v44 = vld [vmem:[#allocation8 + $0xb68] ss:$16 sps:$4 sm:$0xff]   ;;  %v7151_v27 = vld [vmem:[#allocation8 + $0xb2c] ss:$16 sps:$4 sm:$0xff]  }
 0x2b9   :  { %v7140_v63 = vld [vmem:[#allocation8 + $0x948] ss:$16 sps:$4 sm:$0xff]   ;;  %v7154_v40 = vld [vmem:[#allocation8 + $0x90c] ss:$16 sps:$4 sm:$0xff]  }
 0x2ba   :  { %4891 = vmatpush1.bf16.msra.mxu0 %v7074_v17  ;;  %v7143_v46 = vld [vmem:[#allocation8 + $0xb48] ss:$16 sps:$4 sm:$0xff]   ;;  %v7157_v8 = vld [vmem:[#allocation8 + $0xb0c] ss:$16 sps:$4 sm:$0xff]  }
 0x2bb   :  { %4932 = vmatpush1.bf16.msra.mxu1 %v7077_v9  ;;  %4892 = vmatprep.subr.bf16.mxu0 %v7082_v30  ;;  %v7146_v12 = vld [vmem:[#allocation8 + $0x928] ss:$16 sps:$4 sm:$0xff]   ;;  %v7160_v2 = vld [vmem:[#allocation8 + $0xcec] ss:$16 sps:$4 sm:$0xff]  }
 0x2bc   :  { %4933 = vmatprep.subr.bf16.mxu1 %v7085_v3  ;;  %v7149_v37 = vld [vmem:[#allocation8 + $0xb28] ss:$16 sps:$4 sm:$0xff]   ;;  %v7163_v9 = vld [vmem:[#allocation8 + $0xeec] ss:$16 sps:$4 sm:$0xff]  }
 0x2bd   :  { %v7152_v17 = vld [vmem:[#allocation8 + $0x908] ss:$16 sps:$4 sm:$0xff]  }
 0x2be   :  { %4893 = vmatpush1.bf16.msra.mxu0 %v7080_v18  ;;  %v7155_v29 = vld [vmem:[#allocation8 + $0xb08] ss:$16 sps:$4 sm:$0xff]   ;;  %v7166_v18 = vld [vmem:[#allocation8 + $0xccc] ss:$16 sps:$4 sm:$0xff]  }
 0x2bf   :  { %4934 = vmatpush1.bf16.msra.mxu1 %v7083_v4  ;;  %4894 = vmatprep.subr.bf16.mxu0 %v7088_v6  ;;  %v7158_v30 = vld [vmem:[#allocation8 + $0xce8] ss:$16 sps:$4 sm:$0xff]  }
 0x2c0   :  { %4935 = vmatprep.subr.bf16.mxu1 %v7091_v24  ;;  %v7161_v3 = vld [vmem:[#allocation8 + $0xee8] ss:$16 sps:$4 sm:$0xff]   ;;  %v7169_v24 = vld [vmem:[#allocation8 + $0xecc] ss:$16 sps:$4 sm:$0xff]  }
 0x2c2   :  { %4895 = vmatpush1.bf16.msra.mxu0 %v7086_v36 }
 0x2c3   :  { %4936 = vmatpush1.bf16.msra.mxu1 %v7089_v15  ;;  %4896 = vmatprep.subr.bf16.mxu0 %v7094_v16  ;;  %v7164_v15 = vld [vmem:[#allocation8 + $0xcc8] ss:$16 sps:$4 sm:$0xff]  }
 0x2c4   :  { %4937 = vmatprep.subr.bf16.mxu1 %v7097_v19 }
 0x2c6   :  { %4897 = vmatpush1.bf16.msra.mxu0 %v7092_v20  ;;  %v7167_v20 = vld [vmem:[#allocation8 + $0xec8] ss:$16 sps:$4 sm:$0xff]  }
 0x2c7   :  { %4938 = vmatpush1.bf16.msra.mxu1 %v7095_v21  ;;  %4898 = vmatprep.subr.bf16.mxu0 %v7100_v22  ;;  %v7172_v21 = vld [vmem:[#allocation8 + $0xcac] ss:$16 sps:$4 sm:$0xff]  }
 0x2c8   :  { %4939 = vmatprep.subr.bf16.mxu1 %v7103_v23 }
 0x2ca   :  { %4899 = vmatpush1.bf16.msra.mxu0 %v7098_v25 }
 0x2cb   :  { %4940 = vmatpush1.bf16.msra.mxu1 %v7101_v31  ;;  %4900 = vmatprep.subr.bf16.mxu0 %v7106_v32  ;;  %v7173_v31 = vld [vmem:[#allocation8 + $0xea8] ss:$16 sps:$4 sm:$0xff]   ;;  %v7178_v32 = vld [vmem:[#allocation8 + $0xc8c] ss:$16 sps:$4 sm:$0xff]  }
 0x2cc   :  { %4941 = vmatprep.subr.bf16.mxu1 %v7109_v33  ;;  %v7181_v33 = vld [vmem:[#allocation8 + $0xe8c] ss:$16 sps:$4 sm:$0xff]  }
 0x2ce   :  { %4901 = vmatpush1.bf16.msra.mxu0 %v7104_v34  ;;  %v7176_v34 = vld [vmem:[#allocation8 + $0xc88] ss:$16 sps:$4 sm:$0xff]  }
 0x2cf   :  { %4942 = vmatpush1.bf16.msra.mxu1 %v7107_v35  ;;  %4902 = vmatprep.subr.bf16.mxu0 %v7112_v38  ;;  %v7184_v35 = vld [vmem:[#allocation8 + $0xc6c] ss:$16 sps:$4 sm:$0xff]  }
 0x2d0   :  { %4943 = vmatprep.subr.bf16.mxu1 %v7115_v39  ;;  %v7187_v38 = vld [vmem:[#allocation8 + $0xe6c] ss:$16 sps:$4 sm:$0xff]   ;;  %v7182_v39 = vld [vmem:[#allocation8 + $0xc68] ss:$16 sps:$4 sm:$0xff]  }
 0x2d2   :  { %4903 = vmatpush2.bf16.msra.mxu0 %v7110_v10  ;;  %v7185_v10 = vld [vmem:[#allocation8 + $0xe68] ss:$16 sps:$4 sm:$0xff]  }
 0x2d3   :  { %4944 = vmatpush2.bf16.msra.mxu1 %v7113_v41  ;;  %4904 = vmatprep.subr.bf16.mxu0 %v7118_v26  ;;  %v7190_v41 = vld [vmem:[#allocation8 + $0xc4c] ss:$16 sps:$4 sm:$0xff]  }
 0x2d4   :  { %4945 = vmatprep.subr.bf16.mxu1 %v7121_v0  ;;  %v7193_v26 = vld [vmem:[#allocation8 + $0xe4c] ss:$16 sps:$4 sm:$0xff]   ;;  %v7188_v0 = vld [vmem:[#allocation8 + $0xc48] ss:$16 sps:$4 sm:$0xff]  }
 0x2d6   :  { %4905 = vmatpush2.bf16.msra.mxu0 %v7116_v59  ;;  %v7191_v59 = vld [vmem:[#allocation8 + $0xe48] ss:$16 sps:$4 sm:$0xff]  }
 0x2d7   :  { %4946 = vmatpush2.bf16.msra.mxu1 %v7119_v51  ;;  %4906 = vmatprep.subr.bf16.mxu0 %v7124_v52  ;;  %v7196_v51 = vld [vmem:[#allocation8 + $0xc2c] ss:$16 sps:$4 sm:$0xff]  }
 0x2d8   :  { %4947 = vmatprep.subr.bf16.mxu1 %v7127_v53  ;;  %v7199_v52 = vld [vmem:[#allocation8 + $0xe2c] ss:$16 sps:$4 sm:$0xff]   ;;  %v7194_v53 = vld [vmem:[#allocation8 + $0xc28] ss:$16 sps:$4 sm:$0xff]  }
 0x2da   :  { %4907 = vmatpush2.bf16.msra.mxu0 %v7122_v55  ;;  %v7197_v55 = vld [vmem:[#allocation8 + $0xe28] ss:$16 sps:$4 sm:$0xff]  }
 0x2db   :  { %4948 = vmatpush2.bf16.msra.mxu1 %v7125_v48  ;;  %4908 = vmatprep.subr.bf16.mxu0 %v7130_v60  ;;  %v7202_v48 = vld [vmem:[#allocation8 + $0xc0c] ss:$16 sps:$4 sm:$0xff]  }
 0x2dc   :  { %4949 = vmatprep.subr.bf16.mxu1 %v7133_v1  ;;  %v7205_v60 = vld [vmem:[#allocation8 + $0xe0c] ss:$16 sps:$4 sm:$0xff]   ;;  %v7200_v1 = vld [vmem:[#allocation8 + $0xc08] ss:$16 sps:$4 sm:$0xff]  }
 0x2de   :  { %4909 = vmatpush2.bf16.msra.mxu0 %v7128_v56  ;;  %v7203_v56 = vld [vmem:[#allocation8 + $0xe08] ss:$16 sps:$4 sm:$0xff]  }
 0x2df   :  { %4950 = vmatpush2.bf16.msra.mxu1 %v7131_v49  ;;  %4910 = vmatprep.subr.bf16.mxu0 %v7136_v5  ;;  %v7208_v49 = vld [vmem:[#allocation8 + $0xdec] ss:$16 sps:$4 sm:$0xff]  }
 0x2e0   :  { %4951 = vmatprep.subr.bf16.mxu1 %v7139_v57  ;;  %v7211_v5 = vld [vmem:[#allocation8 + $0xfec] ss:$16 sps:$4 sm:$0xff]   ;;  %v7206_v57 = vld [vmem:[#allocation8 + $0xde8] ss:$16 sps:$4 sm:$0xff]  }
 0x2e2   :  { %4911 = vmatpush2.bf16.msra.mxu0 %v7134_v58  ;;  %v7209_v58 = vld [vmem:[#allocation8 + $0xfe8] ss:$16 sps:$4 sm:$0xff]  }
 0x2e3   :  { %4952 = vmatpush2.bf16.msra.mxu1 %v7137_v44  ;;  %4912 = vmatprep.subr.bf16.mxu0 %v7142_v61  ;;  %v7214_v44 = vld [vmem:[#allocation8 + $0xdcc] ss:$16 sps:$4 sm:$0xff]  }
 0x2e4   :  { %4953 = vmatprep.subr.bf16.mxu1 %v7145_v62  ;;  %v7217_v61 = vld [vmem:[#allocation8 + $0xfcc] ss:$16 sps:$4 sm:$0xff]   ;;  %v7212_v62 = vld [vmem:[#allocation8 + $0xdc8] ss:$16 sps:$4 sm:$0xff]  }
 0x2e6   :  { %4913 = vmatpush2.bf16.msra.mxu0 %v7140_v63  ;;  %v7215_v63 = vld [vmem:[#allocation8 + $0xfc8] ss:$16 sps:$4 sm:$0xff]  }
 0x2e7   :  { %4954 = vmatpush2.bf16.msra.mxu1 %v7143_v46  ;;  %4914 = vmatprep.subr.bf16.mxu0 %v7148_v42  ;;  %v7220_v46 = vld [vmem:[#allocation8 + $0xdac] ss:$16 sps:$4 sm:$0xff]  }
 0x2e8   :  { %4955 = vmatprep.subr.bf16.mxu1 %v7151_v27  ;;  %v7223_v42 = vld [vmem:[#allocation8 + $0xfac] ss:$16 sps:$4 sm:$0xff]   ;;  %v7218_v27 = vld [vmem:[#allocation8 + $0xda8] ss:$16 sps:$4 sm:$0xff]  }
 0x2ea   :  { %4915 = vmatpush2.bf16.msra.mxu0 %v7146_v12  ;;  %v7221_v12 = vld [vmem:[#allocation8 + $0xfa8] ss:$16 sps:$4 sm:$0xff]  }
 0x2eb   :  { %4956 = vmatpush2.bf16.msra.mxu1 %v7149_v37  ;;  %4916 = vmatprep.subr.bf16.mxu0 %v7154_v40  ;;  %v7226_v37 = vld [vmem:[#allocation8 + $0xd8c] ss:$16 sps:$4 sm:$0xff]  }
 0x2ec   :  { %4957 = vmatprep.subr.bf16.mxu1 %v7157_v8  ;;  %v7229_v40 = vld [vmem:[#allocation8 + $0xf8c] ss:$16 sps:$4 sm:$0xff]   ;;  %v7224_v8 = vld [vmem:[#allocation8 + $0xd88] ss:$16 sps:$4 sm:$0xff]  }
 0x2ee   :  { %4917 = vmatpush2.bf16.msra.mxu0 %v7152_v17  ;;  %v7227_v17 = vld [vmem:[#allocation8 + $0xf88] ss:$16 sps:$4 sm:$0xff]  }
 0x2ef   :  { %4958 = vmatpush2.bf16.msra.mxu1 %v7155_v29  ;;  %4968 = vmatprep.subr.bf16.mxu0 %v7160_v2  ;;  %v7232_v29 = vld [vmem:[#allocation8 + $0xd6c] ss:$16 sps:$4 sm:$0xff]  }
 0x2f0   :  { %5009 = vmatprep.subr.bf16.mxu1 %v7163_v9  ;;  %v7235_v2 = vld [vmem:[#allocation8 + $0xf6c] ss:$16 sps:$4 sm:$0xff]   ;;  %v7230_v9 = vld [vmem:[#allocation8 + $0xd68] ss:$16 sps:$4 sm:$0xff]  }
 0x2f1   :  { %v4674_v4 = vpop.f32.mrf.mxu0  ;;  %4919 = vmatmul.mubr.bf16.vlgmr.msra.gmra.mxu0 %v7837_v7  ;;  %v7175_v7 = vld [vmem:[#allocation8 + $0xeac] ss:$16 sps:$4 sm:$0xff]  }
 0x2f2   :  { %v4715_v6 = vpop.f32.mrf.mxu1  ;;  %v4675_v36 = vadd.f32 %v4674_v4, %v7879_v28  ;;  %4960 = vmatmul.mubr.bf16.vlgmr.msra.gmra.mxu1 %v7839_v50  ;;  %4969 = vmatpush1.bf16.msra.mxu0 %v7158_v30  ;;  %v7170_v50 = vld [vmem:[#allocation8 + $0xca8] ss:$16 sps:$4 sm:$0xff]  }
 0x2f3   :  { %5000 = vmatprep.mubr.bf16.mxu0 %v7841_v13  ;;  %5010 = vmatpush1.bf16.msra.mxu1 %v7161_v3  ;;  %v7889_v16 = vpop.f32.mrf.mxu0  ;;  %v7233_v30 = vld [vmem:[#allocation8 + $0xf68] ss:$16 sps:$4 sm:$0xff]   ;;  %v7238_v3 = vld [vmem:[#allocation8 + $0xd4c] ss:$16 sps:$4 sm:$0xff]  }
 0x2f4   :  { %v7891_v19 = vpop.f32.mrf.mxu1  ;;  %v7893_v22 = vadd.f32 %v4715_v6, %v4675_v36  ;;  %5041 = vmatprep.mubr.bf16.mxu1 %v7843_v14  ;;  %4970 = vmatprep.subr.bf16.mxu0 %v7166_v18  ;;  %v7179_v14 = vld [vmem:[#allocation8 + $0xe88] ss:$16 sps:$4 sm:$0xff]   ;;  %v7241_v18 = vld [vmem:[#allocation8 + $0xf4c] ss:$16 sps:$4 sm:$0xff]  }
 0x2f5   :  { %v4678_v28 = vpop.f32.mrf.mxu0  ;;  %5011 = vmatprep.subr.bf16.mxu1 %v7169_v24  ;;  %v7236_v4 = vld [vmem:[#allocation8 + $0xd48] ss:$16 sps:$4 sm:$0xff]   ;;  %v7244_v24 = vld [vmem:[#allocation8 + $0xd2c] ss:$16 sps:$4 sm:$0xff]  }
 0x2f6   :  { %v4719_v23 = vpop.f32.mrf.mxu1  ;;  %4971 = vmatpush1.bf16.msra.mxu0 %v7164_v15  ;;  %v7239_v6 = vld [vmem:[#allocation8 + $0xf48] ss:$16 sps:$4 sm:$0xff]   ;;  %v7247_v36 = vld [vmem:[#allocation8 + $0xf2c] ss:$16 sps:$4 sm:$0xff]   ;;  %v4677_v15 = vadd.f32 %v7889_v16, %v7883_v11  ;;  %v7306_v11 = vld [vmem:[#allocation10] sm:$0xf] }
 0x2f7   :  { %5012 = vmatpush1.bf16.msra.mxu1 %v7167_v20  ;;  %v4679_v13 = vpop.f32.mrf.mxu0  ;;  %4972 = vmatprep.subr.bf16.mxu0 %v7172_v21  ;;  %v7242_v20 = vld [vmem:[#allocation8 + $0xd28] ss:$16 sps:$4 sm:$0xff]   ;;  %v7253_v28 = vld [vmem:[#allocation8 + $0xf0c] ss:$16 sps:$4 sm:$0xff]   ;;  %v1825_v16 = vrot.slane %v7306_v11, %v7731_v45 }
 0x2f8   :  { %v4720_v25 = vpop.f32.mrf.mxu1  ;;  %5013 = vmatprep.subr.bf16.mxu1 %v7175_v7  ;;  %v7245_v21 = vld [vmem:[#allocation8 + $0xf28] ss:$16 sps:$4 sm:$0xff]   ;;  %v7250_v7 = vld [vmem:[#allocation8 + $0xd0c] ss:$16 sps:$4 sm:$0xff]   ;;  %v4718_v23 = vadd.f32 %v7891_v19, %v4677_v15 }
 0x2f9   :  { %v7251_v13 = vld [vmem:[#allocation8 + $0xf08] ss:$16 sps:$4 sm:$0xff]   ;;  %v7254_v25 = vld [vmem:[#allocation11 + $0x78] sm:$0xff]   ;;  %v7258_v45 = vld [vmem:[#allocation11 + $0x68] sm:$0xff]  }
 0x2fa   :  { %4973 = vmatpush1.bf16.msra.mxu0 %v7170_v50  ;;  %v7248_v50 = vld [vmem:[#allocation8 + $0xd08] ss:$16 sps:$4 sm:$0xff]   ;;  %v7282_v15 = vld [vmem:[#allocation11 + $0xc8] sm:$0xff]  }
 0x2fb   :  { %5014 = vmatpush1.bf16.msra.mxu1 %v7173_v31  ;;  %4974 = vmatprep.subr.bf16.mxu0 %v7178_v32  ;;  %v5051_v31 = vmax.f32 %v4718_v23, 0.0  ;;  %v7255_v32 = vld [vmem:[#allocation11 + $0x38] sm:$0xff]   ;;  %v7284_v23 = vld [vmem:[#allocation11 + $0xc0] sm:$0xff]  }
 0x2fc   :  { %5015 = vmatprep.subr.bf16.mxu1 %v7181_v33  ;;  %v7256_v33 = vld [vmem:[#allocation11 + $0x70] sm:$0xff]  }
 0x2fe   :  { %4975 = vmatpush1.bf16.msra.mxu0 %v7176_v34  ;;  %v1829_v34 = vrot.slane %v7306_v11, %v7737_v47  ;;  %v7288_v11 = vld [vmem:[#allocation14 + $0x28] sm:$0xff]  }
 0x2ff   :  { %5016 = vmatpush1.bf16.msra.mxu1 %v7179_v14  ;;  %4976 = vmatprep.subr.bf16.mxu0 %v7184_v35  ;;  %v5055_v14 = vpack.c.bf16 %v5051_v31, %v5051_v31  ;;  %v7287_v31 = vld [vmem:[#allocation14 + $0x30] sm:$0xff]  }
 0x300   :  { %5017 = vmatprep.subr.bf16.mxu1 %v7187_v38 }
 0x302   :  { %4977 = vmatpush1.bf16.msra.mxu0 %v7182_v39  ;;  %v7257_v39 = vld [vmem:[#allocation11 + $0x30] sm:$0xff]  }
 0x303   :  { %5018 = vmatpush1.bf16.msra.mxu1 %v7185_v10  ;;  %4978 = vmatprep.subr.bf16.mxu0 %v7190_v41 }
 0x304   :  { %5019 = vmatprep.subr.bf16.mxu1 %v7193_v26 }
 0x306   :  { %4979 = vmatpush1.bf16.msra.mxu0 %v7188_v0 }
 0x307   :  { %5020 = vmatpush1.bf16.msra.mxu1 %v7191_v59  ;;  %4980 = vmatprep.subr.bf16.mxu0 %v7196_v51 }
 0x308   :  { %5021 = vmatprep.subr.bf16.mxu1 %v7199_v52  ;;  %v7259_v52 = vld [vmem:[#allocation11 + $0x28] sm:$0xff]  }
 0x30a   :  { %4981 = vmatpush1.bf16.msra.mxu0 %v7194_v53 }
 0x30b   :  { %5022 = vmatpush1.bf16.msra.mxu1 %v7197_v55  ;;  %4982 = vmatprep.subr.bf16.mxu0 %v7202_v48  ;;  %v7270_v48 = vld [vmem:[#allocation11 + $0xf8] sm:$0xff]  }
 0x30c   :  { %5023 = vmatprep.subr.bf16.mxu1 %v7205_v60  ;;  %v7272_v60 = vld [vmem:[#allocation11 + $0xf0] sm:$0xff]  }
 0x30e   :  { %4983 = vmatpush1.bf16.msra.mxu0 %v7200_v1  ;;  %v7261_v1 = vld [vmem:[#allocation11 + $0x20] sm:$0xff]  }
 0x30f   :  { %5024 = vmatpush1.bf16.msra.mxu1 %v7203_v56  ;;  %4984 = vmatprep.subr.bf16.mxu0 %v7208_v49  ;;  %v7262_v56 = vld [vmem:[#allocation11 + $0x58] sm:$0xff]   ;;  %v7273_v49 = vld [vmem:[#allocation11 + $0xb0] sm:$0xff]  }
 0x310   :  { %5025 = vmatprep.subr.bf16.mxu1 %v7211_v5  ;;  %v7274_v5 = vld [vmem:[#allocation11 + $0xe8] sm:$0xff]  }
 0x312   :  { %4985 = vmatpush2.bf16.msra.mxu0 %v7206_v57  ;;  %v7263_v57 = vld [vmem:[#allocation11 + $0x18] sm:$0xff]  }
 0x313   :  { %5026 = vmatpush2.bf16.msra.mxu1 %v7209_v58  ;;  %4986 = vmatprep.subr.bf16.mxu0 %v7214_v44  ;;  %v7264_v58 = vld [vmem:[#allocation11 + $0x50] sm:$0xff]   ;;  %v7275_v44 = vld [vmem:[#allocation11 + $0xa8] sm:$0xff]  }
 0x314   :  { %5027 = vmatprep.subr.bf16.mxu1 %v7217_v61  ;;  %v7276_v61 = vld [vmem:[#allocation11 + $0xe0] sm:$0xff]  }
 0x316   :  { %4987 = vmatpush2.bf16.msra.mxu0 %v7212_v62  ;;  %v7265_v62 = vld [vmem:[#allocation11 + $0x10] sm:$0xff]  }
 0x317   :  { %5028 = vmatpush2.bf16.msra.mxu1 %v7215_v63  ;;  %4988 = vmatprep.subr.bf16.mxu0 %v7220_v46  ;;  %v7266_v63 = vld [vmem:[#allocation11 + $0x48] sm:$0xff]   ;;  %v7277_v46 = vld [vmem:[#allocation11 + $0xa0] sm:$0xff]  }
 0x318   :  { %5029 = vmatprep.subr.bf16.mxu1 %v7223_v42  ;;  %v7278_v42 = vld [vmem:[#allocation11 + $0xd8] sm:$0xff]  }
 0x31a   :  { %4989 = vmatpush2.bf16.msra.mxu0 %v7218_v27  ;;  %v7267_v27 = vld [vmem:[#allocation11 + $0x8] sm:$0xff]  }
 0x31b   :  { %5030 = vmatpush2.bf16.msra.mxu1 %v7221_v12  ;;  %4990 = vmatprep.subr.bf16.mxu0 %v7226_v37  ;;  %v7268_v12 = vld [vmem:[#allocation11 + $0x40] sm:$0xff]   ;;  %v7279_v37 = vld [vmem:[#allocation11 + $0x98] sm:$0xff]  }
 0x31c   :  { %5031 = vmatprep.subr.bf16.mxu1 %v7229_v40  ;;  %v7269_v40 = vld [vmem:[#allocation11] sm:$0xff]  }
 0x31e   :  { %4991 = vmatpush2.bf16.msra.mxu0 %v7224_v8  ;;  %v5050_v8 = vmax.f32 %v7893_v22, 0.0 }
 0x31f   :  { %5032 = vmatpush2.bf16.msra.mxu1 %v7227_v17  ;;  %4992 = vmatprep.subr.bf16.mxu0 %v7232_v29 }
 0x320   :  { %5033 = vmatprep.subr.bf16.mxu1 %v7235_v2  ;;  %v5054_v17 = vpack.c.bf16 %v5050_v8, %v5050_v8  ;;  %v7280_v2 = vld [vmem:[#allocation11 + $0xd0] sm:$0xff]  }
 0x321   :  { %v7296_v8 = vld [vmem:[#allocation17 + $0x28] sm:$0xff]  }
 0x322   :  { %4993 = vmatpush2.bf16.msra.mxu0 %v7230_v9 }
 0x323   :  { %5034 = vmatpush2.bf16.msra.mxu1 %v7233_v30  ;;  %4994 = vmatprep.subr.bf16.mxu0 %v7238_v3  ;;  %v7281_v3 = vld [vmem:[#allocation11 + $0x90] sm:$0xff]  }
 0x324   :  { %5035 = vmatprep.subr.bf16.mxu1 %v7241_v18 }
 0x326   :  { %4995 = vmatpush2.bf16.msra.mxu0 %v7236_v4 }
 0x327   :  { %5036 = vmatpush2.bf16.msra.mxu1 %v7239_v6  ;;  %4996 = vmatprep.subr.bf16.mxu0 %v7244_v24 }
 0x328   :  { %5037 = vmatprep.subr.bf16.mxu1 %v7247_v36 }
 0x32a   :  { %4997 = vmatpush2.bf16.msra.mxu0 %v7242_v20 }
 0x32b   :  { %5038 = vmatpush2.bf16.msra.mxu1 %v7245_v21  ;;  %4998 = vmatprep.subr.bf16.mxu0 %v7250_v7  ;;  %v7283_v21 = vld [vmem:[#allocation11 + $0x88] sm:$0xff]  }
 0x32c   :  { %5039 = vmatprep.subr.bf16.mxu1 %v7253_v28 }
 0x32e   :  { %4999 = vmatpush2.bf16.msra.mxu0 %v7248_v50  ;;  %v7285_v50 = vld [vmem:[#allocation11 + $0x80] sm:$0xff]  }
 0x32f   :  { %5040 = vmatpush2.bf16.msra.mxu1 %v7251_v13  ;;  %6348 = vmatprep.subr.bf16.mxu0 %v7254_v25  ;;  %v7286_v13 = vld [vmem:[#allocation14 + $0x38] sm:$0xff]   ;;  %v7578_v25 = vmov 0.0  }
 0x330   :  { %6370 = vmatprep.subr.bf16.mxu1 %v7270_v48 }
 0x331   :  { %v4756_v19 = vpop.f32.mrf.mxu0  ;;  %5001 = vmatmul.mubr.bf16.vlgmr.msra.gmra.mxu0 %v7852_v54  ;;  %v7260_v54 = vld [vmem:[#allocation11 + $0x60] sm:$0xff]  }
 0x332   :  { %v4757_v35 = vadd.f32 %v4756_v19, %v1825_v16  ;;  %v4797_v38 = vpop.f32.mrf.mxu1  ;;  %5042 = vmatmul.mubr.bf16.vlgmr.msra.gmra.mxu1 %v7854_v43  ;;  %6349 = vmatpush3.bf16.msra.mxu0 %v7255_v32  ;;  %v7271_v43 = vld [vmem:[#allocation11 + $0xb8] sm:$0xff]   ;;  %v7289_v16 = vld [vmem:[#allocation14 + $0x20] sm:$0xff]  }
 0x333   :  { %5353 = vmatprep.mubr.bf16.mxu0 %v5055_v14  ;;  %v4758_v10 = vpop.f32.mrf.mxu0  ;;  %6350 = vmatprep.subr.bf16.mxu0 %v7256_v33  ;;  %v7290_v32 = vld [vmem:[#allocation14 + $0x18] sm:$0xff]  }
 0x334   :  { %v4798_v41 = vadd.f32 %v4797_v38, %v4757_v35  ;;  %v4759_v26 = vadd.f32 %v4758_v10, %v1829_v34  ;;  %v4799_v0 = vpop.f32.mrf.mxu1  ;;  %6371 = vmatpush3.bf16.msra.mxu1 %v7271_v43 }
 0x335   :  { %v4760_v59 = vpop.f32.mrf.mxu0  ;;  %6372 = vmatprep.subr.bf16.mxu1 %v7272_v60 }
 0x336   :  { %v4800_v51 = vadd.f32 %v4799_v0, %v4759_v26  ;;  %v4801_v47 = vpop.f32.mrf.mxu1  ;;  %6351 = vmatpush3.bf16.msra.mxu0 %v7257_v39 }
 0x337   :  { %v4761_v53 = vpop.f32.mrf.mxu0  ;;  %6352 = vmatprep.subr.bf16.mxu0 %v7258_v45 }
 0x338   :  { %v4802_v55 = vpop.f32.mrf.mxu1  ;;  %6373 = vmatpush3.bf16.msra.mxu1 %v7273_v49 }
 0x339   :  { %6374 = vmatprep.subr.bf16.mxu1 %v7274_v5 }
 0x33a   :  { %6353 = vmatpush3.bf16.msra.mxu0 %v7259_v52 }
 0x33b   :  { %6354 = vmatprep.subr.bf16.mxu0 %v7260_v54 }
 0x33c   :  { %6375 = vmatpush3.bf16.msra.mxu1 %v7275_v44 }
 0x33d   :  { %6376 = vmatprep.subr.bf16.mxu1 %v7276_v61 }
 0x33e   :  { %6355 = vmatpush3.bf16.msra.mxu0 %v7261_v1 }
 0x33f   :  { %6356 = vmatprep.subr.bf16.mxu0 %v7262_v56 }
 0x340   :  { %6377 = vmatpush3.bf16.msra.mxu1 %v7277_v46 }
 0x341   :  { %6378 = vmatprep.subr.bf16.mxu1 %v7278_v42  ;;  %v7291_v42 = vld [vmem:[#allocation14 + $0x10] sm:$0xff]  }
 0x342   :  { %6357 = vmatpush3.bf16.msra.mxu0 %v7263_v57 }
 0x343   :  { %6358 = vmatprep.subr.bf16.mxu0 %v7264_v58 }
 0x344   :  { %6379 = vmatpush3.bf16.msra.mxu1 %v7279_v37  ;;  %v7294_v37 = vld [vmem:[#allocation17 + $0x38] sm:$0xff]  }
 0x345   :  { %6380 = vmatprep.subr.bf16.mxu1 %v7280_v2  ;;  %v7299_v2 = vld [vmem:[#allocation17 + $0x10] sm:$0xff]  }
 0x346   :  { %6359 = vmatpush3.bf16.msra.mxu0 %v7265_v62 }
 0x347   :  { %6360 = vmatprep.subr.bf16.mxu0 %v7266_v63 }
 0x348   :  { %6381 = vmatpush3.bf16.msra.mxu1 %v7281_v3 }
 0x349   :  { %6382 = vmatprep.subr.bf16.mxu1 %v7282_v15 }
 0x34a   :  { %6361 = vmatpush3.bf16.msra.mxu0 %v7267_v27  ;;  %v7292_v27 = vld [vmem:[#allocation14 + $0x8] sm:$0xff]  }
 0x34b   :  { %6362 = vmatprep.subr.bf16.mxu0 %v7268_v12  ;;  %v7293_v12 = vld [vmem:[#allocation14] sm:$0xff]  }
 0x34c   :  { %6383 = vmatpush3.bf16.msra.mxu1 %v7283_v21  ;;  %v7301_v21 = vld [vmem:[#allocation17] sm:$0xff]  }
 0x34d   :  { %6384 = vmatprep.subr.bf16.mxu1 %v7284_v23 }
 0x34e   :  { %6363 = vmatpush3.bf16.msra.mxu0 %v7269_v40  ;;  %v7295_v40 = vld [vmem:[#allocation17 + $0x30] sm:$0xff]  }
 0x34f   :  { %6410 = vmatprep.subr.bf16.mxu0 %v7578_v25 }
 0x350   :  { %6385 = vmatpush3.bf16.msra.mxu1 %v7285_v50 }
 0x351   :  { %5354 = vmatmul.mubr.bf16.vlgmr.msra.gmra.mxu0 %v5054_v17  ;;  %6430 = vmatprep.subr.bf16.mxu1 %v7578_v25  ;;  %v7297_v17 = vld [vmem:[#allocation17 + $0x20] sm:$0xff]  }
 0x352   :  { %6411 = vmatpush3.bf16.msra.mxu0 %v7286_v13  ;;  %6426 = vmatprep.mubr.msk.bf16.mxu0 %vm7579_vm2, %v7578_v25 }
 0x353   :  { %6412 = vmatprep.subr.bf16.mxu0 %v7578_v25 }
 0x356   :  { %6413 = vmatpush3.bf16.msra.mxu0 %v7287_v31 }
 0x357   :  { %6414 = vmatprep.subr.bf16.mxu0 %v7578_v25 }
 0x35a   :  { %6415 = vmatpush3.bf16.msra.mxu0 %v7288_v11 }
 0x35b   :  { %6416 = vmatprep.subr.bf16.mxu0 %v7578_v25 }
 0x35e   :  { %6417 = vmatpush3.bf16.msra.mxu0 %v7289_v16 }
 0x35f   :  { %6418 = vmatprep.subr.bf16.mxu0 %v7578_v25 }
 0x362   :  { %6419 = vmatpush3.bf16.msra.mxu0 %v7290_v32  ;;  %v6339_v32 = vld [vmem:[#allocation19] ss:$0 sm:$0xff] }
 0x363   :  { %6420 = vmatprep.subr.bf16.mxu0 %v7578_v25 }
 0x366   :  { %6421 = vmatpush3.bf16.msra.mxu0 %v7291_v42 }
 0x367   :  { %6422 = vmatprep.subr.bf16.mxu0 %v7578_v25 }
 0x36a   :  { %6423 = vmatpush3.bf16.msra.mxu0 %v7292_v27 }
 0x36b   :  { %6424 = vmatprep.subr.bf16.mxu0 %v7578_v25 }
 0x36e   :  { %6425 = vmatpush3.bf16.msra.mxu0 %v7293_v12 }
 0x371   :  { %v4838_v29 = vpop.f32.mrf.mxu0 }
 0x372   :  { %v4839_v9 = vadd.f32 %v4838_v29, %v4798_v41  ;;  %v4879_v30 = vpop.f32.mrf.mxu1  ;;  %v7298_v29 = vld [vmem:[#allocation17 + $0x18] sm:$0xff]  }
 0x373   :  { %v4840_v18 = vpop.f32.mrf.mxu0 }
 0x374   :  { %v4880_v4 = vadd.f32 %v4879_v30, %v4839_v9  ;;  %v4841_v6 = vadd.f32 %v4840_v18, %v4800_v51  ;;  %v4881_v24 = vpop.f32.mrf.mxu1  ;;  %v6297_v9 = vld [vmem:[#allocation13] ss:$0 sm:$0xff] }
 0x375   :  { %v4842_v36 = vpop.f32.mrf.mxu0 }
 0x376   :  { %v4882_v20 = vadd.f32 %v4881_v24, %v4841_v6  ;;  %v4883_v22 = vpop.f32.mrf.mxu1 }
 0x377   :  { %v4843_v7 = vpop.f32.mrf.mxu0  ;;  %v7300_v22 = vld [vmem:[#allocation17 + $0x8] sm:$0xff]  }
 0x378   :  { %v4884_v28 = vpop.f32.mrf.mxu1  ;;  %v6330_v7 = vld [vmem:[#allocation16] ss:$0 sm:$0xff] }
 0x3b1   :  { %v4920_v33 = vpop.f32.mrf.mxu0 }
 0x3b2   :  { %v4921_v34 = vadd.f32 %v4920_v33, %v4880_v4  ;;  %v4961_v14 = vpop.f32.mrf.mxu1 }
 0x3b3   :  { %v4922_v19 = vpop.f32.mrf.mxu0 }
 0x3b4   :  { %v4962_v35 = vadd.f32 %v4961_v14, %v4921_v34  ;;  %v4963_v38 = vpop.f32.mrf.mxu1  ;;  %v4923_v26 = vadd.f32 %v4922_v19, %v4882_v20 }
 0x3b5   :  { %v4924_v39 = vpop.f32.mrf.mxu0 }
 0x3b6   :  { %v4965_v10 = vpop.f32.mrf.mxu1  ;;  %v4964_v59 = vadd.f32 %v4963_v38, %v4923_v26 }
 0x3b7   :  { %v4925_v45 = vpop.f32.mrf.mxu0 }
 0x3b8   :  { %v4966_v41 = vpop.f32.mrf.mxu1 }
 0x3f1   :  { %v5002_v0 = vpop.f32.mrf.mxu0 }
 0x3f2   :  { %v5003_v51 = vadd.f32 %v5002_v0, %v4962_v35  ;;  %v5043_v47 = vpop.f32.mrf.mxu1 }
 0x3f3   :  { %v5004_v52 = vpop.f32.mrf.mxu0 }
 0x3f4   :  { %v5044_v53 = vadd.f32 %v5043_v47, %v5003_v51  ;;  %v5005_v54 = vadd.f32 %v5004_v52, %v4964_v59  ;;  %v5045_v55 = vpop.f32.mrf.mxu1 }
 0x3f5   :  { %v5006_v48 = vpop.f32.mrf.mxu0 }
 0x3f6   :  { %v5046_v43 = vadd.f32 %v5045_v55, %v5005_v54  ;;  %v5047_v60 = vpop.f32.mrf.mxu1  ;;  %v5052_v1 = vmax.f32 %v5044_v53, 0.0 }
 0x3f7   :  { %v5007_v56 = vpop.f32.mrf.mxu0 }
 0x3f8   :  { %v5053_v49 = vmax.f32 %v5046_v43, 0.0  ;;  %v5048_v5 = vpop.f32.mrf.mxu1  ;;  %v5056_v58 = vpack.c.bf16 %v5052_v1, %v5052_v1 }
 0x3fa   :  { %v5057_v57 = vpack.c.bf16 %v5053_v49, %v5053_v49 }
 0x3fc   :  { %5393 = vmatprep.mubr.bf16.mxu1 %v5057_v57 }
 0x3fd   :  { %5394 = vmatmul.mubr.bf16.vlgmr.msra.gmra.mxu1 %v5056_v58 }
 0x3fe   :  { %6446 = vmatprep.mubr.msk.bf16.mxu1 %vm7579_vm2, %v7578_v25  ;;  %6431 = vmatpush3.bf16.msra.mxu1 %v7294_v37 }
 0x3ff   :  { %6432 = vmatprep.subr.bf16.mxu1 %v7578_v25 }
 0x402   :  { %6433 = vmatpush3.bf16.msra.mxu1 %v7295_v40 }
 0x403   :  { %6434 = vmatprep.subr.bf16.mxu1 %v7578_v25 }
 0x406   :  { %6435 = vmatpush3.bf16.msra.mxu1 %v7296_v8 }
 0x407   :  { %6436 = vmatprep.subr.bf16.mxu1 %v7578_v25 }
 0x40a   :  { %6437 = vmatpush3.bf16.msra.mxu1 %v7297_v17 }
 0x40b   :  { %6438 = vmatprep.subr.bf16.mxu1 %v7578_v25 }
 0x40e   :  { %6439 = vmatpush3.bf16.msra.mxu1 %v7298_v29 }
 0x40f   :  { %6440 = vmatprep.subr.bf16.mxu1 %v7578_v25 }
 0x411   :  { %v6364_v44 = vpop.f32.mrf.mxu0 }
 0x412   :  { %6441 = vmatpush3.bf16.msra.mxu1 %v7299_v2 }
 0x413   :  { %v6365_v61 = vpop.f32.mrf.mxu0  ;;  %6442 = vmatprep.subr.bf16.mxu1 %v7578_v25 }
 0x414   :  { %v6366_v62 = vadd.f32 %v6365_v61, %v6364_v44 }
 0x415   :  { %v6367_v63 = vpop.f32.mrf.mxu0 }
 0x416   :  { %v5356_v18 = vadd.f32 %v6366_v62, %v6297_v9  ;;  %6443 = vmatpush3.bf16.msra.mxu1 %v7300_v22 }
 0x417   :  { %v6368_v46 = vpop.f32.mrf.mxu0  ;;  %6444 = vmatprep.subr.bf16.mxu1 %v7578_v25 }
 0x41a   :  { %6445 = vmatpush3.bf16.msra.mxu1 %v7301_v21 }
 0x4bd   :  { %v6386_v30 = vpop.f32.mrf.mxu1 }
 0x4bf   :  { %v6387_v3 = vpop.f32.mrf.mxu1 }
 0x4c0   :  { %v6388_v4 = vadd.f32 %v6387_v3, %v6386_v30 }
 0x4c1   :  { %v6389_v6 = vpop.f32.mrf.mxu1 }
 0x4c2   :  { %v5396_v24 = vadd.f32 %v6388_v4, %v5356_v18 }
 0x4c3   :  { %v6390_v36 = vpop.f32.mrf.mxu1 }
 0x4c4   :  { %v5401_v15 = vmax.f32 %v5396_v24, 0.0 }
 0x4c6   :  { %v5402_v20 = vpack.c.bf16 %v5401_v15, %v5401_v15 }
 0x4c8   :  { %6427 = vmatmul.mubr.bf16.vlgmr.msra.gmra.mxu0 %v5402_v20 }
 0x588   :  { %v5508_v28 = vpop.f32.mrf.mxu0 }
 0x589   :  { %v5509_v23 = vadd.f32 %v6330_v7, %v5508_v28 }
 0x58a   :  { %v6428_v50 = vpop.f32.mrf.mxu0 }
 0x58b   :  { %v5514_v13 = vmax.f32 %v5509_v23, 0.0 }
 0x58c   :  { %v5511_v31 = vpop.f32.mrf.mxu0 }
 0x58d   :  { %v5515_v11 = vpack.c.bf16 %v5514_v13, %v5514_v13 }
 0x58e   :  { %v6429_v16 = vpop.f32.mrf.mxu0 }
 0x58f   :  { %6447 = vmatmul.mubr.bf16.vlgmr.msra.gmra.mxu1 %v5515_v11 }
 0x64f   :  { %v5621_v33 = vpop.f32.mrf.mxu1 }
 0x650   :  { %v5622_v34 = vadd.f32 %v6339_v32, %v5621_v33 }
 0x651   :  { %v6448_v14 = vpop.f32.mrf.mxu1 }
 0x652   :  { %5627 = vmax.xlane.f32.xlu0 %v5622_v34 }
 0x653   :  { %v5624_v19 = vpop.f32.mrf.mxu1 }
 0x655   :  { %v6449_v35 = vpop.f32.mrf.mxu1 }
 0x6db   :  { %v5628_v38 = vpop.xlane.xlu0 %5627 }
 0x6dc   :  { %v5629_v25 = vsub.f32 %v5622_v34, %v5628_v38 }
 0x6de   :  { %v5630_v39 = vmul.f32 1.442695, %v5629_v25 }
 0x6e0   :  { %7302 = vpow2.f32 %v5630_v39 }
 0x6ed   :  { %v7303_v10 = vpop.eup %7302 }
 0x6ee   :  { %5632 = vadd.xlane.f32.xlu0 %v7303_v10 }
 0x777   :  { %v5633_v45 = vpop.xlane.xlu0 %5632 }
 0x778   :  { %7304 = vrcp.f32 %v5633_v45 }
 0x785   :  { %v7305_v41 = vpop.eup %7304 }
 0x786   :  { %v5635_v26 = vmul.f32 %v7305_v41, %v7303_v10 }
 0x788   :  { %5636 = vst [vmem:[#allocation20] sm:$0xff] %v5635_v26 }
 0x789   :  { %7538 = shalt.err (!%p7535_p3)
}
 0x78a   :  { %5646 = dma.vmem_to_hbm [thread:$0]  %s5644_s10, 128, %s7936_s11, [#allocation4]  }
 0x78b   :  { %7559 = dma.done.wait [#allocation4], 128  }
 0x78c   :  { %7560 = vsyncadd [#allocation4], 4294967168 }
 0x78d   :  { %5650 = vsyncpa [#allocation3], 1 }
 0x78e   :  { %5651 = vsyncpa [#allocation6], 1 }
 0x78f   :  { %5652 = vsyncpa [#allocation9], 1 }
 0x790   :  { %5653 = vsyncpa [#allocation12], 1 }
 0x791   :  { %5654 = vsyncpa [#allocation15], 1 }
 0x792   :  { %5655 = vsyncpa [#allocation18], 1 }
 0x793   :  { %5656 = vsyncpa [#allocation4], 1 }

// kernel: tpu_custom_call.1
= control target key start
LH: loop header
LB: loop body
LE: loop exit
PB: predicated region body
PF: predicated region fallthrough
CT: control target
= control target key end

     0   :  { %16 = vsyncpa [#allocation3], 0  ;;  %s7925_s0 = inlined_call_operand.hbm [shape: f32[8,100], index: 0, kind: input, shape index: {}]   ;;  %s7926_s1 = inlined_call_operand.hbm [shape: bf16[100,2048], index: 1, kind: input, shape index: {}]   ;;  %s7927_s2 = inlined_call_operand.hbm [shape: f32[1,2048], index: 2, kind: input, shape index: {}]   ;;  %s7928_s3 = inlined_call_operand.hbm [shape: bf16[2048,512], index: 3, kind: input, shape index: {}]   ;;  %s7929_s4 = inlined_call_operand.hbm [shape: f32[1,512], index: 4, kind: input, shape index: {}]   ;;  %s7930_s5 = inlined_call_operand.hbm [shape: bf16[512,128], index: 5, kind: input, shape index: {}]   ;;  %s7931_s6 = inlined_call_operand.hbm [shape: f32[1,128], index: 6, kind: input, shape index: {}]   ;;  %s7932_s7 = inlined_call_operand.hbm [shape: bf16[128,128], index: 7, kind: input, shape index: {}]   ;;  %s7933_s8 = inlined_call_operand.hbm [shape: f32[1,128], index: 8, kind: input, shape index: {}]   ;;  %s7934_s9 = inlined_call_operand.hbm [shape: bf16[128,128], index: 9, kind: input, shape index: {}]   ;;  %s7935_s10 = inlined_call_operand.hbm [shape: f32[1,128], index: 10, kind: input, shape index: {}]   ;;  %s7936_s11 = inlined_call_operand.hbm [shape: f32[8,128], index: 11, kind: output, shape index: {}]  }
   0x1   :  { %17 = vsyncpa [#allocation6], 0 }
   0x2   :  { %18 = vsyncpa [#allocation9], 0 }
   0x3   :  { %19 = vsyncpa [#allocation12], 0 }
   0x4   :  { %20 = vsyncpa [#allocation15], 0 }
   0x5   :  { %21 = vsyncpa [#allocation18], 0 }
   0x6   :  { %22 = vsyncpa [#allocation4], 0  ;;  %s7561_s17 = smov [#allocation5]  }
   0x7   :  { %s38_s18 = sshll.u32 %s7561_s17, 4  ;;  %s39_s18 = int_to_ptr.vmem [resolvable:$true] %s38_s18 }
   0x8   :  { %s7315_s19 = scalar_lea.vmem %s39_s18, 13312  ;;  %p7320_p1 = scmp.lt.s32.totalorder %s39_s18, %s39_s18 }
   0x9   :  { %p7316_p0 = scmp.ne.s32.totalorder %s39_s18, %s7315_s19  ;;  %p7321_p2 = scmp.lt.s32.totalorder %s7315_s19, %s7315_s19 }
   0xb   :  { %p7322_p3 = por %p7321_p2, %p7320_p1 }
   0xd   :  { %p7323_p4 = pnand %p7322_p3, %p7316_p0 }
   0xf   :  { %7326 = shalt.err (!%p7323_p4)
}
  0x10   :  { %s7562_s20 = smov 1024   ;;  %s7563_s21 = smov 64  }
  0x11   :  { %44 = dma.hbm_to_vmem [thread:$0]  %s7926_s1, 13312, %s39_s18, [#allocation6], %s7562_s20, %s7562_s20, %s7563_s21  }
  0x12   :  { %s7564_s24 = smov [#allocation8]  }
  0x13   :  { %s60_s25 = sshll.u32 %s7564_s24, 4  ;;  %s61_s25 = int_to_ptr.vmem [resolvable:$true] %s60_s25 }
  0x14   :  { %s7335_s26 = scalar_lea.vmem %s61_s25, 65536  ;;  %p7340_p6 = scmp.lt.s32.totalorder %s61_s25, %s61_s25 }
  0x15   :  { %p7336_p5 = scmp.ne.s32.totalorder %s61_s25, %s7335_s26  ;;  %p7341_p7 = scmp.lt.s32.totalorder %s7335_s26, %s7335_s26 }
  0x17   :  { %p7342_p8 = por %p7341_p7, %p7340_p6 }
  0x19   :  { %p7343_p9 = pnand %p7342_p8, %p7336_p5 }
  0x1b   :  { %7346 = shalt.err (!%p7343_p9)
}
  0x1c   :  { %s7565_s27 = smov 256   ;;  %s7566_s28 = smov 16  }
  0x1d   :  { %66 = dma.hbm_to_vmem [thread:$0]  %s7928_s3, 65536, %s61_s25, [#allocation9], %s7565_s27, %s7565_s27, %s7566_s28  }
  0x1e   :  { %s7567_s12 = smov [#allocation11]   ;;  %s7568_s1 = smov [#allocation14]  }
  0x1f   :  { %s82_s13 = sshll.u32 %s7567_s12, 4  ;;  %s104_s14 = sshll.u32 %s7568_s1, 4  ;;  %s83_s13 = int_to_ptr.vmem [resolvable:$true] %s82_s13  ;;  %s105_s14 = int_to_ptr.vmem [resolvable:$true] %s104_s14 }
  0x20   :  { %s7355_s15 = scalar_lea.vmem %s83_s13, 4096  ;;  %p7360_p11 = scmp.lt.s32.totalorder %s83_s13, %s83_s13 }
  0x21   :  { %p7356_p10 = scmp.ne.s32.totalorder %s83_s13, %s7355_s15  ;;  %p7361_p12 = scmp.lt.s32.totalorder %s7355_s15, %s7355_s15 }
  0x23   :  { %p7362_p13 = por %p7361_p12, %p7360_p11 }
  0x25   :  { %p7363_p0 = pnand %p7362_p13, %p7356_p10 }
  0x27   :  { %7366 = shalt.err (!%p7363_p0)
}
  0x28   :  { %s7569_s16 = smov 4   ;;  %s7375_s3 = scalar_lea.vmem %s105_s14, 1024 }
  0x29   :  { %88 = dma.hbm_to_vmem [thread:$0]  %s7930_s5, 4096, %s83_s13, [#allocation12], %s7563_s21, %s7563_s21, %s7569_s16  }
  0x2a   :  { %p7376_p1 = scmp.ne.s32.totalorder %s105_s14, %s7375_s3  ;;  %p7380_p2 = scmp.lt.s32.totalorder %s105_s14, %s105_s14 }
  0x2b   :  { %p7381_p3 = scmp.lt.s32.totalorder %s7375_s3, %s7375_s3 }
  0x2d   :  { %p7382_p4 = por %p7381_p3, %p7380_p2 }
  0x2f   :  { %p7383_p5 = pnand %p7382_p4, %p7376_p1 }
  0x31   :  { %7386 = shalt.err (!%p7383_p5)
}
  0x32   :  { %110 = dma.hbm_to_vmem [thread:$0]  %s7932_s7, 1024, %s105_s14, [#allocation15], %s7563_s21, %s7563_s21, %s7569_s16  }
  0x33   :  { %s7570_s22 = smov [#allocation17]   ;;  %s7571_s24 = smov [#allocation2]  }
  0x34   :  { %s126_s23 = sshll.u32 %s7570_s22, 4  ;;  %s29_s25 = sshll.u32 %s7571_s24, 4  ;;  %s127_s23 = int_to_ptr.vmem [resolvable:$true] %s126_s23  ;;  %s30_s25 = int_to_ptr.vmem [resolvable:$true] %s29_s25 }
  0x35   :  { %s7395_s5 = scalar_lea.vmem %s127_s23, 1024  ;;  %p7400_p7 = scmp.lt.s32.totalorder %s127_s23, %s127_s23 }
  0x36   :  { %p7396_p6 = scmp.ne.s32.totalorder %s127_s23, %s7395_s5  ;;  %p7401_p8 = scmp.lt.s32.totalorder %s7395_s5, %s7395_s5 }
  0x38   :  { %p7402_p9 = por %p7401_p8, %p7400_p7 }
  0x3a   :  { %p7403_p10 = pnand %p7402_p9, %p7396_p6 }
  0x3c   :  { %7406 = shalt.err (!%p7403_p10)
}
  0x3d   :  { %132 = dma.hbm_to_vmem [thread:$0]  %s7934_s9, 1024, %s127_s23, [#allocation18], %s7563_s21, %s7563_s21, %s7569_s16  }
  0x3e   :  { %s7415_s7 = scalar_lea.vmem %s30_s25, 128  ;;  %p7420_p12 = scmp.lt.s32.totalorder %s30_s25, %s30_s25 }
  0x3f   :  { %p7416_p11 = scmp.ne.s32.totalorder %s30_s25, %s7415_s7  ;;  %p7421_p13 = scmp.lt.s32.totalorder %s7415_s7, %s7415_s7 }
  0x41   :  { %p7422_p0 = por %p7421_p13, %p7420_p12 }
  0x43   :  { %p7423_p1 = pnand %p7422_p0, %p7416_p11 }
  0x45   :  { %7426 = shalt.err (!%p7423_p1)
}
  0x46   :  { %32 = dma.hbm_to_vmem [thread:$0]  %s7925_s0, 128, %s30_s25, [#allocation3]  }
  0x47   :  { %s7572_s30 = smov [#allocation7]   ;;  %s7573_s13 = smov [#allocation10]  }
  0x48   :  { %s51_s12 = sshll.u32 %s7572_s30, 4  ;;  %s73_s1 = sshll.u32 %s7573_s13, 4  ;;  %s52_s12 = int_to_ptr.vmem [resolvable:$true] %s51_s12  ;;  %s74_s1 = int_to_ptr.vmem [resolvable:$true] %s73_s1 }
  0x49   :  { %s7435_s14 = scalar_lea.vmem %s52_s12, 256  ;;  %p7440_p3 = scmp.lt.s32.totalorder %s52_s12, %s52_s12 }
  0x4a   :  { %p7436_p2 = scmp.ne.s32.totalorder %s52_s12, %s7435_s14  ;;  %p7441_p4 = scmp.lt.s32.totalorder %s7435_s14, %s7435_s14 }
  0x4c   :  { %p7442_p5 = por %p7441_p4, %p7440_p3 }
  0x4e   :  { %p7443_p6 = pnand %p7442_p5, %p7436_p2 }
  0x50   :  { %7446 = shalt.err (!%p7443_p6)
}
  0x51   :  { %54 = dma.hbm_to_vmem [thread:$0]  %s7927_s2, 256, %s52_s12, [#allocation6]  }
  0x52   :  { %s7455_s15 = scalar_lea.vmem %s74_s1, 64  ;;  %p7460_p8 = scmp.lt.s32.totalorder %s74_s1, %s74_s1 }
  0x53   :  { %p7456_p7 = scmp.ne.s32.totalorder %s74_s1, %s7455_s15  ;;  %p7461_p9 = scmp.lt.s32.totalorder %s7455_s15, %s7455_s15 }
  0x55   :  { %p7462_p10 = por %p7461_p9, %p7460_p8 }
  0x57   :  { %p7463_p11 = pnand %p7462_p10, %p7456_p7 }
  0x59   :  { %7466 = shalt.err (!%p7463_p11)
}
  0x5a   :  { %76 = dma.hbm_to_vmem [thread:$0]  %s7929_s4, 64, %s74_s1, [#allocation9]  }
  0x5b   :  { %s7574_s17 = smov [#allocation13]   ;;  %s7575_s3 = smov [#allocation16]  }
  0x5c   :  { %s95_s18 = sshll.u32 %s7574_s17, 4  ;;  %s117_s19 = sshll.u32 %s7575_s3, 4  ;;  %s96_s18 = int_to_ptr.vmem [resolvable:$true] %s95_s18  ;;  %s118_s19 = int_to_ptr.vmem [resolvable:$true] %s117_s19 }
  0x5d   :  { %s7475_s20 = scalar_lea.vmem %s96_s18, 16  ;;  %s7479_s2 = scalar_lea.vmem %s96_s18, 32 }
  0x5e   :  { %p7476_p12 = scmp.ne.s32.totalorder %s96_s18, %s7475_s20  ;;  %p7480_p13 = scmp.lt.s32.totalorder %s96_s18, %s96_s18 }
  0x5f   :  { %p7481_p0 = scmp.lt.s32.totalorder %s7479_s2, %s7475_s20 }
  0x61   :  { %p7482_p1 = por %p7481_p0, %p7480_p13 }
  0x63   :  { %p7483_p2 = pnand %p7482_p1, %p7476_p12 }
  0x65   :  { %7486 = shalt.err (!%p7483_p2)
}
  0x66   :  { %98 = dma.hbm_to_vmem [thread:$0]  %s7931_s6, 16, %s96_s18, [#allocation12]  }
  0x67   :  { %s7495_s24 = scalar_lea.vmem %s118_s19, 16  ;;  %s7499_s4 = scalar_lea.vmem %s118_s19, 32 }
  0x68   :  { %p7496_p3 = scmp.ne.s32.totalorder %s118_s19, %s7495_s24  ;;  %p7500_p4 = scmp.lt.s32.totalorder %s118_s19, %s118_s19 }
  0x69   :  { %p7501_p5 = scmp.lt.s32.totalorder %s7499_s4, %s7495_s24 }
  0x6b   :  { %p7502_p6 = por %p7501_p5, %p7500_p4 }
  0x6d   :  { %p7503_p7 = pnand %p7502_p6, %p7496_p3 }
  0x6f   :  { %7506 = shalt.err (!%p7503_p7)
}
  0x70   :  { %120 = dma.hbm_to_vmem [thread:$0]  %s7933_s8, 16, %s118_s19, [#allocation15]  }
  0x71   :  { %s7576_s26 = smov [#allocation19]  }
  0x72   :  { %s139_s27 = sshll.u32 %s7576_s26, 4  ;;  %s140_s27 = int_to_ptr.vmem [resolvable:$true] %s139_s27 }
  0x73   :  { %s7515_s7 = scalar_lea.vmem %s140_s27, 16  ;;  %s7519_s28 = scalar_lea.vmem %s140_s27, 32 }
  0x74   :  { %p7516_p8 = scmp.ne.s32.totalorder %s140_s27, %s7515_s7  ;;  %p7520_p9 = scmp.lt.s32.totalorder %s140_s27, %s140_s27 }
  0x75   :  { %p7521_p10 = scmp.lt.s32.totalorder %s7519_s28, %s7515_s7 }
  0x77   :  { %p7522_p11 = por %p7521_p10, %p7520_p9 }
  0x79   :  { %p7523_p12 = pnand %p7522_p11, %p7516_p8 }
  0x7b   :  { %7526 = shalt.err (!%p7523_p12)
}
  0x7c   :  { %142 = dma.hbm_to_vmem [thread:$0]  %s7935_s10, 16, %s140_s27, [#allocation18]  }
  0x7d   :  { %7547 = dma.done.wait [#allocation3], 128  }
  0x7e   :  { %7548 = vsyncadd [#allocation3], 4294967168 }
  0x7f   :  { %7549 = dma.done.wait [#allocation6], 13568  }
  0x80   :  { %7550 = vsyncadd [#allocation6], 4294953728 }
  0x81   :  { %7551 = dma.done.wait [#allocation9], 65600  }
  0x82   :  { %7552 = vsyncadd [#allocation9], 4294901696 }
  0x83   :  { %7553 = dma.done.wait [#allocation12], 4112  }
  0x84   :  { %7554 = vsyncadd [#allocation12], 4294963184 }
  0x85   :  { %7555 = dma.done.wait [#allocation15], 1040  }
  0x86   :  { %7556 = vsyncadd [#allocation15], 4294966256 }
  0x87   :  { %7557 = dma.done.wait [#allocation18], 1040  }
  0x88   :  { %7558 = vsyncadd [#allocation18], 4294966256  ;;  %v7577_v0 = vmov 0   ;;  %v275_v1 = vld [vmem:[#allocation5 + $0x300] sm:$0x33]  ;;  %vm891_vm0 = vcmask 1041408  }
  0x89   :  { %972 = vmatprep.mubr.bf16.mxu0 %v7577_v0  ;;  %1013 = vmatprep.mubr.bf16.mxu1 %v7577_v0  ;;  %v276_v2 = vld [vmem:[#allocation5 + $0x308] sm:$0x33]  ;;  %v259_v3 = vld [vmem:[#allocation5 + $0x280] sm:$0xff]  ;;  %v5754_v4 = vcombine.high %v275_v1, %v275_v1  ;;  %v5753_v6 = vcombine.low %v275_v1, %v275_v1  ;;  %v277_v55 = vld [vmem:[#allocation5 + $0x310] sm:$0x33]  ;;  %vm887_vm1 = vcmask 818176  }
  0x8a   :  { %v5756_v5 = vcombine.high %v276_v2, %v276_v2  ;;  %v5755_v7 = vcombine.low %v276_v2, %v276_v2  ;;  %v267_v8 = vld [vmem:[#allocation5 + $0x2c0] sm:$0xff]  ;;  %v260_v9 = vld [vmem:[#allocation5 + $0x288] sm:$0xff]  ;;  %v278_v56 = vld [vmem:[#allocation5 + $0x318] sm:$0x33]  ;;  %v5758_v60 = vcombine.high %v277_v55, %v277_v55  ;;  %v5757_v61 = vcombine.low %v277_v55, %v277_v55  ;;  %s7580_s8 = smov [#allocation20]  }
  0x8b   :  { %v268_v10 = vld [vmem:[#allocation5 + $0x2c8] sm:$0xff]  ;;  %v5738_v11 = vcombine.high %v259_v3, %v267_v8  ;;  %v243_v13 = vld [vmem:[#allocation5 + $0x200] sm:$0xff]  ;;  %5769 = vmatprep.subr.msk.bf16.mxu0 %vm891_vm0, %v5754_v4  ;;  %v893_v16 = vsel %vm891_vm0, %v5753_v6, 0  ;;  %v5737_v19 = vcombine.low %v259_v3, %v267_v8  ;;  %v177_v59 = vld [vmem:[#allocation2] sm:$0xff]  ;;  %v5760_v62 = vcombine.high %v278_v56, %v278_v56  ;;  %s5643_s10 = sshll.u32 %s7580_s8, 4  ;;  %s5644_s10 = int_to_ptr.vmem [resolvable:$true] %s5643_s10 }
  0x8c   :  { %v5740_v12 = vcombine.high %v260_v9, %v268_v10  ;;  %v251_v14 = vld [vmem:[#allocation5 + $0x240] sm:$0xff]  ;;  %v244_v15 = vld [vmem:[#allocation5 + $0x208] sm:$0xff]  ;;  %5771 = vmatprep.subr.msk.bf16.mxu1 %vm891_vm0, %v5756_v5  ;;  %v899_v17 = vsel %vm891_vm0, %v5755_v7, 0  ;;  %943 = vmatpush1.bf16.msra.mxu0 %v893_v16  ;;  %v5739_v20 = vcombine.low %v260_v9, %v268_v10  ;;  %v5759_v63 = vcombine.low %v278_v56, %v278_v56  ;;  %v261_v1 = vld [vmem:[#allocation5 + $0x290] sm:$0xff]  ;;  %s7527_s30 = scalar_lea.vmem %s5644_s10, 128  ;;  %p7532_p0 = scmp.lt.s32.totalorder %s5644_s10, %s5644_s10 }
  0x8d   :  { %v252_v18 = vld [vmem:[#allocation5 + $0x248] sm:$0xff]  ;;  %984 = vmatpush1.bf16.msra.mxu1 %v899_v17  ;;  %944 = vmatprep.subr.bf16.mxu0 %v5738_v11  ;;  %v5722_v21 = vcombine.high %v243_v13, %v251_v14  ;;  %v227_v23 = vld [vmem:[#allocation5 + $0x180] sm:$0xff]  ;;  %v5721_v27 = vcombine.low %v243_v13, %v251_v14  ;;  %v269_v2 = vld [vmem:[#allocation5 + $0x2d0] sm:$0xff]  ;;  %v7687_v5 = vpack.c.bf16 %v177_v59, %v177_v59  ;;  %v905_v6 = vsel %vm891_vm0, %v5757_v61, 0  ;;  %p7528_p13 = scmp.ne.s32.totalorder %s5644_s10, %s7527_s30  ;;  %p7533_p1 = scmp.lt.s32.totalorder %s7527_s30, %s7527_s30 }
  0x8e   :  { %985 = vmatprep.subr.bf16.mxu1 %v5740_v12  ;;  %v5724_v22 = vcombine.high %v244_v15, %v252_v18  ;;  %v235_v24 = vld [vmem:[#allocation5 + $0x1c0] sm:$0xff]  ;;  %v228_v25 = vld [vmem:[#allocation5 + $0x188] sm:$0xff]  ;;  %v5723_v28 = vcombine.low %v244_v15, %v252_v18  ;;  %v262_v3 = vld [vmem:[#allocation5 + $0x298] sm:$0xff]  ;;  %v911_v7 = vsel %vm891_vm0, %v5759_v63, 0  ;;  %v5742_v8 = vcombine.high %v261_v1, %v269_v2 }
  0x8f   :  { %v236_v26 = vld [vmem:[#allocation5 + $0x1c8] sm:$0xff]  ;;  %v5706_v29 = vcombine.high %v227_v23, %v235_v24  ;;  %v211_v31 = vld [vmem:[#allocation5 + $0x100] sm:$0xff]  ;;  %v5705_v35 = vcombine.low %v227_v23, %v235_v24  ;;  %v270_v4 = vld [vmem:[#allocation5 + $0x2d8] sm:$0xff]  ;;  %v5741_v14 = vcombine.low %v261_v1, %v269_v2  ;;  %vm7579_vm2 = vmmov 0   ;;  %p7534_p2 = por %p7533_p1, %p7532_p0 }
  0x90   :  { %945 = vmatpush1.bf16.msra.mxu0 %v5737_v19  ;;  %v5708_v30 = vcombine.high %v228_v25, %v236_v26  ;;  %v219_v32 = vld [vmem:[#allocation5 + $0x140] sm:$0xff]  ;;  %v212_v33 = vld [vmem:[#allocation5 + $0x108] sm:$0xff]  ;;  %v5707_v36 = vcombine.low %v228_v25, %v236_v26  ;;  %v5744_v9 = vcombine.high %v262_v3, %v270_v4  ;;  %v245_v10 = vld [vmem:[#allocation5 + $0x210] sm:$0xff]  ;;  %v5743_v15 = vcombine.low %v262_v3, %v270_v4 }
  0x91   :  { %986 = vmatpush1.bf16.msra.mxu1 %v5739_v20  ;;  %946 = vmatprep.subr.bf16.mxu0 %v5722_v21  ;;  %v220_v34 = vld [vmem:[#allocation5 + $0x148] sm:$0xff]  ;;  %v5690_v37 = vcombine.high %v211_v31, %v219_v32  ;;  %v195_v39 = vld [vmem:[#allocation5 + $0x80] sm:$0xff]  ;;  %v5689_v43 = vcombine.low %v211_v31, %v219_v32  ;;  %v253_v11 = vld [vmem:[#allocation5 + $0x250] sm:$0xff]  ;;  %p7535_p3 = pnand %p7534_p2, %p7528_p13 }
  0x92   :  { %987 = vmatprep.subr.bf16.mxu1 %v5724_v22  ;;  %v5692_v38 = vcombine.high %v212_v33, %v220_v34  ;;  %v203_v40 = vld [vmem:[#allocation5 + $0xc0] sm:$0xff]  ;;  %v196_v41 = vld [vmem:[#allocation5 + $0x88] sm:$0xff]  ;;  %v5691_v44 = vcombine.low %v212_v33, %v220_v34  ;;  %v246_v12 = vld [vmem:[#allocation5 + $0x218] sm:$0xff]  ;;  %v5726_v16 = vcombine.high %v245_v10, %v253_v11  ;;  %v5725_v22 = vcombine.low %v245_v10, %v253_v11 }
  0x93   :  { %v204_v42 = vld [vmem:[#allocation5 + $0xc8] sm:$0xff]  ;;  %v5674_v45 = vcombine.high %v195_v39, %v203_v40  ;;  %v179_v47 = vld [vmem:[#allocation5] sm:$0xff]  ;;  %v5673_v51 = vcombine.low %v195_v39, %v203_v40  ;;  %v254_v13 = vld [vmem:[#allocation5 + $0x258] sm:$0xff] }
  0x94   :  { %947 = vmatpush1.bf16.msra.mxu0 %v5721_v27  ;;  %v5676_v46 = vcombine.high %v196_v41, %v204_v42  ;;  %v187_v48 = vld [vmem:[#allocation5 + $0x40] sm:$0xff]  ;;  %v180_v49 = vld [vmem:[#allocation5 + $0x8] sm:$0xff]  ;;  %v5675_v52 = vcombine.low %v196_v41, %v204_v42  ;;  %v5728_v17 = vcombine.high %v246_v12, %v254_v13  ;;  %v229_v18 = vld [vmem:[#allocation5 + $0x190] sm:$0xff]  ;;  %v5727_v23 = vcombine.low %v246_v12, %v254_v13 }
  0x95   :  { %988 = vmatpush1.bf16.msra.mxu1 %v5723_v28  ;;  %948 = vmatprep.subr.bf16.mxu0 %v5706_v29  ;;  %v188_v50 = vld [vmem:[#allocation5 + $0x48] sm:$0xff]  ;;  %v5658_v53 = vcombine.high %v179_v47, %v187_v48  ;;  %v5657_v57 = vcombine.low %v179_v47, %v187_v48  ;;  %v237_v19 = vld [vmem:[#allocation5 + $0x1d0] sm:$0xff]  ;;  %v230_v20 = vld [vmem:[#allocation5 + $0x198] sm:$0xff] }
  0x96   :  { %989 = vmatprep.subr.bf16.mxu1 %v5708_v30  ;;  %v5660_v54 = vcombine.high %v180_v49, %v188_v50  ;;  %v5659_v58 = vcombine.low %v180_v49, %v188_v50  ;;  %v238_v21 = vld [vmem:[#allocation5 + $0x1d8] sm:$0xff]  ;;  %v5710_v24 = vcombine.high %v229_v18, %v237_v19  ;;  %v213_v26 = vld [vmem:[#allocation5 + $0x110] sm:$0xff]  ;;  %v5709_v30 = vcombine.low %v229_v18, %v237_v19  ;;  %v279_v50 = vld [vmem:[#allocation5 + $0x320] sm:$0x33] }
  0x97   :  { %v5712_v25 = vcombine.high %v230_v20, %v238_v21  ;;  %v221_v27 = vld [vmem:[#allocation5 + $0x150] sm:$0xff]  ;;  %v214_v28 = vld [vmem:[#allocation5 + $0x118] sm:$0xff]  ;;  %v5711_v31 = vcombine.low %v230_v20, %v238_v21  ;;  %v5761_v55 = vcombine.low %v279_v50, %v279_v50  ;;  %v271_v59 = vld [vmem:[#allocation5 + $0x2e0] sm:$0xff] }
  0x98   :  { %949 = vmatpush1.bf16.msra.mxu0 %v5705_v35  ;;  %v222_v29 = vld [vmem:[#allocation5 + $0x158] sm:$0xff]  ;;  %v5694_v32 = vcombine.high %v213_v26, %v221_v27  ;;  %v197_v34 = vld [vmem:[#allocation5 + $0x90] sm:$0xff]  ;;  %v272_v61 = vld [vmem:[#allocation5 + $0x2e8] sm:$0xff] }
  0x99   :  { %990 = vmatpush1.bf16.msra.mxu1 %v5707_v36  ;;  %950 = vmatprep.subr.bf16.mxu0 %v5690_v37  ;;  %v5696_v33 = vcombine.high %v214_v28, %v222_v29  ;;  %v205_v35 = vld [vmem:[#allocation5 + $0xd0] sm:$0xff]  ;;  %v198_v36 = vld [vmem:[#allocation5 + $0x98] sm:$0xff]  ;;  %v5695_v39 = vcombine.low %v214_v28, %v222_v29  ;;  %v247_v3 = vld [vmem:[#allocation5 + $0x220] sm:$0xff] }
  0x9a   :  { %991 = vmatprep.subr.bf16.mxu1 %v5692_v38  ;;  %v206_v37 = vld [vmem:[#allocation5 + $0xd8] sm:$0xff]  ;;  %v5693_v38 = vcombine.low %v213_v26, %v221_v27  ;;  %v5678_v40 = vcombine.high %v197_v34, %v205_v35  ;;  %v181_v42 = vld [vmem:[#allocation5 + $0x10] sm:$0xff]  ;;  %v255_v4 = vld [vmem:[#allocation5 + $0x260] sm:$0xff] }
  0x9b   :  { %v5680_v41 = vcombine.high %v198_v36, %v206_v37  ;;  %v5679_v47 = vcombine.low %v198_v36, %v206_v37  ;;  %v5730_v10 = vcombine.high %v247_v3, %v255_v4  ;;  %v231_v12 = vld [vmem:[#allocation5 + $0x1a0] sm:$0xff]  ;;  %v184_v36 = vld [vmem:[#allocation5 + $0x28] sm:$0xff] }
  0x9c   :  { %951 = vmatpush1.bf16.msra.mxu0 %v5689_v43  ;;  %v189_v43 = vld [vmem:[#allocation5 + $0x50] sm:$0xff]  ;;  %v239_v13 = vld [vmem:[#allocation5 + $0x1e0] sm:$0xff]  ;;  %v192_v37 = vld [vmem:[#allocation5 + $0x68] sm:$0xff] }
  0x9d   :  { %992 = vmatpush1.bf16.msra.mxu1 %v5691_v44  ;;  %952 = vmatprep.subr.bf16.mxu0 %v5674_v45  ;;  %v182_v44 = vld [vmem:[#allocation5 + $0x18] sm:$0xff]  ;;  %v5662_v48 = vcombine.high %v181_v42, %v189_v43  ;;  %v5714_v18 = vcombine.high %v231_v12, %v239_v13  ;;  %v215_v20 = vld [vmem:[#allocation5 + $0x120] sm:$0xff] }
  0x9e   :  { %993 = vmatprep.subr.bf16.mxu1 %v5676_v46  ;;  %v190_v45 = vld [vmem:[#allocation5 + $0x58] sm:$0xff]  ;;  %v5677_v46 = vcombine.low %v197_v34, %v205_v35  ;;  %v223_v21 = vld [vmem:[#allocation5 + $0x160] sm:$0xff] }
  0x9f   :  { %v5664_v49 = vcombine.high %v182_v44, %v190_v45  ;;  %v5698_v26 = vcombine.high %v215_v20, %v223_v21  ;;  %v199_v28 = vld [vmem:[#allocation5 + $0xa0] sm:$0xff] }
  0xa0   :  { %953 = vmatpush1.bf16.msra.mxu0 %v5673_v51  ;;  %v280_v51 = vld [vmem:[#allocation5 + $0x328] sm:$0x33]  ;;  %v207_v29 = vld [vmem:[#allocation5 + $0xe0] sm:$0xff] }
  0xa1   :  { %994 = vmatpush1.bf16.msra.mxu1 %v5675_v52  ;;  %954 = vmatprep.subr.bf16.mxu0 %v5658_v53  ;;  %v5661_v52 = vcombine.low %v181_v42, %v189_v43  ;;  %v5663_v53 = vcombine.low %v182_v44, %v190_v45  ;;  %v5764_v56 = vcombine.high %v280_v51, %v280_v51  ;;  %v183_v34 = vld [vmem:[#allocation5 + $0x20] sm:$0xff]  ;;  %v282_v43 = vld [vmem:[#allocation5 + $0x338] sm:$0x33] }
  0xa2   :  { %995 = vmatprep.subr.bf16.mxu1 %v5660_v54  ;;  %v5762_v54 = vcombine.high %v279_v50, %v279_v50  ;;  %v191_v35 = vld [vmem:[#allocation5 + $0x60] sm:$0xff]  ;;  %v5668_v45 = vcombine.high %v184_v36, %v192_v37  ;;  %v273_v50 = vld [vmem:[#allocation5 + $0x2f0] sm:$0xff] }
  0xa3   :  { %v5666_v44 = vcombine.high %v183_v34, %v191_v35 }
  0xa4   :  { %955 = vmatpush1.bf16.msra.mxu0 %v5657_v57  ;;  %v5763_v57 = vcombine.low %v280_v51, %v280_v51  ;;  %v266_v51 = vld [vmem:[#allocation5 + $0x2b8] sm:$0xff] }
  0xa5   :  { %996 = vmatpush1.bf16.msra.mxu1 %v5659_v58  ;;  %5773 = vmatprep.subr.msk.bf16.mxu0 %vm891_vm0, %v5758_v60  ;;  %v263_v58 = vld [vmem:[#allocation5 + $0x2a0] sm:$0xff]  ;;  %v264_v60 = vld [vmem:[#allocation5 + $0x2a8] sm:$0xff] }
  0xa6   :  { %5775 = vmatprep.subr.msk.bf16.mxu1 %vm891_vm0, %v5760_v62  ;;  %v917_v62 = vsel %vm891_vm0, %v5761_v55, 0  ;;  %v923_v63 = vsel %vm891_vm0, %v5763_v57, 0  ;;  %v5746_v1 = vcombine.high %v263_v58, %v271_v59  ;;  %v5748_v2 = vcombine.high %v264_v60, %v272_v61  ;;  %v257_v57 = vld [vmem:[#allocation5 + $0x270] sm:$0xff] }
  0xa7   :  { %5770 = vmatmul.mubr.msk.bf16.vlgmr.msra.gmra.mxu0 %vm887_vm1, %v7687_v5  ;;  %v5767_v55 = vcombine.low %v282_v43, %v282_v43 }
  0xa8   :  { %5772 = vmatmul.mubr.msk.bf16.vlgmr.msra.gmra.mxu1 %vm887_vm1, %v7687_v5  ;;  %1025 = vmatpush1.bf16.msra.mxu0 %v905_v6  ;;  %v248_v6 = vld [vmem:[#allocation5 + $0x228] sm:$0xff] }
  0xa9   :  { %1066 = vmatpush1.bf16.msra.mxu1 %v911_v7  ;;  %1026 = vmatprep.subr.bf16.mxu0 %v5742_v8  ;;  %v256_v7 = vld [vmem:[#allocation5 + $0x268] sm:$0xff]  ;;  %v5745_v8 = vcombine.low %v263_v58, %v271_v59  ;;  %v250_v58 = vld [vmem:[#allocation5 + $0x238] sm:$0xff] }
  0xaa   :  { %1067 = vmatprep.subr.bf16.mxu1 %v5744_v9  ;;  %1054 = vmatprep.mubr.bf16.mxu0 %v7577_v0  ;;  %v5747_v9 = vcombine.low %v264_v60, %v272_v61  ;;  %v5732_v11 = vcombine.high %v248_v6, %v256_v7  ;;  %v258_v59 = vld [vmem:[#allocation5 + $0x278] sm:$0xff]  ;;  %v935_v61 = vsel %vm891_vm0, %v5767_v55, 0  ;;  %v6512_v55 = vld [vmem:[#allocation8 + $0x64] ss:$16 sps:$4 sm:$0xff]  }
  0xab   :  { %1095 = vmatprep.mubr.bf16.mxu1 %v7577_v0 }
  0xac   :  { %1027 = vmatpush1.bf16.msra.mxu0 %v5741_v14  ;;  %v232_v14 = vld [vmem:[#allocation5 + $0x1a8] sm:$0xff] }
  0xad   :  { %1068 = vmatpush1.bf16.msra.mxu1 %v5743_v15  ;;  %1028 = vmatprep.subr.bf16.mxu0 %v5726_v16  ;;  %v240_v15 = vld [vmem:[#allocation5 + $0x1e8] sm:$0xff]  ;;  %v5729_v16 = vcombine.low %v247_v3, %v255_v4  ;;  %v233_v3 = vld [vmem:[#allocation5 + $0x1b0] sm:$0xff] }
  0xae   :  { %1069 = vmatprep.subr.bf16.mxu1 %v5728_v17  ;;  %v5731_v17 = vcombine.low %v248_v6, %v256_v7  ;;  %v5716_v19 = vcombine.high %v232_v14, %v240_v15  ;;  %v241_v4 = vld [vmem:[#allocation5 + $0x1f0] sm:$0xff]  ;;  %v234_v6 = vld [vmem:[#allocation5 + $0x1b8] sm:$0xff] }
  0xaf   :  { %v242_v7 = vld [vmem:[#allocation5 + $0x1f8] sm:$0xff] }
  0xb0   :  { %1029 = vmatpush1.bf16.msra.mxu0 %v5725_v22  ;;  %v216_v22 = vld [vmem:[#allocation5 + $0x128] sm:$0xff] }
  0xb1   :  { %1070 = vmatpush1.bf16.msra.mxu1 %v5727_v23  ;;  %1030 = vmatprep.subr.bf16.mxu0 %v5710_v24  ;;  %v224_v23 = vld [vmem:[#allocation5 + $0x168] sm:$0xff]  ;;  %v5713_v24 = vcombine.low %v231_v12, %v239_v13  ;;  %v217_v12 = vld [vmem:[#allocation5 + $0x130] sm:$0xff]  ;;  %v5718_v13 = vcombine.high %v233_v3, %v241_v4 }
  0xb2   :  { %1071 = vmatprep.subr.bf16.mxu1 %v5712_v25  ;;  %v5715_v25 = vcombine.low %v232_v14, %v240_v15  ;;  %v5700_v27 = vcombine.high %v216_v22, %v224_v23  ;;  %v5720_v14 = vcombine.high %v234_v6, %v242_v7  ;;  %v225_v15 = vld [vmem:[#allocation5 + $0x170] sm:$0xff] }
  0xb4   :  { %1031 = vmatpush1.bf16.msra.mxu0 %v5709_v30  ;;  %v200_v30 = vld [vmem:[#allocation5 + $0xa8] sm:$0xff] }
  0xb5   :  { %1072 = vmatpush1.bf16.msra.mxu1 %v5711_v31  ;;  %1032 = vmatprep.subr.bf16.mxu0 %v5694_v32  ;;  %v208_v31 = vld [vmem:[#allocation5 + $0xe8] sm:$0xff]  ;;  %v5697_v32 = vcombine.low %v215_v20, %v223_v21  ;;  %v201_v20 = vld [vmem:[#allocation5 + $0xb0] sm:$0xff] }
  0xb6   :  { %1073 = vmatprep.subr.bf16.mxu1 %v5696_v33  ;;  %v5699_v33 = vcombine.low %v216_v22, %v224_v23  ;;  %v5683_v42 = vcombine.low %v200_v30, %v208_v31  ;;  %v209_v21 = vld [vmem:[#allocation5 + $0xf0] sm:$0xff]  ;;  %v202_v23 = vld [vmem:[#allocation5 + $0xb8] sm:$0xff] }
  0xb8   :  { %1033 = vmatpush1.bf16.msra.mxu0 %v5693_v38  ;;  %v5682_v38 = vcombine.high %v199_v28, %v207_v29 }
  0xb9   :  { %1074 = vmatpush1.bf16.msra.mxu1 %v5695_v39  ;;  %1034 = vmatprep.subr.bf16.mxu0 %v5678_v40  ;;  %v5684_v39 = vcombine.high %v200_v30, %v208_v31  ;;  %v281_v40 = vld [vmem:[#allocation5 + $0x330] sm:$0x33]  ;;  %v186_v31 = vld [vmem:[#allocation5 + $0x38] sm:$0xff] }
  0xba   :  { %1075 = vmatprep.subr.bf16.mxu1 %v5680_v41  ;;  %v5681_v41 = vcombine.low %v199_v28, %v207_v29  ;;  %v193_v28 = vld [vmem:[#allocation5 + $0x70] sm:$0xff]  ;;  %v5686_v29 = vcombine.high %v201_v20, %v209_v21 }
  0xbc   :  { %1035 = vmatpush1.bf16.msra.mxu0 %v5677_v46  ;;  %v5665_v46 = vcombine.low %v183_v34, %v191_v35 }
  0xbd   :  { %1076 = vmatpush1.bf16.msra.mxu1 %v5679_v47  ;;  %1036 = vmatprep.subr.bf16.mxu0 %v5662_v48  ;;  %v5667_v47 = vcombine.low %v184_v36, %v192_v37  ;;  %v5766_v48 = vcombine.high %v281_v40, %v281_v40  ;;  %v6488_v37 = vld [vmem:[#allocation8 + $0xe4] ss:$16 sps:$4 sm:$0xff]  }
  0xbe   :  { %1077 = vmatprep.subr.bf16.mxu1 %v5664_v49  ;;  %v265_v49 = vld [vmem:[#allocation5 + $0x2b0] sm:$0xff] }
  0xc0   :  { %1037 = vmatpush1.bf16.msra.mxu0 %v5661_v52  ;;  %v274_v52 = vld [vmem:[#allocation5 + $0x2f8] sm:$0xff] }
  0xc1   :  { %1078 = vmatpush1.bf16.msra.mxu1 %v5663_v53  ;;  %5777 = vmatprep.subr.msk.bf16.mxu0 %vm891_vm0, %v5762_v54  ;;  %v5765_v53 = vcombine.low %v281_v40, %v281_v40  ;;  %v5768_v54 = vcombine.high %v282_v43, %v282_v43  ;;  %v6494_v43 = vld [vmem:[#allocation8 + $0xc4] ss:$16 sps:$4 sm:$0xff]  }
  0xc2   :  { %5779 = vmatprep.subr.msk.bf16.mxu1 %vm891_vm0, %v5764_v56  ;;  %v249_v56 = vld [vmem:[#allocation5 + $0x230] sm:$0xff] }
  0xc3   :  { %5774 = vmatmul.mubr.msk.bf16.vlgmr.msra.gmra.mxu0 %vm887_vm1, %v7687_v5  ;;  %v929_v60 = vsel %vm891_vm0, %v5765_v53, 0  ;;  %v6504_v53 = vld [vmem:[#allocation8 + $0x80] ss:$16 sps:$4 sm:$0xff]  }
  0xc4   :  { %5776 = vmatmul.mubr.msk.bf16.vlgmr.msra.gmra.mxu1 %vm887_vm1, %v7687_v5  ;;  %1107 = vmatpush1.bf16.msra.mxu0 %v917_v62  ;;  %v5750_v62 = vcombine.high %v265_v49, %v273_v50 }
  0xc5   :  { %1148 = vmatpush1.bf16.msra.mxu1 %v923_v63  ;;  %1108 = vmatprep.subr.bf16.mxu0 %v5746_v1  ;;  %v5752_v63 = vcombine.high %v266_v51, %v274_v52  ;;  %v5749_v1 = vcombine.low %v265_v49, %v273_v50  ;;  %v6498_v49 = vld [vmem:[#allocation8 + $0xa0] ss:$16 sps:$4 sm:$0xff]  }
  0xc6   :  { %1149 = vmatprep.subr.bf16.mxu1 %v5748_v2  ;;  %1136 = vmatprep.mubr.bf16.mxu0 %v7577_v0  ;;  %v5751_v2 = vcombine.low %v266_v51, %v274_v52  ;;  %v6501_v50 = vld [vmem:[#allocation8 + $0x2a0] ss:$16 sps:$4 sm:$0xff]   ;;  %v6506_v51 = vld [vmem:[#allocation8 + $0x84] ss:$16 sps:$4 sm:$0xff]  }
  0xc7   :  { %1177 = vmatprep.mubr.bf16.mxu1 %v7577_v0  ;;  %v6509_v52 = vld [vmem:[#allocation8 + $0x284] ss:$16 sps:$4 sm:$0xff]  }
  0xc8   :  { %1109 = vmatpush1.bf16.msra.mxu0 %v5745_v8  ;;  %v5734_v8 = vcombine.high %v249_v56, %v257_v57 }
  0xc9   :  { %1150 = vmatpush1.bf16.msra.mxu1 %v5747_v9  ;;  %1110 = vmatprep.subr.bf16.mxu0 %v5730_v10  ;;  %v5736_v9 = vcombine.high %v250_v58, %v258_v59  ;;  %v5733_v10 = vcombine.low %v249_v56, %v257_v57  ;;  %v6515_v56 = vld [vmem:[#allocation8 + $0x264] ss:$16 sps:$4 sm:$0xff]   ;;  %v6513_v57 = vld [vmem:[#allocation8 + $0x260] ss:$16 sps:$4 sm:$0xff]  }
  0xca   :  { %1151 = vmatprep.subr.bf16.mxu1 %v5732_v11  ;;  %v5735_v11 = vcombine.low %v250_v58, %v258_v59  ;;  %v6518_v58 = vld [vmem:[#allocation8 + $0x44] ss:$16 sps:$4 sm:$0xff]  }
  0xcb   :  { %v6521_v59 = vld [vmem:[#allocation8 + $0x244] ss:$16 sps:$4 sm:$0xff]  }
  0xcc   :  { %1111 = vmatpush1.bf16.msra.mxu0 %v5729_v16  ;;  %v218_v16 = vld [vmem:[#allocation5 + $0x138] sm:$0xff] }
  0xcd   :  { %1152 = vmatpush1.bf16.msra.mxu1 %v5731_v17  ;;  %1112 = vmatprep.subr.bf16.mxu0 %v5714_v18  ;;  %v226_v17 = vld [vmem:[#allocation5 + $0x178] sm:$0xff]  ;;  %v5717_v18 = vcombine.low %v233_v3, %v241_v4  ;;  %v6530_v3 = vld [vmem:[#allocation8 + $0x4] ss:$16 sps:$4 sm:$0xff]  }
  0xce   :  { %1153 = vmatprep.subr.bf16.mxu1 %v5716_v19  ;;  %v5719_v19 = vcombine.low %v234_v6, %v242_v7  ;;  %v5704_v22 = vcombine.high %v218_v16, %v226_v17  ;;  %v6533_v4 = vld [vmem:[#allocation8 + $0x204] ss:$16 sps:$4 sm:$0xff]   ;;  %v6528_v6 = vld [vmem:[#allocation8] ss:$16 sps:$4 sm:$0xff]  }
  0xcf   :  { %v6531_v7 = vld [vmem:[#allocation8 + $0x200] ss:$16 sps:$4 sm:$0xff]  }
  0xd0   :  { %1113 = vmatpush1.bf16.msra.mxu0 %v5713_v24  ;;  %v210_v24 = vld [vmem:[#allocation5 + $0xf8] sm:$0xff] }
  0xd1   :  { %1154 = vmatpush1.bf16.msra.mxu1 %v5715_v25  ;;  %1114 = vmatprep.subr.bf16.mxu0 %v5698_v26  ;;  %v5701_v25 = vcombine.low %v217_v12, %v225_v15  ;;  %v5703_v26 = vcombine.low %v218_v16, %v226_v17  ;;  %v5688_v30 = vcombine.high %v202_v23, %v210_v24  ;;  %v6548_v16 = vld [vmem:[#allocation8 + $0x1a4] ss:$16 sps:$4 sm:$0xff]  }
  0xd2   :  { %1155 = vmatprep.subr.bf16.mxu1 %v5700_v27  ;;  %v185_v27 = vld [vmem:[#allocation5 + $0x30] sm:$0xff]  ;;  %v5687_v34 = vcombine.low %v202_v23, %v210_v24 }
  0xd3   :  { %v5670_v35 = vcombine.high %v185_v27, %v193_v28  ;;  %v6551_v17 = vld [vmem:[#allocation8 + $0x3a4] ss:$16 sps:$4 sm:$0xff]  }
  0xd4   :  { %1115 = vmatpush1.bf16.msra.mxu0 %v5697_v32  ;;  %v194_v32 = vld [vmem:[#allocation5 + $0x78] sm:$0xff]  ;;  %v6560_v23 = vld [vmem:[#allocation8 + $0x164] ss:$16 sps:$4 sm:$0xff]  }
  0xd5   :  { %1156 = vmatpush1.bf16.msra.mxu1 %v5699_v33  ;;  %1116 = vmatprep.subr.bf16.mxu0 %v5682_v38  ;;  %v5685_v33 = vcombine.low %v201_v20, %v209_v21  ;;  %v5672_v36 = vcombine.high %v186_v31, %v194_v32  ;;  %v6491_v38 = vld [vmem:[#allocation8 + $0x2e4] ss:$16 sps:$4 sm:$0xff]   ;;  %v5671_v40 = vcombine.low %v186_v31, %v194_v32 }
  0xd6   :  { %1157 = vmatprep.subr.bf16.mxu1 %v5684_v39  ;;  %v5669_v39 = vcombine.low %v185_v27, %v193_v28  ;;  %v6554_v20 = vld [vmem:[#allocation8 + $0x184] ss:$16 sps:$4 sm:$0xff]  }
  0xd7   :  { %v6557_v21 = vld [vmem:[#allocation8 + $0x384] ss:$16 sps:$4 sm:$0xff]  }
  0xd8   :  { %1117 = vmatpush1.bf16.msra.mxu0 %v5681_v41  ;;  %v6486_v41 = vld [vmem:[#allocation8 + $0xe0] ss:$16 sps:$4 sm:$0xff]   ;;  %v6563_v24 = vld [vmem:[#allocation8 + $0x364] ss:$16 sps:$4 sm:$0xff]  }
  0xd9   :  { %1158 = vmatpush1.bf16.msra.mxu1 %v5683_v42  ;;  %1118 = vmatprep.subr.bf16.mxu0 %v5666_v44  ;;  %v6489_v42 = vld [vmem:[#allocation8 + $0x2e0] ss:$16 sps:$4 sm:$0xff]   ;;  %v6497_v44 = vld [vmem:[#allocation8 + $0x2c4] ss:$16 sps:$4 sm:$0xff]  }
  0xda   :  { %1159 = vmatprep.subr.bf16.mxu1 %v5668_v45  ;;  %v6492_v45 = vld [vmem:[#allocation8 + $0xc0] ss:$16 sps:$4 sm:$0xff]   ;;  %v6566_v27 = vld [vmem:[#allocation8 + $0x144] ss:$16 sps:$4 sm:$0xff]  }
  0xdb   :  { %v6569_v28 = vld [vmem:[#allocation8 + $0x344] ss:$16 sps:$4 sm:$0xff]  }
  0xdc   :  { %1119 = vmatpush1.bf16.msra.mxu0 %v5665_v46  ;;  %v6495_v46 = vld [vmem:[#allocation8 + $0x2c0] ss:$16 sps:$4 sm:$0xff]   ;;  %v6572_v31 = vld [vmem:[#allocation8 + $0x124] ss:$16 sps:$4 sm:$0xff]  }
  0xdd   :  { %1160 = vmatpush1.bf16.msra.mxu1 %v5667_v47  ;;  %5781 = vmatprep.subr.msk.bf16.mxu0 %vm891_vm0, %v5766_v48  ;;  %v6500_v47 = vld [vmem:[#allocation8 + $0xa4] ss:$16 sps:$4 sm:$0xff]  }
  0xde   :  { %5783 = vmatprep.subr.msk.bf16.mxu1 %vm891_vm0, %v5768_v54  ;;  %v6503_v48 = vld [vmem:[#allocation8 + $0x2a4] ss:$16 sps:$4 sm:$0xff]   ;;  %v6507_v54 = vld [vmem:[#allocation8 + $0x280] ss:$16 sps:$4 sm:$0xff]  }
  0xdf   :  { %5778 = vmatmul.mubr.msk.bf16.vlgmr.msra.gmra.mxu0 %vm887_vm1, %v7687_v5  ;;  %v6575_v32 = vld [vmem:[#allocation8 + $0x324] ss:$16 sps:$4 sm:$0xff]  }
  0xe0   :  { %5780 = vmatmul.mubr.msk.bf16.vlgmr.msra.gmra.mxu1 %vm887_vm1, %v7687_v5  ;;  %1189 = vmatpush1.bf16.msra.mxu0 %v929_v60  ;;  %v6516_v60 = vld [vmem:[#allocation8 + $0x40] ss:$16 sps:$4 sm:$0xff]  }
  0xe1   :  { %1230 = vmatpush1.bf16.msra.mxu1 %v935_v61  ;;  %1190 = vmatprep.subr.bf16.mxu0 %v5750_v62  ;;  %v6519_v61 = vld [vmem:[#allocation8 + $0x240] ss:$16 sps:$4 sm:$0xff]   ;;  %v6524_v62 = vld [vmem:[#allocation8 + $0x24] ss:$16 sps:$4 sm:$0xff]  }
  0xe2   :  { %1231 = vmatprep.subr.bf16.mxu1 %v5752_v63  ;;  %1218 = vmatprep.mubr.bf16.mxu0 %v7577_v0  ;;  %v6527_v63 = vld [vmem:[#allocation8 + $0x224] ss:$16 sps:$4 sm:$0xff]  }
  0xe3   :  { %1259 = vmatprep.mubr.bf16.mxu1 %v7577_v0  ;;  %v5702_v0 = vcombine.high %v217_v12, %v225_v15  ;;  %v6542_v12 = vld [vmem:[#allocation8 + $0x1c4] ss:$16 sps:$4 sm:$0xff]   ;;  %v6543_v15 = vld [vmem:[#allocation8 + $0x3c0] ss:$16 sps:$4 sm:$0xff]  }
  0xe4   :  { %1191 = vmatpush1.bf16.msra.mxu0 %v5749_v1  ;;  %v6522_v1 = vld [vmem:[#allocation8 + $0x20] ss:$16 sps:$4 sm:$0xff]  }
  0xe5   :  { %1232 = vmatpush1.bf16.msra.mxu1 %v5751_v2  ;;  %1192 = vmatprep.subr.bf16.mxu0 %v5734_v8  ;;  %v6525_v2 = vld [vmem:[#allocation8 + $0x220] ss:$16 sps:$4 sm:$0xff]   ;;  %v6536_v8 = vld [vmem:[#allocation8 + $0x1e4] ss:$16 sps:$4 sm:$0xff]  }
  0xe6   :  { %1233 = vmatprep.subr.bf16.mxu1 %v5736_v9  ;;  %v6539_v9 = vld [vmem:[#allocation8 + $0x3e4] ss:$16 sps:$4 sm:$0xff]  }
  0xe8   :  { %1193 = vmatpush1.bf16.msra.mxu0 %v5733_v10  ;;  %v6534_v10 = vld [vmem:[#allocation8 + $0x1e0] ss:$16 sps:$4 sm:$0xff]  }
  0xe9   :  { %1234 = vmatpush1.bf16.msra.mxu1 %v5735_v11  ;;  %1194 = vmatprep.subr.bf16.mxu0 %v5718_v13  ;;  %v6537_v11 = vld [vmem:[#allocation8 + $0x3e0] ss:$16 sps:$4 sm:$0xff]   ;;  %v6545_v13 = vld [vmem:[#allocation8 + $0x3c4] ss:$16 sps:$4 sm:$0xff]  }
  0xea   :  { %1235 = vmatprep.subr.bf16.mxu1 %v5720_v14  ;;  %v6540_v14 = vld [vmem:[#allocation8 + $0x1c0] ss:$16 sps:$4 sm:$0xff]  }
  0xec   :  { %1195 = vmatpush1.bf16.msra.mxu0 %v5717_v18  ;;  %v6546_v18 = vld [vmem:[#allocation8 + $0x1a0] ss:$16 sps:$4 sm:$0xff]  }
  0xed   :  { %1236 = vmatpush1.bf16.msra.mxu1 %v5719_v19  ;;  %1196 = vmatprep.subr.bf16.mxu0 %v5702_v0  ;;  %v6549_v19 = vld [vmem:[#allocation8 + $0x3a0] ss:$16 sps:$4 sm:$0xff]  }
  0xee   :  { %1237 = vmatprep.subr.bf16.mxu1 %v5704_v22  ;;  %v6552_v0 = vld [vmem:[#allocation8 + $0x180] ss:$16 sps:$4 sm:$0xff]  }
  0xef   :  { %v6555_v22 = vld [vmem:[#allocation8 + $0x380] ss:$16 sps:$4 sm:$0xff]  }
  0xf0   :  { %1197 = vmatpush1.bf16.msra.mxu0 %v5701_v25  ;;  %v6558_v25 = vld [vmem:[#allocation8 + $0x160] ss:$16 sps:$4 sm:$0xff]  }
  0xf1   :  { %1238 = vmatpush1.bf16.msra.mxu1 %v5703_v26  ;;  %1198 = vmatprep.subr.bf16.mxu0 %v5686_v29  ;;  %v6561_v26 = vld [vmem:[#allocation8 + $0x360] ss:$16 sps:$4 sm:$0xff]  }
  0xf2   :  { %1239 = vmatprep.subr.bf16.mxu1 %v5688_v30  ;;  %v6564_v29 = vld [vmem:[#allocation8 + $0x140] ss:$16 sps:$4 sm:$0xff]  }
  0xf3   :  { %v6567_v30 = vld [vmem:[#allocation8 + $0x340] ss:$16 sps:$4 sm:$0xff]  }
  0xf4   :  { %1199 = vmatpush1.bf16.msra.mxu0 %v5685_v33  ;;  %v6570_v33 = vld [vmem:[#allocation8 + $0x120] ss:$16 sps:$4 sm:$0xff]  }
  0xf5   :  { %1240 = vmatpush1.bf16.msra.mxu1 %v5687_v34  ;;  %1200 = vmatprep.subr.bf16.mxu0 %v5670_v35  ;;  %v6573_v34 = vld [vmem:[#allocation8 + $0x320] ss:$16 sps:$4 sm:$0xff]   ;;  %v6578_v35 = vld [vmem:[#allocation8 + $0x104] ss:$16 sps:$4 sm:$0xff]  }
  0xf6   :  { %1241 = vmatprep.subr.bf16.mxu1 %v5672_v36  ;;  %v6581_v36 = vld [vmem:[#allocation8 + $0x304] ss:$16 sps:$4 sm:$0xff]  }
  0xf8   :  { %1201 = vmatpush1.bf16.msra.mxu0 %v5669_v39  ;;  %v6584_v39 = vld [vmem:[#allocation8 + $0x4e4] ss:$16 sps:$4 sm:$0xff]  }
  0xf9   :  { %1242 = vmatpush1.bf16.msra.mxu1 %v5671_v40  ;;  %4394 = vmatprep.subr.bf16.mxu0 %v6488_v37  ;;  %v6576_v37 = vld [vmem:[#allocation8 + $0x100] ss:$16 sps:$4 sm:$0xff]   ;;  %v6587_v40 = vld [vmem:[#allocation8 + $0x6e4] ss:$16 sps:$4 sm:$0xff]  }
  0xfa   :  { %4435 = vmatprep.subr.bf16.mxu1 %v6491_v38  ;;  %v6579_v38 = vld [vmem:[#allocation8 + $0x300] ss:$16 sps:$4 sm:$0xff]  }
  0xfb   :  { %5782 = vmatmul.mubr.msk.bf16.vlgmr.msra.gmra.mxu0 %vm887_vm1, %v7687_v5 }
  0xfc   :  { %5784 = vmatmul.mubr.msk.bf16.vlgmr.msra.gmra.mxu1 %vm887_vm1, %v7687_v5  ;;  %4395 = vmatpush1.bf16.msra.mxu0 %v6486_v41  ;;  %v6510_v5 = vld [vmem:[#allocation8 + $0x60] ss:$16 sps:$4 sm:$0xff]   ;;  %v287_v41 = vlaneseq }
  0xfd   :  { %4436 = vmatpush1.bf16.msra.mxu1 %v6489_v42  ;;  %4396 = vmatprep.subr.bf16.mxu0 %v6494_v43  ;;  %v7725_v43 = vld [vmem:[#allocation7] sm:$0xff] }
  0xfe   :  { %4437 = vmatprep.subr.bf16.mxu1 %v6497_v44  ;;  %v7723_v42 = vshrl.u32 %v287_v41, 7  ;;  %v6621_v41 = vld [vmem:[#allocation8 + $0x620] ss:$16 sps:$4 sm:$0xff]  }
 0x100   :  { %4397 = vmatpush1.bf16.msra.mxu0 %v6492_v45  ;;  %v7728_v44 = vsub.s32 0, %v7723_v42  ;;  %v7731_v45 = vsub.s32 2, %v7723_v42 }
 0x101   :  { %4438 = vmatpush1.bf16.msra.mxu1 %v6495_v46  ;;  %4398 = vmatprep.subr.bf16.mxu0 %v6500_v47  ;;  %v7734_v46 = vsub.s32 1, %v7723_v42  ;;  %v7737_v47 = vsub.s32 3, %v7723_v42 }
 0x102   :  { %4439 = vmatprep.subr.bf16.mxu1 %v6503_v48  ;;  %v290_v48 = vrot.slane %v7725_v43, %v7728_v44 }
 0x104   :  { %4399 = vmatpush1.bf16.msra.mxu0 %v6498_v49  ;;  %v298_v49 = vrot.slane %v7725_v43, %v7731_v45 }
 0x105   :  { %4440 = vmatpush1.bf16.msra.mxu1 %v6501_v50  ;;  %4400 = vmatprep.subr.bf16.mxu0 %v6506_v51  ;;  %v294_v50 = vrot.slane %v7725_v43, %v7734_v46  ;;  %v302_v51 = vrot.slane %v7725_v43, %v7737_v47 }
 0x106   :  { %4441 = vmatprep.subr.bf16.mxu1 %v6509_v52 }
 0x108   :  { %4401 = vmatpush1.bf16.msra.mxu0 %v6504_v53 }
 0x109   :  { %4442 = vmatpush1.bf16.msra.mxu1 %v6507_v54  ;;  %4402 = vmatprep.subr.bf16.mxu0 %v6512_v55 }
 0x10a   :  { %4443 = vmatprep.subr.bf16.mxu1 %v6515_v56 }
 0x10c   :  { %4403 = vmatpush1.bf16.msra.mxu0 %v6510_v5 }
 0x10d   :  { %4444 = vmatpush1.bf16.msra.mxu1 %v6513_v57  ;;  %4404 = vmatprep.subr.bf16.mxu0 %v6518_v58 }
 0x10e   :  { %4445 = vmatprep.subr.bf16.mxu1 %v6521_v59 }
 0x110   :  { %4405 = vmatpush1.bf16.msra.mxu0 %v6516_v60 }
 0x111   :  { %4446 = vmatpush1.bf16.msra.mxu1 %v6519_v61  ;;  %4406 = vmatprep.subr.bf16.mxu0 %v6524_v62 }
 0x112   :  { %4447 = vmatprep.subr.bf16.mxu1 %v6527_v63 }
 0x114   :  { %4407 = vmatpush1.bf16.msra.mxu0 %v6522_v1 }
 0x115   :  { %4448 = vmatpush1.bf16.msra.mxu1 %v6525_v2  ;;  %4408 = vmatprep.subr.bf16.mxu0 %v6530_v3  ;;  %v6582_v2 = vld [vmem:[#allocation8 + $0x4e0] ss:$16 sps:$4 sm:$0xff]  }
 0x116   :  { %4449 = vmatprep.subr.bf16.mxu1 %v6533_v4  ;;  %v6585_v3 = vld [vmem:[#allocation8 + $0x6e0] ss:$16 sps:$4 sm:$0xff]  }
 0x118   :  { %4409 = vmatpush1.bf16.msra.mxu0 %v6528_v6 }
 0x119   :  { %4450 = vmatpush1.bf16.msra.mxu1 %v6531_v7  ;;  %4410 = vmatprep.subr.bf16.mxu0 %v6536_v8 }
 0x11a   :  { %4451 = vmatprep.subr.bf16.mxu1 %v6539_v9 }
 0x11c   :  { %4411 = vmatpush2.bf16.msra.mxu0 %v6534_v10 }
 0x11d   :  { %4452 = vmatpush2.bf16.msra.mxu1 %v6537_v11  ;;  %4412 = vmatprep.subr.bf16.mxu0 %v6542_v12  ;;  %v6590_v11 = vld [vmem:[#allocation8 + $0x4c4] ss:$16 sps:$4 sm:$0xff]  }
 0x11e   :  { %4453 = vmatprep.subr.bf16.mxu1 %v6545_v13  ;;  %v6593_v12 = vld [vmem:[#allocation8 + $0x6c4] ss:$16 sps:$4 sm:$0xff]   ;;  %v6588_v13 = vld [vmem:[#allocation8 + $0x4c0] ss:$16 sps:$4 sm:$0xff]  }
 0x120   :  { %4413 = vmatpush2.bf16.msra.mxu0 %v6540_v14  ;;  %v6591_v14 = vld [vmem:[#allocation8 + $0x6c0] ss:$16 sps:$4 sm:$0xff]  }
 0x121   :  { %4454 = vmatpush2.bf16.msra.mxu1 %v6543_v15  ;;  %4414 = vmatprep.subr.bf16.mxu0 %v6548_v16  ;;  %v6596_v15 = vld [vmem:[#allocation8 + $0x4a4] ss:$16 sps:$4 sm:$0xff]  }
 0x122   :  { %4455 = vmatprep.subr.bf16.mxu1 %v6551_v17  ;;  %v6599_v16 = vld [vmem:[#allocation8 + $0x6a4] ss:$16 sps:$4 sm:$0xff]   ;;  %v6594_v17 = vld [vmem:[#allocation8 + $0x4a0] ss:$16 sps:$4 sm:$0xff]  }
 0x124   :  { %4415 = vmatpush2.bf16.msra.mxu0 %v6546_v18  ;;  %v6597_v18 = vld [vmem:[#allocation8 + $0x6a0] ss:$16 sps:$4 sm:$0xff]  }
 0x125   :  { %4456 = vmatpush2.bf16.msra.mxu1 %v6549_v19  ;;  %4416 = vmatprep.subr.bf16.mxu0 %v6554_v20  ;;  %v6602_v19 = vld [vmem:[#allocation8 + $0x484] ss:$16 sps:$4 sm:$0xff]  }
 0x126   :  { %4457 = vmatprep.subr.bf16.mxu1 %v6557_v21  ;;  %v6605_v20 = vld [vmem:[#allocation8 + $0x684] ss:$16 sps:$4 sm:$0xff]   ;;  %v6600_v21 = vld [vmem:[#allocation8 + $0x480] ss:$16 sps:$4 sm:$0xff]  }
 0x128   :  { %4417 = vmatpush2.bf16.msra.mxu0 %v6552_v0  ;;  %v6603_v0 = vld [vmem:[#allocation8 + $0x680] ss:$16 sps:$4 sm:$0xff]  }
 0x129   :  { %4458 = vmatpush2.bf16.msra.mxu1 %v6555_v22  ;;  %4418 = vmatprep.subr.bf16.mxu0 %v6560_v23  ;;  %v6608_v22 = vld [vmem:[#allocation8 + $0x464] ss:$16 sps:$4 sm:$0xff]  }
 0x12a   :  { %4459 = vmatprep.subr.bf16.mxu1 %v6563_v24  ;;  %v6611_v23 = vld [vmem:[#allocation8 + $0x664] ss:$16 sps:$4 sm:$0xff]   ;;  %v6606_v24 = vld [vmem:[#allocation8 + $0x460] ss:$16 sps:$4 sm:$0xff]  }
 0x12c   :  { %4419 = vmatpush2.bf16.msra.mxu0 %v6558_v25  ;;  %v6609_v25 = vld [vmem:[#allocation8 + $0x660] ss:$16 sps:$4 sm:$0xff]  }
 0x12d   :  { %4460 = vmatpush2.bf16.msra.mxu1 %v6561_v26  ;;  %4420 = vmatprep.subr.bf16.mxu0 %v6566_v27  ;;  %v309_v26 = vsub.s32 5, %v7723_v42  ;;  %v317_v27 = vsub.s32 7, %v7723_v42 }
 0x12e   :  { %4461 = vmatprep.subr.bf16.mxu1 %v6569_v28  ;;  %v6614_v28 = vld [vmem:[#allocation8 + $0x444] ss:$16 sps:$4 sm:$0xff]  }
 0x130   :  { %4421 = vmatpush2.bf16.msra.mxu0 %v6564_v29  ;;  %v6617_v29 = vld [vmem:[#allocation8 + $0x644] ss:$16 sps:$4 sm:$0xff]  }
 0x131   :  { %4462 = vmatpush2.bf16.msra.mxu1 %v6567_v30  ;;  %4422 = vmatprep.subr.bf16.mxu0 %v6572_v31  ;;  %v6612_v30 = vld [vmem:[#allocation8 + $0x440] ss:$16 sps:$4 sm:$0xff]  }
 0x132   :  { %4463 = vmatprep.subr.bf16.mxu1 %v6575_v32  ;;  %v6615_v31 = vld [vmem:[#allocation8 + $0x640] ss:$16 sps:$4 sm:$0xff]   ;;  %v310_v32 = vrot.slane %v7725_v43, %v309_v26 }
 0x134   :  { %4423 = vmatpush2.bf16.msra.mxu0 %v6570_v33  ;;  %v318_v33 = vrot.slane %v7725_v43, %v317_v27 }
 0x135   :  { %4464 = vmatpush2.bf16.msra.mxu1 %v6573_v34  ;;  %4424 = vmatprep.subr.bf16.mxu0 %v6578_v35  ;;  %v6620_v34 = vld [vmem:[#allocation8 + $0x424] ss:$16 sps:$4 sm:$0xff]  }
 0x136   :  { %4465 = vmatprep.subr.bf16.mxu1 %v6581_v36  ;;  %v6623_v35 = vld [vmem:[#allocation8 + $0x624] ss:$16 sps:$4 sm:$0xff]  }
 0x138   :  { %4425 = vmatpush2.bf16.msra.mxu0 %v6576_v37 }
 0x139   :  { %4466 = vmatpush2.bf16.msra.mxu1 %v6579_v38  ;;  %4476 = vmatprep.subr.bf16.mxu0 %v6584_v39 }
 0x13a   :  { %4517 = vmatprep.subr.bf16.mxu1 %v6587_v40  ;;  %v6618_v40 = vld [vmem:[#allocation8 + $0x420] ss:$16 sps:$4 sm:$0xff]  }
 0x167   :  { %v974_v52 = vpop.f32.mrf.mxu0 }
 0x168   :  { %v1015_v53 = vpop.f32.mrf.mxu1  ;;  %v975_v54 = vadd.f32 %v974_v52, %v290_v48 }
 0x169   :  { %v1016_v55 = vadd.f32 %v1015_v53, %v298_v49  ;;  %v976_v56 = vpop.f32.mrf.mxu0 }
 0x16a   :  { %v1017_v5 = vpop.f32.mrf.mxu1  ;;  %v977_v58 = vadd.f32 %v976_v56, %v294_v50  ;;  %v1268_v60 = vmax.f32 %v975_v54, 0.0  ;;  %v6626_v50 = vld [vmem:[#allocation8 + $0x404] ss:$16 sps:$4 sm:$0xff]  }
 0x16b   :  { %v1270_v57 = vmax.f32 %v1016_v55, 0.0  ;;  %v1018_v59 = vadd.f32 %v1017_v5, %v302_v51  ;;  %v978_v61 = vpop.f32.mrf.mxu0  ;;  %v6629_v51 = vld [vmem:[#allocation8 + $0x604] ss:$16 sps:$4 sm:$0xff]  }
 0x16c   :  { %v1019_v62 = vpop.f32.mrf.mxu1  ;;  %v1269_v63 = vmax.f32 %v977_v58, 0.0  ;;  %v7753_v10 = vpack.c.bf16 %v1268_v60, %v1268_v60  ;;  %v6627_v58 = vld [vmem:[#allocation8 + $0x600] ss:$16 sps:$4 sm:$0xff]   ;;  %v6632_v61 = vld [vmem:[#allocation8 + $0x5e4] ss:$16 sps:$4 sm:$0xff]  }
 0x16d   :  { %v1271_v1 = vmax.f32 %v1018_v59, 0.0  ;;  %v7747_v4 = vpack.c.bf16 %v1270_v57, %v1270_v57  ;;  %v979_v6 = vpop.f32.mrf.mxu0  ;;  %v6624_v57 = vld [vmem:[#allocation8 + $0x400] ss:$16 sps:$4 sm:$0xff]   ;;  %v6635_v62 = vld [vmem:[#allocation8 + $0x7e4] ss:$16 sps:$4 sm:$0xff]  }
 0x16e   :  { %v1020_v7 = vpop.f32.mrf.mxu1  ;;  %v7749_v8 = vpack.c.bf16 %v1269_v63, %v1269_v63  ;;  %v6630_v63 = vld [vmem:[#allocation8 + $0x5e0] ss:$16 sps:$4 sm:$0xff]  }
 0x16f   :  { %v7751_v9 = vpack.c.bf16 %v1271_v1, %v1271_v1  ;;  %v6633_v1 = vld [vmem:[#allocation8 + $0x7e0] ss:$16 sps:$4 sm:$0xff]  }
 0x170   :  { %4426 = vmatprep.mubr.bf16.mxu0 %v7749_v8  ;;  %v6636_v6 = vld [vmem:[#allocation8 + $0x5c0] ss:$16 sps:$4 sm:$0xff]  }
 0x171   :  { %4467 = vmatprep.mubr.bf16.mxu1 %v7751_v9  ;;  %4427 = vmatmul.mubr.bf16.vlgmr.msra.gmra.mxu0 %v7753_v10  ;;  %v6639_v7 = vld [vmem:[#allocation8 + $0x7c0] ss:$16 sps:$4 sm:$0xff]  }
 0x172   :  { %4468 = vmatmul.mubr.bf16.vlgmr.msra.gmra.mxu1 %v7747_v4  ;;  %4477 = vmatpush1.bf16.msra.mxu0 %v6582_v2  ;;  %v6638_v2 = vld [vmem:[#allocation8 + $0x5c4] ss:$16 sps:$4 sm:$0xff]  }
 0x173   :  { %4518 = vmatpush1.bf16.msra.mxu1 %v6585_v3  ;;  %4478 = vmatprep.subr.bf16.mxu0 %v6590_v11  ;;  %v6641_v3 = vld [vmem:[#allocation8 + $0x7c4] ss:$16 sps:$4 sm:$0xff]  }
 0x174   :  { %4519 = vmatprep.subr.bf16.mxu1 %v6593_v12  ;;  %v6644_v11 = vld [vmem:[#allocation8 + $0x5a4] ss:$16 sps:$4 sm:$0xff]  }
 0x175   :  { %v6647_v12 = vld [vmem:[#allocation8 + $0x7a4] ss:$16 sps:$4 sm:$0xff]  }
 0x176   :  { %4479 = vmatpush1.bf16.msra.mxu0 %v6588_v13  ;;  %v6642_v13 = vld [vmem:[#allocation8 + $0x5a0] ss:$16 sps:$4 sm:$0xff]  }
 0x177   :  { %4520 = vmatpush1.bf16.msra.mxu1 %v6591_v14  ;;  %4480 = vmatprep.subr.bf16.mxu0 %v6596_v15  ;;  %v6645_v14 = vld [vmem:[#allocation8 + $0x7a0] ss:$16 sps:$4 sm:$0xff]   ;;  %v6650_v15 = vld [vmem:[#allocation8 + $0x584] ss:$16 sps:$4 sm:$0xff]  }
 0x178   :  { %4521 = vmatprep.subr.bf16.mxu1 %v6599_v16  ;;  %v6653_v16 = vld [vmem:[#allocation8 + $0x784] ss:$16 sps:$4 sm:$0xff]  }
 0x17a   :  { %4481 = vmatpush1.bf16.msra.mxu0 %v6594_v17  ;;  %v6648_v17 = vld [vmem:[#allocation8 + $0x580] ss:$16 sps:$4 sm:$0xff]  }
 0x17b   :  { %4522 = vmatpush1.bf16.msra.mxu1 %v6597_v18  ;;  %4482 = vmatprep.subr.bf16.mxu0 %v6602_v19  ;;  %v6651_v18 = vld [vmem:[#allocation8 + $0x780] ss:$16 sps:$4 sm:$0xff]   ;;  %v6656_v19 = vld [vmem:[#allocation8 + $0x564] ss:$16 sps:$4 sm:$0xff]  }
 0x17c   :  { %4523 = vmatprep.subr.bf16.mxu1 %v6605_v20  ;;  %v6659_v20 = vld [vmem:[#allocation8 + $0x764] ss:$16 sps:$4 sm:$0xff]  }
 0x17e   :  { %4483 = vmatpush1.bf16.msra.mxu0 %v6600_v21  ;;  %v6654_v21 = vld [vmem:[#allocation8 + $0x560] ss:$16 sps:$4 sm:$0xff]  }
 0x17f   :  { %4524 = vmatpush1.bf16.msra.mxu1 %v6603_v0  ;;  %4484 = vmatprep.subr.bf16.mxu0 %v6608_v22  ;;  %v313_v0 = vsub.s32 6, %v7723_v42  ;;  %v6657_v22 = vld [vmem:[#allocation8 + $0x760] ss:$16 sps:$4 sm:$0xff]  }
 0x180   :  { %4525 = vmatprep.subr.bf16.mxu1 %v6611_v23  ;;  %v6662_v23 = vld [vmem:[#allocation8 + $0x544] ss:$16 sps:$4 sm:$0xff]  }
 0x182   :  { %4485 = vmatpush1.bf16.msra.mxu0 %v6606_v24  ;;  %v305_v24 = vsub.s32 4, %v7723_v42  ;;  %v6768_v42 = vld [vmem:[#allocation8 + $0x900] ss:$16 sps:$4 sm:$0xff]  }
 0x183   :  { %4526 = vmatpush1.bf16.msra.mxu1 %v6609_v25  ;;  %4486 = vmatprep.subr.bf16.mxu0 %v6614_v28  ;;  %v7767_v36 = vpop.f32.mrf.mxu0  ;;  %v6665_v25 = vld [vmem:[#allocation8 + $0x744] ss:$16 sps:$4 sm:$0xff]   ;;  %v7779_v28 = vld [vmem:[#allocation7 + $0x8] sm:$0xff] }
 0x184   :  { %4527 = vmatprep.subr.bf16.mxu1 %v6617_v29  ;;  %v7769_v37 = vpop.f32.mrf.mxu1 }
 0x185   :  { %v1058_v38 = vpop.f32.mrf.mxu0 }
 0x186   :  { %v1099_v39 = vpop.f32.mrf.mxu1  ;;  %4487 = vmatpush1.bf16.msra.mxu0 %v6612_v30  ;;  %v1059_v48 = vadd.f32 %v1058_v38, %v310_v32  ;;  %v306_v38 = vrot.slane %v7725_v43, %v305_v24 }
 0x187   :  { %4528 = vmatpush1.bf16.msra.mxu1 %v6615_v31  ;;  %v1100_v49 = vadd.f32 %v1099_v39, %v318_v33  ;;  %4488 = vmatprep.subr.bf16.mxu0 %v6620_v34  ;;  %v1060_v52 = vpop.f32.mrf.mxu0  ;;  %v314_v31 = vrot.slane %v7725_v43, %v313_v0  ;;  %v6660_v34 = vld [vmem:[#allocation8 + $0x540] ss:$16 sps:$4 sm:$0xff]   ;;  %v6668_v39 = vld [vmem:[#allocation8 + $0x524] ss:$16 sps:$4 sm:$0xff]  }
 0x188   :  { %4529 = vmatprep.subr.bf16.mxu1 %v6623_v35  ;;  %v1101_v53 = vpop.f32.mrf.mxu1  ;;  %v1273_v54 = vmax.f32 %v1059_v48, 0.0  ;;  %v6663_v35 = vld [vmem:[#allocation8 + $0x740] ss:$16 sps:$4 sm:$0xff]  }
 0x189   :  { %v1275_v55 = vmax.f32 %v1100_v49, 0.0  ;;  %v1061_v56 = vpop.f32.mrf.mxu0  ;;  %v326_v49 = vrot.slane %v7779_v28, %v7734_v46  ;;  %v6669_v43 = vld [vmem:[#allocation8 + $0x720] ss:$16 sps:$4 sm:$0xff]  }
 0x18a   :  { %v1102_v5 = vpop.f32.mrf.mxu1  ;;  %4489 = vmatpush1.bf16.msra.mxu0 %v6618_v40  ;;  %v7771_v59 = vpack.c.bf16 %v1273_v54, %v1273_v54  ;;  %v6671_v40 = vld [vmem:[#allocation8 + $0x724] ss:$16 sps:$4 sm:$0xff]   ;;  %v6666_v54 = vld [vmem:[#allocation8 + $0x520] ss:$16 sps:$4 sm:$0xff]  }
 0x18b   :  { %4530 = vmatpush1.bf16.msra.mxu1 %v6621_v41  ;;  %v7773_v60 = vpack.c.bf16 %v1275_v55, %v1275_v55  ;;  %4490 = vmatprep.subr.bf16.mxu0 %v6626_v50  ;;  %v334_v50 = vrot.slane %v7779_v28, %v7737_v47  ;;  %v1057_v55 = vadd.f32 %v7767_v36, %v306_v38  ;;  %v6674_v56 = vld [vmem:[#allocation8 + $0x504] ss:$16 sps:$4 sm:$0xff]  }
 0x18c   :  { %4531 = vmatprep.subr.bf16.mxu1 %v6629_v51  ;;  %4508 = vmatprep.mubr.bf16.mxu0 %v7771_v59  ;;  %v1098_v51 = vadd.f32 %v7769_v37, %v314_v31  ;;  %v6677_v5 = vld [vmem:[#allocation8 + $0x704] ss:$16 sps:$4 sm:$0xff]   ;;  %v6696_v31 = vld [vmem:[#allocation8 + $0x880] ss:$16 sps:$4 sm:$0xff]  }
 0x18d   :  { %4549 = vmatprep.mubr.bf16.mxu1 %v7773_v60  ;;  %v1272_v37 = vmax.f32 %v1057_v55, 0.0  ;;  %v6707_v38 = vld [vmem:[#allocation8 + $0xa64] ss:$16 sps:$4 sm:$0xff]   ;;  %v6711_v55 = vld [vmem:[#allocation8 + $0xa40] ss:$16 sps:$4 sm:$0xff]  }
 0x18e   :  { %4491 = vmatpush1.bf16.msra.mxu0 %v6624_v57 }
 0x18f   :  { %4532 = vmatpush1.bf16.msra.mxu1 %v6627_v58  ;;  %4492 = vmatprep.subr.bf16.mxu0 %v6632_v61  ;;  %v1274_v61 = vmax.f32 %v1098_v51, 0.0  ;;  %v6710_v51 = vld [vmem:[#allocation8 + $0x844] ss:$16 sps:$4 sm:$0xff]  }
 0x190   :  { %4533 = vmatprep.subr.bf16.mxu1 %v6635_v62  ;;  %v6672_v62 = vld [vmem:[#allocation8 + $0x500] ss:$16 sps:$4 sm:$0xff]  }
 0x192   :  { %4493 = vmatpush2.bf16.msra.mxu0 %v6630_v63  ;;  %v6675_v63 = vld [vmem:[#allocation8 + $0x700] ss:$16 sps:$4 sm:$0xff]  }
 0x193   :  { %4534 = vmatpush2.bf16.msra.mxu1 %v6633_v1  ;;  %4494 = vmatprep.subr.bf16.mxu0 %v6638_v2  ;;  %v6680_v1 = vld [vmem:[#allocation8 + $0x8e4] ss:$16 sps:$4 sm:$0xff]  }
 0x194   :  { %4535 = vmatprep.subr.bf16.mxu1 %v6641_v3  ;;  %v6683_v2 = vld [vmem:[#allocation8 + $0xae4] ss:$16 sps:$4 sm:$0xff]   ;;  %v6678_v3 = vld [vmem:[#allocation8 + $0x8e0] ss:$16 sps:$4 sm:$0xff]  }
 0x196   :  { %4495 = vmatpush2.bf16.msra.mxu0 %v6636_v6  ;;  %v6681_v6 = vld [vmem:[#allocation8 + $0xae0] ss:$16 sps:$4 sm:$0xff]  }
 0x197   :  { %4536 = vmatpush2.bf16.msra.mxu1 %v6639_v7  ;;  %4496 = vmatprep.subr.bf16.mxu0 %v6644_v11  ;;  %v7797_v11 = vpack.c.bf16 %v1274_v61, %v1274_v61  ;;  %v6714_v61 = vld [vmem:[#allocation8 + $0x820] ss:$16 sps:$4 sm:$0xff]  }
 0x198   :  { %4537 = vmatprep.subr.bf16.mxu1 %v6647_v12  ;;  %v7799_v12 = vpack.c.bf16 %v1272_v37, %v1272_v37  ;;  %v6725_v37 = vld [vmem:[#allocation8 + $0xa04] ss:$16 sps:$4 sm:$0xff]  }
 0x19a   :  { %4497 = vmatpush2.bf16.msra.mxu0 %v6642_v13  ;;  %v6686_v13 = vld [vmem:[#allocation8 + $0x8c4] ss:$16 sps:$4 sm:$0xff]  }
 0x19b   :  { %4538 = vmatpush2.bf16.msra.mxu1 %v6645_v14  ;;  %4498 = vmatprep.subr.bf16.mxu0 %v6650_v15  ;;  %v6689_v14 = vld [vmem:[#allocation8 + $0xac4] ss:$16 sps:$4 sm:$0xff]   ;;  %v6684_v15 = vld [vmem:[#allocation8 + $0x8c0] ss:$16 sps:$4 sm:$0xff]  }
 0x19c   :  { %4539 = vmatprep.subr.bf16.mxu1 %v6653_v16  ;;  %v6687_v16 = vld [vmem:[#allocation8 + $0xac0] ss:$16 sps:$4 sm:$0xff]  }
 0x19e   :  { %4499 = vmatpush2.bf16.msra.mxu0 %v6648_v17 }
 0x19f   :  { %4540 = vmatpush2.bf16.msra.mxu1 %v6651_v18  ;;  %4500 = vmatprep.subr.bf16.mxu0 %v6656_v19  ;;  %v7781_v29 = vpop.f32.mrf.mxu0  ;;  %v6692_v19 = vld [vmem:[#allocation8 + $0x8a4] ss:$16 sps:$4 sm:$0xff]  }
 0x1a0   :  { %4541 = vmatprep.subr.bf16.mxu1 %v6659_v20  ;;  %v7783_v30 = vpop.f32.mrf.mxu1  ;;  %v6695_v20 = vld [vmem:[#allocation8 + $0xaa4] ss:$16 sps:$4 sm:$0xff]  }
 0x1a1   :  { %v1140_v32 = vpop.f32.mrf.mxu0 }
 0x1a2   :  { %v1181_v33 = vpop.f32.mrf.mxu1  ;;  %4501 = vmatpush2.bf16.msra.mxu0 %v6654_v21  ;;  %v1141_v57 = vadd.f32 %v1140_v32, %v326_v49  ;;  %v6690_v21 = vld [vmem:[#allocation8 + $0x8a0] ss:$16 sps:$4 sm:$0xff]  }
 0x1a3   :  { %4542 = vmatpush2.bf16.msra.mxu1 %v6657_v22  ;;  %4502 = vmatprep.subr.bf16.mxu0 %v6662_v23  ;;  %v1142_v41 = vpop.f32.mrf.mxu0  ;;  %v1182_v58 = vadd.f32 %v1181_v33, %v334_v50  ;;  %v6693_v22 = vld [vmem:[#allocation8 + $0xaa0] ss:$16 sps:$4 sm:$0xff]   ;;  %v6698_v23 = vld [vmem:[#allocation8 + $0x884] ss:$16 sps:$4 sm:$0xff]   ;;  %v338_v33 = vrot.slane %v7779_v28, %v305_v24 }
 0x1a4   :  { %4543 = vmatprep.subr.bf16.mxu1 %v6665_v25  ;;  %v1183_v48 = vpop.f32.mrf.mxu1  ;;  %v1277_v7 = vmax.f32 %v1141_v57, 0.0  ;;  %v6701_v25 = vld [vmem:[#allocation8 + $0xa84] ss:$16 sps:$4 sm:$0xff]   ;;  %v6699_v32 = vld [vmem:[#allocation8 + $0xa80] ss:$16 sps:$4 sm:$0xff]  }
 0x1a5   :  { %v1143_v52 = vpop.f32.mrf.mxu0  ;;  %v1279_v36 = vmax.f32 %v1182_v58, 0.0  ;;  %v6702_v41 = vld [vmem:[#allocation8 + $0x860] ss:$16 sps:$4 sm:$0xff]   ;;  %v6716_v57 = vld [vmem:[#allocation8 + $0x824] ss:$16 sps:$4 sm:$0xff]  }
 0x1a6   :  { %v1184_v53 = vpop.f32.mrf.mxu1  ;;  %4503 = vmatpush2.bf16.msra.mxu0 %v6660_v34  ;;  %v7801_v17 = vpack.c.bf16 %v1277_v7, %v1277_v7  ;;  %v346_v34 = vrot.slane %v7779_v28, %v313_v0  ;;  %v6705_v0 = vld [vmem:[#allocation8 + $0xa60] ss:$16 sps:$4 sm:$0xff]   ;;  %v6713_v52 = vld [vmem:[#allocation8 + $0xa44] ss:$16 sps:$4 sm:$0xff]  }
 0x1a7   :  { %4544 = vmatpush2.bf16.msra.mxu1 %v6663_v35  ;;  %4504 = vmatprep.subr.bf16.mxu0 %v6668_v39  ;;  %v7803_v18 = vpack.c.bf16 %v1279_v36, %v1279_v36  ;;  %v6704_v35 = vld [vmem:[#allocation8 + $0x864] ss:$16 sps:$4 sm:$0xff]   ;;  %v6726_v7 = vld [vmem:[#allocation8 + $0x9e0] ss:$16 sps:$4 sm:$0xff]  }
 0x1a8   :  { %4545 = vmatprep.subr.bf16.mxu1 %v6671_v40  ;;  %v6719_v58 = vld [vmem:[#allocation8 + $0xa24] ss:$16 sps:$4 sm:$0xff]   ;;  %v6729_v36 = vld [vmem:[#allocation8 + $0xbe0] ss:$16 sps:$4 sm:$0xff]  }
 0x1aa   :  { %4505 = vmatpush2.bf16.msra.mxu0 %v6666_v54 }
 0x1ab   :  { %4546 = vmatpush2.bf16.msra.mxu1 %v6669_v43  ;;  %4506 = vmatprep.subr.bf16.mxu0 %v6674_v56  ;;  %v6708_v43 = vld [vmem:[#allocation8 + $0x840] ss:$16 sps:$4 sm:$0xff]  }
 0x1ac   :  { %4547 = vmatprep.subr.bf16.mxu1 %v6677_v5 }
 0x1ae   :  { %4507 = vmatpush2.bf16.msra.mxu0 %v6672_v62  ;;  %v6717_v62 = vld [vmem:[#allocation8 + $0xa20] ss:$16 sps:$4 sm:$0xff]  }
 0x1af   :  { %4548 = vmatpush2.bf16.msra.mxu1 %v6675_v63  ;;  %4558 = vmatprep.subr.bf16.mxu0 %v6680_v1  ;;  %v6722_v63 = vld [vmem:[#allocation8 + $0x804] ss:$16 sps:$4 sm:$0xff]   ;;  %v6720_v1 = vld [vmem:[#allocation8 + $0x800] ss:$16 sps:$4 sm:$0xff]  }
 0x1b0   :  { %4599 = vmatprep.subr.bf16.mxu1 %v6683_v2  ;;  %v6723_v2 = vld [vmem:[#allocation8 + $0xa00] ss:$16 sps:$4 sm:$0xff]  }
 0x1b1   :  { %4509 = vmatmul.mubr.bf16.vlgmr.msra.gmra.mxu0 %v7799_v12 }
 0x1b2   :  { %4550 = vmatmul.mubr.bf16.vlgmr.msra.gmra.mxu1 %v7797_v11  ;;  %4559 = vmatpush1.bf16.msra.mxu0 %v6678_v3  ;;  %v6728_v3 = vld [vmem:[#allocation8 + $0x9e4] ss:$16 sps:$4 sm:$0xff]  }
 0x1b3   :  { %4600 = vmatpush1.bf16.msra.mxu1 %v6681_v6  ;;  %4560 = vmatprep.subr.bf16.mxu0 %v6686_v13  ;;  %v6731_v6 = vld [vmem:[#allocation8 + $0xbe4] ss:$16 sps:$4 sm:$0xff]  }
 0x1b4   :  { %4601 = vmatprep.subr.bf16.mxu1 %v6689_v14  ;;  %4590 = vmatprep.mubr.bf16.mxu0 %v7801_v17  ;;  %v6734_v13 = vld [vmem:[#allocation8 + $0x9c4] ss:$16 sps:$4 sm:$0xff]  }
 0x1b5   :  { %4631 = vmatprep.mubr.bf16.mxu1 %v7803_v18  ;;  %v6737_v14 = vld [vmem:[#allocation8 + $0xbc4] ss:$16 sps:$4 sm:$0xff]  }
 0x1b6   :  { %4561 = vmatpush1.bf16.msra.mxu0 %v6684_v15  ;;  %v6732_v15 = vld [vmem:[#allocation8 + $0x9c0] ss:$16 sps:$4 sm:$0xff]  }
 0x1b7   :  { %4602 = vmatpush1.bf16.msra.mxu1 %v6687_v16  ;;  %4562 = vmatprep.subr.bf16.mxu0 %v6692_v19  ;;  %v6735_v16 = vld [vmem:[#allocation8 + $0xbc0] ss:$16 sps:$4 sm:$0xff]   ;;  %v6740_v19 = vld [vmem:[#allocation8 + $0x9a4] ss:$16 sps:$4 sm:$0xff]  }
 0x1b8   :  { %4603 = vmatprep.subr.bf16.mxu1 %v6695_v20  ;;  %v6743_v20 = vld [vmem:[#allocation8 + $0xba4] ss:$16 sps:$4 sm:$0xff]  }
 0x1ba   :  { %4563 = vmatpush1.bf16.msra.mxu0 %v6690_v21  ;;  %v6738_v21 = vld [vmem:[#allocation8 + $0x9a0] ss:$16 sps:$4 sm:$0xff]  }
 0x1bb   :  { %4604 = vmatpush1.bf16.msra.mxu1 %v6693_v22  ;;  %4564 = vmatprep.subr.bf16.mxu0 %v6698_v23  ;;  %v1220_v39 = vpop.f32.mrf.mxu0  ;;  %v6741_v22 = vld [vmem:[#allocation8 + $0xba0] ss:$16 sps:$4 sm:$0xff]   ;;  %v6746_v23 = vld [vmem:[#allocation8 + $0x984] ss:$16 sps:$4 sm:$0xff]  }
 0x1bc   :  { %4605 = vmatprep.subr.bf16.mxu1 %v6701_v25  ;;  %v1261_v40 = vpop.f32.mrf.mxu1  ;;  %v7815_v48 = vadd.f32 %v1220_v39, %v338_v33  ;;  %v6749_v25 = vld [vmem:[#allocation8 + $0xb84] ss:$16 sps:$4 sm:$0xff]  }
 0x1bd   :  { %v7817_v49 = vadd.f32 %v1261_v40, %v346_v34  ;;  %v7819_v50 = vpop.f32.mrf.mxu0  ;;  %v6752_v33 = vld [vmem:[#allocation8 + $0x964] ss:$16 sps:$4 sm:$0xff]  }
 0x1be   :  { %v7821_v24 = vpop.f32.mrf.mxu1  ;;  %4565 = vmatpush1.bf16.msra.mxu0 %v6696_v31  ;;  %v6744_v31 = vld [vmem:[#allocation8 + $0x980] ss:$16 sps:$4 sm:$0xff]   ;;  %v6755_v34 = vld [vmem:[#allocation8 + $0xb64] ss:$16 sps:$4 sm:$0xff]  }
 0x1bf   :  { %4606 = vmatpush1.bf16.msra.mxu1 %v6699_v32  ;;  %4566 = vmatprep.subr.bf16.mxu0 %v6704_v35  ;;  %v1224_v53 = vpop.f32.mrf.mxu0  ;;  %v6747_v32 = vld [vmem:[#allocation8 + $0xb80] ss:$16 sps:$4 sm:$0xff]   ;;  %v6758_v39 = vld [vmem:[#allocation8 + $0x944] ss:$16 sps:$4 sm:$0xff]  }
 0x1c0   :  { %4607 = vmatprep.subr.bf16.mxu1 %v6707_v38  ;;  %v1265_v54 = vpop.f32.mrf.mxu1  ;;  %v6750_v35 = vld [vmem:[#allocation8 + $0x960] ss:$16 sps:$4 sm:$0xff]   ;;  %v6761_v40 = vld [vmem:[#allocation8 + $0xb44] ss:$16 sps:$4 sm:$0xff]  }
 0x1c1   :  { %v1225_v56 = vpop.f32.mrf.mxu0  ;;  %v6753_v38 = vld [vmem:[#allocation8 + $0xb60] ss:$16 sps:$4 sm:$0xff]   ;;  %v6764_v53 = vld [vmem:[#allocation8 + $0x924] ss:$16 sps:$4 sm:$0xff]  }
 0x1c2   :  { %v1266_v5 = vpop.f32.mrf.mxu1  ;;  %4567 = vmatpush1.bf16.msra.mxu0 %v6702_v41  ;;  %v6756_v41 = vld [vmem:[#allocation8 + $0x940] ss:$16 sps:$4 sm:$0xff]   ;;  %v6767_v54 = vld [vmem:[#allocation8 + $0xb24] ss:$16 sps:$4 sm:$0xff]  }
 0x1c3   :  { %4608 = vmatpush1.bf16.msra.mxu1 %v6705_v0  ;;  %4568 = vmatprep.subr.bf16.mxu0 %v6710_v51  ;;  %v6759_v0 = vld [vmem:[#allocation8 + $0xb40] ss:$16 sps:$4 sm:$0xff]   ;;  %v322_v51 = vrot.slane %v7779_v28, %v7728_v44 }
 0x1c4   :  { %4609 = vmatprep.subr.bf16.mxu1 %v6713_v52  ;;  %v330_v52 = vrot.slane %v7779_v28, %v7731_v45  ;;  %v6762_v56 = vld [vmem:[#allocation8 + $0x920] ss:$16 sps:$4 sm:$0xff]  }
 0x1c5   :  { %v6765_v5 = vld [vmem:[#allocation8 + $0xb20] ss:$16 sps:$4 sm:$0xff]  }
 0x1c6   :  { %4569 = vmatpush1.bf16.msra.mxu0 %v6708_v43  ;;  %v342_v43 = vrot.slane %v7779_v28, %v309_v26 }
 0x1c7   :  { %4610 = vmatpush1.bf16.msra.mxu1 %v6711_v55  ;;  %4570 = vmatprep.subr.bf16.mxu0 %v6716_v57  ;;  %v350_v55 = vrot.slane %v7779_v28, %v317_v27  ;;  %v1139_v57 = vadd.f32 %v7781_v29, %v322_v51  ;;  %v6771_v27 = vld [vmem:[#allocation8 + $0xb00] ss:$16 sps:$4 sm:$0xff]   ;;  %v6779_v29 = vld [vmem:[#allocation8 + $0xee4] ss:$16 sps:$4 sm:$0xff]  }
 0x1c8   :  { %4611 = vmatprep.subr.bf16.mxu1 %v6719_v58  ;;  %v1180_v58 = vadd.f32 %v7783_v30, %v330_v52  ;;  %v6812_v51 = vld [vmem:[#allocation8 + $0xc24] ss:$16 sps:$4 sm:$0xff]  }
 0x1c9   :  { %v1264_v26 = vadd.f32 %v7821_v24, %v350_v55  ;;  %v1276_v28 = vmax.f32 %v1139_v57, 0.0  ;;  %v6782_v24 = vld [vmem:[#allocation8 + $0xcc4] ss:$16 sps:$4 sm:$0xff]  }
 0x1ca   :  { %4571 = vmatpush1.bf16.msra.mxu0 %v6714_v61  ;;  %v6770_v61 = vld [vmem:[#allocation8 + $0x904] ss:$16 sps:$4 sm:$0xff]  }
 0x1cb   :  { %4612 = vmatpush1.bf16.msra.mxu1 %v6717_v62  ;;  %4572 = vmatprep.subr.bf16.mxu0 %v6722_v63  ;;  %v6773_v62 = vld [vmem:[#allocation8 + $0xb04] ss:$16 sps:$4 sm:$0xff]   ;;  %v1223_v63 = vadd.f32 %v7819_v50, %v342_v43  ;;  %v1283_v30 = vmax.f32 %v1264_v26, 0.0 }
 0x1cc   :  { %4613 = vmatprep.subr.bf16.mxu1 %v6725_v37  ;;  %v1278_v37 = vmax.f32 %v1180_v58, 0.0  ;;  %v6815_v52 = vld [vmem:[#allocation8 + $0xe24] ss:$16 sps:$4 sm:$0xff]  }
 0x1cd   :  { %v6818_v43 = vld [vmem:[#allocation8 + $0xc04] ss:$16 sps:$4 sm:$0xff]  }
 0x1ce   :  { %4573 = vmatpush1.bf16.msra.mxu0 %v6720_v1  ;;  %v6776_v1 = vld [vmem:[#allocation8 + $0xce4] ss:$16 sps:$4 sm:$0xff]   ;;  %v7839_v50 = vpack.c.bf16 %v1278_v37, %v1278_v37 }
 0x1cf   :  { %4614 = vmatpush1.bf16.msra.mxu1 %v6723_v2  ;;  %4574 = vmatprep.subr.bf16.mxu0 %v6728_v3  ;;  %v1281_v2 = vmax.f32 %v1223_v63, 0.0  ;;  %v6774_v3 = vld [vmem:[#allocation8 + $0xce0] ss:$16 sps:$4 sm:$0xff]   ;;  %v6821_v55 = vld [vmem:[#allocation8 + $0xe04] ss:$16 sps:$4 sm:$0xff]  }
 0x1d0   :  { %4615 = vmatprep.subr.bf16.mxu1 %v6731_v6  ;;  %v6777_v6 = vld [vmem:[#allocation8 + $0xee0] ss:$16 sps:$4 sm:$0xff]   ;;  %v6824_v57 = vld [vmem:[#allocation8 + $0xde4] ss:$16 sps:$4 sm:$0xff]  }
 0x1d1   :  { %v6827_v58 = vld [vmem:[#allocation8 + $0xfe4] ss:$16 sps:$4 sm:$0xff]  }
 0x1d2   :  { %4575 = vmatpush2.bf16.msra.mxu0 %v6726_v7  ;;  %v7837_v7 = vpack.c.bf16 %v1276_v28, %v1276_v28  ;;  %v6830_v63 = vld [vmem:[#allocation8 + $0xdc4] ss:$16 sps:$4 sm:$0xff]  }
 0x1d3   :  { %4616 = vmatpush2.bf16.msra.mxu1 %v6729_v36  ;;  %4576 = vmatprep.subr.bf16.mxu0 %v6734_v13  ;;  %v6785_v36 = vld [vmem:[#allocation8 + $0xec4] ss:$16 sps:$4 sm:$0xff]   ;;  %v7841_v13 = vpack.c.bf16 %v1281_v2, %v1281_v2 }
 0x1d4   :  { %4617 = vmatprep.subr.bf16.mxu1 %v6737_v14  ;;  %v7843_v14 = vpack.c.bf16 %v1283_v30, %v1283_v30  ;;  %v6833_v26 = vld [vmem:[#allocation8 + $0xfc4] ss:$16 sps:$4 sm:$0xff]  }
 0x1d5   :  { %v6836_v28 = vld [vmem:[#allocation8 + $0xda4] ss:$16 sps:$4 sm:$0xff]  }
 0x1d6   :  { %4577 = vmatpush2.bf16.msra.mxu0 %v6732_v15  ;;  %v6780_v15 = vld [vmem:[#allocation8 + $0xcc0] ss:$16 sps:$4 sm:$0xff]   ;;  %v6839_v37 = vld [vmem:[#allocation8 + $0xfa4] ss:$16 sps:$4 sm:$0xff]  }
 0x1d7   :  { %4618 = vmatpush2.bf16.msra.mxu1 %v6735_v16  ;;  %4578 = vmatprep.subr.bf16.mxu0 %v6740_v19  ;;  %v6783_v16 = vld [vmem:[#allocation8 + $0xec0] ss:$16 sps:$4 sm:$0xff]   ;;  %v6788_v19 = vld [vmem:[#allocation8 + $0xca4] ss:$16 sps:$4 sm:$0xff]  }
 0x1d8   :  { %4619 = vmatprep.subr.bf16.mxu1 %v6743_v20  ;;  %v6791_v20 = vld [vmem:[#allocation8 + $0xea4] ss:$16 sps:$4 sm:$0xff]  }
 0x1d9   :  { %v6842_v2 = vld [vmem:[#allocation8 + $0xd84] ss:$16 sps:$4 sm:$0xff]  }
 0x1da   :  { %4579 = vmatpush2.bf16.msra.mxu0 %v6738_v21  ;;  %v6786_v21 = vld [vmem:[#allocation8 + $0xca0] ss:$16 sps:$4 sm:$0xff]   ;;  %v6845_v30 = vld [vmem:[#allocation8 + $0xf84] ss:$16 sps:$4 sm:$0xff]  }
 0x1db   :  { %4620 = vmatpush2.bf16.msra.mxu1 %v6741_v22  ;;  %4580 = vmatprep.subr.bf16.mxu0 %v6746_v23  ;;  %v6789_v22 = vld [vmem:[#allocation8 + $0xea0] ss:$16 sps:$4 sm:$0xff]   ;;  %v6794_v23 = vld [vmem:[#allocation8 + $0xc84] ss:$16 sps:$4 sm:$0xff]  }
 0x1dc   :  { %4621 = vmatprep.subr.bf16.mxu1 %v6749_v25  ;;  %v6797_v25 = vld [vmem:[#allocation8 + $0xe84] ss:$16 sps:$4 sm:$0xff]  }
 0x1de   :  { %4581 = vmatpush2.bf16.msra.mxu0 %v6744_v31  ;;  %v6792_v31 = vld [vmem:[#allocation8 + $0xc80] ss:$16 sps:$4 sm:$0xff]  }
 0x1df   :  { %4622 = vmatpush2.bf16.msra.mxu1 %v6747_v32  ;;  %4582 = vmatprep.subr.bf16.mxu0 %v6752_v33  ;;  %v6795_v32 = vld [vmem:[#allocation8 + $0xe80] ss:$16 sps:$4 sm:$0xff]   ;;  %v6800_v33 = vld [vmem:[#allocation8 + $0xc64] ss:$16 sps:$4 sm:$0xff]  }
 0x1e0   :  { %4623 = vmatprep.subr.bf16.mxu1 %v6755_v34  ;;  %v6803_v34 = vld [vmem:[#allocation8 + $0xe64] ss:$16 sps:$4 sm:$0xff]  }
 0x1e2   :  { %4583 = vmatpush2.bf16.msra.mxu0 %v6750_v35  ;;  %v6798_v35 = vld [vmem:[#allocation8 + $0xc60] ss:$16 sps:$4 sm:$0xff]  }
 0x1e3   :  { %4624 = vmatpush2.bf16.msra.mxu1 %v6753_v38  ;;  %4584 = vmatprep.subr.bf16.mxu0 %v6758_v39  ;;  %v6801_v38 = vld [vmem:[#allocation8 + $0xe60] ss:$16 sps:$4 sm:$0xff]   ;;  %v6806_v39 = vld [vmem:[#allocation8 + $0xc44] ss:$16 sps:$4 sm:$0xff]  }
 0x1e4   :  { %4625 = vmatprep.subr.bf16.mxu1 %v6761_v40  ;;  %v6809_v40 = vld [vmem:[#allocation8 + $0xe44] ss:$16 sps:$4 sm:$0xff]  }
 0x1e6   :  { %4585 = vmatpush2.bf16.msra.mxu0 %v6756_v41  ;;  %v6804_v41 = vld [vmem:[#allocation8 + $0xc40] ss:$16 sps:$4 sm:$0xff]  }
 0x1e7   :  { %4626 = vmatpush2.bf16.msra.mxu1 %v6759_v0  ;;  %4586 = vmatprep.subr.bf16.mxu0 %v6764_v53  ;;  %v6807_v0 = vld [vmem:[#allocation8 + $0xe40] ss:$16 sps:$4 sm:$0xff]  }
 0x1e8   :  { %4627 = vmatprep.subr.bf16.mxu1 %v6767_v54  ;;  %v6810_v53 = vld [vmem:[#allocation8 + $0xc20] ss:$16 sps:$4 sm:$0xff]  }
 0x1e9   :  { %v6813_v54 = vld [vmem:[#allocation8 + $0xe20] ss:$16 sps:$4 sm:$0xff]  }
 0x1ea   :  { %4587 = vmatpush2.bf16.msra.mxu0 %v6762_v56  ;;  %v6816_v56 = vld [vmem:[#allocation8 + $0xc00] ss:$16 sps:$4 sm:$0xff]  }
 0x1eb   :  { %4628 = vmatpush2.bf16.msra.mxu1 %v6765_v5  ;;  %4588 = vmatprep.subr.bf16.mxu0 %v6770_v61  ;;  %v6819_v5 = vld [vmem:[#allocation8 + $0xe00] ss:$16 sps:$4 sm:$0xff]  }
 0x1ec   :  { %4629 = vmatprep.subr.bf16.mxu1 %v6773_v62  ;;  %v6822_v61 = vld [vmem:[#allocation8 + $0xde0] ss:$16 sps:$4 sm:$0xff]  }
 0x1ed   :  { %v6825_v62 = vld [vmem:[#allocation8 + $0xfe0] ss:$16 sps:$4 sm:$0xff]  }
 0x1ee   :  { %4589 = vmatpush2.bf16.msra.mxu0 %v6768_v42  ;;  %v6828_v42 = vld [vmem:[#allocation8 + $0xdc0] ss:$16 sps:$4 sm:$0xff]  }
 0x1ef   :  { %4630 = vmatpush2.bf16.msra.mxu1 %v6771_v27  ;;  %4640 = vmatprep.subr.bf16.mxu0 %v6776_v1  ;;  %v6831_v27 = vld [vmem:[#allocation8 + $0xfc0] ss:$16 sps:$4 sm:$0xff]  }
 0x1f0   :  { %4681 = vmatprep.subr.bf16.mxu1 %v6779_v29  ;;  %v6834_v1 = vld [vmem:[#allocation8 + $0xda0] ss:$16 sps:$4 sm:$0xff]  }
 0x1f1   :  { %4591 = vmatmul.mubr.bf16.vlgmr.msra.gmra.mxu0 %v7837_v7  ;;  %v6837_v29 = vld [vmem:[#allocation8 + $0xfa0] ss:$16 sps:$4 sm:$0xff]  }
 0x1f2   :  { %4632 = vmatmul.mubr.bf16.vlgmr.msra.gmra.mxu1 %v7839_v50  ;;  %4641 = vmatpush1.bf16.msra.mxu0 %v6774_v3  ;;  %v6840_v3 = vld [vmem:[#allocation8 + $0xd80] ss:$16 sps:$4 sm:$0xff]  }
 0x1f3   :  { %4682 = vmatpush1.bf16.msra.mxu1 %v6777_v6  ;;  %4642 = vmatprep.subr.bf16.mxu0 %v6782_v24  ;;  %v6843_v6 = vld [vmem:[#allocation8 + $0xf80] ss:$16 sps:$4 sm:$0xff]   ;;  %v6848_v24 = vld [vmem:[#allocation8 + $0xd64] ss:$16 sps:$4 sm:$0xff]  }
 0x1f4   :  { %4683 = vmatprep.subr.bf16.mxu1 %v6785_v36  ;;  %4672 = vmatprep.mubr.bf16.mxu0 %v7841_v13  ;;  %v6851_v36 = vld [vmem:[#allocation8 + $0xf64] ss:$16 sps:$4 sm:$0xff]  }
 0x1f5   :  { %4713 = vmatprep.mubr.bf16.mxu1 %v7843_v14 }
 0x1f6   :  { %4643 = vmatpush1.bf16.msra.mxu0 %v6780_v15  ;;  %v6846_v15 = vld [vmem:[#allocation8 + $0xd60] ss:$16 sps:$4 sm:$0xff]  }
 0x1f7   :  { %4684 = vmatpush1.bf16.msra.mxu1 %v6783_v16  ;;  %4644 = vmatprep.subr.bf16.mxu0 %v6788_v19  ;;  %v6849_v16 = vld [vmem:[#allocation8 + $0xf60] ss:$16 sps:$4 sm:$0xff]   ;;  %v6854_v19 = vld [vmem:[#allocation8 + $0xd44] ss:$16 sps:$4 sm:$0xff]  }
 0x1f8   :  { %4685 = vmatprep.subr.bf16.mxu1 %v6791_v20  ;;  %v6857_v20 = vld [vmem:[#allocation8 + $0xf44] ss:$16 sps:$4 sm:$0xff]  }
 0x1fa   :  { %4645 = vmatpush1.bf16.msra.mxu0 %v6786_v21  ;;  %v6852_v21 = vld [vmem:[#allocation8 + $0xd40] ss:$16 sps:$4 sm:$0xff]  }
 0x1fb   :  { %4686 = vmatpush1.bf16.msra.mxu1 %v6789_v22  ;;  %4646 = vmatprep.subr.bf16.mxu0 %v6794_v23  ;;  %v6855_v22 = vld [vmem:[#allocation8 + $0xf40] ss:$16 sps:$4 sm:$0xff]   ;;  %v6860_v23 = vld [vmem:[#allocation8 + $0xd24] ss:$16 sps:$4 sm:$0xff]  }
 0x1fc   :  { %4687 = vmatprep.subr.bf16.mxu1 %v6797_v25  ;;  %v6863_v25 = vld [vmem:[#allocation8 + $0xf24] ss:$16 sps:$4 sm:$0xff]  }
 0x1fe   :  { %4647 = vmatpush1.bf16.msra.mxu0 %v6792_v31  ;;  %v6858_v31 = vld [vmem:[#allocation8 + $0xd20] ss:$16 sps:$4 sm:$0xff]  }
 0x1ff   :  { %4688 = vmatpush1.bf16.msra.mxu1 %v6795_v32  ;;  %4648 = vmatprep.subr.bf16.mxu0 %v6800_v33  ;;  %v6861_v32 = vld [vmem:[#allocation8 + $0xf20] ss:$16 sps:$4 sm:$0xff]   ;;  %v6866_v33 = vld [vmem:[#allocation8 + $0xd04] ss:$16 sps:$4 sm:$0xff]  }
 0x200   :  { %4689 = vmatprep.subr.bf16.mxu1 %v6803_v34  ;;  %v6869_v34 = vld [vmem:[#allocation8 + $0xf04] ss:$16 sps:$4 sm:$0xff]  }
 0x202   :  { %4649 = vmatpush1.bf16.msra.mxu0 %v6798_v35  ;;  %v6864_v35 = vld [vmem:[#allocation8 + $0xd00] ss:$16 sps:$4 sm:$0xff]  }
 0x203   :  { %4690 = vmatpush1.bf16.msra.mxu1 %v6801_v38  ;;  %4650 = vmatprep.subr.bf16.mxu0 %v6806_v39  ;;  %v6867_v38 = vld [vmem:[#allocation8 + $0xf00] ss:$16 sps:$4 sm:$0xff]   ;;  %v6872_v39 = vld [vmem:[#allocation8 + $0xec] ss:$16 sps:$4 sm:$0xff]  }
 0x204   :  { %4691 = vmatprep.subr.bf16.mxu1 %v6809_v40  ;;  %v1280_v40 = vmax.f32 %v7815_v48, 0.0 }
 0x206   :  { %4651 = vmatpush1.bf16.msra.mxu0 %v6804_v41  ;;  %v1282_v41 = vmax.f32 %v7817_v49, 0.0  ;;  %v6881_v49 = vld [vmem:[#allocation8 + $0x2cc] ss:$16 sps:$4 sm:$0xff]  }
 0x207   :  { %4692 = vmatpush1.bf16.msra.mxu1 %v6807_v0  ;;  %4652 = vmatprep.subr.bf16.mxu0 %v6812_v51  ;;  %v6875_v0 = vld [vmem:[#allocation8 + $0x2ec] ss:$16 sps:$4 sm:$0xff]   ;;  %v1812_v51 = vld [vmem:[#allocation10] sm:$0xf] }
 0x208   :  { %4693 = vmatprep.subr.bf16.mxu1 %v6815_v52  ;;  %v6870_v52 = vld [vmem:[#allocation8 + $0xe8] ss:$16 sps:$4 sm:$0xff]   ;;  %v1821_v48 = vrot.slane %v1812_v51, %v7734_v46  ;;  %v6884_v46 = vld [vmem:[#allocation8 + $0xac] ss:$16 sps:$4 sm:$0xff]  }
 0x20a   :  { %4653 = vmatpush1.bf16.msra.mxu0 %v6810_v53  ;;  %v1817_v53 = vrot.slane %v1812_v51, %v7728_v44  ;;  %v6876_v44 = vld [vmem:[#allocation8 + $0xc8] ss:$16 sps:$4 sm:$0xff]  }
 0x20b   :  { %4694 = vmatpush1.bf16.msra.mxu1 %v6813_v54  ;;  %4654 = vmatprep.subr.bf16.mxu0 %v6818_v43  ;;  %v7852_v54 = vpack.c.bf16 %v1280_v40, %v1280_v40  ;;  %v7854_v43 = vpack.c.bf16 %v1282_v41, %v1282_v41  ;;  %v6920_v40 = vld [vmem:[#allocation8 + $0x1ec] ss:$16 sps:$4 sm:$0xff]   ;;  %v6921_v51 = vld [vmem:[#allocation8 + $0x3e8] ss:$16 sps:$4 sm:$0xff]  }
 0x20c   :  { %4695 = vmatprep.subr.bf16.mxu1 %v6821_v55  ;;  %v6873_v55 = vld [vmem:[#allocation8 + $0x2e8] ss:$16 sps:$4 sm:$0xff]   ;;  %v6923_v41 = vld [vmem:[#allocation8 + $0x3ec] ss:$16 sps:$4 sm:$0xff]  }
 0x20e   :  { %4655 = vmatpush1.bf16.msra.mxu0 %v6816_v56  ;;  %v6878_v56 = vld [vmem:[#allocation8 + $0xcc] ss:$16 sps:$4 sm:$0xff]  }
 0x20f   :  { %4696 = vmatpush1.bf16.msra.mxu1 %v6819_v5  ;;  %4656 = vmatprep.subr.bf16.mxu0 %v6824_v57 }
 0x210   :  { %4697 = vmatprep.subr.bf16.mxu1 %v6827_v58 }
 0x212   :  { %4657 = vmatpush2.bf16.msra.mxu0 %v6822_v61 }
 0x213   :  { %4698 = vmatpush2.bf16.msra.mxu1 %v6825_v62  ;;  %4658 = vmatprep.subr.bf16.mxu0 %v6830_v63  ;;  %v6879_v63 = vld [vmem:[#allocation8 + $0x2c8] ss:$16 sps:$4 sm:$0xff]  }
 0x214   :  { %4699 = vmatprep.subr.bf16.mxu1 %v6833_v26 }
 0x216   :  { %4659 = vmatpush2.bf16.msra.mxu0 %v6828_v42 }
 0x217   :  { %4700 = vmatpush2.bf16.msra.mxu1 %v6831_v27  ;;  %4660 = vmatprep.subr.bf16.mxu0 %v6836_v28  ;;  %v6887_v27 = vld [vmem:[#allocation8 + $0x2ac] ss:$16 sps:$4 sm:$0xff]  }
 0x218   :  { %4701 = vmatprep.subr.bf16.mxu1 %v6839_v37 }
 0x21a   :  { %4661 = vmatpush2.bf16.msra.mxu0 %v6834_v1 }
 0x21b   :  { %4702 = vmatpush2.bf16.msra.mxu1 %v6837_v29  ;;  %4662 = vmatprep.subr.bf16.mxu0 %v6842_v2 }
 0x21c   :  { %4703 = vmatprep.subr.bf16.mxu1 %v6845_v30  ;;  %v6890_v30 = vld [vmem:[#allocation8 + $0x8c] ss:$16 sps:$4 sm:$0xff]  }
 0x21e   :  { %4663 = vmatpush2.bf16.msra.mxu0 %v6840_v3  ;;  %v6893_v3 = vld [vmem:[#allocation8 + $0x28c] ss:$16 sps:$4 sm:$0xff]  }
 0x21f   :  { %4704 = vmatpush2.bf16.msra.mxu1 %v6843_v6  ;;  %4664 = vmatprep.subr.bf16.mxu0 %v6848_v24  ;;  %v6888_v6 = vld [vmem:[#allocation8 + $0x88] ss:$16 sps:$4 sm:$0xff]  }
 0x220   :  { %4705 = vmatprep.subr.bf16.mxu1 %v6851_v36  ;;  %v6891_v24 = vld [vmem:[#allocation8 + $0x288] ss:$16 sps:$4 sm:$0xff]   ;;  %v6896_v36 = vld [vmem:[#allocation8 + $0x6c] ss:$16 sps:$4 sm:$0xff]  }
 0x222   :  { %4665 = vmatpush2.bf16.msra.mxu0 %v6846_v15  ;;  %v6899_v15 = vld [vmem:[#allocation8 + $0x26c] ss:$16 sps:$4 sm:$0xff]  }
 0x223   :  { %4706 = vmatpush2.bf16.msra.mxu1 %v6849_v16  ;;  %4666 = vmatprep.subr.bf16.mxu0 %v6854_v19  ;;  %v6894_v16 = vld [vmem:[#allocation8 + $0x68] ss:$16 sps:$4 sm:$0xff]  }
 0x224   :  { %4707 = vmatprep.subr.bf16.mxu1 %v6857_v20  ;;  %v6897_v19 = vld [vmem:[#allocation8 + $0x268] ss:$16 sps:$4 sm:$0xff]   ;;  %v6902_v20 = vld [vmem:[#allocation8 + $0x4c] ss:$16 sps:$4 sm:$0xff]  }
 0x226   :  { %4667 = vmatpush2.bf16.msra.mxu0 %v6852_v21  ;;  %v6905_v21 = vld [vmem:[#allocation8 + $0x24c] ss:$16 sps:$4 sm:$0xff]  }
 0x227   :  { %4708 = vmatpush2.bf16.msra.mxu1 %v6855_v22  ;;  %4668 = vmatprep.subr.bf16.mxu0 %v6860_v23  ;;  %v6900_v22 = vld [vmem:[#allocation8 + $0x48] ss:$16 sps:$4 sm:$0xff]  }
 0x228   :  { %4709 = vmatprep.subr.bf16.mxu1 %v6863_v25  ;;  %v6903_v23 = vld [vmem:[#allocation8 + $0x248] ss:$16 sps:$4 sm:$0xff]   ;;  %v6908_v25 = vld [vmem:[#allocation8 + $0x2c] ss:$16 sps:$4 sm:$0xff]  }
 0x22a   :  { %4669 = vmatpush2.bf16.msra.mxu0 %v6858_v31  ;;  %v6911_v31 = vld [vmem:[#allocation8 + $0x22c] ss:$16 sps:$4 sm:$0xff]  }
 0x22b   :  { %4710 = vmatpush2.bf16.msra.mxu1 %v6861_v32  ;;  %4670 = vmatprep.subr.bf16.mxu0 %v6866_v33  ;;  %v6906_v32 = vld [vmem:[#allocation8 + $0x28] ss:$16 sps:$4 sm:$0xff]  }
 0x22c   :  { %4711 = vmatprep.subr.bf16.mxu1 %v6869_v34  ;;  %v6909_v33 = vld [vmem:[#allocation8 + $0x228] ss:$16 sps:$4 sm:$0xff]   ;;  %v6914_v34 = vld [vmem:[#allocation8 + $0xc] ss:$16 sps:$4 sm:$0xff]  }
 0x22e   :  { %4671 = vmatpush2.bf16.msra.mxu0 %v6864_v35  ;;  %v6917_v35 = vld [vmem:[#allocation8 + $0x20c] ss:$16 sps:$4 sm:$0xff]  }
 0x22f   :  { %4712 = vmatpush2.bf16.msra.mxu1 %v6867_v38  ;;  %4722 = vmatprep.subr.bf16.mxu0 %v6872_v39  ;;  %v6912_v38 = vld [vmem:[#allocation8 + $0x8] ss:$16 sps:$4 sm:$0xff]  }
 0x230   :  { %4763 = vmatprep.subr.bf16.mxu1 %v6875_v0  ;;  %v6915_v39 = vld [vmem:[#allocation8 + $0x208] ss:$16 sps:$4 sm:$0xff]  }
 0x231   :  { %4673 = vmatmul.mubr.bf16.vlgmr.msra.gmra.mxu0 %v7852_v54  ;;  %v4428_v5 = vpop.f32.mrf.mxu0  ;;  %v6918_v0 = vld [vmem:[#allocation8 + $0x1e8] ss:$16 sps:$4 sm:$0xff]  }
 0x232   :  { %4714 = vmatmul.mubr.bf16.vlgmr.msra.gmra.mxu1 %v7854_v43  ;;  %v4469_v57 = vpop.f32.mrf.mxu1  ;;  %v4429_v58 = vadd.f32 %v4428_v5, %v1817_v53  ;;  %4723 = vmatpush1.bf16.msra.mxu0 %v6870_v52  ;;  %v6926_v52 = vld [vmem:[#allocation8 + $0x1cc] ss:$16 sps:$4 sm:$0xff]   ;;  %v6930_v5 = vld [vmem:[#allocation8 + $0x1a8] ss:$16 sps:$4 sm:$0xff]  }
 0x233   :  { %4754 = vmatprep.mubr.bf16.mxu0 %v7749_v8  ;;  %4764 = vmatpush1.bf16.msra.mxu1 %v6873_v55  ;;  %v4430_v61 = vpop.f32.mrf.mxu0  ;;  %v6882_v8 = vld [vmem:[#allocation8 + $0xa8] ss:$16 sps:$4 sm:$0xff]   ;;  %v6929_v53 = vld [vmem:[#allocation8 + $0x3cc] ss:$16 sps:$4 sm:$0xff]  }
 0x234   :  { %4795 = vmatprep.mubr.bf16.mxu1 %v7751_v9  ;;  %v4471_v62 = vpop.f32.mrf.mxu1  ;;  %v7861_v26 = vadd.f32 %v4469_v57, %v4429_v58  ;;  %v4431_v42 = vadd.f32 %v4430_v61, %v1821_v48  ;;  %4724 = vmatprep.subr.bf16.mxu0 %v6878_v56  ;;  %v6885_v9 = vld [vmem:[#allocation8 + $0x2a8] ss:$16 sps:$4 sm:$0xff]   ;;  %v6932_v56 = vld [vmem:[#allocation8 + $0x1ac] ss:$16 sps:$4 sm:$0xff]  }
 0x235   :  { %4765 = vmatprep.subr.bf16.mxu1 %v6881_v49  ;;  %v4432_v28 = vpop.f32.mrf.mxu0  ;;  %v6924_v55 = vld [vmem:[#allocation8 + $0x1c8] ss:$16 sps:$4 sm:$0xff]   ;;  %v6935_v49 = vld [vmem:[#allocation8 + $0x3ac] ss:$16 sps:$4 sm:$0xff]  }
 0x236   :  { %v4473_v37 = vpop.f32.mrf.mxu1  ;;  %v7863_v1 = vadd.f32 %v4471_v62, %v4431_v42  ;;  %4725 = vmatpush1.bf16.msra.mxu0 %v6876_v44  ;;  %v6927_v48 = vld [vmem:[#allocation8 + $0x3c8] ss:$16 sps:$4 sm:$0xff]   ;;  %v6938_v58 = vld [vmem:[#allocation8 + $0x18c] ss:$16 sps:$4 sm:$0xff]  }
 0x237   :  { %4766 = vmatpush1.bf16.msra.mxu1 %v6879_v63  ;;  %v4433_v29 = vpop.f32.mrf.mxu0  ;;  %4726 = vmatprep.subr.bf16.mxu0 %v6884_v46  ;;  %v6933_v57 = vld [vmem:[#allocation8 + $0x3a8] ss:$16 sps:$4 sm:$0xff]   ;;  %v6941_v44 = vld [vmem:[#allocation8 + $0x38c] ss:$16 sps:$4 sm:$0xff]  }
 0x238   :  { %v4474_v2 = vpop.f32.mrf.mxu1  ;;  %4767 = vmatprep.subr.bf16.mxu1 %v6887_v27  ;;  %v6936_v61 = vld [vmem:[#allocation8 + $0x188] ss:$16 sps:$4 sm:$0xff]   ;;  %v6944_v63 = vld [vmem:[#allocation8 + $0x16c] ss:$16 sps:$4 sm:$0xff]  }
 0x239   :  { %v6939_v62 = vld [vmem:[#allocation8 + $0x388] ss:$16 sps:$4 sm:$0xff]   ;;  %v6947_v46 = vld [vmem:[#allocation8 + $0x36c] ss:$16 sps:$4 sm:$0xff]  }
 0x23a   :  { %4727 = vmatpush1.bf16.msra.mxu0 %v6882_v8  ;;  %v6942_v42 = vld [vmem:[#allocation8 + $0x168] ss:$16 sps:$4 sm:$0xff]   ;;  %v6950_v28 = vld [vmem:[#allocation8 + $0x14c] ss:$16 sps:$4 sm:$0xff]  }
 0x23b   :  { %4768 = vmatpush1.bf16.msra.mxu1 %v6885_v9  ;;  %4728 = vmatprep.subr.bf16.mxu0 %v6890_v30  ;;  %v6945_v27 = vld [vmem:[#allocation8 + $0x368] ss:$16 sps:$4 sm:$0xff]   ;;  %v6953_v37 = vld [vmem:[#allocation8 + $0x34c] ss:$16 sps:$4 sm:$0xff]  }
 0x23c   :  { %4769 = vmatprep.subr.bf16.mxu1 %v6893_v3  ;;  %v6948_v8 = vld [vmem:[#allocation8 + $0x148] ss:$16 sps:$4 sm:$0xff]   ;;  %v6956_v2 = vld [vmem:[#allocation8 + $0x12c] ss:$16 sps:$4 sm:$0xff]  }
 0x23d   :  { %v6951_v29 = vld [vmem:[#allocation8 + $0x348] ss:$16 sps:$4 sm:$0xff]   ;;  %v6959_v9 = vld [vmem:[#allocation8 + $0x32c] ss:$16 sps:$4 sm:$0xff]  }
 0x23e   :  { %4729 = vmatpush1.bf16.msra.mxu0 %v6888_v6  ;;  %v6954_v30 = vld [vmem:[#allocation8 + $0x128] ss:$16 sps:$4 sm:$0xff]   ;;  %v6962_v6 = vld [vmem:[#allocation8 + $0x10c] ss:$16 sps:$4 sm:$0xff]  }
 0x23f   :  { %4770 = vmatpush1.bf16.msra.mxu1 %v6891_v24  ;;  %4730 = vmatprep.subr.bf16.mxu0 %v6896_v36  ;;  %v6957_v3 = vld [vmem:[#allocation8 + $0x328] ss:$16 sps:$4 sm:$0xff]   ;;  %v6965_v24 = vld [vmem:[#allocation8 + $0x30c] ss:$16 sps:$4 sm:$0xff]  }
 0x240   :  { %4771 = vmatprep.subr.bf16.mxu1 %v6899_v15  ;;  %v6960_v36 = vld [vmem:[#allocation8 + $0x108] ss:$16 sps:$4 sm:$0xff]  }
 0x241   :  { %v6963_v15 = vld [vmem:[#allocation8 + $0x308] ss:$16 sps:$4 sm:$0xff]  }
 0x242   :  { %4731 = vmatpush1.bf16.msra.mxu0 %v6894_v16  ;;  %v6968_v16 = vld [vmem:[#allocation8 + $0x4ec] ss:$16 sps:$4 sm:$0xff]  }
 0x243   :  { %4772 = vmatpush1.bf16.msra.mxu1 %v6897_v19  ;;  %4732 = vmatprep.subr.bf16.mxu0 %v6902_v20  ;;  %v6971_v19 = vld [vmem:[#allocation8 + $0x6ec] ss:$16 sps:$4 sm:$0xff]   ;;  %v6966_v20 = vld [vmem:[#allocation8 + $0x4e8] ss:$16 sps:$4 sm:$0xff]  }
 0x244   :  { %4773 = vmatprep.subr.bf16.mxu1 %v6905_v21  ;;  %v6969_v21 = vld [vmem:[#allocation8 + $0x6e8] ss:$16 sps:$4 sm:$0xff]  }
 0x246   :  { %4733 = vmatpush1.bf16.msra.mxu0 %v6900_v22  ;;  %v6974_v22 = vld [vmem:[#allocation8 + $0x4cc] ss:$16 sps:$4 sm:$0xff]  }
 0x247   :  { %4774 = vmatpush1.bf16.msra.mxu1 %v6903_v23  ;;  %4734 = vmatprep.subr.bf16.mxu0 %v6908_v25 }
 0x248   :  { %4775 = vmatprep.subr.bf16.mxu1 %v6911_v31  ;;  %v6977_v31 = vld [vmem:[#allocation8 + $0x6cc] ss:$16 sps:$4 sm:$0xff]  }
 0x24a   :  { %4735 = vmatpush1.bf16.msra.mxu0 %v6906_v32 }
 0x24b   :  { %4776 = vmatpush1.bf16.msra.mxu1 %v6909_v33  ;;  %4736 = vmatprep.subr.bf16.mxu0 %v6914_v34  ;;  %v6972_v33 = vld [vmem:[#allocation8 + $0x4c8] ss:$16 sps:$4 sm:$0xff]  }
 0x24c   :  { %4777 = vmatprep.subr.bf16.mxu1 %v6917_v35 }
 0x24e   :  { %4737 = vmatpush1.bf16.msra.mxu0 %v6912_v38  ;;  %v6975_v38 = vld [vmem:[#allocation8 + $0x6c8] ss:$16 sps:$4 sm:$0xff]  }
 0x24f   :  { %4778 = vmatpush1.bf16.msra.mxu1 %v6915_v39  ;;  %4738 = vmatprep.subr.bf16.mxu0 %v6920_v40  ;;  %v6980_v39 = vld [vmem:[#allocation8 + $0x4ac] ss:$16 sps:$4 sm:$0xff]  }
 0x250   :  { %4779 = vmatprep.subr.bf16.mxu1 %v6923_v41  ;;  %v6983_v41 = vld [vmem:[#allocation8 + $0x6ac] ss:$16 sps:$4 sm:$0xff]  }
 0x252   :  { %4739 = vmatpush2.bf16.msra.mxu0 %v6918_v0 }
 0x253   :  { %4780 = vmatpush2.bf16.msra.mxu1 %v6921_v51  ;;  %4740 = vmatprep.subr.bf16.mxu0 %v6926_v52 }
 0x254   :  { %4781 = vmatprep.subr.bf16.mxu1 %v6929_v53  ;;  %v6981_v53 = vld [vmem:[#allocation8 + $0x6a8] ss:$16 sps:$4 sm:$0xff]  }
 0x256   :  { %4741 = vmatpush2.bf16.msra.mxu0 %v6924_v55  ;;  %v6986_v55 = vld [vmem:[#allocation8 + $0x48c] ss:$16 sps:$4 sm:$0xff]  }
 0x257   :  { %4782 = vmatpush2.bf16.msra.mxu1 %v6927_v48  ;;  %4742 = vmatprep.subr.bf16.mxu0 %v6932_v56  ;;  %v6989_v48 = vld [vmem:[#allocation8 + $0x68c] ss:$16 sps:$4 sm:$0xff]  }
 0x258   :  { %4783 = vmatprep.subr.bf16.mxu1 %v6935_v49  ;;  %v6992_v56 = vld [vmem:[#allocation8 + $0x46c] ss:$16 sps:$4 sm:$0xff]  }
 0x259   :  { %v6995_v49 = vld [vmem:[#allocation8 + $0x66c] ss:$16 sps:$4 sm:$0xff]  }
 0x25a   :  { %4743 = vmatpush2.bf16.msra.mxu0 %v6930_v5  ;;  %v6990_v5 = vld [vmem:[#allocation8 + $0x468] ss:$16 sps:$4 sm:$0xff]  }
 0x25b   :  { %4784 = vmatpush2.bf16.msra.mxu1 %v6933_v57  ;;  %4744 = vmatprep.subr.bf16.mxu0 %v6938_v58  ;;  %v6993_v57 = vld [vmem:[#allocation8 + $0x668] ss:$16 sps:$4 sm:$0xff]   ;;  %v6998_v58 = vld [vmem:[#allocation8 + $0x44c] ss:$16 sps:$4 sm:$0xff]  }
 0x25c   :  { %4785 = vmatprep.subr.bf16.mxu1 %v6941_v44  ;;  %v7001_v44 = vld [vmem:[#allocation8 + $0x64c] ss:$16 sps:$4 sm:$0xff]  }
 0x25e   :  { %4745 = vmatpush2.bf16.msra.mxu0 %v6936_v61  ;;  %v6996_v61 = vld [vmem:[#allocation8 + $0x448] ss:$16 sps:$4 sm:$0xff]  }
 0x25f   :  { %4786 = vmatpush2.bf16.msra.mxu1 %v6939_v62  ;;  %4746 = vmatprep.subr.bf16.mxu0 %v6944_v63  ;;  %v6999_v62 = vld [vmem:[#allocation8 + $0x648] ss:$16 sps:$4 sm:$0xff]   ;;  %v7004_v63 = vld [vmem:[#allocation8 + $0x42c] ss:$16 sps:$4 sm:$0xff]  }
 0x260   :  { %4787 = vmatprep.subr.bf16.mxu1 %v6947_v46  ;;  %v7007_v46 = vld [vmem:[#allocation8 + $0x62c] ss:$16 sps:$4 sm:$0xff]  }
 0x262   :  { %4747 = vmatpush2.bf16.msra.mxu0 %v6942_v42  ;;  %v7002_v42 = vld [vmem:[#allocation8 + $0x428] ss:$16 sps:$4 sm:$0xff]  }
 0x263   :  { %4788 = vmatpush2.bf16.msra.mxu1 %v6945_v27  ;;  %4748 = vmatprep.subr.bf16.mxu0 %v6950_v28  ;;  %v7005_v27 = vld [vmem:[#allocation8 + $0x628] ss:$16 sps:$4 sm:$0xff]   ;;  %v7010_v28 = vld [vmem:[#allocation8 + $0x40c] ss:$16 sps:$4 sm:$0xff]  }
 0x264   :  { %4789 = vmatprep.subr.bf16.mxu1 %v6953_v37  ;;  %v7013_v37 = vld [vmem:[#allocation8 + $0x60c] ss:$16 sps:$4 sm:$0xff]  }
 0x266   :  { %4749 = vmatpush2.bf16.msra.mxu0 %v6948_v8  ;;  %v7008_v8 = vld [vmem:[#allocation8 + $0x408] ss:$16 sps:$4 sm:$0xff]  }
 0x267   :  { %4790 = vmatpush2.bf16.msra.mxu1 %v6951_v29  ;;  %4750 = vmatprep.subr.bf16.mxu0 %v6956_v2  ;;  %v7011_v29 = vld [vmem:[#allocation8 + $0x608] ss:$16 sps:$4 sm:$0xff]   ;;  %v7016_v2 = vld [vmem:[#allocation8 + $0x5ec] ss:$16 sps:$4 sm:$0xff]  }
 0x268   :  { %4791 = vmatprep.subr.bf16.mxu1 %v6959_v9  ;;  %v7019_v9 = vld [vmem:[#allocation8 + $0x7ec] ss:$16 sps:$4 sm:$0xff]  }
 0x26a   :  { %4751 = vmatpush2.bf16.msra.mxu0 %v6954_v30  ;;  %v7014_v30 = vld [vmem:[#allocation8 + $0x5e8] ss:$16 sps:$4 sm:$0xff]  }
 0x26b   :  { %4792 = vmatpush2.bf16.msra.mxu1 %v6957_v3  ;;  %4752 = vmatprep.subr.bf16.mxu0 %v6962_v6  ;;  %v7017_v3 = vld [vmem:[#allocation8 + $0x7e8] ss:$16 sps:$4 sm:$0xff]   ;;  %v7022_v6 = vld [vmem:[#allocation8 + $0x5cc] ss:$16 sps:$4 sm:$0xff]  }
 0x26c   :  { %4793 = vmatprep.subr.bf16.mxu1 %v6965_v24  ;;  %v7025_v24 = vld [vmem:[#allocation8 + $0x7cc] ss:$16 sps:$4 sm:$0xff]  }
 0x26e   :  { %4753 = vmatpush2.bf16.msra.mxu0 %v6960_v36  ;;  %v7020_v36 = vld [vmem:[#allocation8 + $0x5c8] ss:$16 sps:$4 sm:$0xff]  }
 0x26f   :  { %4794 = vmatpush2.bf16.msra.mxu1 %v6963_v15  ;;  %4804 = vmatprep.subr.bf16.mxu0 %v6968_v16  ;;  %v7023_v15 = vld [vmem:[#allocation8 + $0x7c8] ss:$16 sps:$4 sm:$0xff]   ;;  %v7028_v16 = vld [vmem:[#allocation8 + $0x5ac] ss:$16 sps:$4 sm:$0xff]  }
 0x270   :  { %4845 = vmatprep.subr.bf16.mxu1 %v6971_v19  ;;  %v7031_v19 = vld [vmem:[#allocation8 + $0x7ac] ss:$16 sps:$4 sm:$0xff]  }
 0x271   :  { %v4510_v23 = vpop.f32.mrf.mxu0  ;;  %4755 = vmatmul.mubr.bf16.vlgmr.msra.gmra.mxu0 %v7753_v10 }
 0x272   :  { %v4551_v25 = vpop.f32.mrf.mxu1  ;;  %v4511_v32 = vadd.f32 %v4510_v23, %v7861_v26  ;;  %4796 = vmatmul.mubr.bf16.vlgmr.msra.gmra.mxu1 %v7747_v4  ;;  %4805 = vmatpush1.bf16.msra.mxu0 %v6966_v20  ;;  %v7026_v20 = vld [vmem:[#allocation8 + $0x5a8] ss:$16 sps:$4 sm:$0xff]   ;;  %v7037_v23 = vld [vmem:[#allocation8 + $0x78c] ss:$16 sps:$4 sm:$0xff]  }
 0x273   :  { %4836 = vmatprep.mubr.bf16.mxu0 %v7771_v59  ;;  %4846 = vmatpush1.bf16.msra.mxu1 %v6969_v21  ;;  %v4512_v34 = vpop.f32.mrf.mxu0  ;;  %v6978_v59 = vld [vmem:[#allocation8 + $0x4a8] ss:$16 sps:$4 sm:$0xff]  }
 0x274   :  { %v4553_v35 = vpop.f32.mrf.mxu1  ;;  %v7869_v40 = vadd.f32 %v4551_v25, %v4511_v32  ;;  %4877 = vmatprep.mubr.bf16.mxu1 %v7773_v60  ;;  %v4513_v10 = vadd.f32 %v4512_v34, %v7863_v1  ;;  %4806 = vmatprep.subr.bf16.mxu0 %v6974_v22  ;;  %v6984_v60 = vld [vmem:[#allocation8 + $0x488] ss:$16 sps:$4 sm:$0xff]   ;;  %v7034_v22 = vld [vmem:[#allocation8 + $0x58c] ss:$16 sps:$4 sm:$0xff]  }
 0x275   :  { %v4514_v26 = vpop.f32.mrf.mxu0  ;;  %4847 = vmatprep.subr.bf16.mxu1 %v6977_v31  ;;  %v6987_v1 = vld [vmem:[#allocation8 + $0x688] ss:$16 sps:$4 sm:$0xff]   ;;  %v7040_v32 = vld [vmem:[#allocation8 + $0x56c] ss:$16 sps:$4 sm:$0xff]  }
 0x276   :  { %v4555_v0 = vpop.f32.mrf.mxu1  ;;  %v7873_v4 = vadd.f32 %v4553_v35, %v4513_v10  ;;  %4807 = vmatpush1.bf16.msra.mxu0 %v6972_v33  ;;  %v7029_v21 = vld [vmem:[#allocation8 + $0x7a8] ss:$16 sps:$4 sm:$0xff]   ;;  %v7043_v33 = vld [vmem:[#allocation8 + $0x76c] ss:$16 sps:$4 sm:$0xff]  }
 0x277   :  { %4848 = vmatpush1.bf16.msra.mxu1 %v6975_v38  ;;  %v4515_v51 = vpop.f32.mrf.mxu0  ;;  %4808 = vmatprep.subr.bf16.mxu0 %v6980_v39  ;;  %v7032_v25 = vld [vmem:[#allocation8 + $0x588] ss:$16 sps:$4 sm:$0xff]   ;;  %v7046_v38 = vld [vmem:[#allocation8 + $0x54c] ss:$16 sps:$4 sm:$0xff]  }
 0x278   :  { %v4556_v52 = vpop.f32.mrf.mxu1  ;;  %4849 = vmatprep.subr.bf16.mxu1 %v6983_v41  ;;  %v7035_v31 = vld [vmem:[#allocation8 + $0x788] ss:$16 sps:$4 sm:$0xff]   ;;  %v7049_v39 = vld [vmem:[#allocation8 + $0x74c] ss:$16 sps:$4 sm:$0xff]  }
 0x279   :  { %v7038_v34 = vld [vmem:[#allocation8 + $0x568] ss:$16 sps:$4 sm:$0xff]   ;;  %v7052_v26 = vld [vmem:[#allocation8 + $0x52c] ss:$16 sps:$4 sm:$0xff]  }
 0x27a   :  { %4809 = vmatpush1.bf16.msra.mxu0 %v6978_v59  ;;  %v7041_v35 = vld [vmem:[#allocation8 + $0x768] ss:$16 sps:$4 sm:$0xff]   ;;  %v7055_v0 = vld [vmem:[#allocation8 + $0x72c] ss:$16 sps:$4 sm:$0xff]  }
 0x27b   :  { %4850 = vmatpush1.bf16.msra.mxu1 %v6981_v53  ;;  %4810 = vmatprep.subr.bf16.mxu0 %v6986_v55  ;;  %v7044_v10 = vld [vmem:[#allocation8 + $0x548] ss:$16 sps:$4 sm:$0xff]   ;;  %v7058_v52 = vld [vmem:[#allocation8 + $0x50c] ss:$16 sps:$4 sm:$0xff]  }
 0x27c   :  { %4851 = vmatprep.subr.bf16.mxu1 %v6989_v48  ;;  %v7047_v41 = vld [vmem:[#allocation8 + $0x748] ss:$16 sps:$4 sm:$0xff]   ;;  %v7061_v53 = vld [vmem:[#allocation8 + $0x70c] ss:$16 sps:$4 sm:$0xff]  }
 0x27d   :  { %v7050_v59 = vld [vmem:[#allocation8 + $0x528] ss:$16 sps:$4 sm:$0xff]  }
 0x27e   :  { %4811 = vmatpush1.bf16.msra.mxu0 %v6984_v60  ;;  %v7053_v51 = vld [vmem:[#allocation8 + $0x728] ss:$16 sps:$4 sm:$0xff]   ;;  %v7064_v60 = vld [vmem:[#allocation8 + $0x8ec] ss:$16 sps:$4 sm:$0xff]  }
 0x27f   :  { %4852 = vmatpush1.bf16.msra.mxu1 %v6987_v1  ;;  %4812 = vmatprep.subr.bf16.mxu0 %v6992_v56  ;;  %v7056_v55 = vld [vmem:[#allocation8 + $0x508] ss:$16 sps:$4 sm:$0xff]   ;;  %v7067_v1 = vld [vmem:[#allocation8 + $0xaec] ss:$16 sps:$4 sm:$0xff]  }
 0x280   :  { %4853 = vmatprep.subr.bf16.mxu1 %v6995_v49  ;;  %v7059_v48 = vld [vmem:[#allocation8 + $0x708] ss:$16 sps:$4 sm:$0xff]  }
 0x281   :  { %v7062_v56 = vld [vmem:[#allocation8 + $0x8e8] ss:$16 sps:$4 sm:$0xff]  }
 0x282   :  { %4813 = vmatpush1.bf16.msra.mxu0 %v6990_v5  ;;  %v7065_v49 = vld [vmem:[#allocation8 + $0xae8] ss:$16 sps:$4 sm:$0xff]   ;;  %v7070_v5 = vld [vmem:[#allocation8 + $0x8cc] ss:$16 sps:$4 sm:$0xff]  }
 0x283   :  { %4854 = vmatpush1.bf16.msra.mxu1 %v6993_v57  ;;  %4814 = vmatprep.subr.bf16.mxu0 %v6998_v58 }
 0x284   :  { %4855 = vmatprep.subr.bf16.mxu1 %v7001_v44  ;;  %v7073_v44 = vld [vmem:[#allocation8 + $0xacc] ss:$16 sps:$4 sm:$0xff]  }
 0x286   :  { %4815 = vmatpush1.bf16.msra.mxu0 %v6996_v61 }
 0x287   :  { %4856 = vmatpush1.bf16.msra.mxu1 %v6999_v62  ;;  %4816 = vmatprep.subr.bf16.mxu0 %v7004_v63  ;;  %v7068_v62 = vld [vmem:[#allocation8 + $0x8c8] ss:$16 sps:$4 sm:$0xff]  }
 0x288   :  { %4857 = vmatprep.subr.bf16.mxu1 %v7007_v46 }
 0x28a   :  { %4817 = vmatpush1.bf16.msra.mxu0 %v7002_v42  ;;  %v7071_v42 = vld [vmem:[#allocation8 + $0xac8] ss:$16 sps:$4 sm:$0xff]  }
 0x28b   :  { %4858 = vmatpush1.bf16.msra.mxu1 %v7005_v27  ;;  %4818 = vmatprep.subr.bf16.mxu0 %v7010_v28  ;;  %v7076_v27 = vld [vmem:[#allocation8 + $0x8ac] ss:$16 sps:$4 sm:$0xff]  }
 0x28c   :  { %4859 = vmatprep.subr.bf16.mxu1 %v7013_v37  ;;  %v7079_v37 = vld [vmem:[#allocation8 + $0xaac] ss:$16 sps:$4 sm:$0xff]  }
 0x28e   :  { %4819 = vmatpush1.bf16.msra.mxu0 %v7008_v8 }
 0x28f   :  { %4860 = vmatpush1.bf16.msra.mxu1 %v7011_v29  ;;  %4820 = vmatprep.subr.bf16.mxu0 %v7016_v2 }
 0x290   :  { %4861 = vmatprep.subr.bf16.mxu1 %v7019_v9  ;;  %v7077_v9 = vld [vmem:[#allocation8 + $0xaa8] ss:$16 sps:$4 sm:$0xff]  }
 0x292   :  { %4821 = vmatpush2.bf16.msra.mxu0 %v7014_v30  ;;  %v7082_v30 = vld [vmem:[#allocation8 + $0x88c] ss:$16 sps:$4 sm:$0xff]  }
 0x293   :  { %4862 = vmatpush2.bf16.msra.mxu1 %v7017_v3  ;;  %4822 = vmatprep.subr.bf16.mxu0 %v7022_v6  ;;  %v7085_v3 = vld [vmem:[#allocation8 + $0xa8c] ss:$16 sps:$4 sm:$0xff]  }
 0x294   :  { %4863 = vmatprep.subr.bf16.mxu1 %v7025_v24  ;;  %v7088_v6 = vld [vmem:[#allocation8 + $0x86c] ss:$16 sps:$4 sm:$0xff]  }
 0x295   :  { %v7091_v24 = vld [vmem:[#allocation8 + $0xa6c] ss:$16 sps:$4 sm:$0xff]  }
 0x296   :  { %4823 = vmatpush2.bf16.msra.mxu0 %v7020_v36  ;;  %v7086_v36 = vld [vmem:[#allocation8 + $0x868] ss:$16 sps:$4 sm:$0xff]  }
 0x297   :  { %4864 = vmatpush2.bf16.msra.mxu1 %v7023_v15  ;;  %4824 = vmatprep.subr.bf16.mxu0 %v7028_v16  ;;  %v7089_v15 = vld [vmem:[#allocation8 + $0xa68] ss:$16 sps:$4 sm:$0xff]   ;;  %v7094_v16 = vld [vmem:[#allocation8 + $0x84c] ss:$16 sps:$4 sm:$0xff]  }
 0x298   :  { %4865 = vmatprep.subr.bf16.mxu1 %v7031_v19  ;;  %v7097_v19 = vld [vmem:[#allocation8 + $0xa4c] ss:$16 sps:$4 sm:$0xff]  }
 0x29a   :  { %4825 = vmatpush2.bf16.msra.mxu0 %v7026_v20  ;;  %v7092_v20 = vld [vmem:[#allocation8 + $0x848] ss:$16 sps:$4 sm:$0xff]  }
 0x29b   :  { %4866 = vmatpush2.bf16.msra.mxu1 %v7029_v21  ;;  %4826 = vmatprep.subr.bf16.mxu0 %v7034_v22  ;;  %v7095_v21 = vld [vmem:[#allocation8 + $0xa48] ss:$16 sps:$4 sm:$0xff]   ;;  %v7100_v22 = vld [vmem:[#allocation8 + $0x82c] ss:$16 sps:$4 sm:$0xff]  }
 0x29c   :  { %4867 = vmatprep.subr.bf16.mxu1 %v7037_v23  ;;  %v7103_v23 = vld [vmem:[#allocation8 + $0xa2c] ss:$16 sps:$4 sm:$0xff]  }
 0x29e   :  { %4827 = vmatpush2.bf16.msra.mxu0 %v7032_v25  ;;  %v7098_v25 = vld [vmem:[#allocation8 + $0x828] ss:$16 sps:$4 sm:$0xff]  }
 0x29f   :  { %4868 = vmatpush2.bf16.msra.mxu1 %v7035_v31  ;;  %4828 = vmatprep.subr.bf16.mxu0 %v7040_v32  ;;  %v7101_v31 = vld [vmem:[#allocation8 + $0xa28] ss:$16 sps:$4 sm:$0xff]   ;;  %v7106_v32 = vld [vmem:[#allocation8 + $0x80c] ss:$16 sps:$4 sm:$0xff]  }
 0x2a0   :  { %4869 = vmatprep.subr.bf16.mxu1 %v7043_v33  ;;  %v7109_v33 = vld [vmem:[#allocation8 + $0xa0c] ss:$16 sps:$4 sm:$0xff]  }
 0x2a2   :  { %4829 = vmatpush2.bf16.msra.mxu0 %v7038_v34  ;;  %v7104_v34 = vld [vmem:[#allocation8 + $0x808] ss:$16 sps:$4 sm:$0xff]  }
 0x2a3   :  { %4870 = vmatpush2.bf16.msra.mxu1 %v7041_v35  ;;  %4830 = vmatprep.subr.bf16.mxu0 %v7046_v38  ;;  %v7107_v35 = vld [vmem:[#allocation8 + $0xa08] ss:$16 sps:$4 sm:$0xff]   ;;  %v7112_v38 = vld [vmem:[#allocation8 + $0x9ec] ss:$16 sps:$4 sm:$0xff]  }
 0x2a4   :  { %4871 = vmatprep.subr.bf16.mxu1 %v7049_v39  ;;  %v7115_v39 = vld [vmem:[#allocation8 + $0xbec] ss:$16 sps:$4 sm:$0xff]  }
 0x2a6   :  { %4831 = vmatpush2.bf16.msra.mxu0 %v7044_v10  ;;  %v7110_v10 = vld [vmem:[#allocation8 + $0x9e8] ss:$16 sps:$4 sm:$0xff]  }
 0x2a7   :  { %4872 = vmatpush2.bf16.msra.mxu1 %v7047_v41  ;;  %4832 = vmatprep.subr.bf16.mxu0 %v7052_v26  ;;  %v7113_v41 = vld [vmem:[#allocation8 + $0xbe8] ss:$16 sps:$4 sm:$0xff]   ;;  %v7118_v26 = vld [vmem:[#allocation8 + $0x9cc] ss:$16 sps:$4 sm:$0xff]  }
 0x2a8   :  { %4873 = vmatprep.subr.bf16.mxu1 %v7055_v0  ;;  %v7121_v0 = vld [vmem:[#allocation8 + $0xbcc] ss:$16 sps:$4 sm:$0xff]  }
 0x2aa   :  { %4833 = vmatpush2.bf16.msra.mxu0 %v7050_v59  ;;  %v7116_v59 = vld [vmem:[#allocation8 + $0x9c8] ss:$16 sps:$4 sm:$0xff]  }
 0x2ab   :  { %4874 = vmatpush2.bf16.msra.mxu1 %v7053_v51  ;;  %4834 = vmatprep.subr.bf16.mxu0 %v7058_v52  ;;  %v7119_v51 = vld [vmem:[#allocation8 + $0xbc8] ss:$16 sps:$4 sm:$0xff]   ;;  %v7124_v52 = vld [vmem:[#allocation8 + $0x9ac] ss:$16 sps:$4 sm:$0xff]  }
 0x2ac   :  { %4875 = vmatprep.subr.bf16.mxu1 %v7061_v53  ;;  %v7127_v53 = vld [vmem:[#allocation8 + $0xbac] ss:$16 sps:$4 sm:$0xff]  }
 0x2ae   :  { %4835 = vmatpush2.bf16.msra.mxu0 %v7056_v55  ;;  %v7122_v55 = vld [vmem:[#allocation8 + $0x9a8] ss:$16 sps:$4 sm:$0xff]  }
 0x2af   :  { %4876 = vmatpush2.bf16.msra.mxu1 %v7059_v48  ;;  %4886 = vmatprep.subr.bf16.mxu0 %v7064_v60  ;;  %v7125_v48 = vld [vmem:[#allocation8 + $0xba8] ss:$16 sps:$4 sm:$0xff]   ;;  %v7130_v60 = vld [vmem:[#allocation8 + $0x98c] ss:$16 sps:$4 sm:$0xff]  }
 0x2b0   :  { %4927 = vmatprep.subr.bf16.mxu1 %v7067_v1  ;;  %v7133_v1 = vld [vmem:[#allocation8 + $0xb8c] ss:$16 sps:$4 sm:$0xff]  }
 0x2b1   :  { %v4592_v57 = vpop.f32.mrf.mxu0  ;;  %4837 = vmatmul.mubr.bf16.vlgmr.msra.gmra.mxu0 %v7799_v12 }
 0x2b2   :  { %v4633_v58 = vpop.f32.mrf.mxu1  ;;  %v4593_v61 = vadd.f32 %v4592_v57, %v7869_v40  ;;  %4878 = vmatmul.mubr.bf16.vlgmr.msra.gmra.mxu1 %v7797_v11  ;;  %4887 = vmatpush1.bf16.msra.mxu0 %v7062_v56  ;;  %v7128_v56 = vld [vmem:[#allocation8 + $0x988] ss:$16 sps:$4 sm:$0xff]   ;;  %v7139_v57 = vld [vmem:[#allocation8 + $0xb6c] ss:$16 sps:$4 sm:$0xff]  }
 0x2b3   :  { %4918 = vmatprep.mubr.bf16.mxu0 %v7801_v17  ;;  %4928 = vmatpush1.bf16.msra.mxu1 %v7065_v49  ;;  %v4594_v63 = vpop.f32.mrf.mxu0  ;;  %v7074_v17 = vld [vmem:[#allocation8 + $0x8a8] ss:$16 sps:$4 sm:$0xff]  }
 0x2b4   :  { %v4635_v46 = vpop.f32.mrf.mxu1  ;;  %v7879_v28 = vadd.f32 %v4633_v58, %v4593_v61  ;;  %4959 = vmatprep.mubr.bf16.mxu1 %v7803_v18  ;;  %v4595_v12 = vadd.f32 %v4594_v63, %v7873_v4  ;;  %4888 = vmatprep.subr.bf16.mxu0 %v7070_v5  ;;  %v7080_v18 = vld [vmem:[#allocation8 + $0x888] ss:$16 sps:$4 sm:$0xff]   ;;  %v7136_v5 = vld [vmem:[#allocation8 + $0x96c] ss:$16 sps:$4 sm:$0xff]  }
 0x2b5   :  { %v4596_v40 = vpop.f32.mrf.mxu0  ;;  %4929 = vmatprep.subr.bf16.mxu1 %v7073_v44  ;;  %v7083_v4 = vld [vmem:[#allocation8 + $0xa88] ss:$16 sps:$4 sm:$0xff]   ;;  %v7142_v61 = vld [vmem:[#allocation8 + $0x94c] ss:$16 sps:$4 sm:$0xff]  }
 0x2b6   :  { %v4637_v8 = vpop.f32.mrf.mxu1  ;;  %v7883_v11 = vadd.f32 %v4635_v46, %v4595_v12  ;;  %4889 = vmatpush1.bf16.msra.mxu0 %v7068_v62  ;;  %v7131_v49 = vld [vmem:[#allocation8 + $0xb88] ss:$16 sps:$4 sm:$0xff]   ;;  %v7145_v62 = vld [vmem:[#allocation8 + $0xb4c] ss:$16 sps:$4 sm:$0xff]  }
 0x2b7   :  { %4930 = vmatpush1.bf16.msra.mxu1 %v7071_v42  ;;  %v4597_v29 = vpop.f32.mrf.mxu0  ;;  %4890 = vmatprep.subr.bf16.mxu0 %v7076_v27  ;;  %v7134_v58 = vld [vmem:[#allocation8 + $0x968] ss:$16 sps:$4 sm:$0xff]   ;;  %v7148_v42 = vld [vmem:[#allocation8 + $0x92c] ss:$16 sps:$4 sm:$0xff]  }
 0x2b8   :  { %v4638_v2 = vpop.f32.mrf.mxu1  ;;  %4931 = vmatprep.subr.bf16.mxu1 %v7079_v37  ;;  %v7137_v44 = vld [vmem:[#allocation8 + $0xb68] ss:$16 sps:$4 sm:$0xff]   ;;  %v7151_v27 = vld [vmem:[#allocation8 + $0xb2c] ss:$16 sps:$4 sm:$0xff]  }
 0x2b9   :  { %v7140_v63 = vld [vmem:[#allocation8 + $0x948] ss:$16 sps:$4 sm:$0xff]   ;;  %v7154_v40 = vld [vmem:[#allocation8 + $0x90c] ss:$16 sps:$4 sm:$0xff]  }
 0x2ba   :  { %4891 = vmatpush1.bf16.msra.mxu0 %v7074_v17  ;;  %v7143_v46 = vld [vmem:[#allocation8 + $0xb48] ss:$16 sps:$4 sm:$0xff]   ;;  %v7157_v8 = vld [vmem:[#allocation8 + $0xb0c] ss:$16 sps:$4 sm:$0xff]  }
 0x2bb   :  { %4932 = vmatpush1.bf16.msra.mxu1 %v7077_v9  ;;  %4892 = vmatprep.subr.bf16.mxu0 %v7082_v30  ;;  %v7146_v12 = vld [vmem:[#allocation8 + $0x928] ss:$16 sps:$4 sm:$0xff]   ;;  %v7160_v2 = vld [vmem:[#allocation8 + $0xcec] ss:$16 sps:$4 sm:$0xff]  }
 0x2bc   :  { %4933 = vmatprep.subr.bf16.mxu1 %v7085_v3  ;;  %v7149_v37 = vld [vmem:[#allocation8 + $0xb28] ss:$16 sps:$4 sm:$0xff]   ;;  %v7163_v9 = vld [vmem:[#allocation8 + $0xeec] ss:$16 sps:$4 sm:$0xff]  }
 0x2bd   :  { %v7152_v17 = vld [vmem:[#allocation8 + $0x908] ss:$16 sps:$4 sm:$0xff]  }
 0x2be   :  { %4893 = vmatpush1.bf16.msra.mxu0 %v7080_v18  ;;  %v7155_v29 = vld [vmem:[#allocation8 + $0xb08] ss:$16 sps:$4 sm:$0xff]   ;;  %v7166_v18 = vld [vmem:[#allocation8 + $0xccc] ss:$16 sps:$4 sm:$0xff]  }
 0x2bf   :  { %4934 = vmatpush1.bf16.msra.mxu1 %v7083_v4  ;;  %4894 = vmatprep.subr.bf16.mxu0 %v7088_v6  ;;  %v7158_v30 = vld [vmem:[#allocation8 + $0xce8] ss:$16 sps:$4 sm:$0xff]  }
 0x2c0   :  { %4935 = vmatprep.subr.bf16.mxu1 %v7091_v24  ;;  %v7161_v3 = vld [vmem:[#allocation8 + $0xee8] ss:$16 sps:$4 sm:$0xff]   ;;  %v7169_v24 = vld [vmem:[#allocation8 + $0xecc] ss:$16 sps:$4 sm:$0xff]  }
 0x2c2   :  { %4895 = vmatpush1.bf16.msra.mxu0 %v7086_v36 }
 0x2c3   :  { %4936 = vmatpush1.bf16.msra.mxu1 %v7089_v15  ;;  %4896 = vmatprep.subr.bf16.mxu0 %v7094_v16  ;;  %v7164_v15 = vld [vmem:[#allocation8 + $0xcc8] ss:$16 sps:$4 sm:$0xff]  }
 0x2c4   :  { %4937 = vmatprep.subr.bf16.mxu1 %v7097_v19 }
 0x2c6   :  { %4897 = vmatpush1.bf16.msra.mxu0 %v7092_v20  ;;  %v7167_v20 = vld [vmem:[#allocation8 + $0xec8] ss:$16 sps:$4 sm:$0xff]  }
 0x2c7   :  { %4938 = vmatpush1.bf16.msra.mxu1 %v7095_v21  ;;  %4898 = vmatprep.subr.bf16.mxu0 %v7100_v22  ;;  %v7172_v21 = vld [vmem:[#allocation8 + $0xcac] ss:$16 sps:$4 sm:$0xff]  }
 0x2c8   :  { %4939 = vmatprep.subr.bf16.mxu1 %v7103_v23 }
 0x2ca   :  { %4899 = vmatpush1.bf16.msra.mxu0 %v7098_v25 }
 0x2cb   :  { %4940 = vmatpush1.bf16.msra.mxu1 %v7101_v31  ;;  %4900 = vmatprep.subr.bf16.mxu0 %v7106_v32  ;;  %v7173_v31 = vld [vmem:[#allocation8 + $0xea8] ss:$16 sps:$4 sm:$0xff]   ;;  %v7178_v32 = vld [vmem:[#allocation8 + $0xc8c] ss:$16 sps:$4 sm:$0xff]  }
 0x2cc   :  { %4941 = vmatprep.subr.bf16.mxu1 %v7109_v33  ;;  %v7181_v33 = vld [vmem:[#allocation8 + $0xe8c] ss:$16 sps:$4 sm:$0xff]  }
 0x2ce   :  { %4901 = vmatpush1.bf16.msra.mxu0 %v7104_v34  ;;  %v7176_v34 = vld [vmem:[#allocation8 + $0xc88] ss:$16 sps:$4 sm:$0xff]  }
 0x2cf   :  { %4942 = vmatpush1.bf16.msra.mxu1 %v7107_v35  ;;  %4902 = vmatprep.subr.bf16.mxu0 %v7112_v38  ;;  %v7184_v35 = vld [vmem:[#allocation8 + $0xc6c] ss:$16 sps:$4 sm:$0xff]  }
 0x2d0   :  { %4943 = vmatprep.subr.bf16.mxu1 %v7115_v39  ;;  %v7187_v38 = vld [vmem:[#allocation8 + $0xe6c] ss:$16 sps:$4 sm:$0xff]   ;;  %v7182_v39 = vld [vmem:[#allocation8 + $0xc68] ss:$16 sps:$4 sm:$0xff]  }
 0x2d2   :  { %4903 = vmatpush2.bf16.msra.mxu0 %v7110_v10  ;;  %v7185_v10 = vld [vmem:[#allocation8 + $0xe68] ss:$16 sps:$4 sm:$0xff]  }
 0x2d3   :  { %4944 = vmatpush2.bf16.msra.mxu1 %v7113_v41  ;;  %4904 = vmatprep.subr.bf16.mxu0 %v7118_v26  ;;  %v7190_v41 = vld [vmem:[#allocation8 + $0xc4c] ss:$16 sps:$4 sm:$0xff]  }
 0x2d4   :  { %4945 = vmatprep.subr.bf16.mxu1 %v7121_v0  ;;  %v7193_v26 = vld [vmem:[#allocation8 + $0xe4c] ss:$16 sps:$4 sm:$0xff]   ;;  %v7188_v0 = vld [vmem:[#allocation8 + $0xc48] ss:$16 sps:$4 sm:$0xff]  }
 0x2d6   :  { %4905 = vmatpush2.bf16.msra.mxu0 %v7116_v59  ;;  %v7191_v59 = vld [vmem:[#allocation8 + $0xe48] ss:$16 sps:$4 sm:$0xff]  }
 0x2d7   :  { %4946 = vmatpush2.bf16.msra.mxu1 %v7119_v51  ;;  %4906 = vmatprep.subr.bf16.mxu0 %v7124_v52  ;;  %v7196_v51 = vld [vmem:[#allocation8 + $0xc2c] ss:$16 sps:$4 sm:$0xff]  }
 0x2d8   :  { %4947 = vmatprep.subr.bf16.mxu1 %v7127_v53  ;;  %v7199_v52 = vld [vmem:[#allocation8 + $0xe2c] ss:$16 sps:$4 sm:$0xff]   ;;  %v7194_v53 = vld [vmem:[#allocation8 + $0xc28] ss:$16 sps:$4 sm:$0xff]  }
 0x2da   :  { %4907 = vmatpush2.bf16.msra.mxu0 %v7122_v55  ;;  %v7197_v55 = vld [vmem:[#allocation8 + $0xe28] ss:$16 sps:$4 sm:$0xff]  }
 0x2db   :  { %4948 = vmatpush2.bf16.msra.mxu1 %v7125_v48  ;;  %4908 = vmatprep.subr.bf16.mxu0 %v7130_v60  ;;  %v7202_v48 = vld [vmem:[#allocation8 + $0xc0c] ss:$16 sps:$4 sm:$0xff]  }
 0x2dc   :  { %4949 = vmatprep.subr.bf16.mxu1 %v7133_v1  ;;  %v7205_v60 = vld [vmem:[#allocation8 + $0xe0c] ss:$16 sps:$4 sm:$0xff]   ;;  %v7200_v1 = vld [vmem:[#allocation8 + $0xc08] ss:$16 sps:$4 sm:$0xff]  }
 0x2de   :  { %4909 = vmatpush2.bf16.msra.mxu0 %v7128_v56  ;;  %v7203_v56 = vld [vmem:[#allocation8 + $0xe08] ss:$16 sps:$4 sm:$0xff]  }
 0x2df   :  { %4950 = vmatpush2.bf16.msra.mxu1 %v7131_v49  ;;  %4910 = vmatprep.subr.bf16.mxu0 %v7136_v5  ;;  %v7208_v49 = vld [vmem:[#allocation8 + $0xdec] ss:$16 sps:$4 sm:$0xff]  }
 0x2e0   :  { %4951 = vmatprep.subr.bf16.mxu1 %v7139_v57  ;;  %v7211_v5 = vld [vmem:[#allocation8 + $0xfec] ss:$16 sps:$4 sm:$0xff]   ;;  %v7206_v57 = vld [vmem:[#allocation8 + $0xde8] ss:$16 sps:$4 sm:$0xff]  }
 0x2e2   :  { %4911 = vmatpush2.bf16.msra.mxu0 %v7134_v58  ;;  %v7209_v58 = vld [vmem:[#allocation8 + $0xfe8] ss:$16 sps:$4 sm:$0xff]  }
 0x2e3   :  { %4952 = vmatpush2.bf16.msra.mxu1 %v7137_v44  ;;  %4912 = vmatprep.subr.bf16.mxu0 %v7142_v61  ;;  %v7214_v44 = vld [vmem:[#allocation8 + $0xdcc] ss:$16 sps:$4 sm:$0xff]  }
 0x2e4   :  { %4953 = vmatprep.subr.bf16.mxu1 %v7145_v62  ;;  %v7217_v61 = vld [vmem:[#allocation8 + $0xfcc] ss:$16 sps:$4 sm:$0xff]   ;;  %v7212_v62 = vld [vmem:[#allocation8 + $0xdc8] ss:$16 sps:$4 sm:$0xff]  }
 0x2e6   :  { %4913 = vmatpush2.bf16.msra.mxu0 %v7140_v63  ;;  %v7215_v63 = vld [vmem:[#allocation8 + $0xfc8] ss:$16 sps:$4 sm:$0xff]  }
 0x2e7   :  { %4954 = vmatpush2.bf16.msra.mxu1 %v7143_v46  ;;  %4914 = vmatprep.subr.bf16.mxu0 %v7148_v42  ;;  %v7220_v46 = vld [vmem:[#allocation8 + $0xdac] ss:$16 sps:$4 sm:$0xff]  }
 0x2e8   :  { %4955 = vmatprep.subr.bf16.mxu1 %v7151_v27  ;;  %v7223_v42 = vld [vmem:[#allocation8 + $0xfac] ss:$16 sps:$4 sm:$0xff]   ;;  %v7218_v27 = vld [vmem:[#allocation8 + $0xda8] ss:$16 sps:$4 sm:$0xff]  }
 0x2ea   :  { %4915 = vmatpush2.bf16.msra.mxu0 %v7146_v12  ;;  %v7221_v12 = vld [vmem:[#allocation8 + $0xfa8] ss:$16 sps:$4 sm:$0xff]  }
 0x2eb   :  { %4956 = vmatpush2.bf16.msra.mxu1 %v7149_v37  ;;  %4916 = vmatprep.subr.bf16.mxu0 %v7154_v40  ;;  %v7226_v37 = vld [vmem:[#allocation8 + $0xd8c] ss:$16 sps:$4 sm:$0xff]  }
 0x2ec   :  { %4957 = vmatprep.subr.bf16.mxu1 %v7157_v8  ;;  %v7229_v40 = vld [vmem:[#allocation8 + $0xf8c] ss:$16 sps:$4 sm:$0xff]   ;;  %v7224_v8 = vld [vmem:[#allocation8 + $0xd88] ss:$16 sps:$4 sm:$0xff]  }
 0x2ee   :  { %4917 = vmatpush2.bf16.msra.mxu0 %v7152_v17  ;;  %v7227_v17 = vld [vmem:[#allocation8 + $0xf88] ss:$16 sps:$4 sm:$0xff]  }
 0x2ef   :  { %4958 = vmatpush2.bf16.msra.mxu1 %v7155_v29  ;;  %4968 = vmatprep.subr.bf16.mxu0 %v7160_v2  ;;  %v7232_v29 = vld [vmem:[#allocation8 + $0xd6c] ss:$16 sps:$4 sm:$0xff]  }
 0x2f0   :  { %5009 = vmatprep.subr.bf16.mxu1 %v7163_v9  ;;  %v7235_v2 = vld [vmem:[#allocation8 + $0xf6c] ss:$16 sps:$4 sm:$0xff]   ;;  %v7230_v9 = vld [vmem:[#allocation8 + $0xd68] ss:$16 sps:$4 sm:$0xff]  }
 0x2f1   :  { %v4674_v4 = vpop.f32.mrf.mxu0  ;;  %4919 = vmatmul.mubr.bf16.vlgmr.msra.gmra.mxu0 %v7837_v7  ;;  %v7175_v7 = vld [vmem:[#allocation8 + $0xeac] ss:$16 sps:$4 sm:$0xff]  }
 0x2f2   :  { %v4715_v6 = vpop.f32.mrf.mxu1  ;;  %v4675_v36 = vadd.f32 %v4674_v4, %v7879_v28  ;;  %4960 = vmatmul.mubr.bf16.vlgmr.msra.gmra.mxu1 %v7839_v50  ;;  %4969 = vmatpush1.bf16.msra.mxu0 %v7158_v30  ;;  %v7170_v50 = vld [vmem:[#allocation8 + $0xca8] ss:$16 sps:$4 sm:$0xff]  }
 0x2f3   :  { %5000 = vmatprep.mubr.bf16.mxu0 %v7841_v13  ;;  %5010 = vmatpush1.bf16.msra.mxu1 %v7161_v3  ;;  %v7889_v16 = vpop.f32.mrf.mxu0  ;;  %v7233_v30 = vld [vmem:[#allocation8 + $0xf68] ss:$16 sps:$4 sm:$0xff]   ;;  %v7238_v3 = vld [vmem:[#allocation8 + $0xd4c] ss:$16 sps:$4 sm:$0xff]  }
 0x2f4   :  { %v7891_v19 = vpop.f32.mrf.mxu1  ;;  %v7893_v22 = vadd.f32 %v4715_v6, %v4675_v36  ;;  %5041 = vmatprep.mubr.bf16.mxu1 %v7843_v14  ;;  %4970 = vmatprep.subr.bf16.mxu0 %v7166_v18  ;;  %v7179_v14 = vld [vmem:[#allocation8 + $0xe88] ss:$16 sps:$4 sm:$0xff]   ;;  %v7241_v18 = vld [vmem:[#allocation8 + $0xf4c] ss:$16 sps:$4 sm:$0xff]  }
 0x2f5   :  { %v4678_v28 = vpop.f32.mrf.mxu0  ;;  %5011 = vmatprep.subr.bf16.mxu1 %v7169_v24  ;;  %v7236_v4 = vld [vmem:[#allocation8 + $0xd48] ss:$16 sps:$4 sm:$0xff]   ;;  %v7244_v24 = vld [vmem:[#allocation8 + $0xd2c] ss:$16 sps:$4 sm:$0xff]  }
 0x2f6   :  { %v4719_v23 = vpop.f32.mrf.mxu1  ;;  %4971 = vmatpush1.bf16.msra.mxu0 %v7164_v15  ;;  %v7239_v6 = vld [vmem:[#allocation8 + $0xf48] ss:$16 sps:$4 sm:$0xff]   ;;  %v7247_v36 = vld [vmem:[#allocation8 + $0xf2c] ss:$16 sps:$4 sm:$0xff]   ;;  %v4677_v15 = vadd.f32 %v7889_v16, %v7883_v11  ;;  %v7306_v11 = vld [vmem:[#allocation10] sm:$0xf] }
 0x2f7   :  { %5012 = vmatpush1.bf16.msra.mxu1 %v7167_v20  ;;  %v4679_v13 = vpop.f32.mrf.mxu0  ;;  %4972 = vmatprep.subr.bf16.mxu0 %v7172_v21  ;;  %v7242_v20 = vld [vmem:[#allocation8 + $0xd28] ss:$16 sps:$4 sm:$0xff]   ;;  %v7253_v28 = vld [vmem:[#allocation8 + $0xf0c] ss:$16 sps:$4 sm:$0xff]   ;;  %v1825_v16 = vrot.slane %v7306_v11, %v7731_v45 }
 0x2f8   :  { %v4720_v25 = vpop.f32.mrf.mxu1  ;;  %5013 = vmatprep.subr.bf16.mxu1 %v7175_v7  ;;  %v7245_v21 = vld [vmem:[#allocation8 + $0xf28] ss:$16 sps:$4 sm:$0xff]   ;;  %v7250_v7 = vld [vmem:[#allocation8 + $0xd0c] ss:$16 sps:$4 sm:$0xff]   ;;  %v4718_v23 = vadd.f32 %v7891_v19, %v4677_v15 }
 0x2f9   :  { %v7251_v13 = vld [vmem:[#allocation8 + $0xf08] ss:$16 sps:$4 sm:$0xff]   ;;  %v7254_v25 = vld [vmem:[#allocation11 + $0x78] sm:$0xff]   ;;  %v7258_v45 = vld [vmem:[#allocation11 + $0x68] sm:$0xff]  }
 0x2fa   :  { %4973 = vmatpush1.bf16.msra.mxu0 %v7170_v50  ;;  %v7248_v50 = vld [vmem:[#allocation8 + $0xd08] ss:$16 sps:$4 sm:$0xff]   ;;  %v7282_v15 = vld [vmem:[#allocation11 + $0xc8] sm:$0xff]  }
 0x2fb   :  { %5014 = vmatpush1.bf16.msra.mxu1 %v7173_v31  ;;  %4974 = vmatprep.subr.bf16.mxu0 %v7178_v32  ;;  %v5051_v31 = vmax.f32 %v4718_v23, 0.0  ;;  %v7255_v32 = vld [vmem:[#allocation11 + $0x38] sm:$0xff]   ;;  %v7284_v23 = vld [vmem:[#allocation11 + $0xc0] sm:$0xff]  }
 0x2fc   :  { %5015 = vmatprep.subr.bf16.mxu1 %v7181_v33  ;;  %v7256_v33 = vld [vmem:[#allocation11 + $0x70] sm:$0xff]  }
 0x2fe   :  { %4975 = vmatpush1.bf16.msra.mxu0 %v7176_v34  ;;  %v1829_v34 = vrot.slane %v7306_v11, %v7737_v47  ;;  %v7288_v11 = vld [vmem:[#allocation14 + $0x28] sm:$0xff]  }
 0x2ff   :  { %5016 = vmatpush1.bf16.msra.mxu1 %v7179_v14  ;;  %4976 = vmatprep.subr.bf16.mxu0 %v7184_v35  ;;  %v5055_v14 = vpack.c.bf16 %v5051_v31, %v5051_v31  ;;  %v7287_v31 = vld [vmem:[#allocation14 + $0x30] sm:$0xff]  }
 0x300   :  { %5017 = vmatprep.subr.bf16.mxu1 %v7187_v38 }
 0x302   :  { %4977 = vmatpush1.bf16.msra.mxu0 %v7182_v39  ;;  %v7257_v39 = vld [vmem:[#allocation11 + $0x30] sm:$0xff]  }
 0x303   :  { %5018 = vmatpush1.bf16.msra.mxu1 %v7185_v10  ;;  %4978 = vmatprep.subr.bf16.mxu0 %v7190_v41 }
 0x304   :  { %5019 = vmatprep.subr.bf16.mxu1 %v7193_v26 }
 0x306   :  { %4979 = vmatpush1.bf16.msra.mxu0 %v7188_v0 }
 0x307   :  { %5020 = vmatpush1.bf16.msra.mxu1 %v7191_v59  ;;  %4980 = vmatprep.subr.bf16.mxu0 %v7196_v51 }
 0x308   :  { %5021 = vmatprep.subr.bf16.mxu1 %v7199_v52  ;;  %v7259_v52 = vld [vmem:[#allocation11 + $0x28] sm:$0xff]  }
 0x30a   :  { %4981 = vmatpush1.bf16.msra.mxu0 %v7194_v53 }
 0x30b   :  { %5022 = vmatpush1.bf16.msra.mxu1 %v7197_v55  ;;  %4982 = vmatprep.subr.bf16.mxu0 %v7202_v48  ;;  %v7270_v48 = vld [vmem:[#allocation11 + $0xf8] sm:$0xff]  }
 0x30c   :  { %5023 = vmatprep.subr.bf16.mxu1 %v7205_v60  ;;  %v7272_v60 = vld [vmem:[#allocation11 + $0xf0] sm:$0xff]  }
 0x30e   :  { %4983 = vmatpush1.bf16.msra.mxu0 %v7200_v1  ;;  %v7261_v1 = vld [vmem:[#allocation11 + $0x20] sm:$0xff]  }
 0x30f   :  { %5024 = vmatpush1.bf16.msra.mxu1 %v7203_v56  ;;  %4984 = vmatprep.subr.bf16.mxu0 %v7208_v49  ;;  %v7262_v56 = vld [vmem:[#allocation11 + $0x58] sm:$0xff]   ;;  %v7273_v49 = vld [vmem:[#allocation11 + $0xb0] sm:$0xff]  }
 0x310   :  { %5025 = vmatprep.subr.bf16.mxu1 %v7211_v5  ;;  %v7274_v5 = vld [vmem:[#allocation11 + $0xe8] sm:$0xff]  }
 0x312   :  { %4985 = vmatpush2.bf16.msra.mxu0 %v7206_v57  ;;  %v7263_v57 = vld [vmem:[#allocation11 + $0x18] sm:$0xff]  }
 0x313   :  { %5026 = vmatpush2.bf16.msra.mxu1 %v7209_v58  ;;  %4986 = vmatprep.subr.bf16.mxu0 %v7214_v44  ;;  %v7264_v58 = vld [vmem:[#allocation11 + $0x50] sm:$0xff]   ;;  %v7275_v44 = vld [vmem:[#allocation11 + $0xa8] sm:$0xff]  }
 0x314   :  { %5027 = vmatprep.subr.bf16.mxu1 %v7217_v61  ;;  %v7276_v61 = vld [vmem:[#allocation11 + $0xe0] sm:$0xff]  }
 0x316   :  { %4987 = vmatpush2.bf16.msra.mxu0 %v7212_v62  ;;  %v7265_v62 = vld [vmem:[#allocation11 + $0x10] sm:$0xff]  }
 0x317   :  { %5028 = vmatpush2.bf16.msra.mxu1 %v7215_v63  ;;  %4988 = vmatprep.subr.bf16.mxu0 %v7220_v46  ;;  %v7266_v63 = vld [vmem:[#allocation11 + $0x48] sm:$0xff]   ;;  %v7277_v46 = vld [vmem:[#allocation11 + $0xa0] sm:$0xff]  }
 0x318   :  { %5029 = vmatprep.subr.bf16.mxu1 %v7223_v42  ;;  %v7278_v42 = vld [vmem:[#allocation11 + $0xd8] sm:$0xff]  }
 0x31a   :  { %4989 = vmatpush2.bf16.msra.mxu0 %v7218_v27  ;;  %v7267_v27 = vld [vmem:[#allocation11 + $0x8] sm:$0xff]  }
 0x31b   :  { %5030 = vmatpush2.bf16.msra.mxu1 %v7221_v12  ;;  %4990 = vmatprep.subr.bf16.mxu0 %v7226_v37  ;;  %v7268_v12 = vld [vmem:[#allocation11 + $0x40] sm:$0xff]   ;;  %v7279_v37 = vld [vmem:[#allocation11 + $0x98] sm:$0xff]  }
 0x31c   :  { %5031 = vmatprep.subr.bf16.mxu1 %v7229_v40  ;;  %v7269_v40 = vld [vmem:[#allocation11] sm:$0xff]  }
 0x31e   :  { %4991 = vmatpush2.bf16.msra.mxu0 %v7224_v8  ;;  %v5050_v8 = vmax.f32 %v7893_v22, 0.0 }
 0x31f   :  { %5032 = vmatpush2.bf16.msra.mxu1 %v7227_v17  ;;  %4992 = vmatprep.subr.bf16.mxu0 %v7232_v29 }
 0x320   :  { %5033 = vmatprep.subr.bf16.mxu1 %v7235_v2  ;;  %v5054_v17 = vpack.c.bf16 %v5050_v8, %v5050_v8  ;;  %v7280_v2 = vld [vmem:[#allocation11 + $0xd0] sm:$0xff]  }
 0x321   :  { %v7296_v8 = vld [vmem:[#allocation17 + $0x28] sm:$0xff]  }
 0x322   :  { %4993 = vmatpush2.bf16.msra.mxu0 %v7230_v9 }
 0x323   :  { %5034 = vmatpush2.bf16.msra.mxu1 %v7233_v30  ;;  %4994 = vmatprep.subr.bf16.mxu0 %v7238_v3  ;;  %v7281_v3 = vld [vmem:[#allocation11 + $0x90] sm:$0xff]  }
 0x324   :  { %5035 = vmatprep.subr.bf16.mxu1 %v7241_v18 }
 0x326   :  { %4995 = vmatpush2.bf16.msra.mxu0 %v7236_v4 }
 0x327   :  { %5036 = vmatpush2.bf16.msra.mxu1 %v7239_v6  ;;  %4996 = vmatprep.subr.bf16.mxu0 %v7244_v24 }
 0x328   :  { %5037 = vmatprep.subr.bf16.mxu1 %v7247_v36 }
 0x32a   :  { %4997 = vmatpush2.bf16.msra.mxu0 %v7242_v20 }
 0x32b   :  { %5038 = vmatpush2.bf16.msra.mxu1 %v7245_v21  ;;  %4998 = vmatprep.subr.bf16.mxu0 %v7250_v7  ;;  %v7283_v21 = vld [vmem:[#allocation11 + $0x88] sm:$0xff]  }
 0x32c   :  { %5039 = vmatprep.subr.bf16.mxu1 %v7253_v28 }
 0x32e   :  { %4999 = vmatpush2.bf16.msra.mxu0 %v7248_v50  ;;  %v7285_v50 = vld [vmem:[#allocation11 + $0x80] sm:$0xff]  }
 0x32f   :  { %5040 = vmatpush2.bf16.msra.mxu1 %v7251_v13  ;;  %6348 = vmatprep.subr.bf16.mxu0 %v7254_v25  ;;  %v7286_v13 = vld [vmem:[#allocation14 + $0x38] sm:$0xff]   ;;  %v7578_v25 = vmov 0.0  }
 0x330   :  { %6370 = vmatprep.subr.bf16.mxu1 %v7270_v48 }
 0x331   :  { %v4756_v19 = vpop.f32.mrf.mxu0  ;;  %5001 = vmatmul.mubr.bf16.vlgmr.msra.gmra.mxu0 %v7852_v54  ;;  %v7260_v54 = vld [vmem:[#allocation11 + $0x60] sm:$0xff]  }
 0x332   :  { %v4757_v35 = vadd.f32 %v4756_v19, %v1825_v16  ;;  %v4797_v38 = vpop.f32.mrf.mxu1  ;;  %5042 = vmatmul.mubr.bf16.vlgmr.msra.gmra.mxu1 %v7854_v43  ;;  %6349 = vmatpush3.bf16.msra.mxu0 %v7255_v32  ;;  %v7271_v43 = vld [vmem:[#allocation11 + $0xb8] sm:$0xff]   ;;  %v7289_v16 = vld [vmem:[#allocation14 + $0x20] sm:$0xff]  }
 0x333   :  { %5353 = vmatprep.mubr.bf16.mxu0 %v5055_v14  ;;  %v4758_v10 = vpop.f32.mrf.mxu0  ;;  %6350 = vmatprep.subr.bf16.mxu0 %v7256_v33  ;;  %v7290_v32 = vld [vmem:[#allocation14 + $0x18] sm:$0xff]  }
 0x334   :  { %v4798_v41 = vadd.f32 %v4797_v38, %v4757_v35  ;;  %v4759_v26 = vadd.f32 %v4758_v10, %v1829_v34  ;;  %v4799_v0 = vpop.f32.mrf.mxu1  ;;  %6371 = vmatpush3.bf16.msra.mxu1 %v7271_v43 }
 0x335   :  { %v4760_v59 = vpop.f32.mrf.mxu0  ;;  %6372 = vmatprep.subr.bf16.mxu1 %v7272_v60 }
 0x336   :  { %v4800_v51 = vadd.f32 %v4799_v0, %v4759_v26  ;;  %v4801_v47 = vpop.f32.mrf.mxu1  ;;  %6351 = vmatpush3.bf16.msra.mxu0 %v7257_v39 }
 0x337   :  { %v4761_v53 = vpop.f32.mrf.mxu0  ;;  %6352 = vmatprep.subr.bf16.mxu0 %v7258_v45 }
 0x338   :  { %v4802_v55 = vpop.f32.mrf.mxu1  ;;  %6373 = vmatpush3.bf16.msra.mxu1 %v7273_v49 }
 0x339   :  { %6374 = vmatprep.subr.bf16.mxu1 %v7274_v5 }
 0x33a   :  { %6353 = vmatpush3.bf16.msra.mxu0 %v7259_v52 }
 0x33b   :  { %6354 = vmatprep.subr.bf16.mxu0 %v7260_v54 }
 0x33c   :  { %6375 = vmatpush3.bf16.msra.mxu1 %v7275_v44 }
 0x33d   :  { %6376 = vmatprep.subr.bf16.mxu1 %v7276_v61 }
 0x33e   :  { %6355 = vmatpush3.bf16.msra.mxu0 %v7261_v1 }
 0x33f   :  { %6356 = vmatprep.subr.bf16.mxu0 %v7262_v56 }
 0x340   :  { %6377 = vmatpush3.bf16.msra.mxu1 %v7277_v46 }
 0x341   :  { %6378 = vmatprep.subr.bf16.mxu1 %v7278_v42  ;;  %v7291_v42 = vld [vmem:[#allocation14 + $0x10] sm:$0xff]  }
 0x342   :  { %6357 = vmatpush3.bf16.msra.mxu0 %v7263_v57 }
 0x343   :  { %6358 = vmatprep.subr.bf16.mxu0 %v7264_v58 }
 0x344   :  { %6379 = vmatpush3.bf16.msra.mxu1 %v7279_v37  ;;  %v7294_v37 = vld [vmem:[#allocation17 + $0x38] sm:$0xff]  }
 0x345   :  { %6380 = vmatprep.subr.bf16.mxu1 %v7280_v2  ;;  %v7299_v2 = vld [vmem:[#allocation17 + $0x10] sm:$0xff]  }
 0x346   :  { %6359 = vmatpush3.bf16.msra.mxu0 %v7265_v62 }
 0x347   :  { %6360 = vmatprep.subr.bf16.mxu0 %v7266_v63 }
 0x348   :  { %6381 = vmatpush3.bf16.msra.mxu1 %v7281_v3 }
 0x349   :  { %6382 = vmatprep.subr.bf16.mxu1 %v7282_v15 }
 0x34a   :  { %6361 = vmatpush3.bf16.msra.mxu0 %v7267_v27  ;;  %v7292_v27 = vld [vmem:[#allocation14 + $0x8] sm:$0xff]  }
 0x34b   :  { %6362 = vmatprep.subr.bf16.mxu0 %v7268_v12  ;;  %v7293_v12 = vld [vmem:[#allocation14] sm:$0xff]  }
 0x34c   :  { %6383 = vmatpush3.bf16.msra.mxu1 %v7283_v21  ;;  %v7301_v21 = vld [vmem:[#allocation17] sm:$0xff]  }
 0x34d   :  { %6384 = vmatprep.subr.bf16.mxu1 %v7284_v23 }
 0x34e   :  { %6363 = vmatpush3.bf16.msra.mxu0 %v7269_v40  ;;  %v7295_v40 = vld [vmem:[#allocation17 + $0x30] sm:$0xff]  }
 0x34f   :  { %6410 = vmatprep.subr.bf16.mxu0 %v7578_v25 }
 0x350   :  { %6385 = vmatpush3.bf16.msra.mxu1 %v7285_v50 }
 0x351   :  { %5354 = vmatmul.mubr.bf16.vlgmr.msra.gmra.mxu0 %v5054_v17  ;;  %6430 = vmatprep.subr.bf16.mxu1 %v7578_v25  ;;  %v7297_v17 = vld [vmem:[#allocation17 + $0x20] sm:$0xff]  }
 0x352   :  { %6411 = vmatpush3.bf16.msra.mxu0 %v7286_v13  ;;  %6426 = vmatprep.mubr.msk.bf16.mxu0 %vm7579_vm2, %v7578_v25 }
 0x353   :  { %6412 = vmatprep.subr.bf16.mxu0 %v7578_v25 }
 0x356   :  { %6413 = vmatpush3.bf16.msra.mxu0 %v7287_v31 }
 0x357   :  { %6414 = vmatprep.subr.bf16.mxu0 %v7578_v25 }
 0x35a   :  { %6415 = vmatpush3.bf16.msra.mxu0 %v7288_v11 }
 0x35b   :  { %6416 = vmatprep.subr.bf16.mxu0 %v7578_v25 }
 0x35e   :  { %6417 = vmatpush3.bf16.msra.mxu0 %v7289_v16 }
 0x35f   :  { %6418 = vmatprep.subr.bf16.mxu0 %v7578_v25 }
 0x362   :  { %6419 = vmatpush3.bf16.msra.mxu0 %v7290_v32  ;;  %v6339_v32 = vld [vmem:[#allocation19] ss:$0 sm:$0xff] }
 0x363   :  { %6420 = vmatprep.subr.bf16.mxu0 %v7578_v25 }
 0x366   :  { %6421 = vmatpush3.bf16.msra.mxu0 %v7291_v42 }
 0x367   :  { %6422 = vmatprep.subr.bf16.mxu0 %v7578_v25 }
 0x36a   :  { %6423 = vmatpush3.bf16.msra.mxu0 %v7292_v27 }
 0x36b   :  { %6424 = vmatprep.subr.bf16.mxu0 %v7578_v25 }
 0x36e   :  { %6425 = vmatpush3.bf16.msra.mxu0 %v7293_v12 }
 0x371   :  { %v4838_v29 = vpop.f32.mrf.mxu0 }
 0x372   :  { %v4839_v9 = vadd.f32 %v4838_v29, %v4798_v41  ;;  %v4879_v30 = vpop.f32.mrf.mxu1  ;;  %v7298_v29 = vld [vmem:[#allocation17 + $0x18] sm:$0xff]  }
 0x373   :  { %v4840_v18 = vpop.f32.mrf.mxu0 }
 0x374   :  { %v4880_v4 = vadd.f32 %v4879_v30, %v4839_v9  ;;  %v4841_v6 = vadd.f32 %v4840_v18, %v4800_v51  ;;  %v4881_v24 = vpop.f32.mrf.mxu1  ;;  %v6297_v9 = vld [vmem:[#allocation13] ss:$0 sm:$0xff] }
 0x375   :  { %v4842_v36 = vpop.f32.mrf.mxu0 }
 0x376   :  { %v4882_v20 = vadd.f32 %v4881_v24, %v4841_v6  ;;  %v4883_v22 = vpop.f32.mrf.mxu1 }
 0x377   :  { %v4843_v7 = vpop.f32.mrf.mxu0  ;;  %v7300_v22 = vld [vmem:[#allocation17 + $0x8] sm:$0xff]  }
 0x378   :  { %v4884_v28 = vpop.f32.mrf.mxu1  ;;  %v6330_v7 = vld [vmem:[#allocation16] ss:$0 sm:$0xff] }
 0x3b1   :  { %v4920_v33 = vpop.f32.mrf.mxu0 }
 0x3b2   :  { %v4921_v34 = vadd.f32 %v4920_v33, %v4880_v4  ;;  %v4961_v14 = vpop.f32.mrf.mxu1 }
 0x3b3   :  { %v4922_v19 = vpop.f32.mrf.mxu0 }
 0x3b4   :  { %v4962_v35 = vadd.f32 %v4961_v14, %v4921_v34  ;;  %v4963_v38 = vpop.f32.mrf.mxu1  ;;  %v4923_v26 = vadd.f32 %v4922_v19, %v4882_v20 }
 0x3b5   :  { %v4924_v39 = vpop.f32.mrf.mxu0 }
 0x3b6   :  { %v4965_v10 = vpop.f32.mrf.mxu1  ;;  %v4964_v59 = vadd.f32 %v4963_v38, %v4923_v26 }
 0x3b7   :  { %v4925_v45 = vpop.f32.mrf.mxu0 }
 0x3b8   :  { %v4966_v41 = vpop.f32.mrf.mxu1 }
 0x3f1   :  { %v5002_v0 = vpop.f32.mrf.mxu0 }
 0x3f2   :  { %v5003_v51 = vadd.f32 %v5002_v0, %v4962_v35  ;;  %v5043_v47 = vpop.f32.mrf.mxu1 }
 0x3f3   :  { %v5004_v52 = vpop.f32.mrf.mxu0 }
 0x3f4   :  { %v5044_v53 = vadd.f32 %v5043_v47, %v5003_v51  ;;  %v5005_v54 = vadd.f32 %v5004_v52, %v4964_v59  ;;  %v5045_v55 = vpop.f32.mrf.mxu1 }
 0x3f5   :  { %v5006_v48 = vpop.f32.mrf.mxu0 }
 0x3f6   :  { %v5046_v43 = vadd.f32 %v5045_v55, %v5005_v54  ;;  %v5047_v60 = vpop.f32.mrf.mxu1  ;;  %v5052_v1 = vmax.f32 %v5044_v53, 0.0 }
 0x3f7   :  { %v5007_v56 = vpop.f32.mrf.mxu0 }
 0x3f8   :  { %v5053_v49 = vmax.f32 %v5046_v43, 0.0  ;;  %v5048_v5 = vpop.f32.mrf.mxu1  ;;  %v5056_v58 = vpack.c.bf16 %v5052_v1, %v5052_v1 }
 0x3fa   :  { %v5057_v57 = vpack.c.bf16 %v5053_v49, %v5053_v49 }
 0x3fc   :  { %5393 = vmatprep.mubr.bf16.mxu1 %v5057_v57 }
 0x3fd   :  { %5394 = vmatmul.mubr.bf16.vlgmr.msra.gmra.mxu1 %v5056_v58 }
 0x3fe   :  { %6446 = vmatprep.mubr.msk.bf16.mxu1 %vm7579_vm2, %v7578_v25  ;;  %6431 = vmatpush3.bf16.msra.mxu1 %v7294_v37 }
 0x3ff   :  { %6432 = vmatprep.subr.bf16.mxu1 %v7578_v25 }
 0x402   :  { %6433 = vmatpush3.bf16.msra.mxu1 %v7295_v40 }
 0x403   :  { %6434 = vmatprep.subr.bf16.mxu1 %v7578_v25 }
 0x406   :  { %6435 = vmatpush3.bf16.msra.mxu1 %v7296_v8 }
 0x407   :  { %6436 = vmatprep.subr.bf16.mxu1 %v7578_v25 }
 0x40a   :  { %6437 = vmatpush3.bf16.msra.mxu1 %v7297_v17 }
 0x40b   :  { %6438 = vmatprep.subr.bf16.mxu1 %v7578_v25 }
 0x40e   :  { %6439 = vmatpush3.bf16.msra.mxu1 %v7298_v29 }
 0x40f   :  { %6440 = vmatprep.subr.bf16.mxu1 %v7578_v25 }
 0x411   :  { %v6364_v44 = vpop.f32.mrf.mxu0 }
 0x412   :  { %6441 = vmatpush3.bf16.msra.mxu1 %v7299_v2 }
 0x413   :  { %v6365_v61 = vpop.f32.mrf.mxu0  ;;  %6442 = vmatprep.subr.bf16.mxu1 %v7578_v25 }
 0x414   :  { %v6366_v62 = vadd.f32 %v6365_v61, %v6364_v44 }
 0x415   :  { %v6367_v63 = vpop.f32.mrf.mxu0 }
 0x416   :  { %v5356_v18 = vadd.f32 %v6366_v62, %v6297_v9  ;;  %6443 = vmatpush3.bf16.msra.mxu1 %v7300_v22 }
 0x417   :  { %v6368_v46 = vpop.f32.mrf.mxu0  ;;  %6444 = vmatprep.subr.bf16.mxu1 %v7578_v25 }
 0x41a   :  { %6445 = vmatpush3.bf16.msra.mxu1 %v7301_v21 }
 0x4bd   :  { %v6386_v30 = vpop.f32.mrf.mxu1 }
 0x4bf   :  { %v6387_v3 = vpop.f32.mrf.mxu1 }
 0x4c0   :  { %v6388_v4 = vadd.f32 %v6387_v3, %v6386_v30 }
 0x4c1   :  { %v6389_v6 = vpop.f32.mrf.mxu1 }
 0x4c2   :  { %v5396_v24 = vadd.f32 %v6388_v4, %v5356_v18 }
 0x4c3   :  { %v6390_v36 = vpop.f32.mrf.mxu1 }
 0x4c4   :  { %v5401_v15 = vmax.f32 %v5396_v24, 0.0 }
 0x4c6   :  { %v5402_v20 = vpack.c.bf16 %v5401_v15, %v5401_v15 }
 0x4c8   :  { %6427 = vmatmul.mubr.bf16.vlgmr.msra.gmra.mxu0 %v5402_v20 }
 0x588   :  { %v5508_v28 = vpop.f32.mrf.mxu0 }
 0x589   :  { %v5509_v23 = vadd.f32 %v6330_v7, %v5508_v28 }
 0x58a   :  { %v6428_v50 = vpop.f32.mrf.mxu0 }
 0x58b   :  { %v5514_v13 = vmax.f32 %v5509_v23, 0.0 }
 0x58c   :  { %v5511_v31 = vpop.f32.mrf.mxu0 }
 0x58d   :  { %v5515_v11 = vpack.c.bf16 %v5514_v13, %v5514_v13 }
 0x58e   :  { %v6429_v16 = vpop.f32.mrf.mxu0 }
 0x58f   :  { %6447 = vmatmul.mubr.bf16.vlgmr.msra.gmra.mxu1 %v5515_v11 }
 0x64f   :  { %v5621_v33 = vpop.f32.mrf.mxu1 }
 0x650   :  { %v5622_v34 = vadd.f32 %v6339_v32, %v5621_v33 }
 0x651   :  { %v6448_v14 = vpop.f32.mrf.mxu1 }
 0x652   :  { %5627 = vmax.xlane.f32.xlu0 %v5622_v34 }
 0x653   :  { %v5624_v19 = vpop.f32.mrf.mxu1 }
 0x655   :  { %v6449_v35 = vpop.f32.mrf.mxu1 }
 0x6db   :  { %v5628_v38 = vpop.xlane.xlu0 %5627 }
 0x6dc   :  { %v5629_v25 = vsub.f32 %v5622_v34, %v5628_v38 }
 0x6de   :  { %v5630_v39 = vmul.f32 1.442695, %v5629_v25 }
 0x6e0   :  { %7302 = vpow2.f32 %v5630_v39 }
 0x6ed   :  { %v7303_v10 = vpop.eup %7302 }
 0x6ee   :  { %5632 = vadd.xlane.f32.xlu0 %v7303_v10 }
 0x777   :  { %v5633_v45 = vpop.xlane.xlu0 %5632 }
 0x778   :  { %7304 = vrcp.f32 %v5633_v45 }
 0x785   :  { %v7305_v41 = vpop.eup %7304 }
 0x786   :  { %v5635_v26 = vmul.f32 %v7305_v41, %v7303_v10 }
 0x788   :  { %5636 = vst [vmem:[#allocation20] sm:$0xff] %v5635_v26 }
 0x789   :  { %7538 = shalt.err (!%p7535_p3)
}
 0x78a   :  { %5646 = dma.vmem_to_hbm [thread:$0]  %s5644_s10, 128, %s7936_s11, [#allocation4]  }
 0x78b   :  { %7559 = dma.done.wait [#allocation4], 128  }
 0x78c   :  { %7560 = vsyncadd [#allocation4], 4294967168 }
 0x78d   :  { %5650 = vsyncpa [#allocation3], 1 }
 0x78e   :  { %5651 = vsyncpa [#allocation6], 1 }
 0x78f   :  { %5652 = vsyncpa [#allocation9], 1 }
 0x790   :  { %5653 = vsyncpa [#allocation12], 1 }
 0x791   :  { %5654 = vsyncpa [#allocation15], 1 }
 0x792   :  { %5655 = vsyncpa [#allocation18], 1 }
 0x793   :  { %5656 = vsyncpa [#allocation4], 1 }

</bundles_post_ra>
